<compile_context>
chip_gen: v7x
topology: tpu7x:2x2x1
jax: 0.10.0
libtpu: 0.0.40
codegen_flags: <defaults>
</compile_context>

<pallas_src>
import functools

import jax
import jax.numpy as jnp
import numpy as np
from jax.experimental import pallas as pl
from jax.experimental.pallas import tpu as pltpu

MC_SAMPLES = 50
BN_EPS = 1e-5
_LANE = 128          # hidden dim is zero-padded up to a full lane tile


def _round_up(n, m):
    return ((n + m - 1) // m) * m


def _num_chunks_for_device():
    """2 chunks (one per TensorCore) on v7x, 1 on single-TC chips (v5e/v6e/...)."""
    try:
        kind = jax.devices()[0].device_kind.lower()
    except Exception:
        return 1
    return 2 if "v7" in kind else 1


def _mcdc_gate_kernel(x_ref, w1_ref, b1_ref, w2t_ref, b2_ref,
                      gamma_ref, beta_ref, mean_ref, var_ref,
                      bw1_ref, bb1_ref, bw2_ref, bb2_ref,
                      out_ref, w1rep_ref, b1rep_ref,
                      *, dc_scale, thresh, spc, hp):
    # -------- hoisted, sample-invariant prep --------
    x = x_ref[...]                                                     # (B, I)
    bn_scale = gamma_ref[...] * jax.lax.rsqrt(var_ref[...] + BN_EPS)   # (1, Hp)
    bn_bias = beta_ref[...] - mean_ref[...] * bn_scale                 # (1, Hp)
    # Fold the DropConnect scale p/(1-p) (and the BatchNorm scale for layer 1)
    # into pre-scaled copies; per-sample masking is then a single compare+select.
    w1s = w1_ref[...] * (bn_scale * dc_scale)                          # (I, Hp)
    b1s = b1_ref[...] * (bn_scale * dc_scale)                          # (1, Hp)
    w2s = w2t_ref[...] * dc_scale                                      # (O, Hp) transposed
    b2s = b2_ref[...] * dc_scale                                       # (1, O)

    # -------- hoisted, chunk-wide DropConnect mask application --------
    # Layer 1: build one lane-wide masked slab (I, spc*Hp) and its bias row
    # (1, spc*Hp) in VMEM scratch so the spc tiny matmuls fuse into a single wide
    # MXU call and the bias-add + ReLU become two wide vector ops.
    for s in range(spc):
        lo = s * hp
        keep_w = bw1_ref[:, lo:lo + hp].astype(jnp.int32) >= thresh    # int8 -> i32
        w1rep_ref[:, lo:lo + hp] = jnp.where(keep_w, w1s, 0.0)
        keep_b = bb1_ref[s:s + 1, :] >= thresh
        b1rep_ref[:, lo:lo + hp] = jnp.where(keep_b, b1s, 0.0) + bn_bias
    # Layer 2: masked weight / bias stacks for the whole chunk in one shot.
    w2m = jnp.where(bw2_ref[...] >= thresh, w2s[None, :, :], 0.0)      # (spc, O, Hp)
    b2m = jnp.where(bb2_ref[...] >= thresh, b2s, 0.0)                  # (spc, O)

    # -------- one wide layer-1 matmul + BN bias + ReLU for all samples --------
    h_wide = jnp.dot(x, w1rep_ref[...], preferred_element_type=jnp.float32)
    h_wide = jnp.maximum(h_wide + b1rep_ref[...], 0.0)                 # (B, spc*Hp)

    # -------- per-sample tail, fully unrolled: matmul2 + softmax only --------
    acc = jnp.zeros(out_ref.shape, jnp.float32)
    for s in range(spc):
        lo = s * hp
        h = h_wide[:, lo:lo + hp]                                      # (B, Hp)
        # logits = h @ w2m[s].T -- contraction on both minor dims; (O=8 x Hp=128)
        # is one vreg, so any transpose Mosaic inserts is a single free XLU op.
        logits = jax.lax.dot_general(
            h, w2m[s], dimension_numbers=(((1,), (1,)), ((), ())),
            preferred_element_type=jnp.float32) + b2m[s:s + 1, :]      # (B, O)
        m = jnp.max(logits, axis=-1, keepdims=True)
        e = jnp.exp(logits - m)
        d = jnp.sum(e, axis=-1, keepdims=True)
        # EUP approximate reciprocal + one Newton step: divide stays off the VALU
        # slot while remaining ~exact for the softmax normalisation.
        r = pl.reciprocal(d, approx=True)
        r = r * (2.0 - d * r)
        acc = acc + e * r
    out_ref[...] = acc * (1.0 / MC_SAMPLES)      # fold the MC mean into the store


def _draw_dropconnect_bits(key, in_feat, hidden_p, out_feat):
    """Per-sample 8-bit uniform values in [-128, 127] for every DropConnect mask."""
    kw1, kb1, kw2, kb2 = jax.random.split(key, 4)

    def draw(k, shape):
        return (jax.random.bits(k, shape, dtype=jnp.uint32) >> 24).astype(jnp.int32) - 128

    return (draw(kw1, (MC_SAMPLES, in_feat, hidden_p)),     # W1 masks
            draw(kb1, (MC_SAMPLES, hidden_p)),              # b1 masks
            draw(kw2, (MC_SAMPLES, out_feat, hidden_p)),    # W2 masks (transposed layout)
            draw(kb2, (MC_SAMPLES, out_feat)))              # b2 masks


def _pack_bits_for_kernel(raw_bits, num_chunks):
    bw1, bb1, bw2, bb2 = raw_bits
    s_total, in_feat, hp = bw1.shape
    out_feat = bw2.shape[1]
    spc = s_total // num_chunks
    # W1 bits in lane-wide layout (chunk, I, spc*Hp): the masked W1 slab is then
    # built from 128-lane-aligned slices.  int8 cuts the dominant HBM bit stream 4x.
    bw1_k = (bw1.reshape(num_chunks, spc, in_feat, hp)
                 .transpose(0, 2, 1, 3)
                 .reshape(num_chunks, in_feat, spc * hp)
                 .astype(jnp.int8))
    bb1_k = bb1.reshape(num_chunks, spc, hp)                 # int32, sublane-dense
    bw2_k = bw2.reshape(num_chunks, spc, out_feat, hp)       # int32, (8,128) tiles
    bb2_k = bb2.reshape(num_chunks, spc, out_feat)           # int32
    return bw1_k, bb1_k, bw2_k, bb2_k


def simple_mcdc_gate(x, w1, b1, w2, b2, bn_gamma, bn_beta, bn_mean, bn_var,
                     *, p, key, num_chunks=None):
    """Eval-mode forward of SimpleMCDropConnectGate (MC-averaged gate probabilities)."""
    B, in_feat = x.shape
    hidden = w1.shape[1]
    out_feat = w2.shape[1]
    assert 0.0 <= float(p) < 1.0
    if num_chunks is None:
        num_chunks = _num_chunks_for_device()
    assert MC_SAMPLES % num_chunks == 0
    spc = MC_SAMPLES // num_chunks
    hp = _round_up(hidden, _LANE)
    pad = hp - hidden

    # Zero-pad the hidden dim to a full 128-lane tile.  Padded lanes come out of
    # layer 1 exactly zero (zero W1 cols, zero bias, zero BN scale/bias) and hit
    # zero-padded W2 rows, so the softmax over the logical experts is unaffected.
    w1p = jnp.pad(w1, ((0, 0), (0, pad)))
    b1p = jnp.pad(b1, (0, pad)).reshape(1, hp)
    w2tp = jnp.pad(w2.T, ((0, 0), (0, pad)))                 # (O, Hp), transposed
    b2r = b2.reshape(1, out_feat)
    gammap = jnp.pad(bn_gamma, (0, pad)).reshape(1, hp)
    betap = jnp.pad(bn_beta, (0, pad)).reshape(1, hp)
    meanp = jnp.pad(bn_mean, (0, pad)).reshape(1, hp)
    varp = jnp.pad(bn_var, (0, pad), constant_values=1.0).reshape(1, hp)

    raw_bits = _draw_dropconnect_bits(key, in_feat, hp, out_feat)
    bw1, bb1, bw2, bb2 = _pack_bits_for_kernel(raw_bits, num_chunks)

    kernel = functools.partial(
        _mcdc_gate_kernel,
        dc_scale=float(p) / (1.0 - float(p)),
        thresh=int(round(float(p) * 256.0)) - 128,     # 8-bit keep threshold
        spc=spc, hp=hp)

    whole = lambda c: (0, 0)
    partial_means = pl.pallas_call(
        kernel,
        out_shape=jax.ShapeDtypeStruct((num_chunks, B, out_feat), jnp.float32),
        grid=(num_chunks,),
        in_specs=[
            pl.BlockSpec((B, in_feat), whole),                            # x
            pl.BlockSpec((in_feat, hp), whole),                           # W1 (padded)
            pl.BlockSpec((1, hp), whole),                                 # b1
            pl.BlockSpec((out_feat, hp), whole),                          # W2^T (padded)
            pl.BlockSpec((1, out_feat), whole),                           # b2
            pl.BlockSpec((1, hp), whole),                                 # gamma
            pl.BlockSpec((1, hp), whole),                                 # beta
            pl.BlockSpec((1, hp), whole),                                 # running_mean
            pl.BlockSpec((1, hp), whole),                                 # running_var
            pl.BlockSpec((None, in_feat, spc * hp), lambda c: (c, 0, 0)),    # W1 bits (i8)
            pl.BlockSpec((None, spc, hp), lambda c: (c, 0, 0)),              # b1 bits
            pl.BlockSpec((None, spc, out_feat, hp), lambda c: (c, 0, 0, 0)), # W2 bits
            pl.BlockSpec((None, spc, out_feat), lambda c: (c, 0, 0)),        # b2 bits
        ],
        out_specs=pl.BlockSpec((None, B, out_feat), lambda c: (c, 0, 0)),
        scratch_shapes=[pltpu.VMEM((in_feat, spc * hp), jnp.float32),     # wide W1 slab
                        pltpu.VMEM((1, spc * hp), jnp.float32)],          # wide bias row
        compiler_params=pltpu.CompilerParams(dimension_semantics=("parallel",)),
    )(x, w1p, b1p, w2tp, b2r, gammap, betap, meanp, varp, bw1, bb1, bw2, bb2)

    # Each chunk already carries the 1/MC_SAMPLES factor; summing chunks -> mean.
    return jnp.sum(partial_means, axis=0)


def _reference(x, w1, b1, w2, b2, gamma, beta, mean, var, raw_bits, p):
    """Pure-JAX transcription of the PyTorch eval forward, using identical mask bits."""
    bw1, bb1, bw2, bb2 = raw_bits
    hidden = w1.shape[1]
    scale = p / (1.0 - p)
    thr = int(round(p * 256.0)) - 128
    hprec = jax.lax.Precision.HIGHEST
    preds = []
    for s in range(MC_SAMPLES):
        w1d = jnp.where(bw1[s, :, :hidden] >= thr, w1 * scale, 0.0)
        b1d = jnp.where(bb1[s, :hidden] >= thr, b1 * scale, 0.0)
        h = jnp.dot(x, w1d, precision=hprec) + b1d
        h = (h - mean) / jnp.sqrt(var + BN_EPS) * gamma + beta
        h = jnp.maximum(h, 0.0)
        w2d = jnp.where(jnp.transpose(bw2[s, :, :hidden]) >= thr, w2 * scale, 0.0)
        b2d = jnp.where(bb2[s] >= thr, b2 * scale, 0.0)
        preds.append(jax.nn.softmax(jnp.dot(h, w2d, precision=hprec) + b2d, axis=-1))
    return jnp.mean(jnp.stack(preds, axis=0), axis=0)


if __name__ == "__main__":
    # Shapes consistent with the module: batch=2, in_feat=32, hidden=100 (fixed by the
    # module), out_feat=8 experts, drop-connect p=0.5.
    B, IN_FEAT, HIDDEN, OUT_FEAT = 2, 32, 100, 8
    P = 0.5

    root = jax.random.PRNGKey(0)
    kx, kw1, kb1, kw2, kb2, kmask = jax.random.split(root, 6)

    # Parameter init mirroring MCDC_FC.__init__ (xavier_normal W, normal bias);
    # SimpleMCDropConnectGate's .apply(init_weights) only touches nn.Linear -> no-op.
    x = jax.random.normal(kx, (B, IN_FEAT), dtype=jnp.float32)
    w1 = jax.random.normal(kw1, (IN_FEAT, HIDDEN), dtype=jnp.float32) * np.sqrt(
        2.0 / (IN_FEAT + HIDDEN))
    b1 = jax.random.normal(kb1, (HIDDEN,), dtype=jnp.float32)
    w2 = jax.random.normal(kw2, (HIDDEN, OUT_FEAT), dtype=jnp.float32) * np.sqrt(
        2.0 / (HIDDEN + OUT_FEAT))
    b2 = jax.random.normal(kb2, (OUT_FEAT,), dtype=jnp.float32)

    # Freshly-initialised BatchNorm1d in eval mode: mean=0, var=1, gamma=1, beta=0.
    gamma = jnp.ones((HIDDEN,), jnp.float32)
    beta = jnp.zeros((HIDDEN,), jnp.float32)
    r_mean = jnp.zeros((HIDDEN,), jnp.float32)
    r_var = jnp.ones((HIDDEN,), jnp.float32)

    out = simple_mcdc_gate(x, w1, b1, w2, b2, gamma, beta, r_mean, r_var, p=P, key=kmask)
    out = jax.block_until_ready(out)
    assert out.shape == (B, OUT_FEAT)

    # Averaged softmax outputs must still sum to 1 per row.
    row_sums = np.asarray(jnp.sum(out, axis=-1))
    assert np.allclose(row_sums, 1.0, atol=1e-3), row_sums

    # Cross-check against a pure-JAX reference using identical DropConnect bits.
    hp = _round_up(HIDDEN, _LANE)
    raw_bits = _draw_dropconnect_bits(kmask, IN_FEAT, hp, OUT_FEAT)
    ref = np.asarray(_reference(x, w1, b1, w2, b2, gamma, beta, r_mean, r_var, raw_bits, P))
    err = float(np.max(np.abs(np.asarray(out) - ref)))
    assert np.allclose(np.asarray(out), ref, atol=2e-3), err

    print("KERNEL_OK")
</pallas_src>

<mosaic_0001>
module attributes {stable_mosaic.version = 11 : i64} {
  func.func @_mcdc_gate_kernel(%arg0: i32, %arg1: memref<2x32xf32, #tpu.memory_space<vmem>>, %arg2: memref<32x128xf32, #tpu.memory_space<vmem>>, %arg3: memref<1x128xf32, #tpu.memory_space<vmem>>, %arg4: memref<8x128xf32, #tpu.memory_space<vmem>>, %arg5: memref<1x8xf32, #tpu.memory_space<vmem>>, %arg6: memref<1x128xf32, #tpu.memory_space<vmem>>, %arg7: memref<1x128xf32, #tpu.memory_space<vmem>>, %arg8: memref<1x128xf32, #tpu.memory_space<vmem>>, %arg9: memref<1x128xf32, #tpu.memory_space<vmem>>, %arg10: memref<1x32x6400xi8, #tpu.memory_space<vmem>>, %arg11: memref<1x50x128xi32, #tpu.memory_space<vmem>>, %arg12: memref<1x50x8x128xi32, #tpu.memory_space<vmem>>, %arg13: memref<1x50x8xi32, #tpu.memory_space<vmem>>, %arg14: memref<1x2x8xf32, #tpu.memory_space<vmem>>, %arg15: memref<32x6400xf32, #tpu.memory_space<vmem>>, %arg16: memref<1x6400xf32, #tpu.memory_space<vmem>>) attributes {dimension_semantics = [#tpu.dimension_semantics<parallel>], iteration_bounds = array<i64: 1>, scalar_prefetch = 0 : i64, scratch_operands = 2 : i64, tpu.core_type = #tpu.core_type<tc>, window_params = [{pipeline_mode = #tpu.pipeline_mode<synchronous>, transform_indices = @transform_0, window_bounds = array<i64: 2, 32>}, {pipeline_mode = #tpu.pipeline_mode<synchronous>, transform_indices = @transform_1, window_bounds = array<i64: 32, 128>}, {pipeline_mode = #tpu.pipeline_mode<synchronous>, transform_indices = @transform_2, window_bounds = array<i64: 1, 128>}, {pipeline_mode = #tpu.pipeline_mode<synchronous>, transform_indices = @transform_3, window_bounds = array<i64: 8, 128>}, {pipeline_mode = #tpu.pipeline_mode<synchronous>, transform_indices = @transform_4, window_bounds = array<i64: 1, 8>}, {pipeline_mode = #tpu.pipeline_mode<synchronous>, transform_indices = @transform_5, window_bounds = array<i64: 1, 128>}, {pipeline_mode = #tpu.pipeline_mode<synchronous>, transform_indices = @transform_6, window_bounds = array<i64: 1, 128>}, {pipeline_mode = #tpu.pipeline_mode<synchronous>, transform_indices = @transform_7, window_bounds = array<i64: 1, 128>}, {pipeline_mode = #tpu.pipeline_mode<synchronous>, transform_indices = @transform_8, window_bounds = array<i64: 1, 128>}, {transform_indices = @transform_9, window_bounds = array<i64: 1, 32, 6400>}, {transform_indices = @transform_10, window_bounds = array<i64: 1, 50, 128>}, {transform_indices = @transform_11, window_bounds = array<i64: 1, 50, 8, 128>}, {transform_indices = @transform_12, window_bounds = array<i64: 1, 50, 8>}, {transform_indices = @transform_13, window_bounds = array<i64: 1, 2, 8>}]} {
    %c0 = arith.constant 0 : index
    %c0_0 = arith.constant 0 : index
    %0 = vector.load %arg1[%c0, %c0_0] : memref<2x32xf32, #tpu.memory_space<vmem>>, vector<2x32xf32>
    %c0_1 = arith.constant 0 : index
    %c0_2 = arith.constant 0 : index
    %1 = vector.load %arg6[%c0_1, %c0_2] : memref<1x128xf32, #tpu.memory_space<vmem>>, vector<1x128xf32>
    %c0_3 = arith.constant 0 : index
    %c0_4 = arith.constant 0 : index
    %2 = vector.load %arg9[%c0_3, %c0_4] : memref<1x128xf32, #tpu.memory_space<vmem>>, vector<1x128xf32>
    %cst = arith.constant 9.99999974E-6 : f32
    %3 = vector.broadcast %cst : f32 to vector<1x128xf32>
    %4 = arith.addf %2, %3 : vector<1x128xf32>
    %5 = math.rsqrt %4 : vector<1x128xf32>
    %6 = arith.mulf %1, %5 : vector<1x128xf32>
    %c0_5 = arith.constant 0 : index
    %c0_6 = arith.constant 0 : index
    %7 = vector.load %arg7[%c0_5, %c0_6] : memref<1x128xf32, #tpu.memory_space<vmem>>, vector<1x128xf32>
    %c0_7 = arith.constant 0 : index
    %c0_8 = arith.constant 0 : index
    %8 = vector.load %arg8[%c0_7, %c0_8] : memref<1x128xf32, #tpu.memory_space<vmem>>, vector<1x128xf32>
    %9 = arith.mulf %8, %6 : vector<1x128xf32>
    %10 = arith.subf %7, %9 : vector<1x128xf32>
    %c0_9 = arith.constant 0 : index
    %c0_10 = arith.constant 0 : index
    %11 = vector.load %arg2[%c0_9, %c0_10] : memref<32x128xf32, #tpu.memory_space<vmem>>, vector<32x128xf32>
    %cst_11 = arith.constant 1.000000e+00 : f32
    %12 = vector.broadcast %cst_11 : f32 to vector<1x128xf32>
    %13 = arith.mulf %6, %12 : vector<1x128xf32>
    %14 = vector.broadcast %13 : vector<1x128xf32> to vector<32x128xf32>
    %15 = arith.mulf %11, %14 : vector<32x128xf32>
    %c0_12 = arith.constant 0 : index
    %c0_13 = arith.constant 0 : index
    %16 = vector.load %arg3[%c0_12, %c0_13] : memref<1x128xf32, #tpu.memory_space<vmem>>, vector<1x128xf32>
    %cst_14 = arith.constant 1.000000e+00 : f32
    %17 = vector.broadcast %cst_14 : f32 to vector<1x128xf32>
    %18 = arith.mulf %6, %17 : vector<1x128xf32>
    %19 = arith.mulf %16, %18 : vector<1x128xf32>
    %c0_15 = arith.constant 0 : index
    %c0_16 = arith.constant 0 : index
    %20 = vector.load %arg4[%c0_15, %c0_16] : memref<8x128xf32, #tpu.memory_space<vmem>>, vector<8x128xf32>
    %cst_17 = arith.constant 1.000000e+00 : f32
    %21 = vector.broadcast %cst_17 : f32 to vector<8x128xf32>
    %22 = arith.mulf %20, %21 : vector<8x128xf32>
    %c0_18 = arith.constant 0 : index
    %c0_19 = arith.constant 0 : index
    %23 = vector.load %arg5[%c0_18, %c0_19] : memref<1x8xf32, #tpu.memory_space<vmem>>, vector<1x8xf32>
    %cst_20 = arith.constant 1.000000e+00 : f32
    %24 = vector.broadcast %cst_20 : f32 to vector<1x8xf32>
    %25 = arith.mulf %23, %24 : vector<1x8xf32>
    %c0_21 = arith.constant 0 : index
    %c0_22 = arith.constant 0 : index
    %c0_23 = arith.constant 0 : index
    %26 = vector.load %arg10[%c0_21, %c0_22, %c0_23] : memref<1x32x6400xi8, #tpu.memory_space<vmem>>, vector<1x32x128xi8>
    %27 = vector.shape_cast %26 : vector<1x32x128xi8> to vector<32x128xi8>
    %28 = arith.extsi %27 : vector<32x128xi8> to vector<32x128xi32>
    %c0_i32 = arith.constant 0 : i32
    %29 = vector.broadcast %c0_i32 : i32 to vector<32x128xi32>
    %30 = arith.cmpi sge, %28, %29 : vector<32x128xi32>
    %cst_24 = arith.constant 0.000000e+00 : f32
    %31 = vector.broadcast %cst_24 : f32 to vector<32x128xf32>
    %32 = arith.select %30, %15, %31 : vector<32x128xi1>, vector<32x128xf32>
    %c0_25 = arith.constant 0 : index
    %c0_26 = arith.constant 0 : index
    %33 = vector.load %arg15[%c0_25, %c0_26] : memref<32x6400xf32, #tpu.memory_space<vmem>>, vector<32x128xf32>
    tpu.vector_store %arg15[%c0_25, %c0_26], %32 {strides = array<i32>} : memref<32x6400xf32, #tpu.memory_space<vmem>>, vector<32x128xf32>,
    %c0_27 = arith.constant 0 : index
    %c0_28 = arith.constant 0 : index
    %c0_29 = arith.constant 0 : index
    %34 = vector.load %arg11[%c0_27, %c0_28, %c0_29] : memref<1x50x128xi32, #tpu.memory_space<vmem>>, vector<1x1x128xi32>
    %35 = vector.shape_cast %34 : vector<1x1x128xi32> to vector<1x128xi32>
    %c0_i32_30 = arith.constant 0 : i32
    %36 = vector.broadcast %c0_i32_30 : i32 to vector<1x128xi32>
    %37 = arith.cmpi sge, %35, %36 : vector<1x128xi32>
    %cst_31 = arith.constant 0.000000e+00 : f32
    %38 = vector.broadcast %cst_31 : f32 to vector<1x128xf32>
    %39 = arith.select %37, %19, %38 : vector<1x128xi1>, vector<1x128xf32>
    %40 = arith.addf %39, %10 : vector<1x128xf32>
    %c0_32 = arith.constant 0 : index
    %c0_33 = arith.constant 0 : index
    %41 = vector.load %arg16[%c0_32, %c0_33] : memref<1x6400xf32, #tpu.memory_space<vmem>>, vector<1x128xf32>
    tpu.vector_store %arg16[%c0_32, %c0_33], %40 {strides = array<i32>} : memref<1x6400xf32, #tpu.memory_space<vmem>>, vector<1x128xf32>,
    %c0_34 = arith.constant 0 : index
    %c0_35 = arith.constant 0 : index
    %c128 = arith.constant 128 : index
    %42 = vector.load %arg10[%c0_34, %c0_35, %c128] : memref<1x32x6400xi8, #tpu.memory_space<vmem>>, vector<1x32x128xi8>
    %43 = vector.shape_cast %42 : vector<1x32x128xi8> to vector<32x128xi8>
    %44 = arith.extsi %43 : vector<32x128xi8> to vector<32x128xi32>
    %c0_i32_36 = arith.constant 0 : i32
    %45 = vector.broadcast %c0_i32_36 : i32 to vector<32x128xi32>
    %46 = arith.cmpi sge, %44, %45 : vector<32x128xi32>
    %cst_37 = arith.constant 0.000000e+00 : f32
    %47 = vector.broadcast %cst_37 : f32 to vector<32x128xf32>
    %48 = arith.select %46, %15, %47 : vector<32x128xi1>, vector<32x128xf32>
    %c0_38 = arith.constant 0 : index
    %c128_39 = arith.constant 128 : index
    %49 = vector.load %arg15[%c0_38, %c128_39] : memref<32x6400xf32, #tpu.memory_space<vmem>>, vector<32x128xf32>
    tpu.vector_store %arg15[%c0_38, %c128_39], %48 {strides = array<i32>} : memref<32x6400xf32, #tpu.memory_space<vmem>>, vector<32x128xf32>,
    %c0_40 = arith.constant 0 : index
    %c1 = arith.constant 1 : index
    %c0_41 = arith.constant 0 : index
    %50 = vector.load %arg11[%c0_40, %c1, %c0_41] : memref<1x50x128xi32, #tpu.memory_space<vmem>>, vector<1x1x128xi32>
    %51 = vector.shape_cast %50 : vector<1x1x128xi32> to vector<1x128xi32>
    %c0_i32_42 = arith.constant 0 : i32
    %52 = vector.broadcast %c0_i32_42 : i32 to vector<1x128xi32>
    %53 = arith.cmpi sge, %51, %52 : vector<1x128xi32>
    %cst_43 = arith.constant 0.000000e+00 : f32
    %54 = vector.broadcast %cst_43 : f32 to vector<1x128xf32>
    %55 = arith.select %53, %19, %54 : vector<1x128xi1>, vector<1x128xf32>
    %56 = arith.addf %55, %10 : vector<1x128xf32>
    %c0_44 = arith.constant 0 : index
    %c128_45 = arith.constant 128 : index
    %57 = vector.load %arg16[%c0_44, %c128_45] : memref<1x6400xf32, #tpu.memory_space<vmem>>, vector<1x128xf32>
    tpu.vector_store %arg16[%c0_44, %c128_45], %56 {strides = array<i32>} : memref<1x6400xf32, #tpu.memory_space<vmem>>, vector<1x128xf32>,
    %c0_46 = arith.constant 0 : index
    %c0_47 = arith.constant 0 : index
    %c256 = arith.constant 256 : index
    %58 = vector.load %arg10[%c0_46, %c0_47, %c256] : memref<1x32x6400xi8, #tpu.memory_space<vmem>>, vector<1x32x128xi8>
    %59 = vector.shape_cast %58 : vector<1x32x128xi8> to vector<32x128xi8>
    %60 = arith.extsi %59 : vector<32x128xi8> to vector<32x128xi32>
    %c0_i32_48 = arith.constant 0 : i32
    %61 = vector.broadcast %c0_i32_48 : i32 to vector<32x128xi32>
    %62 = arith.cmpi sge, %60, %61 : vector<32x128xi32>
    %cst_49 = arith.constant 0.000000e+00 : f32
    %63 = vector.broadcast %cst_49 : f32 to vector<32x128xf32>
    %64 = arith.select %62, %15, %63 : vector<32x128xi1>, vector<32x128xf32>
    %c0_50 = arith.constant 0 : index
    %c256_51 = arith.constant 256 : index
    %65 = vector.load %arg15[%c0_50, %c256_51] : memref<32x6400xf32, #tpu.memory_space<vmem>>, vector<32x128xf32>
    tpu.vector_store %arg15[%c0_50, %c256_51], %64 {strides = array<i32>} : memref<32x6400xf32, #tpu.memory_space<vmem>>, vector<32x128xf32>,
    %c0_52 = arith.constant 0 : index
    %c2 = arith.constant 2 : index
    %c0_53 = arith.constant 0 : index
    %66 = vector.load %arg11[%c0_52, %c2, %c0_53] : memref<1x50x128xi32, #tpu.memory_space<vmem>>, vector<1x1x128xi32>
    %67 = vector.shape_cast %66 : vector<1x1x128xi32> to vector<1x128xi32>
    %c0_i32_54 = arith.constant 0 : i32
    %68 = vector.broadcast %c0_i32_54 : i32 to vector<1x128xi32>
    %69 = arith.cmpi sge, %67, %68 : vector<1x128xi32>
    %cst_55 = arith.constant 0.000000e+00 : f32
    %70 = vector.broadcast %cst_55 : f32 to vector<1x128xf32>
    %71 = arith.select %69, %19, %70 : vector<1x128xi1>, vector<1x128xf32>
    %72 = arith.addf %71, %10 : vector<1x128xf32>
    %c0_56 = arith.constant 0 : index
    %c256_57 = arith.constant 256 : index
    %73 = vector.load %arg16[%c0_56, %c256_57] : memref<1x6400xf32, #tpu.memory_space<vmem>>, vector<1x128xf32>
    tpu.vector_store %arg16[%c0_56, %c256_57], %72 {strides = array<i32>} : memref<1x6400xf32, #tpu.memory_space<vmem>>, vector<1x128xf32>,
    %c0_58 = arith.constant 0 : index
    %c0_59 = arith.constant 0 : index
    %c384 = arith.constant 384 : index
    %74 = vector.load %arg10[%c0_58, %c0_59, %c384] : memref<1x32x6400xi8, #tpu.memory_space<vmem>>, vector<1x32x128xi8>
    %75 = vector.shape_cast %74 : vector<1x32x128xi8> to vector<32x128xi8>
    %76 = arith.extsi %75 : vector<32x128xi8> to vector<32x128xi32>
    %c0_i32_60 = arith.constant 0 : i32
    %77 = vector.broadcast %c0_i32_60 : i32 to vector<32x128xi32>
    %78 = arith.cmpi sge, %76, %77 : vector<32x128xi32>
    %cst_61 = arith.constant 0.000000e+00 : f32
    %79 = vector.broadcast %cst_61 : f32 to vector<32x128xf32>
    %80 = arith.select %78, %15, %79 : vector<32x128xi1>, vector<32x128xf32>
    %c0_62 = arith.constant 0 : index
    %c384_63 = arith.constant 384 : index
    %81 = vector.load %arg15[%c0_62, %c384_63] : memref<32x6400xf32, #tpu.memory_space<vmem>>, vector<32x128xf32>
    tpu.vector_store %arg15[%c0_62, %c384_63], %80 {strides = array<i32>} : memref<32x6400xf32, #tpu.memory_space<vmem>>, vector<32x128xf32>,
    %c0_64 = arith.constant 0 : index
    %c3 = arith.constant 3 : index
    %c0_65 = arith.constant 0 : index
    %82 = vector.load %arg11[%c0_64, %c3, %c0_65] : memref<1x50x128xi32, #tpu.memory_space<vmem>>, vector<1x1x128xi32>
    %83 = vector.shape_cast %82 : vector<1x1x128xi32> to vector<1x128xi32>
    %c0_i32_66 = arith.constant 0 : i32
    %84 = vector.broadcast %c0_i32_66 : i32 to vector<1x128xi32>
    %85 = arith.cmpi sge, %83, %84 : vector<1x128xi32>
    %cst_67 = arith.constant 0.000000e+00 : f32
    %86 = vector.broadcast %cst_67 : f32 to vector<1x128xf32>
    %87 = arith.select %85, %19, %86 : vector<1x128xi1>, vector<1x128xf32>
    %88 = arith.addf %87, %10 : vector<1x128xf32>
    %c0_68 = arith.constant 0 : index
    %c384_69 = arith.constant 384 : index
    %89 = vector.load %arg16[%c0_68, %c384_69] : memref<1x6400xf32, #tpu.memory_space<vmem>>, vector<1x128xf32>
    tpu.vector_store %arg16[%c0_68, %c384_69], %88 {strides = array<i32>} : memref<1x6400xf32, #tpu.memory_space<vmem>>, vector<1x128xf32>,
    %c0_70 = arith.constant 0 : index
    %c0_71 = arith.constant 0 : index
    %c512 = arith.constant 512 : index
    %90 = vector.load %arg10[%c0_70, %c0_71, %c512] : memref<1x32x6400xi8, #tpu.memory_space<vmem>>, vector<1x32x128xi8>
    %91 = vector.shape_cast %90 : vector<1x32x128xi8> to vector<32x128xi8>
    %92 = arith.extsi %91 : vector<32x128xi8> to vector<32x128xi32>
    %c0_i32_72 = arith.constant 0 : i32
    %93 = vector.broadcast %c0_i32_72 : i32 to vector<32x128xi32>
    %94 = arith.cmpi sge, %92, %93 : vector<32x128xi32>
    %cst_73 = arith.constant 0.000000e+00 : f32
    %95 = vector.broadcast %cst_73 : f32 to vector<32x128xf32>
    %96 = arith.select %94, %15, %95 : vector<32x128xi1>, vector<32x128xf32>
    %c0_74 = arith.constant 0 : index
    %c512_75 = arith.constant 512 : index
    %97 = vector.load %arg15[%c0_74, %c512_75] : memref<32x6400xf32, #tpu.memory_space<vmem>>, vector<32x128xf32>
    tpu.vector_store %arg15[%c0_74, %c512_75], %96 {strides = array<i32>} : memref<32x6400xf32, #tpu.memory_space<vmem>>, vector<32x128xf32>,
    %c0_76 = arith.constant 0 : index
    %c4 = arith.constant 4 : index
    %c0_77 = arith.constant 0 : index
    %98 = vector.load %arg11[%c0_76, %c4, %c0_77] : memref<1x50x128xi32, #tpu.memory_space<vmem>>, vector<1x1x128xi32>
    %99 = vector.shape_cast %98 : vector<1x1x128xi32> to vector<1x128xi32>
    %c0_i32_78 = arith.constant 0 : i32
    %100 = vector.broadcast %c0_i32_78 : i32 to vector<1x128xi32>
    %101 = arith.cmpi sge, %99, %100 : vector<1x128xi32>
    %cst_79 = arith.constant 0.000000e+00 : f32
    %102 = vector.broadcast %cst_79 : f32 to vector<1x128xf32>
    %103 = arith.select %101, %19, %102 : vector<1x128xi1>, vector<1x128xf32>
    %104 = arith.addf %103, %10 : vector<1x128xf32>
    %c0_80 = arith.constant 0 : index
    %c512_81 = arith.constant 512 : index
    %105 = vector.load %arg16[%c0_80, %c512_81] : memref<1x6400xf32, #tpu.memory_space<vmem>>, vector<1x128xf32>
    tpu.vector_store %arg16[%c0_80, %c512_81], %104 {strides = array<i32>} : memref<1x6400xf32, #tpu.memory_space<vmem>>, vector<1x128xf32>,
    %c0_82 = arith.constant 0 : index
    %c0_83 = arith.constant 0 : index
    %c640 = arith.constant 640 : index
    %106 = vector.load %arg10[%c0_82, %c0_83, %c640] : memref<1x32x6400xi8, #tpu.memory_space<vmem>>, vector<1x32x128xi8>
    %107 = vector.shape_cast %106 : vector<1x32x128xi8> to vector<32x128xi8>
    %108 = arith.extsi %107 : vector<32x128xi8> to vector<32x128xi32>
    %c0_i32_84 = arith.constant 0 : i32
    %109 = vector.broadcast %c0_i32_84 : i32 to vector<32x128xi32>
    %110 = arith.cmpi sge, %108, %109 : vector<32x128xi32>
    %cst_85 = arith.constant 0.000000e+00 : f32
    %111 = vector.broadcast %cst_85 : f32 to vector<32x128xf32>
    %112 = arith.select %110, %15, %111 : vector<32x128xi1>, vector<32x128xf32>
    %c0_86 = arith.constant 0 : index
    %c640_87 = arith.constant 640 : index
    %113 = vector.load %arg15[%c0_86, %c640_87] : memref<32x6400xf32, #tpu.memory_space<vmem>>, vector<32x128xf32>
    tpu.vector_store %arg15[%c0_86, %c640_87], %112 {strides = array<i32>} : memref<32x6400xf32, #tpu.memory_space<vmem>>, vector<32x128xf32>,
    %c0_88 = arith.constant 0 : index
    %c5 = arith.constant 5 : index
    %c0_89 = arith.constant 0 : index
    %114 = vector.load %arg11[%c0_88, %c5, %c0_89] : memref<1x50x128xi32, #tpu.memory_space<vmem>>, vector<1x1x128xi32>
    %115 = vector.shape_cast %114 : vector<1x1x128xi32> to vector<1x128xi32>
    %c0_i32_90 = arith.constant 0 : i32
    %116 = vector.broadcast %c0_i32_90 : i32 to vector<1x128xi32>
    %117 = arith.cmpi sge, %115, %116 : vector<1x128xi32>
    %cst_91 = arith.constant 0.000000e+00 : f32
    %118 = vector.broadcast %cst_91 : f32 to vector<1x128xf32>
    %119 = arith.select %117, %19, %118 : vector<1x128xi1>, vector<1x128xf32>
    %120 = arith.addf %119, %10 : vector<1x128xf32>
    %c0_92 = arith.constant 0 : index
    %c640_93 = arith.constant 640 : index
    %121 = vector.load %arg16[%c0_92, %c640_93] : memref<1x6400xf32, #tpu.memory_space<vmem>>, vector<1x128xf32>
    tpu.vector_store %arg16[%c0_92, %c640_93], %120 {strides = array<i32>} : memref<1x6400xf32, #tpu.memory_space<vmem>>, vector<1x128xf32>,
    %c0_94 = arith.constant 0 : index
    %c0_95 = arith.constant 0 : index
    %c768 = arith.constant 768 : index
    %122 = vector.load %arg10[%c0_94, %c0_95, %c768] : memref<1x32x6400xi8, #tpu.memory_space<vmem>>, vector<1x32x128xi8>
    %123 = vector.shape_cast %122 : vector<1x32x128xi8> to vector<32x128xi8>
    %124 = arith.extsi %123 : vector<32x128xi8> to vector<32x128xi32>
    %c0_i32_96 = arith.constant 0 : i32
    %125 = vector.broadcast %c0_i32_96 : i32 to vector<32x128xi32>
    %126 = arith.cmpi sge, %124, %125 : vector<32x128xi32>
    %cst_97 = arith.constant 0.000000e+00 : f32
    %127 = vector.broadcast %cst_97 : f32 to vector<32x128xf32>
    %128 = arith.select %126, %15, %127 : vector<32x128xi1>, vector<32x128xf32>
    %c0_98 = arith.constant 0 : index
    %c768_99 = arith.constant 768 : index
    %129 = vector.load %arg15[%c0_98, %c768_99] : memref<32x6400xf32, #tpu.memory_space<vmem>>, vector<32x128xf32>
    tpu.vector_store %arg15[%c0_98, %c768_99], %128 {strides = array<i32>} : memref<32x6400xf32, #tpu.memory_space<vmem>>, vector<32x128xf32>,
    %c0_100 = arith.constant 0 : index
    %c6 = arith.constant 6 : index
    %c0_101 = arith.constant 0 : index
    %130 = vector.load %arg11[%c0_100, %c6, %c0_101] : memref<1x50x128xi32, #tpu.memory_space<vmem>>, vector<1x1x128xi32>
    %131 = vector.shape_cast %130 : vector<1x1x128xi32> to vector<1x128xi32>
    %c0_i32_102 = arith.constant 0 : i32
    %132 = vector.broadcast %c0_i32_102 : i32 to vector<1x128xi32>
    %133 = arith.cmpi sge, %131, %132 : vector<1x128xi32>
    %cst_103 = arith.constant 0.000000e+00 : f32
    %134 = vector.broadcast %cst_103 : f32 to vector<1x128xf32>
    %135 = arith.select %133, %19, %134 : vector<1x128xi1>, vector<1x128xf32>
    %136 = arith.addf %135, %10 : vector<1x128xf32>
    %c0_104 = arith.constant 0 : index
    %c768_105 = arith.constant 768 : index
    %137 = vector.load %arg16[%c0_104, %c768_105] : memref<1x6400xf32, #tpu.memory_space<vmem>>, vector<1x128xf32>
    tpu.vector_store %arg16[%c0_104, %c768_105], %136 {strides = array<i32>} : memref<1x6400xf32, #tpu.memory_space<vmem>>, vector<1x128xf32>,
    %c0_106 = arith.constant 0 : index
    %c0_107 = arith.constant 0 : index
    %c896 = arith.constant 896 : index
    %138 = vector.load %arg10[%c0_106, %c0_107, %c896] : memref<1x32x6400xi8, #tpu.memory_space<vmem>>, vector<1x32x128xi8>
    %139 = vector.shape_cast %138 : vector<1x32x128xi8> to vector<32x128xi8>
    %140 = arith.extsi %139 : vector<32x128xi8> to vector<32x128xi32>
    %c0_i32_108 = arith.constant 0 : i32
    %141 = vector.broadcast %c0_i32_108 : i32 to vector<32x128xi32>
    %142 = arith.cmpi sge, %140, %141 : vector<32x128xi32>
    %cst_109 = arith.constant 0.000000e+00 : f32
    %143 = vector.broadcast %cst_109 : f32 to vector<32x128xf32>
    %144 = arith.select %142, %15, %143 : vector<32x128xi1>, vector<32x128xf32>
    %c0_110 = arith.constant 0 : index
    %c896_111 = arith.constant 896 : index
    %145 = vector.load %arg15[%c0_110, %c896_111] : memref<32x6400xf32, #tpu.memory_space<vmem>>, vector<32x128xf32>
    tpu.vector_store %arg15[%c0_110, %c896_111], %144 {strides = array<i32>} : memref<32x6400xf32, #tpu.memory_space<vmem>>, vector<32x128xf32>,
    %c0_112 = arith.constant 0 : index
    %c7 = arith.constant 7 : index
    %c0_113 = arith.constant 0 : index
    %146 = vector.load %arg11[%c0_112, %c7, %c0_113] : memref<1x50x128xi32, #tpu.memory_space<vmem>>, vector<1x1x128xi32>
    %147 = vector.shape_cast %146 : vector<1x1x128xi32> to vector<1x128xi32>
    %c0_i32_114 = arith.constant 0 : i32
    %148 = vector.broadcast %c0_i32_114 : i32 to vector<1x128xi32>
    %149 = arith.cmpi sge, %147, %148 : vector<1x128xi32>
    %cst_115 = arith.constant 0.000000e+00 : f32
    %150 = vector.broadcast %cst_115 : f32 to vector<1x128xf32>
    %151 = arith.select %149, %19, %150 : vector<1x128xi1>, vector<1x128xf32>
    %152 = arith.addf %151, %10 : vector<1x128xf32>
    %c0_116 = arith.constant 0 : index
    %c896_117 = arith.constant 896 : index
    %153 = vector.load %arg16[%c0_116, %c896_117] : memref<1x6400xf32, #tpu.memory_space<vmem>>, vector<1x128xf32>
    tpu.vector_store %arg16[%c0_116, %c896_117], %152 {strides = array<i32>} : memref<1x6400xf32, #tpu.memory_space<vmem>>, vector<1x128xf32>,
    %c0_118 = arith.constant 0 : index
    %c0_119 = arith.constant 0 : index
    %c1024 = arith.constant 1024 : index
    %154 = vector.load %arg10[%c0_118, %c0_119, %c1024] : memref<1x32x6400xi8, #tpu.memory_space<vmem>>, vector<1x32x128xi8>
    %155 = vector.shape_cast %154 : vector<1x32x128xi8> to vector<32x128xi8>
    %156 = arith.extsi %155 : vector<32x128xi8> to vector<32x128xi32>
    %c0_i32_120 = arith.constant 0 : i32
    %157 = vector.broadcast %c0_i32_120 : i32 to vector<32x128xi32>
    %158 = arith.cmpi sge, %156, %157 : vector<32x128xi32>
    %cst_121 = arith.constant 0.000000e+00 : f32
    %159 = vector.broadcast %cst_121 : f32 to vector<32x128xf32>
    %160 = arith.select %158, %15, %159 : vector<32x128xi1>, vector<32x128xf32>
    %c0_122 = arith.constant 0 : index
    %c1024_123 = arith.constant 1024 : index
    %161 = vector.load %arg15[%c0_122, %c1024_123] : memref<32x6400xf32, #tpu.memory_space<vmem>>, vector<32x128xf32>
    tpu.vector_store %arg15[%c0_122, %c1024_123], %160 {strides = array<i32>} : memref<32x6400xf32, #tpu.memory_space<vmem>>, vector<32x128xf32>,
    %c0_124 = arith.constant 0 : index
    %c8 = arith.constant 8 : index
    %c0_125 = arith.constant 0 : index
    %162 = vector.load %arg11[%c0_124, %c8, %c0_125] : memref<1x50x128xi32, #tpu.memory_space<vmem>>, vector<1x1x128xi32>
    %163 = vector.shape_cast %162 : vector<1x1x128xi32> to vector<1x128xi32>
    %c0_i32_126 = arith.constant 0 : i32
    %164 = vector.broadcast %c0_i32_126 : i32 to vector<1x128xi32>
    %165 = arith.cmpi sge, %163, %164 : vector<1x128xi32>
    %cst_127 = arith.constant 0.000000e+00 : f32
    %166 = vector.broadcast %cst_127 : f32 to vector<1x128xf32>
    %167 = arith.select %165, %19, %166 : vector<1x128xi1>, vector<1x128xf32>
    %168 = arith.addf %167, %10 : vector<1x128xf32>
    %c0_128 = arith.constant 0 : index
    %c1024_129 = arith.constant 1024 : index
    %169 = vector.load %arg16[%c0_128, %c1024_129] : memref<1x6400xf32, #tpu.memory_space<vmem>>, vector<1x128xf32>
    tpu.vector_store %arg16[%c0_128, %c1024_129], %168 {strides = array<i32>} : memref<1x6400xf32, #tpu.memory_space<vmem>>, vector<1x128xf32>,
    %c0_130 = arith.constant 0 : index
    %c0_131 = arith.constant 0 : index
    %c1152 = arith.constant 1152 : index
    %170 = vector.load %arg10[%c0_130, %c0_131, %c1152] : memref<1x32x6400xi8, #tpu.memory_space<vmem>>, vector<1x32x128xi8>
    %171 = vector.shape_cast %170 : vector<1x32x128xi8> to vector<32x128xi8>
    %172 = arith.extsi %171 : vector<32x128xi8> to vector<32x128xi32>
    %c0_i32_132 = arith.constant 0 : i32
    %173 = vector.broadcast %c0_i32_132 : i32 to vector<32x128xi32>
    %174 = arith.cmpi sge, %172, %173 : vector<32x128xi32>
    %cst_133 = arith.constant 0.000000e+00 : f32
    %175 = vector.broadcast %cst_133 : f32 to vector<32x128xf32>
    %176 = arith.select %174, %15, %175 : vector<32x128xi1>, vector<32x128xf32>
    %c0_134 = arith.constant 0 : index
    %c1152_135 = arith.constant 1152 : index
    %177 = vector.load %arg15[%c0_134, %c1152_135] : memref<32x6400xf32, #tpu.memory_space<vmem>>, vector<32x128xf32>
    tpu.vector_store %arg15[%c0_134, %c1152_135], %176 {strides = array<i32>} : memref<32x6400xf32, #tpu.memory_space<vmem>>, vector<32x128xf32>,
    %c0_136 = arith.constant 0 : index
    %c9 = arith.constant 9 : index
    %c0_137 = arith.constant 0 : index
    %178 = vector.load %arg11[%c0_136, %c9, %c0_137] : memref<1x50x128xi32, #tpu.memory_space<vmem>>, vector<1x1x128xi32>
    %179 = vector.shape_cast %178 : vector<1x1x128xi32> to vector<1x128xi32>
    %c0_i32_138 = arith.constant 0 : i32
    %180 = vector.broadcast %c0_i32_138 : i32 to vector<1x128xi32>
    %181 = arith.cmpi sge, %179, %180 : vector<1x128xi32>
    %cst_139 = arith.constant 0.000000e+00 : f32
    %182 = vector.broadcast %cst_139 : f32 to vector<1x128xf32>
    %183 = arith.select %181, %19, %182 : vector<1x128xi1>, vector<1x128xf32>
    %184 = arith.addf %183, %10 : vector<1x128xf32>
    %c0_140 = arith.constant 0 : index
    %c1152_141 = arith.constant 1152 : index
    %185 = vector.load %arg16[%c0_140, %c1152_141] : memref<1x6400xf32, #tpu.memory_space<vmem>>, vector<1x128xf32>
    tpu.vector_store %arg16[%c0_140, %c1152_141], %184 {strides = array<i32>} : memref<1x6400xf32, #tpu.memory_space<vmem>>, vector<1x128xf32>,
    %c0_142 = arith.constant 0 : index
    %c0_143 = arith.constant 0 : index
    %c1280 = arith.constant 1280 : index
    %186 = vector.load %arg10[%c0_142, %c0_143, %c1280] : memref<1x32x6400xi8, #tpu.memory_space<vmem>>, vector<1x32x128xi8>
    %187 = vector.shape_cast %186 : vector<1x32x128xi8> to vector<32x128xi8>
    %188 = arith.extsi %187 : vector<32x128xi8> to vector<32x128xi32>
    %c0_i32_144 = arith.constant 0 : i32
    %189 = vector.broadcast %c0_i32_144 : i32 to vector<32x128xi32>
    %190 = arith.cmpi sge, %188, %189 : vector<32x128xi32>
    %cst_145 = arith.constant 0.000000e+00 : f32
    %191 = vector.broadcast %cst_145 : f32 to vector<32x128xf32>
    %192 = arith.select %190, %15, %191 : vector<32x128xi1>, vector<32x128xf32>
    %c0_146 = arith.constant 0 : index
    %c1280_147 = arith.constant 1280 : index
    %193 = vector.load %arg15[%c0_146, %c1280_147] : memref<32x6400xf32, #tpu.memory_space<vmem>>, vector<32x128xf32>
    tpu.vector_store %arg15[%c0_146, %c1280_147], %192 {strides = array<i32>} : memref<32x6400xf32, #tpu.memory_space<vmem>>, vector<32x128xf32>,
    %c0_148 = arith.constant 0 : index
    %c10 = arith.constant 10 : index
    %c0_149 = arith.constant 0 : index
    %194 = vector.load %arg11[%c0_148, %c10, %c0_149] : memref<1x50x128xi32, #tpu.memory_space<vmem>>, vector<1x1x128xi32>
    %195 = vector.shape_cast %194 : vector<1x1x128xi32> to vector<1x128xi32>
    %c0_i32_150 = arith.constant 0 : i32
    %196 = vector.broadcast %c0_i32_150 : i32 to vector<1x128xi32>
    %197 = arith.cmpi sge, %195, %196 : vector<1x128xi32>
    %cst_151 = arith.constant 0.000000e+00 : f32
    %198 = vector.broadcast %cst_151 : f32 to vector<1x128xf32>
    %199 = arith.select %197, %19, %198 : vector<1x128xi1>, vector<1x128xf32>
    %200 = arith.addf %199, %10 : vector<1x128xf32>
    %c0_152 = arith.constant 0 : index
    %c1280_153 = arith.constant 1280 : index
    %201 = vector.load %arg16[%c0_152, %c1280_153] : memref<1x6400xf32, #tpu.memory_space<vmem>>, vector<1x128xf32>
    tpu.vector_store %arg16[%c0_152, %c1280_153], %200 {strides = array<i32>} : memref<1x6400xf32, #tpu.memory_space<vmem>>, vector<1x128xf32>,
    %c0_154 = arith.constant 0 : index
    %c0_155 = arith.constant 0 : index
    %c1408 = arith.constant 1408 : index
    %202 = vector.load %arg10[%c0_154, %c0_155, %c1408] : memref<1x32x6400xi8, #tpu.memory_space<vmem>>, vector<1x32x128xi8>
    %203 = vector.shape_cast %202 : vector<1x32x128xi8> to vector<32x128xi8>
    %204 = arith.extsi %203 : vector<32x128xi8> to vector<32x128xi32>
    %c0_i32_156 = arith.constant 0 : i32
    %205 = vector.broadcast %c0_i32_156 : i32 to vector<32x128xi32>
    %206 = arith.cmpi sge, %204, %205 : vector<32x128xi32>
    %cst_157 = arith.constant 0.000000e+00 : f32
    %207 = vector.broadcast %cst_157 : f32 to vector<32x128xf32>
    %208 = arith.select %206, %15, %207 : vector<32x128xi1>, vector<32x128xf32>
    %c0_158 = arith.constant 0 : index
    %c1408_159 = arith.constant 1408 : index
    %209 = vector.load %arg15[%c0_158, %c1408_159] : memref<32x6400xf32, #tpu.memory_space<vmem>>, vector<32x128xf32>
    tpu.vector_store %arg15[%c0_158, %c1408_159], %208 {strides = array<i32>} : memref<32x6400xf32, #tpu.memory_space<vmem>>, vector<32x128xf32>,
    %c0_160 = arith.constant 0 : index
    %c11 = arith.constant 11 : index
    %c0_161 = arith.constant 0 : index
    %210 = vector.load %arg11[%c0_160, %c11, %c0_161] : memref<1x50x128xi32, #tpu.memory_space<vmem>>, vector<1x1x128xi32>
    %211 = vector.shape_cast %210 : vector<1x1x128xi32> to vector<1x128xi32>
    %c0_i32_162 = arith.constant 0 : i32
    %212 = vector.broadcast %c0_i32_162 : i32 to vector<1x128xi32>
    %213 = arith.cmpi sge, %211, %212 : vector<1x128xi32>
    %cst_163 = arith.constant 0.000000e+00 : f32
    %214 = vector.broadcast %cst_163 : f32 to vector<1x128xf32>
    %215 = arith.select %213, %19, %214 : vector<1x128xi1>, vector<1x128xf32>
    %216 = arith.addf %215, %10 : vector<1x128xf32>
    %c0_164 = arith.constant 0 : index
    %c1408_165 = arith.constant 1408 : index
    %217 = vector.load %arg16[%c0_164, %c1408_165] : memref<1x6400xf32, #tpu.memory_space<vmem>>, vector<1x128xf32>
    tpu.vector_store %arg16[%c0_164, %c1408_165], %216 {strides = array<i32>} : memref<1x6400xf32, #tpu.memory_space<vmem>>, vector<1x128xf32>,
    %c0_166 = arith.constant 0 : index
    %c0_167 = arith.constant 0 : index
    %c1536 = arith.constant 1536 : index
    %218 = vector.load %arg10[%c0_166, %c0_167, %c1536] : memref<1x32x6400xi8, #tpu.memory_space<vmem>>, vector<1x32x128xi8>
    %219 = vector.shape_cast %218 : vector<1x32x128xi8> to vector<32x128xi8>
    %220 = arith.extsi %219 : vector<32x128xi8> to vector<32x128xi32>
    %c0_i32_168 = arith.constant 0 : i32
    %221 = vector.broadcast %c0_i32_168 : i32 to vector<32x128xi32>
    %222 = arith.cmpi sge, %220, %221 : vector<32x128xi32>
    %cst_169 = arith.constant 0.000000e+00 : f32
    %223 = vector.broadcast %cst_169 : f32 to vector<32x128xf32>
    %224 = arith.select %222, %15, %223 : vector<32x128xi1>, vector<32x128xf32>
    %c0_170 = arith.constant 0 : index
    %c1536_171 = arith.constant 1536 : index
    %225 = vector.load %arg15[%c0_170, %c1536_171] : memref<32x6400xf32, #tpu.memory_space<vmem>>, vector<32x128xf32>
    tpu.vector_store %arg15[%c0_170, %c1536_171], %224 {strides = array<i32>} : memref<32x6400xf32, #tpu.memory_space<vmem>>, vector<32x128xf32>,
    %c0_172 = arith.constant 0 : index
    %c12 = arith.constant 12 : index
    %c0_173 = arith.constant 0 : index
    %226 = vector.load %arg11[%c0_172, %c12, %c0_173] : memref<1x50x128xi32, #tpu.memory_space<vmem>>, vector<1x1x128xi32>
    %227 = vector.shape_cast %226 : vector<1x1x128xi32> to vector<1x128xi32>
    %c0_i32_174 = arith.constant 0 : i32
    %228 = vector.broadcast %c0_i32_174 : i32 to vector<1x128xi32>
    %229 = arith.cmpi sge, %227, %228 : vector<1x128xi32>
    %cst_175 = arith.constant 0.000000e+00 : f32
    %230 = vector.broadcast %cst_175 : f32 to vector<1x128xf32>
    %231 = arith.select %229, %19, %230 : vector<1x128xi1>, vector<1x128xf32>
    %232 = arith.addf %231, %10 : vector<1x128xf32>
    %c0_176 = arith.constant 0 : index
    %c1536_177 = arith.constant 1536 : index
    %233 = vector.load %arg16[%c0_176, %c1536_177] : memref<1x6400xf32, #tpu.memory_space<vmem>>, vector<1x128xf32>
    tpu.vector_store %arg16[%c0_176, %c1536_177], %232 {strides = array<i32>} : memref<1x6400xf32, #tpu.memory_space<vmem>>, vector<1x128xf32>,
    %c0_178 = arith.constant 0 : index
    %c0_179 = arith.constant 0 : index
    %c1664 = arith.constant 1664 : index
    %234 = vector.load %arg10[%c0_178, %c0_179, %c1664] : memref<1x32x6400xi8, #tpu.memory_space<vmem>>, vector<1x32x128xi8>
    %235 = vector.shape_cast %234 : vector<1x32x128xi8> to vector<32x128xi8>
    %236 = arith.extsi %235 : vector<32x128xi8> to vector<32x128xi32>
    %c0_i32_180 = arith.constant 0 : i32
    %237 = vector.broadcast %c0_i32_180 : i32 to vector<32x128xi32>
    %238 = arith.cmpi sge, %236, %237 : vector<32x128xi32>
    %cst_181 = arith.constant 0.000000e+00 : f32
    %239 = vector.broadcast %cst_181 : f32 to vector<32x128xf32>
    %240 = arith.select %238, %15, %239 : vector<32x128xi1>, vector<32x128xf32>
    %c0_182 = arith.constant 0 : index
    %c1664_183 = arith.constant 1664 : index
    %241 = vector.load %arg15[%c0_182, %c1664_183] : memref<32x6400xf32, #tpu.memory_space<vmem>>, vector<32x128xf32>
    tpu.vector_store %arg15[%c0_182, %c1664_183], %240 {strides = array<i32>} : memref<32x6400xf32, #tpu.memory_space<vmem>>, vector<32x128xf32>,
    %c0_184 = arith.constant 0 : index
    %c13 = arith.constant 13 : index
    %c0_185 = arith.constant 0 : index
    %242 = vector.load %arg11[%c0_184, %c13, %c0_185] : memref<1x50x128xi32, #tpu.memory_space<vmem>>, vector<1x1x128xi32>
    %243 = vector.shape_cast %242 : vector<1x1x128xi32> to vector<1x128xi32>
    %c0_i32_186 = arith.constant 0 : i32
    %244 = vector.broadcast %c0_i32_186 : i32 to vector<1x128xi32>
    %245 = arith.cmpi sge, %243, %244 : vector<1x128xi32>
    %cst_187 = arith.constant 0.000000e+00 : f32
    %246 = vector.broadcast %cst_187 : f32 to vector<1x128xf32>
    %247 = arith.select %245, %19, %246 : vector<1x128xi1>, vector<1x128xf32>
    %248 = arith.addf %247, %10 : vector<1x128xf32>
    %c0_188 = arith.constant 0 : index
    %c1664_189 = arith.constant 1664 : index
    %249 = vector.load %arg16[%c0_188, %c1664_189] : memref<1x6400xf32, #tpu.memory_space<vmem>>, vector<1x128xf32>
    tpu.vector_store %arg16[%c0_188, %c1664_189], %248 {strides = array<i32>} : memref<1x6400xf32, #tpu.memory_space<vmem>>, vector<1x128xf32>,
    %c0_190 = arith.constant 0 : index
    %c0_191 = arith.constant 0 : index
    %c1792 = arith.constant 1792 : index
    %250 = vector.load %arg10[%c0_190, %c0_191, %c1792] : memref<1x32x6400xi8, #tpu.memory_space<vmem>>, vector<1x32x128xi8>
    %251 = vector.shape_cast %250 : vector<1x32x128xi8> to vector<32x128xi8>
    %252 = arith.extsi %251 : vector<32x128xi8> to vector<32x128xi32>
    %c0_i32_192 = arith.constant 0 : i32
    %253 = vector.broadcast %c0_i32_192 : i32 to vector<32x128xi32>
    %254 = arith.cmpi sge, %252, %253 : vector<32x128xi32>
    %cst_193 = arith.constant 0.000000e+00 : f32
    %255 = vector.broadcast %cst_193 : f32 to vector<32x128xf32>
    %256 = arith.select %254, %15, %255 : vector<32x128xi1>, vector<32x128xf32>
    %c0_194 = arith.constant 0 : index
    %c1792_195 = arith.constant 1792 : index
    %257 = vector.load %arg15[%c0_194, %c1792_195] : memref<32x6400xf32, #tpu.memory_space<vmem>>, vector<32x128xf32>
    tpu.vector_store %arg15[%c0_194, %c1792_195], %256 {strides = array<i32>} : memref<32x6400xf32, #tpu.memory_space<vmem>>, vector<32x128xf32>,
    %c0_196 = arith.constant 0 : index
    %c14 = arith.constant 14 : index
    %c0_197 = arith.constant 0 : index
    %258 = vector.load %arg11[%c0_196, %c14, %c0_197] : memref<1x50x128xi32, #tpu.memory_space<vmem>>, vector<1x1x128xi32>
    %259 = vector.shape_cast %258 : vector<1x1x128xi32> to vector<1x128xi32>
    %c0_i32_198 = arith.constant 0 : i32
    %260 = vector.broadcast %c0_i32_198 : i32 to vector<1x128xi32>
    %261 = arith.cmpi sge, %259, %260 : vector<1x128xi32>
    %cst_199 = arith.constant 0.000000e+00 : f32
    %262 = vector.broadcast %cst_199 : f32 to vector<1x128xf32>
    %263 = arith.select %261, %19, %262 : vector<1x128xi1>, vector<1x128xf32>
    %264 = arith.addf %263, %10 : vector<1x128xf32>
    %c0_200 = arith.constant 0 : index
    %c1792_201 = arith.constant 1792 : index
    %265 = vector.load %arg16[%c0_200, %c1792_201] : memref<1x6400xf32, #tpu.memory_space<vmem>>, vector<1x128xf32>
    tpu.vector_store %arg16[%c0_200, %c1792_201], %264 {strides = array<i32>} : memref<1x6400xf32, #tpu.memory_space<vmem>>, vector<1x128xf32>,
    %c0_202 = arith.constant 0 : index
    %c0_203 = arith.constant 0 : index
    %c1920 = arith.constant 1920 : index
    %266 = vector.load %arg10[%c0_202, %c0_203, %c1920] : memref<1x32x6400xi8, #tpu.memory_space<vmem>>, vector<1x32x128xi8>
    %267 = vector.shape_cast %266 : vector<1x32x128xi8> to vector<32x128xi8>
    %268 = arith.extsi %267 : vector<32x128xi8> to vector<32x128xi32>
    %c0_i32_204 = arith.constant 0 : i32
    %269 = vector.broadcast %c0_i32_204 : i32 to vector<32x128xi32>
    %270 = arith.cmpi sge, %268, %269 : vector<32x128xi32>
    %cst_205 = arith.constant 0.000000e+00 : f32
    %271 = vector.broadcast %cst_205 : f32 to vector<32x128xf32>
    %272 = arith.select %270, %15, %271 : vector<32x128xi1>, vector<32x128xf32>
    %c0_206 = arith.constant 0 : index
    %c1920_207 = arith.constant 1920 : index
    %273 = vector.load %arg15[%c0_206, %c1920_207] : memref<32x6400xf32, #tpu.memory_space<vmem>>, vector<32x128xf32>
    tpu.vector_store %arg15[%c0_206, %c1920_207], %272 {strides = array<i32>} : memref<32x6400xf32, #tpu.memory_space<vmem>>, vector<32x128xf32>,
    %c0_208 = arith.constant 0 : index
    %c15 = arith.constant 15 : index
    %c0_209 = arith.constant 0 : index
    %274 = vector.load %arg11[%c0_208, %c15, %c0_209] : memref<1x50x128xi32, #tpu.memory_space<vmem>>, vector<1x1x128xi32>
    %275 = vector.shape_cast %274 : vector<1x1x128xi32> to vector<1x128xi32>
    %c0_i32_210 = arith.constant 0 : i32
    %276 = vector.broadcast %c0_i32_210 : i32 to vector<1x128xi32>
    %277 = arith.cmpi sge, %275, %276 : vector<1x128xi32>
    %cst_211 = arith.constant 0.000000e+00 : f32
    %278 = vector.broadcast %cst_211 : f32 to vector<1x128xf32>
    %279 = arith.select %277, %19, %278 : vector<1x128xi1>, vector<1x128xf32>
    %280 = arith.addf %279, %10 : vector<1x128xf32>
    %c0_212 = arith.constant 0 : index
    %c1920_213 = arith.constant 1920 : index
    %281 = vector.load %arg16[%c0_212, %c1920_213] : memref<1x6400xf32, #tpu.memory_space<vmem>>, vector<1x128xf32>
    tpu.vector_store %arg16[%c0_212, %c1920_213], %280 {strides = array<i32>} : memref<1x6400xf32, #tpu.memory_space<vmem>>, vector<1x128xf32>,
    %c0_214 = arith.constant 0 : index
    %c0_215 = arith.constant 0 : index
    %c2048 = arith.constant 2048 : index
    %282 = vector.load %arg10[%c0_214, %c0_215, %c2048] : memref<1x32x6400xi8, #tpu.memory_space<vmem>>, vector<1x32x128xi8>
    %283 = vector.shape_cast %282 : vector<1x32x128xi8> to vector<32x128xi8>
    %284 = arith.extsi %283 : vector<32x128xi8> to vector<32x128xi32>
    %c0_i32_216 = arith.constant 0 : i32
    %285 = vector.broadcast %c0_i32_216 : i32 to vector<32x128xi32>
    %286 = arith.cmpi sge, %284, %285 : vector<32x128xi32>
    %cst_217 = arith.constant 0.000000e+00 : f32
    %287 = vector.broadcast %cst_217 : f32 to vector<32x128xf32>
    %288 = arith.select %286, %15, %287 : vector<32x128xi1>, vector<32x128xf32>
    %c0_218 = arith.constant 0 : index
    %c2048_219 = arith.constant 2048 : index
    %289 = vector.load %arg15[%c0_218, %c2048_219] : memref<32x6400xf32, #tpu.memory_space<vmem>>, vector<32x128xf32>
    tpu.vector_store %arg15[%c0_218, %c2048_219], %288 {strides = array<i32>} : memref<32x6400xf32, #tpu.memory_space<vmem>>, vector<32x128xf32>,
    %c0_220 = arith.constant 0 : index
    %c16 = arith.constant 16 : index
    %c0_221 = arith.constant 0 : index
    %290 = vector.load %arg11[%c0_220, %c16, %c0_221] : memref<1x50x128xi32, #tpu.memory_space<vmem>>, vector<1x1x128xi32>
    %291 = vector.shape_cast %290 : vector<1x1x128xi32> to vector<1x128xi32>
    %c0_i32_222 = arith.constant 0 : i32
    %292 = vector.broadcast %c0_i32_222 : i32 to vector<1x128xi32>
    %293 = arith.cmpi sge, %291, %292 : vector<1x128xi32>
    %cst_223 = arith.constant 0.000000e+00 : f32
    %294 = vector.broadcast %cst_223 : f32 to vector<1x128xf32>
    %295 = arith.select %293, %19, %294 : vector<1x128xi1>, vector<1x128xf32>
    %296 = arith.addf %295, %10 : vector<1x128xf32>
    %c0_224 = arith.constant 0 : index
    %c2048_225 = arith.constant 2048 : index
    %297 = vector.load %arg16[%c0_224, %c2048_225] : memref<1x6400xf32, #tpu.memory_space<vmem>>, vector<1x128xf32>
    tpu.vector_store %arg16[%c0_224, %c2048_225], %296 {strides = array<i32>} : memref<1x6400xf32, #tpu.memory_space<vmem>>, vector<1x128xf32>,
    %c0_226 = arith.constant 0 : index
    %c0_227 = arith.constant 0 : index
    %c2176 = arith.constant 2176 : index
    %298 = vector.load %arg10[%c0_226, %c0_227, %c2176] : memref<1x32x6400xi8, #tpu.memory_space<vmem>>, vector<1x32x128xi8>
    %299 = vector.shape_cast %298 : vector<1x32x128xi8> to vector<32x128xi8>
    %300 = arith.extsi %299 : vector<32x128xi8> to vector<32x128xi32>
    %c0_i32_228 = arith.constant 0 : i32
    %301 = vector.broadcast %c0_i32_228 : i32 to vector<32x128xi32>
    %302 = arith.cmpi sge, %300, %301 : vector<32x128xi32>
    %cst_229 = arith.constant 0.000000e+00 : f32
    %303 = vector.broadcast %cst_229 : f32 to vector<32x128xf32>
    %304 = arith.select %302, %15, %303 : vector<32x128xi1>, vector<32x128xf32>
    %c0_230 = arith.constant 0 : index
    %c2176_231 = arith.constant 2176 : index
    %305 = vector.load %arg15[%c0_230, %c2176_231] : memref<32x6400xf32, #tpu.memory_space<vmem>>, vector<32x128xf32>
    tpu.vector_store %arg15[%c0_230, %c2176_231], %304 {strides = array<i32>} : memref<32x6400xf32, #tpu.memory_space<vmem>>, vector<32x128xf32>,
    %c0_232 = arith.constant 0 : index
    %c17 = arith.constant 17 : index
    %c0_233 = arith.constant 0 : index
    %306 = vector.load %arg11[%c0_232, %c17, %c0_233] : memref<1x50x128xi32, #tpu.memory_space<vmem>>, vector<1x1x128xi32>
    %307 = vector.shape_cast %306 : vector<1x1x128xi32> to vector<1x128xi32>
    %c0_i32_234 = arith.constant 0 : i32
    %308 = vector.broadcast %c0_i32_234 : i32 to vector<1x128xi32>
    %309 = arith.cmpi sge, %307, %308 : vector<1x128xi32>
    %cst_235 = arith.constant 0.000000e+00 : f32
    %310 = vector.broadcast %cst_235 : f32 to vector<1x128xf32>
    %311 = arith.select %309, %19, %310 : vector<1x128xi1>, vector<1x128xf32>
    %312 = arith.addf %311, %10 : vector<1x128xf32>
    %c0_236 = arith.constant 0 : index
    %c2176_237 = arith.constant 2176 : index
    %313 = vector.load %arg16[%c0_236, %c2176_237] : memref<1x6400xf32, #tpu.memory_space<vmem>>, vector<1x128xf32>
    tpu.vector_store %arg16[%c0_236, %c2176_237], %312 {strides = array<i32>} : memref<1x6400xf32, #tpu.memory_space<vmem>>, vector<1x128xf32>,
    %c0_238 = arith.constant 0 : index
    %c0_239 = arith.constant 0 : index
    %c2304 = arith.constant 2304 : index
    %314 = vector.load %arg10[%c0_238, %c0_239, %c2304] : memref<1x32x6400xi8, #tpu.memory_space<vmem>>, vector<1x32x128xi8>
    %315 = vector.shape_cast %314 : vector<1x32x128xi8> to vector<32x128xi8>
    %316 = arith.extsi %315 : vector<32x128xi8> to vector<32x128xi32>
    %c0_i32_240 = arith.constant 0 : i32
    %317 = vector.broadcast %c0_i32_240 : i32 to vector<32x128xi32>
    %318 = arith.cmpi sge, %316, %317 : vector<32x128xi32>
    %cst_241 = arith.constant 0.000000e+00 : f32
    %319 = vector.broadcast %cst_241 : f32 to vector<32x128xf32>
    %320 = arith.select %318, %15, %319 : vector<32x128xi1>, vector<32x128xf32>
    %c0_242 = arith.constant 0 : index
    %c2304_243 = arith.constant 2304 : index
    %321 = vector.load %arg15[%c0_242, %c2304_243] : memref<32x6400xf32, #tpu.memory_space<vmem>>, vector<32x128xf32>
    tpu.vector_store %arg15[%c0_242, %c2304_243], %320 {strides = array<i32>} : memref<32x6400xf32, #tpu.memory_space<vmem>>, vector<32x128xf32>,
    %c0_244 = arith.constant 0 : index
    %c18 = arith.constant 18 : index
    %c0_245 = arith.constant 0 : index
    %322 = vector.load %arg11[%c0_244, %c18, %c0_245] : memref<1x50x128xi32, #tpu.memory_space<vmem>>, vector<1x1x128xi32>
    %323 = vector.shape_cast %322 : vector<1x1x128xi32> to vector<1x128xi32>
    %c0_i32_246 = arith.constant 0 : i32
    %324 = vector.broadcast %c0_i32_246 : i32 to vector<1x128xi32>
    %325 = arith.cmpi sge, %323, %324 : vector<1x128xi32>
    %cst_247 = arith.constant 0.000000e+00 : f32
    %326 = vector.broadcast %cst_247 : f32 to vector<1x128xf32>
    %327 = arith.select %325, %19, %326 : vector<1x128xi1>, vector<1x128xf32>
    %328 = arith.addf %327, %10 : vector<1x128xf32>
    %c0_248 = arith.constant 0 : index
    %c2304_249 = arith.constant 2304 : index
    %329 = vector.load %arg16[%c0_248, %c2304_249] : memref<1x6400xf32, #tpu.memory_space<vmem>>, vector<1x128xf32>
    tpu.vector_store %arg16[%c0_248, %c2304_249], %328 {strides = array<i32>} : memref<1x6400xf32, #tpu.memory_space<vmem>>, vector<1x128xf32>,
    %c0_250 = arith.constant 0 : index
    %c0_251 = arith.constant 0 : index
    %c2432 = arith.constant 2432 : index
    %330 = vector.load %arg10[%c0_250, %c0_251, %c2432] : memref<1x32x6400xi8, #tpu.memory_space<vmem>>, vector<1x32x128xi8>
    %331 = vector.shape_cast %330 : vector<1x32x128xi8> to vector<32x128xi8>
    %332 = arith.extsi %331 : vector<32x128xi8> to vector<32x128xi32>
    %c0_i32_252 = arith.constant 0 : i32
    %333 = vector.broadcast %c0_i32_252 : i32 to vector<32x128xi32>
    %334 = arith.cmpi sge, %332, %333 : vector<32x128xi32>
    %cst_253 = arith.constant 0.000000e+00 : f32
    %335 = vector.broadcast %cst_253 : f32 to vector<32x128xf32>
    %336 = arith.select %334, %15, %335 : vector<32x128xi1>, vector<32x128xf32>
    %c0_254 = arith.constant 0 : index
    %c2432_255 = arith.constant 2432 : index
    %337 = vector.load %arg15[%c0_254, %c2432_255] : memref<32x6400xf32, #tpu.memory_space<vmem>>, vector<32x128xf32>
    tpu.vector_store %arg15[%c0_254, %c2432_255], %336 {strides = array<i32>} : memref<32x6400xf32, #tpu.memory_space<vmem>>, vector<32x128xf32>,
    %c0_256 = arith.constant 0 : index
    %c19 = arith.constant 19 : index
    %c0_257 = arith.constant 0 : index
    %338 = vector.load %arg11[%c0_256, %c19, %c0_257] : memref<1x50x128xi32, #tpu.memory_space<vmem>>, vector<1x1x128xi32>
    %339 = vector.shape_cast %338 : vector<1x1x128xi32> to vector<1x128xi32>
    %c0_i32_258 = arith.constant 0 : i32
    %340 = vector.broadcast %c0_i32_258 : i32 to vector<1x128xi32>
    %341 = arith.cmpi sge, %339, %340 : vector<1x128xi32>
    %cst_259 = arith.constant 0.000000e+00 : f32
    %342 = vector.broadcast %cst_259 : f32 to vector<1x128xf32>
    %343 = arith.select %341, %19, %342 : vector<1x128xi1>, vector<1x128xf32>
    %344 = arith.addf %343, %10 : vector<1x128xf32>
    %c0_260 = arith.constant 0 : index
    %c2432_261 = arith.constant 2432 : index
    %345 = vector.load %arg16[%c0_260, %c2432_261] : memref<1x6400xf32, #tpu.memory_space<vmem>>, vector<1x128xf32>
    tpu.vector_store %arg16[%c0_260, %c2432_261], %344 {strides = array<i32>} : memref<1x6400xf32, #tpu.memory_space<vmem>>, vector<1x128xf32>,
    %c0_262 = arith.constant 0 : index
    %c0_263 = arith.constant 0 : index
    %c2560 = arith.constant 2560 : index
    %346 = vector.load %arg10[%c0_262, %c0_263, %c2560] : memref<1x32x6400xi8, #tpu.memory_space<vmem>>, vector<1x32x128xi8>
    %347 = vector.shape_cast %346 : vector<1x32x128xi8> to vector<32x128xi8>
    %348 = arith.extsi %347 : vector<32x128xi8> to vector<32x128xi32>
    %c0_i32_264 = arith.constant 0 : i32
    %349 = vector.broadcast %c0_i32_264 : i32 to vector<32x128xi32>
    %350 = arith.cmpi sge, %348, %349 : vector<32x128xi32>
    %cst_265 = arith.constant 0.000000e+00 : f32
    %351 = vector.broadcast %cst_265 : f32 to vector<32x128xf32>
    %352 = arith.select %350, %15, %351 : vector<32x128xi1>, vector<32x128xf32>
    %c0_266 = arith.constant 0 : index
    %c2560_267 = arith.constant 2560 : index
    %353 = vector.load %arg15[%c0_266, %c2560_267] : memref<32x6400xf32, #tpu.memory_space<vmem>>, vector<32x128xf32>
    tpu.vector_store %arg15[%c0_266, %c2560_267], %352 {strides = array<i32>} : memref<32x6400xf32, #tpu.memory_space<vmem>>, vector<32x128xf32>,
    %c0_268 = arith.constant 0 : index
    %c20 = arith.constant 20 : index
    %c0_269 = arith.constant 0 : index
    %354 = vector.load %arg11[%c0_268, %c20, %c0_269] : memref<1x50x128xi32, #tpu.memory_space<vmem>>, vector<1x1x128xi32>
    %355 = vector.shape_cast %354 : vector<1x1x128xi32> to vector<1x128xi32>
    %c0_i32_270 = arith.constant 0 : i32
    %356 = vector.broadcast %c0_i32_270 : i32 to vector<1x128xi32>
    %357 = arith.cmpi sge, %355, %356 : vector<1x128xi32>
    %cst_271 = arith.constant 0.000000e+00 : f32
    %358 = vector.broadcast %cst_271 : f32 to vector<1x128xf32>
    %359 = arith.select %357, %19, %358 : vector<1x128xi1>, vector<1x128xf32>
    %360 = arith.addf %359, %10 : vector<1x128xf32>
    %c0_272 = arith.constant 0 : index
    %c2560_273 = arith.constant 2560 : index
    %361 = vector.load %arg16[%c0_272, %c2560_273] : memref<1x6400xf32, #tpu.memory_space<vmem>>, vector<1x128xf32>
    tpu.vector_store %arg16[%c0_272, %c2560_273], %360 {strides = array<i32>} : memref<1x6400xf32, #tpu.memory_space<vmem>>, vector<1x128xf32>,
    %c0_274 = arith.constant 0 : index
    %c0_275 = arith.constant 0 : index
    %c2688 = arith.constant 2688 : index
    %362 = vector.load %arg10[%c0_274, %c0_275, %c2688] : memref<1x32x6400xi8, #tpu.memory_space<vmem>>, vector<1x32x128xi8>
    %363 = vector.shape_cast %362 : vector<1x32x128xi8> to vector<32x128xi8>
    %364 = arith.extsi %363 : vector<32x128xi8> to vector<32x128xi32>
    %c0_i32_276 = arith.constant 0 : i32
    %365 = vector.broadcast %c0_i32_276 : i32 to vector<32x128xi32>
    %366 = arith.cmpi sge, %364, %365 : vector<32x128xi32>
    %cst_277 = arith.constant 0.000000e+00 : f32
    %367 = vector.broadcast %cst_277 : f32 to vector<32x128xf32>
    %368 = arith.select %366, %15, %367 : vector<32x128xi1>, vector<32x128xf32>
    %c0_278 = arith.constant 0 : index
    %c2688_279 = arith.constant 2688 : index
    %369 = vector.load %arg15[%c0_278, %c2688_279] : memref<32x6400xf32, #tpu.memory_space<vmem>>, vector<32x128xf32>
    tpu.vector_store %arg15[%c0_278, %c2688_279], %368 {strides = array<i32>} : memref<32x6400xf32, #tpu.memory_space<vmem>>, vector<32x128xf32>,
    %c0_280 = arith.constant 0 : index
    %c21 = arith.constant 21 : index
    %c0_281 = arith.constant 0 : index
    %370 = vector.load %arg11[%c0_280, %c21, %c0_281] : memref<1x50x128xi32, #tpu.memory_space<vmem>>, vector<1x1x128xi32>
    %371 = vector.shape_cast %370 : vector<1x1x128xi32> to vector<1x128xi32>
    %c0_i32_282 = arith.constant 0 : i32
    %372 = vector.broadcast %c0_i32_282 : i32 to vector<1x128xi32>
    %373 = arith.cmpi sge, %371, %372 : vector<1x128xi32>
    %cst_283 = arith.constant 0.000000e+00 : f32
    %374 = vector.broadcast %cst_283 : f32 to vector<1x128xf32>
    %375 = arith.select %373, %19, %374 : vector<1x128xi1>, vector<1x128xf32>
    %376 = arith.addf %375, %10 : vector<1x128xf32>
    %c0_284 = arith.constant 0 : index
    %c2688_285 = arith.constant 2688 : index
    %377 = vector.load %arg16[%c0_284, %c2688_285] : memref<1x6400xf32, #tpu.memory_space<vmem>>, vector<1x128xf32>
    tpu.vector_store %arg16[%c0_284, %c2688_285], %376 {strides = array<i32>} : memref<1x6400xf32, #tpu.memory_space<vmem>>, vector<1x128xf32>,
    %c0_286 = arith.constant 0 : index
    %c0_287 = arith.constant 0 : index
    %c2816 = arith.constant 2816 : index
    %378 = vector.load %arg10[%c0_286, %c0_287, %c2816] : memref<1x32x6400xi8, #tpu.memory_space<vmem>>, vector<1x32x128xi8>
    %379 = vector.shape_cast %378 : vector<1x32x128xi8> to vector<32x128xi8>
    %380 = arith.extsi %379 : vector<32x128xi8> to vector<32x128xi32>
    %c0_i32_288 = arith.constant 0 : i32
    %381 = vector.broadcast %c0_i32_288 : i32 to vector<32x128xi32>
    %382 = arith.cmpi sge, %380, %381 : vector<32x128xi32>
    %cst_289 = arith.constant 0.000000e+00 : f32
    %383 = vector.broadcast %cst_289 : f32 to vector<32x128xf32>
    %384 = arith.select %382, %15, %383 : vector<32x128xi1>, vector<32x128xf32>
    %c0_290 = arith.constant 0 : index
    %c2816_291 = arith.constant 2816 : index
    %385 = vector.load %arg15[%c0_290, %c2816_291] : memref<32x6400xf32, #tpu.memory_space<vmem>>, vector<32x128xf32>
    tpu.vector_store %arg15[%c0_290, %c2816_291], %384 {strides = array<i32>} : memref<32x6400xf32, #tpu.memory_space<vmem>>, vector<32x128xf32>,
    %c0_292 = arith.constant 0 : index
    %c22 = arith.constant 22 : index
    %c0_293 = arith.constant 0 : index
    %386 = vector.load %arg11[%c0_292, %c22, %c0_293] : memref<1x50x128xi32, #tpu.memory_space<vmem>>, vector<1x1x128xi32>
    %387 = vector.shape_cast %386 : vector<1x1x128xi32> to vector<1x128xi32>
    %c0_i32_294 = arith.constant 0 : i32
    %388 = vector.broadcast %c0_i32_294 : i32 to vector<1x128xi32>
    %389 = arith.cmpi sge, %387, %388 : vector<1x128xi32>
    %cst_295 = arith.constant 0.000000e+00 : f32
    %390 = vector.broadcast %cst_295 : f32 to vector<1x128xf32>
    %391 = arith.select %389, %19, %390 : vector<1x128xi1>, vector<1x128xf32>
    %392 = arith.addf %391, %10 : vector<1x128xf32>
    %c0_296 = arith.constant 0 : index
    %c2816_297 = arith.constant 2816 : index
    %393 = vector.load %arg16[%c0_296, %c2816_297] : memref<1x6400xf32, #tpu.memory_space<vmem>>, vector<1x128xf32>
    tpu.vector_store %arg16[%c0_296, %c2816_297], %392 {strides = array<i32>} : memref<1x6400xf32, #tpu.memory_space<vmem>>, vector<1x128xf32>,
    %c0_298 = arith.constant 0 : index
    %c0_299 = arith.constant 0 : index
    %c2944 = arith.constant 2944 : index
    %394 = vector.load %arg10[%c0_298, %c0_299, %c2944] : memref<1x32x6400xi8, #tpu.memory_space<vmem>>, vector<1x32x128xi8>
    %395 = vector.shape_cast %394 : vector<1x32x128xi8> to vector<32x128xi8>
    %396 = arith.extsi %395 : vector<32x128xi8> to vector<32x128xi32>
    %c0_i32_300 = arith.constant 0 : i32
    %397 = vector.broadcast %c0_i32_300 : i32 to vector<32x128xi32>
    %398 = arith.cmpi sge, %396, %397 : vector<32x128xi32>
    %cst_301 = arith.constant 0.000000e+00 : f32
    %399 = vector.broadcast %cst_301 : f32 to vector<32x128xf32>
    %400 = arith.select %398, %15, %399 : vector<32x128xi1>, vector<32x128xf32>
    %c0_302 = arith.constant 0 : index
    %c2944_303 = arith.constant 2944 : index
    %401 = vector.load %arg15[%c0_302, %c2944_303] : memref<32x6400xf32, #tpu.memory_space<vmem>>, vector<32x128xf32>
    tpu.vector_store %arg15[%c0_302, %c2944_303], %400 {strides = array<i32>} : memref<32x6400xf32, #tpu.memory_space<vmem>>, vector<32x128xf32>,
    %c0_304 = arith.constant 0 : index
    %c23 = arith.constant 23 : index
    %c0_305 = arith.constant 0 : index
    %402 = vector.load %arg11[%c0_304, %c23, %c0_305] : memref<1x50x128xi32, #tpu.memory_space<vmem>>, vector<1x1x128xi32>
    %403 = vector.shape_cast %402 : vector<1x1x128xi32> to vector<1x128xi32>
    %c0_i32_306 = arith.constant 0 : i32
    %404 = vector.broadcast %c0_i32_306 : i32 to vector<1x128xi32>
    %405 = arith.cmpi sge, %403, %404 : vector<1x128xi32>
    %cst_307 = arith.constant 0.000000e+00 : f32
    %406 = vector.broadcast %cst_307 : f32 to vector<1x128xf32>
    %407 = arith.select %405, %19, %406 : vector<1x128xi1>, vector<1x128xf32>
    %408 = arith.addf %407, %10 : vector<1x128xf32>
    %c0_308 = arith.constant 0 : index
    %c2944_309 = arith.constant 2944 : index
    %409 = vector.load %arg16[%c0_308, %c2944_309] : memref<1x6400xf32, #tpu.memory_space<vmem>>, vector<1x128xf32>
    tpu.vector_store %arg16[%c0_308, %c2944_309], %408 {strides = array<i32>} : memref<1x6400xf32, #tpu.memory_space<vmem>>, vector<1x128xf32>,
    %c0_310 = arith.constant 0 : index
    %c0_311 = arith.constant 0 : index
    %c3072 = arith.constant 3072 : index
    %410 = vector.load %arg10[%c0_310, %c0_311, %c3072] : memref<1x32x6400xi8, #tpu.memory_space<vmem>>, vector<1x32x128xi8>
    %411 = vector.shape_cast %410 : vector<1x32x128xi8> to vector<32x128xi8>
    %412 = arith.extsi %411 : vector<32x128xi8> to vector<32x128xi32>
    %c0_i32_312 = arith.constant 0 : i32
    %413 = vector.broadcast %c0_i32_312 : i32 to vector<32x128xi32>
    %414 = arith.cmpi sge, %412, %413 : vector<32x128xi32>
    %cst_313 = arith.constant 0.000000e+00 : f32
    %415 = vector.broadcast %cst_313 : f32 to vector<32x128xf32>
    %416 = arith.select %414, %15, %415 : vector<32x128xi1>, vector<32x128xf32>
    %c0_314 = arith.constant 0 : index
    %c3072_315 = arith.constant 3072 : index
    %417 = vector.load %arg15[%c0_314, %c3072_315] : memref<32x6400xf32, #tpu.memory_space<vmem>>, vector<32x128xf32>
    tpu.vector_store %arg15[%c0_314, %c3072_315], %416 {strides = array<i32>} : memref<32x6400xf32, #tpu.memory_space<vmem>>, vector<32x128xf32>,
    %c0_316 = arith.constant 0 : index
    %c24 = arith.constant 24 : index
    %c0_317 = arith.constant 0 : index
    %418 = vector.load %arg11[%c0_316, %c24, %c0_317] : memref<1x50x128xi32, #tpu.memory_space<vmem>>, vector<1x1x128xi32>
    %419 = vector.shape_cast %418 : vector<1x1x128xi32> to vector<1x128xi32>
    %c0_i32_318 = arith.constant 0 : i32
    %420 = vector.broadcast %c0_i32_318 : i32 to vector<1x128xi32>
    %421 = arith.cmpi sge, %419, %420 : vector<1x128xi32>
    %cst_319 = arith.constant 0.000000e+00 : f32
    %422 = vector.broadcast %cst_319 : f32 to vector<1x128xf32>
    %423 = arith.select %421, %19, %422 : vector<1x128xi1>, vector<1x128xf32>
    %424 = arith.addf %423, %10 : vector<1x128xf32>
    %c0_320 = arith.constant 0 : index
    %c3072_321 = arith.constant 3072 : index
    %425 = vector.load %arg16[%c0_320, %c3072_321] : memref<1x6400xf32, #tpu.memory_space<vmem>>, vector<1x128xf32>
    tpu.vector_store %arg16[%c0_320, %c3072_321], %424 {strides = array<i32>} : memref<1x6400xf32, #tpu.memory_space<vmem>>, vector<1x128xf32>,
    %c0_322 = arith.constant 0 : index
    %c0_323 = arith.constant 0 : index
    %c3200 = arith.constant 3200 : index
    %426 = vector.load %arg10[%c0_322, %c0_323, %c3200] : memref<1x32x6400xi8, #tpu.memory_space<vmem>>, vector<1x32x128xi8>
    %427 = vector.shape_cast %426 : vector<1x32x128xi8> to vector<32x128xi8>
    %428 = arith.extsi %427 : vector<32x128xi8> to vector<32x128xi32>
    %c0_i32_324 = arith.constant 0 : i32
    %429 = vector.broadcast %c0_i32_324 : i32 to vector<32x128xi32>
    %430 = arith.cmpi sge, %428, %429 : vector<32x128xi32>
    %cst_325 = arith.constant 0.000000e+00 : f32
    %431 = vector.broadcast %cst_325 : f32 to vector<32x128xf32>
    %432 = arith.select %430, %15, %431 : vector<32x128xi1>, vector<32x128xf32>
    %c0_326 = arith.constant 0 : index
    %c3200_327 = arith.constant 3200 : index
    %433 = vector.load %arg15[%c0_326, %c3200_327] : memref<32x6400xf32, #tpu.memory_space<vmem>>, vector<32x128xf32>
    tpu.vector_store %arg15[%c0_326, %c3200_327], %432 {strides = array<i32>} : memref<32x6400xf32, #tpu.memory_space<vmem>>, vector<32x128xf32>,
    %c0_328 = arith.constant 0 : index
    %c25 = arith.constant 25 : index
    %c0_329 = arith.constant 0 : index
    %434 = vector.load %arg11[%c0_328, %c25, %c0_329] : memref<1x50x128xi32, #tpu.memory_space<vmem>>, vector<1x1x128xi32>
    %435 = vector.shape_cast %434 : vector<1x1x128xi32> to vector<1x128xi32>
    %c0_i32_330 = arith.constant 0 : i32
    %436 = vector.broadcast %c0_i32_330 : i32 to vector<1x128xi32>
    %437 = arith.cmpi sge, %435, %436 : vector<1x128xi32>
    %cst_331 = arith.constant 0.000000e+00 : f32
    %438 = vector.broadcast %cst_331 : f32 to vector<1x128xf32>
    %439 = arith.select %437, %19, %438 : vector<1x128xi1>, vector<1x128xf32>
    %440 = arith.addf %439, %10 : vector<1x128xf32>
    %c0_332 = arith.constant 0 : index
    %c3200_333 = arith.constant 3200 : index
    %441 = vector.load %arg16[%c0_332, %c3200_333] : memref<1x6400xf32, #tpu.memory_space<vmem>>, vector<1x128xf32>
    tpu.vector_store %arg16[%c0_332, %c3200_333], %440 {strides = array<i32>} : memref<1x6400xf32, #tpu.memory_space<vmem>>, vector<1x128xf32>,
    %c0_334 = arith.constant 0 : index
    %c0_335 = arith.constant 0 : index
    %c3328 = arith.constant 3328 : index
    %442 = vector.load %arg10[%c0_334, %c0_335, %c3328] : memref<1x32x6400xi8, #tpu.memory_space<vmem>>, vector<1x32x128xi8>
    %443 = vector.shape_cast %442 : vector<1x32x128xi8> to vector<32x128xi8>
    %444 = arith.extsi %443 : vector<32x128xi8> to vector<32x128xi32>
    %c0_i32_336 = arith.constant 0 : i32
    %445 = vector.broadcast %c0_i32_336 : i32 to vector<32x128xi32>
    %446 = arith.cmpi sge, %444, %445 : vector<32x128xi32>
    %cst_337 = arith.constant 0.000000e+00 : f32
    %447 = vector.broadcast %cst_337 : f32 to vector<32x128xf32>
    %448 = arith.select %446, %15, %447 : vector<32x128xi1>, vector<32x128xf32>
    %c0_338 = arith.constant 0 : index
    %c3328_339 = arith.constant 3328 : index
    %449 = vector.load %arg15[%c0_338, %c3328_339] : memref<32x6400xf32, #tpu.memory_space<vmem>>, vector<32x128xf32>
    tpu.vector_store %arg15[%c0_338, %c3328_339], %448 {strides = array<i32>} : memref<32x6400xf32, #tpu.memory_space<vmem>>, vector<32x128xf32>,
    %c0_340 = arith.constant 0 : index
    %c26 = arith.constant 26 : index
    %c0_341 = arith.constant 0 : index
    %450 = vector.load %arg11[%c0_340, %c26, %c0_341] : memref<1x50x128xi32, #tpu.memory_space<vmem>>, vector<1x1x128xi32>
    %451 = vector.shape_cast %450 : vector<1x1x128xi32> to vector<1x128xi32>
    %c0_i32_342 = arith.constant 0 : i32
    %452 = vector.broadcast %c0_i32_342 : i32 to vector<1x128xi32>
    %453 = arith.cmpi sge, %451, %452 : vector<1x128xi32>
    %cst_343 = arith.constant 0.000000e+00 : f32
    %454 = vector.broadcast %cst_343 : f32 to vector<1x128xf32>
    %455 = arith.select %453, %19, %454 : vector<1x128xi1>, vector<1x128xf32>
    %456 = arith.addf %455, %10 : vector<1x128xf32>
    %c0_344 = arith.constant 0 : index
    %c3328_345 = arith.constant 3328 : index
    %457 = vector.load %arg16[%c0_344, %c3328_345] : memref<1x6400xf32, #tpu.memory_space<vmem>>, vector<1x128xf32>
    tpu.vector_store %arg16[%c0_344, %c3328_345], %456 {strides = array<i32>} : memref<1x6400xf32, #tpu.memory_space<vmem>>, vector<1x128xf32>,
    %c0_346 = arith.constant 0 : index
    %c0_347 = arith.constant 0 : index
    %c3456 = arith.constant 3456 : index
    %458 = vector.load %arg10[%c0_346, %c0_347, %c3456] : memref<1x32x6400xi8, #tpu.memory_space<vmem>>, vector<1x32x128xi8>
    %459 = vector.shape_cast %458 : vector<1x32x128xi8> to vector<32x128xi8>
    %460 = arith.extsi %459 : vector<32x128xi8> to vector<32x128xi32>
    %c0_i32_348 = arith.constant 0 : i32
    %461 = vector.broadcast %c0_i32_348 : i32 to vector<32x128xi32>
    %462 = arith.cmpi sge, %460, %461 : vector<32x128xi32>
    %cst_349 = arith.constant 0.000000e+00 : f32
    %463 = vector.broadcast %cst_349 : f32 to vector<32x128xf32>
    %464 = arith.select %462, %15, %463 : vector<32x128xi1>, vector<32x128xf32>
    %c0_350 = arith.constant 0 : index
    %c3456_351 = arith.constant 3456 : index
    %465 = vector.load %arg15[%c0_350, %c3456_351] : memref<32x6400xf32, #tpu.memory_space<vmem>>, vector<32x128xf32>
    tpu.vector_store %arg15[%c0_350, %c3456_351], %464 {strides = array<i32>} : memref<32x6400xf32, #tpu.memory_space<vmem>>, vector<32x128xf32>,
    %c0_352 = arith.constant 0 : index
    %c27 = arith.constant 27 : index
    %c0_353 = arith.constant 0 : index
    %466 = vector.load %arg11[%c0_352, %c27, %c0_353] : memref<1x50x128xi32, #tpu.memory_space<vmem>>, vector<1x1x128xi32>
    %467 = vector.shape_cast %466 : vector<1x1x128xi32> to vector<1x128xi32>
    %c0_i32_354 = arith.constant 0 : i32
    %468 = vector.broadcast %c0_i32_354 : i32 to vector<1x128xi32>
    %469 = arith.cmpi sge, %467, %468 : vector<1x128xi32>
    %cst_355 = arith.constant 0.000000e+00 : f32
    %470 = vector.broadcast %cst_355 : f32 to vector<1x128xf32>
    %471 = arith.select %469, %19, %470 : vector<1x128xi1>, vector<1x128xf32>
    %472 = arith.addf %471, %10 : vector<1x128xf32>
    %c0_356 = arith.constant 0 : index
    %c3456_357 = arith.constant 3456 : index
    %473 = vector.load %arg16[%c0_356, %c3456_357] : memref<1x6400xf32, #tpu.memory_space<vmem>>, vector<1x128xf32>
    tpu.vector_store %arg16[%c0_356, %c3456_357], %472 {strides = array<i32>} : memref<1x6400xf32, #tpu.memory_space<vmem>>, vector<1x128xf32>,
    %c0_358 = arith.constant 0 : index
    %c0_359 = arith.constant 0 : index
    %c3584 = arith.constant 3584 : index
    %474 = vector.load %arg10[%c0_358, %c0_359, %c3584] : memref<1x32x6400xi8, #tpu.memory_space<vmem>>, vector<1x32x128xi8>
    %475 = vector.shape_cast %474 : vector<1x32x128xi8> to vector<32x128xi8>
    %476 = arith.extsi %475 : vector<32x128xi8> to vector<32x128xi32>
    %c0_i32_360 = arith.constant 0 : i32
    %477 = vector.broadcast %c0_i32_360 : i32 to vector<32x128xi32>
    %478 = arith.cmpi sge, %476, %477 : vector<32x128xi32>
    %cst_361 = arith.constant 0.000000e+00 : f32
    %479 = vector.broadcast %cst_361 : f32 to vector<32x128xf32>
    %480 = arith.select %478, %15, %479 : vector<32x128xi1>, vector<32x128xf32>
    %c0_362 = arith.constant 0 : index
    %c3584_363 = arith.constant 3584 : index
    %481 = vector.load %arg15[%c0_362, %c3584_363] : memref<32x6400xf32, #tpu.memory_space<vmem>>, vector<32x128xf32>
    tpu.vector_store %arg15[%c0_362, %c3584_363], %480 {strides = array<i32>} : memref<32x6400xf32, #tpu.memory_space<vmem>>, vector<32x128xf32>,
    %c0_364 = arith.constant 0 : index
    %c28 = arith.constant 28 : index
    %c0_365 = arith.constant 0 : index
    %482 = vector.load %arg11[%c0_364, %c28, %c0_365] : memref<1x50x128xi32, #tpu.memory_space<vmem>>, vector<1x1x128xi32>
    %483 = vector.shape_cast %482 : vector<1x1x128xi32> to vector<1x128xi32>
    %c0_i32_366 = arith.constant 0 : i32
    %484 = vector.broadcast %c0_i32_366 : i32 to vector<1x128xi32>
    %485 = arith.cmpi sge, %483, %484 : vector<1x128xi32>
    %cst_367 = arith.constant 0.000000e+00 : f32
    %486 = vector.broadcast %cst_367 : f32 to vector<1x128xf32>
    %487 = arith.select %485, %19, %486 : vector<1x128xi1>, vector<1x128xf32>
    %488 = arith.addf %487, %10 : vector<1x128xf32>
    %c0_368 = arith.constant 0 : index
    %c3584_369 = arith.constant 3584 : index
    %489 = vector.load %arg16[%c0_368, %c3584_369] : memref<1x6400xf32, #tpu.memory_space<vmem>>, vector<1x128xf32>
    tpu.vector_store %arg16[%c0_368, %c3584_369], %488 {strides = array<i32>} : memref<1x6400xf32, #tpu.memory_space<vmem>>, vector<1x128xf32>,
    %c0_370 = arith.constant 0 : index
    %c0_371 = arith.constant 0 : index
    %c3712 = arith.constant 3712 : index
    %490 = vector.load %arg10[%c0_370, %c0_371, %c3712] : memref<1x32x6400xi8, #tpu.memory_space<vmem>>, vector<1x32x128xi8>
    %491 = vector.shape_cast %490 : vector<1x32x128xi8> to vector<32x128xi8>
    %492 = arith.extsi %491 : vector<32x128xi8> to vector<32x128xi32>
    %c0_i32_372 = arith.constant 0 : i32
    %493 = vector.broadcast %c0_i32_372 : i32 to vector<32x128xi32>
    %494 = arith.cmpi sge, %492, %493 : vector<32x128xi32>
    %cst_373 = arith.constant 0.000000e+00 : f32
    %495 = vector.broadcast %cst_373 : f32 to vector<32x128xf32>
    %496 = arith.select %494, %15, %495 : vector<32x128xi1>, vector<32x128xf32>
    %c0_374 = arith.constant 0 : index
    %c3712_375 = arith.constant 3712 : index
    %497 = vector.load %arg15[%c0_374, %c3712_375] : memref<32x6400xf32, #tpu.memory_space<vmem>>, vector<32x128xf32>
    tpu.vector_store %arg15[%c0_374, %c3712_375], %496 {strides = array<i32>} : memref<32x6400xf32, #tpu.memory_space<vmem>>, vector<32x128xf32>,
    %c0_376 = arith.constant 0 : index
    %c29 = arith.constant 29 : index
    %c0_377 = arith.constant 0 : index
    %498 = vector.load %arg11[%c0_376, %c29, %c0_377] : memref<1x50x128xi32, #tpu.memory_space<vmem>>, vector<1x1x128xi32>
    %499 = vector.shape_cast %498 : vector<1x1x128xi32> to vector<1x128xi32>
    %c0_i32_378 = arith.constant 0 : i32
    %500 = vector.broadcast %c0_i32_378 : i32 to vector<1x128xi32>
    %501 = arith.cmpi sge, %499, %500 : vector<1x128xi32>
    %cst_379 = arith.constant 0.000000e+00 : f32
    %502 = vector.broadcast %cst_379 : f32 to vector<1x128xf32>
    %503 = arith.select %501, %19, %502 : vector<1x128xi1>, vector<1x128xf32>
    %504 = arith.addf %503, %10 : vector<1x128xf32>
    %c0_380 = arith.constant 0 : index
    %c3712_381 = arith.constant 3712 : index
    %505 = vector.load %arg16[%c0_380, %c3712_381] : memref<1x6400xf32, #tpu.memory_space<vmem>>, vector<1x128xf32>
    tpu.vector_store %arg16[%c0_380, %c3712_381], %504 {strides = array<i32>} : memref<1x6400xf32, #tpu.memory_space<vmem>>, vector<1x128xf32>,
    %c0_382 = arith.constant 0 : index
    %c0_383 = arith.constant 0 : index
    %c3840 = arith.constant 3840 : index
    %506 = vector.load %arg10[%c0_382, %c0_383, %c3840] : memref<1x32x6400xi8, #tpu.memory_space<vmem>>, vector<1x32x128xi8>
    %507 = vector.shape_cast %506 : vector<1x32x128xi8> to vector<32x128xi8>
    %508 = arith.extsi %507 : vector<32x128xi8> to vector<32x128xi32>
    %c0_i32_384 = arith.constant 0 : i32
    %509 = vector.broadcast %c0_i32_384 : i32 to vector<32x128xi32>
    %510 = arith.cmpi sge, %508, %509 : vector<32x128xi32>
    %cst_385 = arith.constant 0.000000e+00 : f32
    %511 = vector.broadcast %cst_385 : f32 to vector<32x128xf32>
    %512 = arith.select %510, %15, %511 : vector<32x128xi1>, vector<32x128xf32>
    %c0_386 = arith.constant 0 : index
    %c3840_387 = arith.constant 3840 : index
    %513 = vector.load %arg15[%c0_386, %c3840_387] : memref<32x6400xf32, #tpu.memory_space<vmem>>, vector<32x128xf32>
    tpu.vector_store %arg15[%c0_386, %c3840_387], %512 {strides = array<i32>} : memref<32x6400xf32, #tpu.memory_space<vmem>>, vector<32x128xf32>,
    %c0_388 = arith.constant 0 : index
    %c30 = arith.constant 30 : index
    %c0_389 = arith.constant 0 : index
    %514 = vector.load %arg11[%c0_388, %c30, %c0_389] : memref<1x50x128xi32, #tpu.memory_space<vmem>>, vector<1x1x128xi32>
    %515 = vector.shape_cast %514 : vector<1x1x128xi32> to vector<1x128xi32>
    %c0_i32_390 = arith.constant 0 : i32
    %516 = vector.broadcast %c0_i32_390 : i32 to vector<1x128xi32>
    %517 = arith.cmpi sge, %515, %516 : vector<1x128xi32>
    %cst_391 = arith.constant 0.000000e+00 : f32
    %518 = vector.broadcast %cst_391 : f32 to vector<1x128xf32>
    %519 = arith.select %517, %19, %518 : vector<1x128xi1>, vector<1x128xf32>
    %520 = arith.addf %519, %10 : vector<1x128xf32>
    %c0_392 = arith.constant 0 : index
    %c3840_393 = arith.constant 3840 : index
    %521 = vector.load %arg16[%c0_392, %c3840_393] : memref<1x6400xf32, #tpu.memory_space<vmem>>, vector<1x128xf32>
    tpu.vector_store %arg16[%c0_392, %c3840_393], %520 {strides = array<i32>} : memref<1x6400xf32, #tpu.memory_space<vmem>>, vector<1x128xf32>,
    %c0_394 = arith.constant 0 : index
    %c0_395 = arith.constant 0 : index
    %c3968 = arith.constant 3968 : index
    %522 = vector.load %arg10[%c0_394, %c0_395, %c3968] : memref<1x32x6400xi8, #tpu.memory_space<vmem>>, vector<1x32x128xi8>
    %523 = vector.shape_cast %522 : vector<1x32x128xi8> to vector<32x128xi8>
    %524 = arith.extsi %523 : vector<32x128xi8> to vector<32x128xi32>
    %c0_i32_396 = arith.constant 0 : i32
    %525 = vector.broadcast %c0_i32_396 : i32 to vector<32x128xi32>
    %526 = arith.cmpi sge, %524, %525 : vector<32x128xi32>
    %cst_397 = arith.constant 0.000000e+00 : f32
    %527 = vector.broadcast %cst_397 : f32 to vector<32x128xf32>
    %528 = arith.select %526, %15, %527 : vector<32x128xi1>, vector<32x128xf32>
    %c0_398 = arith.constant 0 : index
    %c3968_399 = arith.constant 3968 : index
    %529 = vector.load %arg15[%c0_398, %c3968_399] : memref<32x6400xf32, #tpu.memory_space<vmem>>, vector<32x128xf32>
    tpu.vector_store %arg15[%c0_398, %c3968_399], %528 {strides = array<i32>} : memref<32x6400xf32, #tpu.memory_space<vmem>>, vector<32x128xf32>,
    %c0_400 = arith.constant 0 : index
    %c31 = arith.constant 31 : index
    %c0_401 = arith.constant 0 : index
    %530 = vector.load %arg11[%c0_400, %c31, %c0_401] : memref<1x50x128xi32, #tpu.memory_space<vmem>>, vector<1x1x128xi32>
    %531 = vector.shape_cast %530 : vector<1x1x128xi32> to vector<1x128xi32>
    %c0_i32_402 = arith.constant 0 : i32
    %532 = vector.broadcast %c0_i32_402 : i32 to vector<1x128xi32>
    %533 = arith.cmpi sge, %531, %532 : vector<1x128xi32>
    %cst_403 = arith.constant 0.000000e+00 : f32
    %534 = vector.broadcast %cst_403 : f32 to vector<1x128xf32>
    %535 = arith.select %533, %19, %534 : vector<1x128xi1>, vector<1x128xf32>
    %536 = arith.addf %535, %10 : vector<1x128xf32>
    %c0_404 = arith.constant 0 : index
    %c3968_405 = arith.constant 3968 : index
    %537 = vector.load %arg16[%c0_404, %c3968_405] : memref<1x6400xf32, #tpu.memory_space<vmem>>, vector<1x128xf32>
    tpu.vector_store %arg16[%c0_404, %c3968_405], %536 {strides = array<i32>} : memref<1x6400xf32, #tpu.memory_space<vmem>>, vector<1x128xf32>,
    %c0_406 = arith.constant 0 : index
    %c0_407 = arith.constant 0 : index
    %c4096 = arith.constant 4096 : index
    %538 = vector.load %arg10[%c0_406, %c0_407, %c4096] : memref<1x32x6400xi8, #tpu.memory_space<vmem>>, vector<1x32x128xi8>
    %539 = vector.shape_cast %538 : vector<1x32x128xi8> to vector<32x128xi8>
    %540 = arith.extsi %539 : vector<32x128xi8> to vector<32x128xi32>
    %c0_i32_408 = arith.constant 0 : i32
    %541 = vector.broadcast %c0_i32_408 : i32 to vector<32x128xi32>
    %542 = arith.cmpi sge, %540, %541 : vector<32x128xi32>
    %cst_409 = arith.constant 0.000000e+00 : f32
    %543 = vector.broadcast %cst_409 : f32 to vector<32x128xf32>
    %544 = arith.select %542, %15, %543 : vector<32x128xi1>, vector<32x128xf32>
    %c0_410 = arith.constant 0 : index
    %c4096_411 = arith.constant 4096 : index
    %545 = vector.load %arg15[%c0_410, %c4096_411] : memref<32x6400xf32, #tpu.memory_space<vmem>>, vector<32x128xf32>
    tpu.vector_store %arg15[%c0_410, %c4096_411], %544 {strides = array<i32>} : memref<32x6400xf32, #tpu.memory_space<vmem>>, vector<32x128xf32>,
    %c0_412 = arith.constant 0 : index
    %c32 = arith.constant 32 : index
    %c0_413 = arith.constant 0 : index
    %546 = vector.load %arg11[%c0_412, %c32, %c0_413] : memref<1x50x128xi32, #tpu.memory_space<vmem>>, vector<1x1x128xi32>
    %547 = vector.shape_cast %546 : vector<1x1x128xi32> to vector<1x128xi32>
    %c0_i32_414 = arith.constant 0 : i32
    %548 = vector.broadcast %c0_i32_414 : i32 to vector<1x128xi32>
    %549 = arith.cmpi sge, %547, %548 : vector<1x128xi32>
    %cst_415 = arith.constant 0.000000e+00 : f32
    %550 = vector.broadcast %cst_415 : f32 to vector<1x128xf32>
    %551 = arith.select %549, %19, %550 : vector<1x128xi1>, vector<1x128xf32>
    %552 = arith.addf %551, %10 : vector<1x128xf32>
    %c0_416 = arith.constant 0 : index
    %c4096_417 = arith.constant 4096 : index
    %553 = vector.load %arg16[%c0_416, %c4096_417] : memref<1x6400xf32, #tpu.memory_space<vmem>>, vector<1x128xf32>
    tpu.vector_store %arg16[%c0_416, %c4096_417], %552 {strides = array<i32>} : memref<1x6400xf32, #tpu.memory_space<vmem>>, vector<1x128xf32>,
    %c0_418 = arith.constant 0 : index
    %c0_419 = arith.constant 0 : index
    %c4224 = arith.constant 4224 : index
    %554 = vector.load %arg10[%c0_418, %c0_419, %c4224] : memref<1x32x6400xi8, #tpu.memory_space<vmem>>, vector<1x32x128xi8>
    %555 = vector.shape_cast %554 : vector<1x32x128xi8> to vector<32x128xi8>
    %556 = arith.extsi %555 : vector<32x128xi8> to vector<32x128xi32>
    %c0_i32_420 = arith.constant 0 : i32
    %557 = vector.broadcast %c0_i32_420 : i32 to vector<32x128xi32>
    %558 = arith.cmpi sge, %556, %557 : vector<32x128xi32>
    %cst_421 = arith.constant 0.000000e+00 : f32
    %559 = vector.broadcast %cst_421 : f32 to vector<32x128xf32>
    %560 = arith.select %558, %15, %559 : vector<32x128xi1>, vector<32x128xf32>
    %c0_422 = arith.constant 0 : index
    %c4224_423 = arith.constant 4224 : index
    %561 = vector.load %arg15[%c0_422, %c4224_423] : memref<32x6400xf32, #tpu.memory_space<vmem>>, vector<32x128xf32>
    tpu.vector_store %arg15[%c0_422, %c4224_423], %560 {strides = array<i32>} : memref<32x6400xf32, #tpu.memory_space<vmem>>, vector<32x128xf32>,
    %c0_424 = arith.constant 0 : index
    %c33 = arith.constant 33 : index
    %c0_425 = arith.constant 0 : index
    %562 = vector.load %arg11[%c0_424, %c33, %c0_425] : memref<1x50x128xi32, #tpu.memory_space<vmem>>, vector<1x1x128xi32>
    %563 = vector.shape_cast %562 : vector<1x1x128xi32> to vector<1x128xi32>
    %c0_i32_426 = arith.constant 0 : i32
    %564 = vector.broadcast %c0_i32_426 : i32 to vector<1x128xi32>
    %565 = arith.cmpi sge, %563, %564 : vector<1x128xi32>
    %cst_427 = arith.constant 0.000000e+00 : f32
    %566 = vector.broadcast %cst_427 : f32 to vector<1x128xf32>
    %567 = arith.select %565, %19, %566 : vector<1x128xi1>, vector<1x128xf32>
    %568 = arith.addf %567, %10 : vector<1x128xf32>
    %c0_428 = arith.constant 0 : index
    %c4224_429 = arith.constant 4224 : index
    %569 = vector.load %arg16[%c0_428, %c4224_429] : memref<1x6400xf32, #tpu.memory_space<vmem>>, vector<1x128xf32>
    tpu.vector_store %arg16[%c0_428, %c4224_429], %568 {strides = array<i32>} : memref<1x6400xf32, #tpu.memory_space<vmem>>, vector<1x128xf32>,
    %c0_430 = arith.constant 0 : index
    %c0_431 = arith.constant 0 : index
    %c4352 = arith.constant 4352 : index
    %570 = vector.load %arg10[%c0_430, %c0_431, %c4352] : memref<1x32x6400xi8, #tpu.memory_space<vmem>>, vector<1x32x128xi8>
    %571 = vector.shape_cast %570 : vector<1x32x128xi8> to vector<32x128xi8>
    %572 = arith.extsi %571 : vector<32x128xi8> to vector<32x128xi32>
    %c0_i32_432 = arith.constant 0 : i32
    %573 = vector.broadcast %c0_i32_432 : i32 to vector<32x128xi32>
    %574 = arith.cmpi sge, %572, %573 : vector<32x128xi32>
    %cst_433 = arith.constant 0.000000e+00 : f32
    %575 = vector.broadcast %cst_433 : f32 to vector<32x128xf32>
    %576 = arith.select %574, %15, %575 : vector<32x128xi1>, vector<32x128xf32>
    %c0_434 = arith.constant 0 : index
    %c4352_435 = arith.constant 4352 : index
    %577 = vector.load %arg15[%c0_434, %c4352_435] : memref<32x6400xf32, #tpu.memory_space<vmem>>, vector<32x128xf32>
    tpu.vector_store %arg15[%c0_434, %c4352_435], %576 {strides = array<i32>} : memref<32x6400xf32, #tpu.memory_space<vmem>>, vector<32x128xf32>,
    %c0_436 = arith.constant 0 : index
    %c34 = arith.constant 34 : index
    %c0_437 = arith.constant 0 : index
    %578 = vector.load %arg11[%c0_436, %c34, %c0_437] : memref<1x50x128xi32, #tpu.memory_space<vmem>>, vector<1x1x128xi32>
    %579 = vector.shape_cast %578 : vector<1x1x128xi32> to vector<1x128xi32>
    %c0_i32_438 = arith.constant 0 : i32
    %580 = vector.broadcast %c0_i32_438 : i32 to vector<1x128xi32>
    %581 = arith.cmpi sge, %579, %580 : vector<1x128xi32>
    %cst_439 = arith.constant 0.000000e+00 : f32
    %582 = vector.broadcast %cst_439 : f32 to vector<1x128xf32>
    %583 = arith.select %581, %19, %582 : vector<1x128xi1>, vector<1x128xf32>
    %584 = arith.addf %583, %10 : vector<1x128xf32>
    %c0_440 = arith.constant 0 : index
    %c4352_441 = arith.constant 4352 : index
    %585 = vector.load %arg16[%c0_440, %c4352_441] : memref<1x6400xf32, #tpu.memory_space<vmem>>, vector<1x128xf32>
    tpu.vector_store %arg16[%c0_440, %c4352_441], %584 {strides = array<i32>} : memref<1x6400xf32, #tpu.memory_space<vmem>>, vector<1x128xf32>,
    %c0_442 = arith.constant 0 : index
    %c0_443 = arith.constant 0 : index
    %c4480 = arith.constant 4480 : index
    %586 = vector.load %arg10[%c0_442, %c0_443, %c4480] : memref<1x32x6400xi8, #tpu.memory_space<vmem>>, vector<1x32x128xi8>
    %587 = vector.shape_cast %586 : vector<1x32x128xi8> to vector<32x128xi8>
    %588 = arith.extsi %587 : vector<32x128xi8> to vector<32x128xi32>
    %c0_i32_444 = arith.constant 0 : i32
    %589 = vector.broadcast %c0_i32_444 : i32 to vector<32x128xi32>
    %590 = arith.cmpi sge, %588, %589 : vector<32x128xi32>
    %cst_445 = arith.constant 0.000000e+00 : f32
    %591 = vector.broadcast %cst_445 : f32 to vector<32x128xf32>
    %592 = arith.select %590, %15, %591 : vector<32x128xi1>, vector<32x128xf32>
    %c0_446 = arith.constant 0 : index
    %c4480_447 = arith.constant 4480 : index
    %593 = vector.load %arg15[%c0_446, %c4480_447] : memref<32x6400xf32, #tpu.memory_space<vmem>>, vector<32x128xf32>
    tpu.vector_store %arg15[%c0_446, %c4480_447], %592 {strides = array<i32>} : memref<32x6400xf32, #tpu.memory_space<vmem>>, vector<32x128xf32>,
    %c0_448 = arith.constant 0 : index
    %c35 = arith.constant 35 : index
    %c0_449 = arith.constant 0 : index
    %594 = vector.load %arg11[%c0_448, %c35, %c0_449] : memref<1x50x128xi32, #tpu.memory_space<vmem>>, vector<1x1x128xi32>
    %595 = vector.shape_cast %594 : vector<1x1x128xi32> to vector<1x128xi32>
    %c0_i32_450 = arith.constant 0 : i32
    %596 = vector.broadcast %c0_i32_450 : i32 to vector<1x128xi32>
    %597 = arith.cmpi sge, %595, %596 : vector<1x128xi32>
    %cst_451 = arith.constant 0.000000e+00 : f32
    %598 = vector.broadcast %cst_451 : f32 to vector<1x128xf32>
    %599 = arith.select %597, %19, %598 : vector<1x128xi1>, vector<1x128xf32>
    %600 = arith.addf %599, %10 : vector<1x128xf32>
    %c0_452 = arith.constant 0 : index
    %c4480_453 = arith.constant 4480 : index
    %601 = vector.load %arg16[%c0_452, %c4480_453] : memref<1x6400xf32, #tpu.memory_space<vmem>>, vector<1x128xf32>
    tpu.vector_store %arg16[%c0_452, %c4480_453], %600 {strides = array<i32>} : memref<1x6400xf32, #tpu.memory_space<vmem>>, vector<1x128xf32>,
    %c0_454 = arith.constant 0 : index
    %c0_455 = arith.constant 0 : index
    %c4608 = arith.constant 4608 : index
    %602 = vector.load %arg10[%c0_454, %c0_455, %c4608] : memref<1x32x6400xi8, #tpu.memory_space<vmem>>, vector<1x32x128xi8>
    %603 = vector.shape_cast %602 : vector<1x32x128xi8> to vector<32x128xi8>
    %604 = arith.extsi %603 : vector<32x128xi8> to vector<32x128xi32>
    %c0_i32_456 = arith.constant 0 : i32
    %605 = vector.broadcast %c0_i32_456 : i32 to vector<32x128xi32>
    %606 = arith.cmpi sge, %604, %605 : vector<32x128xi32>
    %cst_457 = arith.constant 0.000000e+00 : f32
    %607 = vector.broadcast %cst_457 : f32 to vector<32x128xf32>
    %608 = arith.select %606, %15, %607 : vector<32x128xi1>, vector<32x128xf32>
    %c0_458 = arith.constant 0 : index
    %c4608_459 = arith.constant 4608 : index
    %609 = vector.load %arg15[%c0_458, %c4608_459] : memref<32x6400xf32, #tpu.memory_space<vmem>>, vector<32x128xf32>
    tpu.vector_store %arg15[%c0_458, %c4608_459], %608 {strides = array<i32>} : memref<32x6400xf32, #tpu.memory_space<vmem>>, vector<32x128xf32>,
    %c0_460 = arith.constant 0 : index
    %c36 = arith.constant 36 : index
    %c0_461 = arith.constant 0 : index
    %610 = vector.load %arg11[%c0_460, %c36, %c0_461] : memref<1x50x128xi32, #tpu.memory_space<vmem>>, vector<1x1x128xi32>
    %611 = vector.shape_cast %610 : vector<1x1x128xi32> to vector<1x128xi32>
    %c0_i32_462 = arith.constant 0 : i32
    %612 = vector.broadcast %c0_i32_462 : i32 to vector<1x128xi32>
    %613 = arith.cmpi sge, %611, %612 : vector<1x128xi32>
    %cst_463 = arith.constant 0.000000e+00 : f32
    %614 = vector.broadcast %cst_463 : f32 to vector<1x128xf32>
    %615 = arith.select %613, %19, %614 : vector<1x128xi1>, vector<1x128xf32>
    %616 = arith.addf %615, %10 : vector<1x128xf32>
    %c0_464 = arith.constant 0 : index
    %c4608_465 = arith.constant 4608 : index
    %617 = vector.load %arg16[%c0_464, %c4608_465] : memref<1x6400xf32, #tpu.memory_space<vmem>>, vector<1x128xf32>
    tpu.vector_store %arg16[%c0_464, %c4608_465], %616 {strides = array<i32>} : memref<1x6400xf32, #tpu.memory_space<vmem>>, vector<1x128xf32>,
    %c0_466 = arith.constant 0 : index
    %c0_467 = arith.constant 0 : index
    %c4736 = arith.constant 4736 : index
    %618 = vector.load %arg10[%c0_466, %c0_467, %c4736] : memref<1x32x6400xi8, #tpu.memory_space<vmem>>, vector<1x32x128xi8>
    %619 = vector.shape_cast %618 : vector<1x32x128xi8> to vector<32x128xi8>
    %620 = arith.extsi %619 : vector<32x128xi8> to vector<32x128xi32>
    %c0_i32_468 = arith.constant 0 : i32
    %621 = vector.broadcast %c0_i32_468 : i32 to vector<32x128xi32>
    %622 = arith.cmpi sge, %620, %621 : vector<32x128xi32>
    %cst_469 = arith.constant 0.000000e+00 : f32
    %623 = vector.broadcast %cst_469 : f32 to vector<32x128xf32>
    %624 = arith.select %622, %15, %623 : vector<32x128xi1>, vector<32x128xf32>
    %c0_470 = arith.constant 0 : index
    %c4736_471 = arith.constant 4736 : index
    %625 = vector.load %arg15[%c0_470, %c4736_471] : memref<32x6400xf32, #tpu.memory_space<vmem>>, vector<32x128xf32>
    tpu.vector_store %arg15[%c0_470, %c4736_471], %624 {strides = array<i32>} : memref<32x6400xf32, #tpu.memory_space<vmem>>, vector<32x128xf32>,
    %c0_472 = arith.constant 0 : index
    %c37 = arith.constant 37 : index
    %c0_473 = arith.constant 0 : index
    %626 = vector.load %arg11[%c0_472, %c37, %c0_473] : memref<1x50x128xi32, #tpu.memory_space<vmem>>, vector<1x1x128xi32>
    %627 = vector.shape_cast %626 : vector<1x1x128xi32> to vector<1x128xi32>
    %c0_i32_474 = arith.constant 0 : i32
    %628 = vector.broadcast %c0_i32_474 : i32 to vector<1x128xi32>
    %629 = arith.cmpi sge, %627, %628 : vector<1x128xi32>
    %cst_475 = arith.constant 0.000000e+00 : f32
    %630 = vector.broadcast %cst_475 : f32 to vector<1x128xf32>
    %631 = arith.select %629, %19, %630 : vector<1x128xi1>, vector<1x128xf32>
    %632 = arith.addf %631, %10 : vector<1x128xf32>
    %c0_476 = arith.constant 0 : index
    %c4736_477 = arith.constant 4736 : index
    %633 = vector.load %arg16[%c0_476, %c4736_477] : memref<1x6400xf32, #tpu.memory_space<vmem>>, vector<1x128xf32>
    tpu.vector_store %arg16[%c0_476, %c4736_477], %632 {strides = array<i32>} : memref<1x6400xf32, #tpu.memory_space<vmem>>, vector<1x128xf32>,
    %c0_478 = arith.constant 0 : index
    %c0_479 = arith.constant 0 : index
    %c4864 = arith.constant 4864 : index
    %634 = vector.load %arg10[%c0_478, %c0_479, %c4864] : memref<1x32x6400xi8, #tpu.memory_space<vmem>>, vector<1x32x128xi8>
    %635 = vector.shape_cast %634 : vector<1x32x128xi8> to vector<32x128xi8>
    %636 = arith.extsi %635 : vector<32x128xi8> to vector<32x128xi32>
    %c0_i32_480 = arith.constant 0 : i32
    %637 = vector.broadcast %c0_i32_480 : i32 to vector<32x128xi32>
    %638 = arith.cmpi sge, %636, %637 : vector<32x128xi32>
    %cst_481 = arith.constant 0.000000e+00 : f32
    %639 = vector.broadcast %cst_481 : f32 to vector<32x128xf32>
    %640 = arith.select %638, %15, %639 : vector<32x128xi1>, vector<32x128xf32>
    %c0_482 = arith.constant 0 : index
    %c4864_483 = arith.constant 4864 : index
    %641 = vector.load %arg15[%c0_482, %c4864_483] : memref<32x6400xf32, #tpu.memory_space<vmem>>, vector<32x128xf32>
    tpu.vector_store %arg15[%c0_482, %c4864_483], %640 {strides = array<i32>} : memref<32x6400xf32, #tpu.memory_space<vmem>>, vector<32x128xf32>,
    %c0_484 = arith.constant 0 : index
    %c38 = arith.constant 38 : index
    %c0_485 = arith.constant 0 : index
    %642 = vector.load %arg11[%c0_484, %c38, %c0_485] : memref<1x50x128xi32, #tpu.memory_space<vmem>>, vector<1x1x128xi32>
    %643 = vector.shape_cast %642 : vector<1x1x128xi32> to vector<1x128xi32>
    %c0_i32_486 = arith.constant 0 : i32
    %644 = vector.broadcast %c0_i32_486 : i32 to vector<1x128xi32>
    %645 = arith.cmpi sge, %643, %644 : vector<1x128xi32>
    %cst_487 = arith.constant 0.000000e+00 : f32
    %646 = vector.broadcast %cst_487 : f32 to vector<1x128xf32>
    %647 = arith.select %645, %19, %646 : vector<1x128xi1>, vector<1x128xf32>
    %648 = arith.addf %647, %10 : vector<1x128xf32>
    %c0_488 = arith.constant 0 : index
    %c4864_489 = arith.constant 4864 : index
    %649 = vector.load %arg16[%c0_488, %c4864_489] : memref<1x6400xf32, #tpu.memory_space<vmem>>, vector<1x128xf32>
    tpu.vector_store %arg16[%c0_488, %c4864_489], %648 {strides = array<i32>} : memref<1x6400xf32, #tpu.memory_space<vmem>>, vector<1x128xf32>,
    %c0_490 = arith.constant 0 : index
    %c0_491 = arith.constant 0 : index
    %c4992 = arith.constant 4992 : index
    %650 = vector.load %arg10[%c0_490, %c0_491, %c4992] : memref<1x32x6400xi8, #tpu.memory_space<vmem>>, vector<1x32x128xi8>
    %651 = vector.shape_cast %650 : vector<1x32x128xi8> to vector<32x128xi8>
    %652 = arith.extsi %651 : vector<32x128xi8> to vector<32x128xi32>
    %c0_i32_492 = arith.constant 0 : i32
    %653 = vector.broadcast %c0_i32_492 : i32 to vector<32x128xi32>
    %654 = arith.cmpi sge, %652, %653 : vector<32x128xi32>
    %cst_493 = arith.constant 0.000000e+00 : f32
    %655 = vector.broadcast %cst_493 : f32 to vector<32x128xf32>
    %656 = arith.select %654, %15, %655 : vector<32x128xi1>, vector<32x128xf32>
    %c0_494 = arith.constant 0 : index
    %c4992_495 = arith.constant 4992 : index
    %657 = vector.load %arg15[%c0_494, %c4992_495] : memref<32x6400xf32, #tpu.memory_space<vmem>>, vector<32x128xf32>
    tpu.vector_store %arg15[%c0_494, %c4992_495], %656 {strides = array<i32>} : memref<32x6400xf32, #tpu.memory_space<vmem>>, vector<32x128xf32>,
    %c0_496 = arith.constant 0 : index
    %c39 = arith.constant 39 : index
    %c0_497 = arith.constant 0 : index
    %658 = vector.load %arg11[%c0_496, %c39, %c0_497] : memref<1x50x128xi32, #tpu.memory_space<vmem>>, vector<1x1x128xi32>
    %659 = vector.shape_cast %658 : vector<1x1x128xi32> to vector<1x128xi32>
    %c0_i32_498 = arith.constant 0 : i32
    %660 = vector.broadcast %c0_i32_498 : i32 to vector<1x128xi32>
    %661 = arith.cmpi sge, %659, %660 : vector<1x128xi32>
    %cst_499 = arith.constant 0.000000e+00 : f32
    %662 = vector.broadcast %cst_499 : f32 to vector<1x128xf32>
    %663 = arith.select %661, %19, %662 : vector<1x128xi1>, vector<1x128xf32>
    %664 = arith.addf %663, %10 : vector<1x128xf32>
    %c0_500 = arith.constant 0 : index
    %c4992_501 = arith.constant 4992 : index
    %665 = vector.load %arg16[%c0_500, %c4992_501] : memref<1x6400xf32, #tpu.memory_space<vmem>>, vector<1x128xf32>
    tpu.vector_store %arg16[%c0_500, %c4992_501], %664 {strides = array<i32>} : memref<1x6400xf32, #tpu.memory_space<vmem>>, vector<1x128xf32>,
    %c0_502 = arith.constant 0 : index
    %c0_503 = arith.constant 0 : index
    %c5120 = arith.constant 5120 : index
    %666 = vector.load %arg10[%c0_502, %c0_503, %c5120] : memref<1x32x6400xi8, #tpu.memory_space<vmem>>, vector<1x32x128xi8>
    %667 = vector.shape_cast %666 : vector<1x32x128xi8> to vector<32x128xi8>
    %668 = arith.extsi %667 : vector<32x128xi8> to vector<32x128xi32>
    %c0_i32_504 = arith.constant 0 : i32
    %669 = vector.broadcast %c0_i32_504 : i32 to vector<32x128xi32>
    %670 = arith.cmpi sge, %668, %669 : vector<32x128xi32>
    %cst_505 = arith.constant 0.000000e+00 : f32
    %671 = vector.broadcast %cst_505 : f32 to vector<32x128xf32>
    %672 = arith.select %670, %15, %671 : vector<32x128xi1>, vector<32x128xf32>
    %c0_506 = arith.constant 0 : index
    %c5120_507 = arith.constant 5120 : index
    %673 = vector.load %arg15[%c0_506, %c5120_507] : memref<32x6400xf32, #tpu.memory_space<vmem>>, vector<32x128xf32>
    tpu.vector_store %arg15[%c0_506, %c5120_507], %672 {strides = array<i32>} : memref<32x6400xf32, #tpu.memory_space<vmem>>, vector<32x128xf32>,
    %c0_508 = arith.constant 0 : index
    %c40 = arith.constant 40 : index
    %c0_509 = arith.constant 0 : index
    %674 = vector.load %arg11[%c0_508, %c40, %c0_509] : memref<1x50x128xi32, #tpu.memory_space<vmem>>, vector<1x1x128xi32>
    %675 = vector.shape_cast %674 : vector<1x1x128xi32> to vector<1x128xi32>
    %c0_i32_510 = arith.constant 0 : i32
    %676 = vector.broadcast %c0_i32_510 : i32 to vector<1x128xi32>
    %677 = arith.cmpi sge, %675, %676 : vector<1x128xi32>
    %cst_511 = arith.constant 0.000000e+00 : f32
    %678 = vector.broadcast %cst_511 : f32 to vector<1x128xf32>
    %679 = arith.select %677, %19, %678 : vector<1x128xi1>, vector<1x128xf32>
    %680 = arith.addf %679, %10 : vector<1x128xf32>
    %c0_512 = arith.constant 0 : index
    %c5120_513 = arith.constant 5120 : index
    %681 = vector.load %arg16[%c0_512, %c5120_513] : memref<1x6400xf32, #tpu.memory_space<vmem>>, vector<1x128xf32>
    tpu.vector_store %arg16[%c0_512, %c5120_513], %680 {strides = array<i32>} : memref<1x6400xf32, #tpu.memory_space<vmem>>, vector<1x128xf32>,
    %c0_514 = arith.constant 0 : index
    %c0_515 = arith.constant 0 : index
    %c5248 = arith.constant 5248 : index
    %682 = vector.load %arg10[%c0_514, %c0_515, %c5248] : memref<1x32x6400xi8, #tpu.memory_space<vmem>>, vector<1x32x128xi8>
    %683 = vector.shape_cast %682 : vector<1x32x128xi8> to vector<32x128xi8>
    %684 = arith.extsi %683 : vector<32x128xi8> to vector<32x128xi32>
    %c0_i32_516 = arith.constant 0 : i32
    %685 = vector.broadcast %c0_i32_516 : i32 to vector<32x128xi32>
    %686 = arith.cmpi sge, %684, %685 : vector<32x128xi32>
    %cst_517 = arith.constant 0.000000e+00 : f32
    %687 = vector.broadcast %cst_517 : f32 to vector<32x128xf32>
    %688 = arith.select %686, %15, %687 : vector<32x128xi1>, vector<32x128xf32>
    %c0_518 = arith.constant 0 : index
    %c5248_519 = arith.constant 5248 : index
    %689 = vector.load %arg15[%c0_518, %c5248_519] : memref<32x6400xf32, #tpu.memory_space<vmem>>, vector<32x128xf32>
    tpu.vector_store %arg15[%c0_518, %c5248_519], %688 {strides = array<i32>} : memref<32x6400xf32, #tpu.memory_space<vmem>>, vector<32x128xf32>,
    %c0_520 = arith.constant 0 : index
    %c41 = arith.constant 41 : index
    %c0_521 = arith.constant 0 : index
    %690 = vector.load %arg11[%c0_520, %c41, %c0_521] : memref<1x50x128xi32, #tpu.memory_space<vmem>>, vector<1x1x128xi32>
    %691 = vector.shape_cast %690 : vector<1x1x128xi32> to vector<1x128xi32>
    %c0_i32_522 = arith.constant 0 : i32
    %692 = vector.broadcast %c0_i32_522 : i32 to vector<1x128xi32>
    %693 = arith.cmpi sge, %691, %692 : vector<1x128xi32>
    %cst_523 = arith.constant 0.000000e+00 : f32
    %694 = vector.broadcast %cst_523 : f32 to vector<1x128xf32>
    %695 = arith.select %693, %19, %694 : vector<1x128xi1>, vector<1x128xf32>
    %696 = arith.addf %695, %10 : vector<1x128xf32>
    %c0_524 = arith.constant 0 : index
    %c5248_525 = arith.constant 5248 : index
    %697 = vector.load %arg16[%c0_524, %c5248_525] : memref<1x6400xf32, #tpu.memory_space<vmem>>, vector<1x128xf32>
    tpu.vector_store %arg16[%c0_524, %c5248_525], %696 {strides = array<i32>} : memref<1x6400xf32, #tpu.memory_space<vmem>>, vector<1x128xf32>,
    %c0_526 = arith.constant 0 : index
    %c0_527 = arith.constant 0 : index
    %c5376 = arith.constant 5376 : index
    %698 = vector.load %arg10[%c0_526, %c0_527, %c5376] : memref<1x32x6400xi8, #tpu.memory_space<vmem>>, vector<1x32x128xi8>
    %699 = vector.shape_cast %698 : vector<1x32x128xi8> to vector<32x128xi8>
    %700 = arith.extsi %699 : vector<32x128xi8> to vector<32x128xi32>
    %c0_i32_528 = arith.constant 0 : i32
    %701 = vector.broadcast %c0_i32_528 : i32 to vector<32x128xi32>
    %702 = arith.cmpi sge, %700, %701 : vector<32x128xi32>
    %cst_529 = arith.constant 0.000000e+00 : f32
    %703 = vector.broadcast %cst_529 : f32 to vector<32x128xf32>
    %704 = arith.select %702, %15, %703 : vector<32x128xi1>, vector<32x128xf32>
    %c0_530 = arith.constant 0 : index
    %c5376_531 = arith.constant 5376 : index
    %705 = vector.load %arg15[%c0_530, %c5376_531] : memref<32x6400xf32, #tpu.memory_space<vmem>>, vector<32x128xf32>
    tpu.vector_store %arg15[%c0_530, %c5376_531], %704 {strides = array<i32>} : memref<32x6400xf32, #tpu.memory_space<vmem>>, vector<32x128xf32>,
    %c0_532 = arith.constant 0 : index
    %c42 = arith.constant 42 : index
    %c0_533 = arith.constant 0 : index
    %706 = vector.load %arg11[%c0_532, %c42, %c0_533] : memref<1x50x128xi32, #tpu.memory_space<vmem>>, vector<1x1x128xi32>
    %707 = vector.shape_cast %706 : vector<1x1x128xi32> to vector<1x128xi32>
    %c0_i32_534 = arith.constant 0 : i32
    %708 = vector.broadcast %c0_i32_534 : i32 to vector<1x128xi32>
    %709 = arith.cmpi sge, %707, %708 : vector<1x128xi32>
    %cst_535 = arith.constant 0.000000e+00 : f32
    %710 = vector.broadcast %cst_535 : f32 to vector<1x128xf32>
    %711 = arith.select %709, %19, %710 : vector<1x128xi1>, vector<1x128xf32>
    %712 = arith.addf %711, %10 : vector<1x128xf32>
    %c0_536 = arith.constant 0 : index
    %c5376_537 = arith.constant 5376 : index
    %713 = vector.load %arg16[%c0_536, %c5376_537] : memref<1x6400xf32, #tpu.memory_space<vmem>>, vector<1x128xf32>
    tpu.vector_store %arg16[%c0_536, %c5376_537], %712 {strides = array<i32>} : memref<1x6400xf32, #tpu.memory_space<vmem>>, vector<1x128xf32>,
    %c0_538 = arith.constant 0 : index
    %c0_539 = arith.constant 0 : index
    %c5504 = arith.constant 5504 : index
    %714 = vector.load %arg10[%c0_538, %c0_539, %c5504] : memref<1x32x6400xi8, #tpu.memory_space<vmem>>, vector<1x32x128xi8>
    %715 = vector.shape_cast %714 : vector<1x32x128xi8> to vector<32x128xi8>
    %716 = arith.extsi %715 : vector<32x128xi8> to vector<32x128xi32>
    %c0_i32_540 = arith.constant 0 : i32
    %717 = vector.broadcast %c0_i32_540 : i32 to vector<32x128xi32>
    %718 = arith.cmpi sge, %716, %717 : vector<32x128xi32>
    %cst_541 = arith.constant 0.000000e+00 : f32
    %719 = vector.broadcast %cst_541 : f32 to vector<32x128xf32>
    %720 = arith.select %718, %15, %719 : vector<32x128xi1>, vector<32x128xf32>
    %c0_542 = arith.constant 0 : index
    %c5504_543 = arith.constant 5504 : index
    %721 = vector.load %arg15[%c0_542, %c5504_543] : memref<32x6400xf32, #tpu.memory_space<vmem>>, vector<32x128xf32>
    tpu.vector_store %arg15[%c0_542, %c5504_543], %720 {strides = array<i32>} : memref<32x6400xf32, #tpu.memory_space<vmem>>, vector<32x128xf32>,
    %c0_544 = arith.constant 0 : index
    %c43 = arith.constant 43 : index
    %c0_545 = arith.constant 0 : index
    %722 = vector.load %arg11[%c0_544, %c43, %c0_545] : memref<1x50x128xi32, #tpu.memory_space<vmem>>, vector<1x1x128xi32>
    %723 = vector.shape_cast %722 : vector<1x1x128xi32> to vector<1x128xi32>
    %c0_i32_546 = arith.constant 0 : i32
    %724 = vector.broadcast %c0_i32_546 : i32 to vector<1x128xi32>
    %725 = arith.cmpi sge, %723, %724 : vector<1x128xi32>
    %cst_547 = arith.constant 0.000000e+00 : f32
    %726 = vector.broadcast %cst_547 : f32 to vector<1x128xf32>
    %727 = arith.select %725, %19, %726 : vector<1x128xi1>, vector<1x128xf32>
    %728 = arith.addf %727, %10 : vector<1x128xf32>
    %c0_548 = arith.constant 0 : index
    %c5504_549 = arith.constant 5504 : index
    %729 = vector.load %arg16[%c0_548, %c5504_549] : memref<1x6400xf32, #tpu.memory_space<vmem>>, vector<1x128xf32>
    tpu.vector_store %arg16[%c0_548, %c5504_549], %728 {strides = array<i32>} : memref<1x6400xf32, #tpu.memory_space<vmem>>, vector<1x128xf32>,
    %c0_550 = arith.constant 0 : index
    %c0_551 = arith.constant 0 : index
    %c5632 = arith.constant 5632 : index
    %730 = vector.load %arg10[%c0_550, %c0_551, %c5632] : memref<1x32x6400xi8, #tpu.memory_space<vmem>>, vector<1x32x128xi8>
    %731 = vector.shape_cast %730 : vector<1x32x128xi8> to vector<32x128xi8>
    %732 = arith.extsi %731 : vector<32x128xi8> to vector<32x128xi32>
    %c0_i32_552 = arith.constant 0 : i32
    %733 = vector.broadcast %c0_i32_552 : i32 to vector<32x128xi32>
    %734 = arith.cmpi sge, %732, %733 : vector<32x128xi32>
    %cst_553 = arith.constant 0.000000e+00 : f32
    %735 = vector.broadcast %cst_553 : f32 to vector<32x128xf32>
    %736 = arith.select %734, %15, %735 : vector<32x128xi1>, vector<32x128xf32>
    %c0_554 = arith.constant 0 : index
    %c5632_555 = arith.constant 5632 : index
    %737 = vector.load %arg15[%c0_554, %c5632_555] : memref<32x6400xf32, #tpu.memory_space<vmem>>, vector<32x128xf32>
    tpu.vector_store %arg15[%c0_554, %c5632_555], %736 {strides = array<i32>} : memref<32x6400xf32, #tpu.memory_space<vmem>>, vector<32x128xf32>,
    %c0_556 = arith.constant 0 : index
    %c44 = arith.constant 44 : index
    %c0_557 = arith.constant 0 : index
    %738 = vector.load %arg11[%c0_556, %c44, %c0_557] : memref<1x50x128xi32, #tpu.memory_space<vmem>>, vector<1x1x128xi32>
    %739 = vector.shape_cast %738 : vector<1x1x128xi32> to vector<1x128xi32>
    %c0_i32_558 = arith.constant 0 : i32
    %740 = vector.broadcast %c0_i32_558 : i32 to vector<1x128xi32>
    %741 = arith.cmpi sge, %739, %740 : vector<1x128xi32>
    %cst_559 = arith.constant 0.000000e+00 : f32
    %742 = vector.broadcast %cst_559 : f32 to vector<1x128xf32>
    %743 = arith.select %741, %19, %742 : vector<1x128xi1>, vector<1x128xf32>
    %744 = arith.addf %743, %10 : vector<1x128xf32>
    %c0_560 = arith.constant 0 : index
    %c5632_561 = arith.constant 5632 : index
    %745 = vector.load %arg16[%c0_560, %c5632_561] : memref<1x6400xf32, #tpu.memory_space<vmem>>, vector<1x128xf32>
    tpu.vector_store %arg16[%c0_560, %c5632_561], %744 {strides = array<i32>} : memref<1x6400xf32, #tpu.memory_space<vmem>>, vector<1x128xf32>,
    %c0_562 = arith.constant 0 : index
    %c0_563 = arith.constant 0 : index
    %c5760 = arith.constant 5760 : index
    %746 = vector.load %arg10[%c0_562, %c0_563, %c5760] : memref<1x32x6400xi8, #tpu.memory_space<vmem>>, vector<1x32x128xi8>
    %747 = vector.shape_cast %746 : vector<1x32x128xi8> to vector<32x128xi8>
    %748 = arith.extsi %747 : vector<32x128xi8> to vector<32x128xi32>
    %c0_i32_564 = arith.constant 0 : i32
    %749 = vector.broadcast %c0_i32_564 : i32 to vector<32x128xi32>
    %750 = arith.cmpi sge, %748, %749 : vector<32x128xi32>
    %cst_565 = arith.constant 0.000000e+00 : f32
    %751 = vector.broadcast %cst_565 : f32 to vector<32x128xf32>
    %752 = arith.select %750, %15, %751 : vector<32x128xi1>, vector<32x128xf32>
    %c0_566 = arith.constant 0 : index
    %c5760_567 = arith.constant 5760 : index
    %753 = vector.load %arg15[%c0_566, %c5760_567] : memref<32x6400xf32, #tpu.memory_space<vmem>>, vector<32x128xf32>
    tpu.vector_store %arg15[%c0_566, %c5760_567], %752 {strides = array<i32>} : memref<32x6400xf32, #tpu.memory_space<vmem>>, vector<32x128xf32>,
    %c0_568 = arith.constant 0 : index
    %c45 = arith.constant 45 : index
    %c0_569 = arith.constant 0 : index
    %754 = vector.load %arg11[%c0_568, %c45, %c0_569] : memref<1x50x128xi32, #tpu.memory_space<vmem>>, vector<1x1x128xi32>
    %755 = vector.shape_cast %754 : vector<1x1x128xi32> to vector<1x128xi32>
    %c0_i32_570 = arith.constant 0 : i32
    %756 = vector.broadcast %c0_i32_570 : i32 to vector<1x128xi32>
    %757 = arith.cmpi sge, %755, %756 : vector<1x128xi32>
    %cst_571 = arith.constant 0.000000e+00 : f32
    %758 = vector.broadcast %cst_571 : f32 to vector<1x128xf32>
    %759 = arith.select %757, %19, %758 : vector<1x128xi1>, vector<1x128xf32>
    %760 = arith.addf %759, %10 : vector<1x128xf32>
    %c0_572 = arith.constant 0 : index
    %c5760_573 = arith.constant 5760 : index
    %761 = vector.load %arg16[%c0_572, %c5760_573] : memref<1x6400xf32, #tpu.memory_space<vmem>>, vector<1x128xf32>
    tpu.vector_store %arg16[%c0_572, %c5760_573], %760 {strides = array<i32>} : memref<1x6400xf32, #tpu.memory_space<vmem>>, vector<1x128xf32>,
    %c0_574 = arith.constant 0 : index
    %c0_575 = arith.constant 0 : index
    %c5888 = arith.constant 5888 : index
    %762 = vector.load %arg10[%c0_574, %c0_575, %c5888] : memref<1x32x6400xi8, #tpu.memory_space<vmem>>, vector<1x32x128xi8>
    %763 = vector.shape_cast %762 : vector<1x32x128xi8> to vector<32x128xi8>
    %764 = arith.extsi %763 : vector<32x128xi8> to vector<32x128xi32>
    %c0_i32_576 = arith.constant 0 : i32
    %765 = vector.broadcast %c0_i32_576 : i32 to vector<32x128xi32>
    %766 = arith.cmpi sge, %764, %765 : vector<32x128xi32>
    %cst_577 = arith.constant 0.000000e+00 : f32
    %767 = vector.broadcast %cst_577 : f32 to vector<32x128xf32>
    %768 = arith.select %766, %15, %767 : vector<32x128xi1>, vector<32x128xf32>
    %c0_578 = arith.constant 0 : index
    %c5888_579 = arith.constant 5888 : index
    %769 = vector.load %arg15[%c0_578, %c5888_579] : memref<32x6400xf32, #tpu.memory_space<vmem>>, vector<32x128xf32>
    tpu.vector_store %arg15[%c0_578, %c5888_579], %768 {strides = array<i32>} : memref<32x6400xf32, #tpu.memory_space<vmem>>, vector<32x128xf32>,
    %c0_580 = arith.constant 0 : index
    %c46 = arith.constant 46 : index
    %c0_581 = arith.constant 0 : index
    %770 = vector.load %arg11[%c0_580, %c46, %c0_581] : memref<1x50x128xi32, #tpu.memory_space<vmem>>, vector<1x1x128xi32>
    %771 = vector.shape_cast %770 : vector<1x1x128xi32> to vector<1x128xi32>
    %c0_i32_582 = arith.constant 0 : i32
    %772 = vector.broadcast %c0_i32_582 : i32 to vector<1x128xi32>
    %773 = arith.cmpi sge, %771, %772 : vector<1x128xi32>
    %cst_583 = arith.constant 0.000000e+00 : f32
    %774 = vector.broadcast %cst_583 : f32 to vector<1x128xf32>
    %775 = arith.select %773, %19, %774 : vector<1x128xi1>, vector<1x128xf32>
    %776 = arith.addf %775, %10 : vector<1x128xf32>
    %c0_584 = arith.constant 0 : index
    %c5888_585 = arith.constant 5888 : index
    %777 = vector.load %arg16[%c0_584, %c5888_585] : memref<1x6400xf32, #tpu.memory_space<vmem>>, vector<1x128xf32>
    tpu.vector_store %arg16[%c0_584, %c5888_585], %776 {strides = array<i32>} : memref<1x6400xf32, #tpu.memory_space<vmem>>, vector<1x128xf32>,
    %c0_586 = arith.constant 0 : index
    %c0_587 = arith.constant 0 : index
    %c6016 = arith.constant 6016 : index
    %778 = vector.load %arg10[%c0_586, %c0_587, %c6016] : memref<1x32x6400xi8, #tpu.memory_space<vmem>>, vector<1x32x128xi8>
    %779 = vector.shape_cast %778 : vector<1x32x128xi8> to vector<32x128xi8>
    %780 = arith.extsi %779 : vector<32x128xi8> to vector<32x128xi32>
    %c0_i32_588 = arith.constant 0 : i32
    %781 = vector.broadcast %c0_i32_588 : i32 to vector<32x128xi32>
    %782 = arith.cmpi sge, %780, %781 : vector<32x128xi32>
    %cst_589 = arith.constant 0.000000e+00 : f32
    %783 = vector.broadcast %cst_589 : f32 to vector<32x128xf32>
    %784 = arith.select %782, %15, %783 : vector<32x128xi1>, vector<32x128xf32>
    %c0_590 = arith.constant 0 : index
    %c6016_591 = arith.constant 6016 : index
    %785 = vector.load %arg15[%c0_590, %c6016_591] : memref<32x6400xf32, #tpu.memory_space<vmem>>, vector<32x128xf32>
    tpu.vector_store %arg15[%c0_590, %c6016_591], %784 {strides = array<i32>} : memref<32x6400xf32, #tpu.memory_space<vmem>>, vector<32x128xf32>,
    %c0_592 = arith.constant 0 : index
    %c47 = arith.constant 47 : index
    %c0_593 = arith.constant 0 : index
    %786 = vector.load %arg11[%c0_592, %c47, %c0_593] : memref<1x50x128xi32, #tpu.memory_space<vmem>>, vector<1x1x128xi32>
    %787 = vector.shape_cast %786 : vector<1x1x128xi32> to vector<1x128xi32>
    %c0_i32_594 = arith.constant 0 : i32
    %788 = vector.broadcast %c0_i32_594 : i32 to vector<1x128xi32>
    %789 = arith.cmpi sge, %787, %788 : vector<1x128xi32>
    %cst_595 = arith.constant 0.000000e+00 : f32
    %790 = vector.broadcast %cst_595 : f32 to vector<1x128xf32>
    %791 = arith.select %789, %19, %790 : vector<1x128xi1>, vector<1x128xf32>
    %792 = arith.addf %791, %10 : vector<1x128xf32>
    %c0_596 = arith.constant 0 : index
    %c6016_597 = arith.constant 6016 : index
    %793 = vector.load %arg16[%c0_596, %c6016_597] : memref<1x6400xf32, #tpu.memory_space<vmem>>, vector<1x128xf32>
    tpu.vector_store %arg16[%c0_596, %c6016_597], %792 {strides = array<i32>} : memref<1x6400xf32, #tpu.memory_space<vmem>>, vector<1x128xf32>,
    %c0_598 = arith.constant 0 : index
    %c0_599 = arith.constant 0 : index
    %c6144 = arith.constant 6144 : index
    %794 = vector.load %arg10[%c0_598, %c0_599, %c6144] : memref<1x32x6400xi8, #tpu.memory_space<vmem>>, vector<1x32x128xi8>
    %795 = vector.shape_cast %794 : vector<1x32x128xi8> to vector<32x128xi8>
    %796 = arith.extsi %795 : vector<32x128xi8> to vector<32x128xi32>
    %c0_i32_600 = arith.constant 0 : i32
    %797 = vector.broadcast %c0_i32_600 : i32 to vector<32x128xi32>
    %798 = arith.cmpi sge, %796, %797 : vector<32x128xi32>
    %cst_601 = arith.constant 0.000000e+00 : f32
    %799 = vector.broadcast %cst_601 : f32 to vector<32x128xf32>
    %800 = arith.select %798, %15, %799 : vector<32x128xi1>, vector<32x128xf32>
    %c0_602 = arith.constant 0 : index
    %c6144_603 = arith.constant 6144 : index
    %801 = vector.load %arg15[%c0_602, %c6144_603] : memref<32x6400xf32, #tpu.memory_space<vmem>>, vector<32x128xf32>
    tpu.vector_store %arg15[%c0_602, %c6144_603], %800 {strides = array<i32>} : memref<32x6400xf32, #tpu.memory_space<vmem>>, vector<32x128xf32>,
    %c0_604 = arith.constant 0 : index
    %c48 = arith.constant 48 : index
    %c0_605 = arith.constant 0 : index
    %802 = vector.load %arg11[%c0_604, %c48, %c0_605] : memref<1x50x128xi32, #tpu.memory_space<vmem>>, vector<1x1x128xi32>
    %803 = vector.shape_cast %802 : vector<1x1x128xi32> to vector<1x128xi32>
    %c0_i32_606 = arith.constant 0 : i32
    %804 = vector.broadcast %c0_i32_606 : i32 to vector<1x128xi32>
    %805 = arith.cmpi sge, %803, %804 : vector<1x128xi32>
    %cst_607 = arith.constant 0.000000e+00 : f32
    %806 = vector.broadcast %cst_607 : f32 to vector<1x128xf32>
    %807 = arith.select %805, %19, %806 : vector<1x128xi1>, vector<1x128xf32>
    %808 = arith.addf %807, %10 : vector<1x128xf32>
    %c0_608 = arith.constant 0 : index
    %c6144_609 = arith.constant 6144 : index
    %809 = vector.load %arg16[%c0_608, %c6144_609] : memref<1x6400xf32, #tpu.memory_space<vmem>>, vector<1x128xf32>
    tpu.vector_store %arg16[%c0_608, %c6144_609], %808 {strides = array<i32>} : memref<1x6400xf32, #tpu.memory_space<vmem>>, vector<1x128xf32>,
    %c0_610 = arith.constant 0 : index
    %c0_611 = arith.constant 0 : index
    %c6272 = arith.constant 6272 : index
    %810 = vector.load %arg10[%c0_610, %c0_611, %c6272] : memref<1x32x6400xi8, #tpu.memory_space<vmem>>, vector<1x32x128xi8>
    %811 = vector.shape_cast %810 : vector<1x32x128xi8> to vector<32x128xi8>
    %812 = arith.extsi %811 : vector<32x128xi8> to vector<32x128xi32>
    %c0_i32_612 = arith.constant 0 : i32
    %813 = vector.broadcast %c0_i32_612 : i32 to vector<32x128xi32>
    %814 = arith.cmpi sge, %812, %813 : vector<32x128xi32>
    %cst_613 = arith.constant 0.000000e+00 : f32
    %815 = vector.broadcast %cst_613 : f32 to vector<32x128xf32>
    %816 = arith.select %814, %15, %815 : vector<32x128xi1>, vector<32x128xf32>
    %c0_614 = arith.constant 0 : index
    %c6272_615 = arith.constant 6272 : index
    %817 = vector.load %arg15[%c0_614, %c6272_615] : memref<32x6400xf32, #tpu.memory_space<vmem>>, vector<32x128xf32>
    tpu.vector_store %arg15[%c0_614, %c6272_615], %816 {strides = array<i32>} : memref<32x6400xf32, #tpu.memory_space<vmem>>, vector<32x128xf32>,
    %c0_616 = arith.constant 0 : index
    %c49 = arith.constant 49 : index
    %c0_617 = arith.constant 0 : index
    %818 = vector.load %arg11[%c0_616, %c49, %c0_617] : memref<1x50x128xi32, #tpu.memory_space<vmem>>, vector<1x1x128xi32>
    %819 = vector.shape_cast %818 : vector<1x1x128xi32> to vector<1x128xi32>
    %c0_i32_618 = arith.constant 0 : i32
    %820 = vector.broadcast %c0_i32_618 : i32 to vector<1x128xi32>
    %821 = arith.cmpi sge, %819, %820 : vector<1x128xi32>
    %cst_619 = arith.constant 0.000000e+00 : f32
    %822 = vector.broadcast %cst_619 : f32 to vector<1x128xf32>
    %823 = arith.select %821, %19, %822 : vector<1x128xi1>, vector<1x128xf32>
    %824 = arith.addf %823, %10 : vector<1x128xf32>
    %c0_620 = arith.constant 0 : index
    %c6272_621 = arith.constant 6272 : index
    %825 = vector.load %arg16[%c0_620, %c6272_621] : memref<1x6400xf32, #tpu.memory_space<vmem>>, vector<1x128xf32>
    tpu.vector_store %arg16[%c0_620, %c6272_621], %824 {strides = array<i32>} : memref<1x6400xf32, #tpu.memory_space<vmem>>, vector<1x128xf32>,
    %c0_622 = arith.constant 0 : index
    %c0_623 = arith.constant 0 : index
    %c0_624 = arith.constant 0 : index
    %c0_625 = arith.constant 0 : index
    %826 = vector.load %arg12[%c0_622, %c0_623, %c0_624, %c0_625] : memref<1x50x8x128xi32, #tpu.memory_space<vmem>>, vector<1x50x8x128xi32>
    %827 = vector.shape_cast %826 : vector<1x50x8x128xi32> to vector<50x8x128xi32>
    %c0_i32_626 = arith.constant 0 : i32
    %828 = vector.broadcast %c0_i32_626 : i32 to vector<50x8x128xi32>
    %829 = arith.cmpi sge, %827, %828 : vector<50x8x128xi32>
    %830 = vector.shape_cast %22 : vector<8x128xf32> to vector<1x8x128xf32>
    %cst_627 = arith.constant 0.000000e+00 : f32
    %831 = vector.shape_cast %830 : vector<1x8x128xf32> to vector<1x8x128xf32>
    %832 = vector.broadcast %831 : vector<1x8x128xf32> to vector<50x8x128xf32>
    %833 = vector.broadcast %cst_627 : f32 to vector<50x8x128xf32>
    %834 = arith.select %829, %832, %833 : vector<50x8x128xi1>, vector<50x8x128xf32>
    %c0_628 = arith.constant 0 : index
    %c0_629 = arith.constant 0 : index
    %c0_630 = arith.constant 0 : index
    %835 = vector.load %arg13[%c0_628, %c0_629, %c0_630] : memref<1x50x8xi32, #tpu.memory_space<vmem>>, vector<1x50x8xi32>
    %836 = vector.shape_cast %835 : vector<1x50x8xi32> to vector<50x8xi32>
    %c0_i32_631 = arith.constant 0 : i32
    %837 = vector.broadcast %c0_i32_631 : i32 to vector<50x8xi32>
    %838 = arith.cmpi sge, %836, %837 : vector<50x8xi32>
    %cst_632 = arith.constant 0.000000e+00 : f32
    %839 = vector.shape_cast %25 : vector<1x8xf32> to vector<1x8xf32>
    %840 = vector.broadcast %839 : vector<1x8xf32> to vector<50x8xf32>
    %841 = vector.broadcast %cst_632 : f32 to vector<50x8xf32>
    %842 = arith.select %838, %840, %841 : vector<50x8xi1>, vector<50x8xf32>
    %c0_633 = arith.constant 0 : index
    %c0_634 = arith.constant 0 : index
    %843 = vector.load %arg15[%c0_633, %c0_634] : memref<32x6400xf32, #tpu.memory_space<vmem>>, vector<32x6400xf32>
    %cst_635 = arith.constant dense<0.000000e+00> : vector<2x6400xf32>
    %844 = tpu.matmul %0, %843, %cst_635 {dimension_numbers = #tpu.dot_dimension_numbers<[1], [0], [0], [1], [0, 0, 1, 1], [], []>} : vector<2x32xf32>, vector<32x6400xf32>, vector<2x6400xf32> -> vector<2x6400xf32>
    %c0_636 = arith.constant 0 : index
    %c0_637 = arith.constant 0 : index
    %845 = vector.load %arg16[%c0_636, %c0_637] : memref<1x6400xf32, #tpu.memory_space<vmem>>, vector<1x6400xf32>
    %846 = vector.broadcast %845 : vector<1x6400xf32> to vector<2x6400xf32>
    %847 = arith.addf %844, %846 : vector<2x6400xf32>
    %cst_638 = arith.constant 0.000000e+00 : f32
    %848 = vector.broadcast %cst_638 : f32 to vector<2x6400xf32>
    %849 = arith.maximumf %847, %848 : vector<2x6400xf32>
    %cst_639 = arith.constant 0.000000e+00 : f32
    %850 = vector.broadcast %cst_639 : f32 to vector<2x8xf32>
    %851 = vector.extract_strided_slice %849 {offsets = [0, 0], sizes = [2, 128], strides = [1, 1]} : vector<2x6400xf32> to vector<2x128xf32>
    %852 = vector.extract_strided_slice %834 {offsets = [0, 0, 0], sizes = [1, 8, 128], strides = [1, 1, 1]} : vector<50x8x128xf32> to vector<1x8x128xf32>
    %853 = vector.shape_cast %852 : vector<1x8x128xf32> to vector<8x128xf32>
    %cst_640 = arith.constant dense<0.000000e+00> : vector<2x8xf32>
    %854 = tpu.matmul %851, %853, %cst_640 {dimension_numbers = #tpu.dot_dimension_numbers<[1], [1], [0], [0], [0, 0, 1, 0], [], []>} : vector<2x128xf32>, vector<8x128xf32>, vector<2x8xf32> -> vector<2x8xf32>
    %855 = vector.extract_strided_slice %842 {offsets = [0, 0], sizes = [1, 8], strides = [1, 1]} : vector<50x8xf32> to vector<1x8xf32>
    %856 = vector.broadcast %855 : vector<1x8xf32> to vector<2x8xf32>
    %857 = arith.addf %854, %856 : vector<2x8xf32>
    %cst_641 = arith.constant dense<0xFF800000> : vector<2xf32>
    %858 = vector.multi_reduction <maximumf>, %857, %cst_641 [1] : vector<2x8xf32> to vector<2xf32>
    %859 = vector.shape_cast %858 : vector<2xf32> to vector<2x1xf32>
    %860 = vector.broadcast %859 : vector<2x1xf32> to vector<2x8xf32>
    %861 = arith.subf %857, %860 : vector<2x8xf32>
    %862 = math.exp %861 : vector<2x8xf32>
    %cst_642 = arith.constant dense<0.000000e+00> : vector<2xf32>
    %863 = vector.multi_reduction <add>, %862, %cst_642 [1] : vector<2x8xf32> to vector<2xf32>
    %864 = vector.shape_cast %863 : vector<2xf32> to vector<2x1xf32>
    %865 = tpu.reciprocal %864 {approx = true} : vector<2x1xf32> -> vector<2x1xf32>
    %866 = arith.mulf %864, %865 : vector<2x1xf32>
    %cst_643 = arith.constant 2.000000e+00 : f32
    %867 = vector.broadcast %cst_643 : f32 to vector<2x1xf32>
    %868 = arith.subf %867, %866 : vector<2x1xf32>
    %869 = arith.mulf %865, %868 : vector<2x1xf32>
    %870 = vector.broadcast %869 : vector<2x1xf32> to vector<2x8xf32>
    %871 = arith.mulf %862, %870 : vector<2x8xf32>
    %872 = arith.addf %850, %871 : vector<2x8xf32>
    %873 = vector.extract_strided_slice %849 {offsets = [0, 128], sizes = [2, 128], strides = [1, 1]} : vector<2x6400xf32> to vector<2x128xf32>
    %874 = vector.extract_strided_slice %834 {offsets = [1, 0, 0], sizes = [1, 8, 128], strides = [1, 1, 1]} : vector<50x8x128xf32> to vector<1x8x128xf32>
    %875 = vector.shape_cast %874 : vector<1x8x128xf32> to vector<8x128xf32>
    %cst_644 = arith.constant dense<0.000000e+00> : vector<2x8xf32>
    %876 = tpu.matmul %873, %875, %cst_644 {dimension_numbers = #tpu.dot_dimension_numbers<[1], [1], [0], [0], [0, 0, 1, 0], [], []>} : vector<2x128xf32>, vector<8x128xf32>, vector<2x8xf32> -> vector<2x8xf32>
    %877 = vector.extract_strided_slice %842 {offsets = [1, 0], sizes = [1, 8], strides = [1, 1]} : vector<50x8xf32> to vector<1x8xf32>
    %878 = vector.broadcast %877 : vector<1x8xf32> to vector<2x8xf32>
    %879 = arith.addf %876, %878 : vector<2x8xf32>
    %cst_645 = arith.constant dense<0xFF800000> : vector<2xf32>
    %880 = vector.multi_reduction <maximumf>, %879, %cst_645 [1] : vector<2x8xf32> to vector<2xf32>
    %881 = vector.shape_cast %880 : vector<2xf32> to vector<2x1xf32>
    %882 = vector.broadcast %881 : vector<2x1xf32> to vector<2x8xf32>
    %883 = arith.subf %879, %882 : vector<2x8xf32>
    %884 = math.exp %883 : vector<2x8xf32>
    %cst_646 = arith.constant dense<0.000000e+00> : vector<2xf32>
    %885 = vector.multi_reduction <add>, %884, %cst_646 [1] : vector<2x8xf32> to vector<2xf32>
    %886 = vector.shape_cast %885 : vector<2xf32> to vector<2x1xf32>
    %887 = tpu.reciprocal %886 {approx = true} : vector<2x1xf32> -> vector<2x1xf32>
    %888 = arith.mulf %886, %887 : vector<2x1xf32>
    %cst_647 = arith.constant 2.000000e+00 : f32
    %889 = vector.broadcast %cst_647 : f32 to vector<2x1xf32>
    %890 = arith.subf %889, %888 : vector<2x1xf32>
    %891 = arith.mulf %887, %890 : vector<2x1xf32>
    %892 = vector.broadcast %891 : vector<2x1xf32> to vector<2x8xf32>
    %893 = arith.mulf %884, %892 : vector<2x8xf32>
    %894 = arith.addf %872, %893 : vector<2x8xf32>
    %895 = vector.extract_strided_slice %849 {offsets = [0, 256], sizes = [2, 128], strides = [1, 1]} : vector<2x6400xf32> to vector<2x128xf32>
    %896 = vector.extract_strided_slice %834 {offsets = [2, 0, 0], sizes = [1, 8, 128], strides = [1, 1, 1]} : vector<50x8x128xf32> to vector<1x8x128xf32>
    %897 = vector.shape_cast %896 : vector<1x8x128xf32> to vector<8x128xf32>
    %cst_648 = arith.constant dense<0.000000e+00> : vector<2x8xf32>
    %898 = tpu.matmul %895, %897, %cst_648 {dimension_numbers = #tpu.dot_dimension_numbers<[1], [1], [0], [0], [0, 0, 1, 0], [], []>} : vector<2x128xf32>, vector<8x128xf32>, vector<2x8xf32> -> vector<2x8xf32>
    %899 = vector.extract_strided_slice %842 {offsets = [2, 0], sizes = [1, 8], strides = [1, 1]} : vector<50x8xf32> to vector<1x8xf32>
    %900 = vector.broadcast %899 : vector<1x8xf32> to vector<2x8xf32>
    %901 = arith.addf %898, %900 : vector<2x8xf32>
    %cst_649 = arith.constant dense<0xFF800000> : vector<2xf32>
    %902 = vector.multi_reduction <maximumf>, %901, %cst_649 [1] : vector<2x8xf32> to vector<2xf32>
    %903 = vector.shape_cast %902 : vector<2xf32> to vector<2x1xf32>
    %904 = vector.broadcast %903 : vector<2x1xf32> to vector<2x8xf32>
    %905 = arith.subf %901, %904 : vector<2x8xf32>
    %906 = math.exp %905 : vector<2x8xf32>
    %cst_650 = arith.constant dense<0.000000e+00> : vector<2xf32>
    %907 = vector.multi_reduction <add>, %906, %cst_650 [1] : vector<2x8xf32> to vector<2xf32>
    %908 = vector.shape_cast %907 : vector<2xf32> to vector<2x1xf32>
    %909 = tpu.reciprocal %908 {approx = true} : vector<2x1xf32> -> vector<2x1xf32>
    %910 = arith.mulf %908, %909 : vector<2x1xf32>
    %cst_651 = arith.constant 2.000000e+00 : f32
    %911 = vector.broadcast %cst_651 : f32 to vector<2x1xf32>
    %912 = arith.subf %911, %910 : vector<2x1xf32>
    %913 = arith.mulf %909, %912 : vector<2x1xf32>
    %914 = vector.broadcast %913 : vector<2x1xf32> to vector<2x8xf32>
    %915 = arith.mulf %906, %914 : vector<2x8xf32>
    %916 = arith.addf %894, %915 : vector<2x8xf32>
    %917 = vector.extract_strided_slice %849 {offsets = [0, 384], sizes = [2, 128], strides = [1, 1]} : vector<2x6400xf32> to vector<2x128xf32>
    %918 = vector.extract_strided_slice %834 {offsets = [3, 0, 0], sizes = [1, 8, 128], strides = [1, 1, 1]} : vector<50x8x128xf32> to vector<1x8x128xf32>
    %919 = vector.shape_cast %918 : vector<1x8x128xf32> to vector<8x128xf32>
    %cst_652 = arith.constant dense<0.000000e+00> : vector<2x8xf32>
    %920 = tpu.matmul %917, %919, %cst_652 {dimension_numbers = #tpu.dot_dimension_numbers<[1], [1], [0], [0], [0, 0, 1, 0], [], []>} : vector<2x128xf32>, vector<8x128xf32>, vector<2x8xf32> -> vector<2x8xf32>
    %921 = vector.extract_strided_slice %842 {offsets = [3, 0], sizes = [1, 8], strides = [1, 1]} : vector<50x8xf32> to vector<1x8xf32>
    %922 = vector.broadcast %921 : vector<1x8xf32> to vector<2x8xf32>
    %923 = arith.addf %920, %922 : vector<2x8xf32>
    %cst_653 = arith.constant dense<0xFF800000> : vector<2xf32>
    %924 = vector.multi_reduction <maximumf>, %923, %cst_653 [1] : vector<2x8xf32> to vector<2xf32>
    %925 = vector.shape_cast %924 : vector<2xf32> to vector<2x1xf32>
    %926 = vector.broadcast %925 : vector<2x1xf32> to vector<2x8xf32>
    %927 = arith.subf %923, %926 : vector<2x8xf32>
    %928 = math.exp %927 : vector<2x8xf32>
    %cst_654 = arith.constant dense<0.000000e+00> : vector<2xf32>
    %929 = vector.multi_reduction <add>, %928, %cst_654 [1] : vector<2x8xf32> to vector<2xf32>
    %930 = vector.shape_cast %929 : vector<2xf32> to vector<2x1xf32>
    %931 = tpu.reciprocal %930 {approx = true} : vector<2x1xf32> -> vector<2x1xf32>
    %932 = arith.mulf %930, %931 : vector<2x1xf32>
    %cst_655 = arith.constant 2.000000e+00 : f32
    %933 = vector.broadcast %cst_655 : f32 to vector<2x1xf32>
    %934 = arith.subf %933, %932 : vector<2x1xf32>
    %935 = arith.mulf %931, %934 : vector<2x1xf32>
    %936 = vector.broadcast %935 : vector<2x1xf32> to vector<2x8xf32>
    %937 = arith.mulf %928, %936 : vector<2x8xf32>
    %938 = arith.addf %916, %937 : vector<2x8xf32>
    %939 = vector.extract_strided_slice %849 {offsets = [0, 512], sizes = [2, 128], strides = [1, 1]} : vector<2x6400xf32> to vector<2x128xf32>
    %940 = vector.extract_strided_slice %834 {offsets = [4, 0, 0], sizes = [1, 8, 128], strides = [1, 1, 1]} : vector<50x8x128xf32> to vector<1x8x128xf32>
    %941 = vector.shape_cast %940 : vector<1x8x128xf32> to vector<8x128xf32>
    %cst_656 = arith.constant dense<0.000000e+00> : vector<2x8xf32>
    %942 = tpu.matmul %939, %941, %cst_656 {dimension_numbers = #tpu.dot_dimension_numbers<[1], [1], [0], [0], [0, 0, 1, 0], [], []>} : vector<2x128xf32>, vector<8x128xf32>, vector<2x8xf32> -> vector<2x8xf32>
    %943 = vector.extract_strided_slice %842 {offsets = [4, 0], sizes = [1, 8], strides = [1, 1]} : vector<50x8xf32> to vector<1x8xf32>
    %944 = vector.broadcast %943 : vector<1x8xf32> to vector<2x8xf32>
    %945 = arith.addf %942, %944 : vector<2x8xf32>
    %cst_657 = arith.constant dense<0xFF800000> : vector<2xf32>
    %946 = vector.multi_reduction <maximumf>, %945, %cst_657 [1] : vector<2x8xf32> to vector<2xf32>
    %947 = vector.shape_cast %946 : vector<2xf32> to vector<2x1xf32>
    %948 = vector.broadcast %947 : vector<2x1xf32> to vector<2x8xf32>
    %949 = arith.subf %945, %948 : vector<2x8xf32>
    %950 = math.exp %949 : vector<2x8xf32>
    %cst_658 = arith.constant dense<0.000000e+00> : vector<2xf32>
    %951 = vector.multi_reduction <add>, %950, %cst_658 [1] : vector<2x8xf32> to vector<2xf32>
    %952 = vector.shape_cast %951 : vector<2xf32> to vector<2x1xf32>
    %953 = tpu.reciprocal %952 {approx = true} : vector<2x1xf32> -> vector<2x1xf32>
    %954 = arith.mulf %952, %953 : vector<2x1xf32>
    %cst_659 = arith.constant 2.000000e+00 : f32
    %955 = vector.broadcast %cst_659 : f32 to vector<2x1xf32>
    %956 = arith.subf %955, %954 : vector<2x1xf32>
    %957 = arith.mulf %953, %956 : vector<2x1xf32>
    %958 = vector.broadcast %957 : vector<2x1xf32> to vector<2x8xf32>
    %959 = arith.mulf %950, %958 : vector<2x8xf32>
    %960 = arith.addf %938, %959 : vector<2x8xf32>
    %961 = vector.extract_strided_slice %849 {offsets = [0, 640], sizes = [2, 128], strides = [1, 1]} : vector<2x6400xf32> to vector<2x128xf32>
    %962 = vector.extract_strided_slice %834 {offsets = [5, 0, 0], sizes = [1, 8, 128], strides = [1, 1, 1]} : vector<50x8x128xf32> to vector<1x8x128xf32>
    %963 = vector.shape_cast %962 : vector<1x8x128xf32> to vector<8x128xf32>
    %cst_660 = arith.constant dense<0.000000e+00> : vector<2x8xf32>
    %964 = tpu.matmul %961, %963, %cst_660 {dimension_numbers = #tpu.dot_dimension_numbers<[1], [1], [0], [0], [0, 0, 1, 0], [], []>} : vector<2x128xf32>, vector<8x128xf32>, vector<2x8xf32> -> vector<2x8xf32>
    %965 = vector.extract_strided_slice %842 {offsets = [5, 0], sizes = [1, 8], strides = [1, 1]} : vector<50x8xf32> to vector<1x8xf32>
    %966 = vector.broadcast %965 : vector<1x8xf32> to vector<2x8xf32>
    %967 = arith.addf %964, %966 : vector<2x8xf32>
    %cst_661 = arith.constant dense<0xFF800000> : vector<2xf32>
    %968 = vector.multi_reduction <maximumf>, %967, %cst_661 [1] : vector<2x8xf32> to vector<2xf32>
    %969 = vector.shape_cast %968 : vector<2xf32> to vector<2x1xf32>
    %970 = vector.broadcast %969 : vector<2x1xf32> to vector<2x8xf32>
    %971 = arith.subf %967, %970 : vector<2x8xf32>
    %972 = math.exp %971 : vector<2x8xf32>
    %cst_662 = arith.constant dense<0.000000e+00> : vector<2xf32>
    %973 = vector.multi_reduction <add>, %972, %cst_662 [1] : vector<2x8xf32> to vector<2xf32>
    %974 = vector.shape_cast %973 : vector<2xf32> to vector<2x1xf32>
    %975 = tpu.reciprocal %974 {approx = true} : vector<2x1xf32> -> vector<2x1xf32>
    %976 = arith.mulf %974, %975 : vector<2x1xf32>
    %cst_663 = arith.constant 2.000000e+00 : f32
    %977 = vector.broadcast %cst_663 : f32 to vector<2x1xf32>
    %978 = arith.subf %977, %976 : vector<2x1xf32>
    %979 = arith.mulf %975, %978 : vector<2x1xf32>
    %980 = vector.broadcast %979 : vector<2x1xf32> to vector<2x8xf32>
    %981 = arith.mulf %972, %980 : vector<2x8xf32>
    %982 = arith.addf %960, %981 : vector<2x8xf32>
    %983 = vector.extract_strided_slice %849 {offsets = [0, 768], sizes = [2, 128], strides = [1, 1]} : vector<2x6400xf32> to vector<2x128xf32>
    %984 = vector.extract_strided_slice %834 {offsets = [6, 0, 0], sizes = [1, 8, 128], strides = [1, 1, 1]} : vector<50x8x128xf32> to vector<1x8x128xf32>
    %985 = vector.shape_cast %984 : vector<1x8x128xf32> to vector<8x128xf32>
    %cst_664 = arith.constant dense<0.000000e+00> : vector<2x8xf32>
    %986 = tpu.matmul %983, %985, %cst_664 {dimension_numbers = #tpu.dot_dimension_numbers<[1], [1], [0], [0], [0, 0, 1, 0], [], []>} : vector<2x128xf32>, vector<8x128xf32>, vector<2x8xf32> -> vector<2x8xf32>
    %987 = vector.extract_strided_slice %842 {offsets = [6, 0], sizes = [1, 8], strides = [1, 1]} : vector<50x8xf32> to vector<1x8xf32>
    %988 = vector.broadcast %987 : vector<1x8xf32> to vector<2x8xf32>
    %989 = arith.addf %986, %988 : vector<2x8xf32>
    %cst_665 = arith.constant dense<0xFF800000> : vector<2xf32>
    %990 = vector.multi_reduction <maximumf>, %989, %cst_665 [1] : vector<2x8xf32> to vector<2xf32>
    %991 = vector.shape_cast %990 : vector<2xf32> to vector<2x1xf32>
    %992 = vector.broadcast %991 : vector<2x1xf32> to vector<2x8xf32>
    %993 = arith.subf %989, %992 : vector<2x8xf32>
    %994 = math.exp %993 : vector<2x8xf32>
    %cst_666 = arith.constant dense<0.000000e+00> : vector<2xf32>
    %995 = vector.multi_reduction <add>, %994, %cst_666 [1] : vector<2x8xf32> to vector<2xf32>
    %996 = vector.shape_cast %995 : vector<2xf32> to vector<2x1xf32>
    %997 = tpu.reciprocal %996 {approx = true} : vector<2x1xf32> -> vector<2x1xf32>
    %998 = arith.mulf %996, %997 : vector<2x1xf32>
    %cst_667 = arith.constant 2.000000e+00 : f32
    %999 = vector.broadcast %cst_667 : f32 to vector<2x1xf32>
    %1000 = arith.subf %999, %998 : vector<2x1xf32>
    %1001 = arith.mulf %997, %1000 : vector<2x1xf32>
    %1002 = vector.broadcast %1001 : vector<2x1xf32> to vector<2x8xf32>
    %1003 = arith.mulf %994, %1002 : vector<2x8xf32>
    %1004 = arith.addf %982, %1003 : vector<2x8xf32>
    %1005 = vector.extract_strided_slice %849 {offsets = [0, 896], sizes = [2, 128], strides = [1, 1]} : vector<2x6400xf32> to vector<2x128xf32>
    %1006 = vector.extract_strided_slice %834 {offsets = [7, 0, 0], sizes = [1, 8, 128], strides = [1, 1, 1]} : vector<50x8x128xf32> to vector<1x8x128xf32>
    %1007 = vector.shape_cast %1006 : vector<1x8x128xf32> to vector<8x128xf32>
    %cst_668 = arith.constant dense<0.000000e+00> : vector<2x8xf32>
    %1008 = tpu.matmul %1005, %1007, %cst_668 {dimension_numbers = #tpu.dot_dimension_numbers<[1], [1], [0], [0], [0, 0, 1, 0], [], []>} : vector<2x128xf32>, vector<8x128xf32>, vector<2x8xf32> -> vector<2x8xf32>
    %1009 = vector.extract_strided_slice %842 {offsets = [7, 0], sizes = [1, 8], strides = [1, 1]} : vector<50x8xf32> to vector<1x8xf32>
    %1010 = vector.broadcast %1009 : vector<1x8xf32> to vector<2x8xf32>
    %1011 = arith.addf %1008, %1010 : vector<2x8xf32>
    %cst_669 = arith.constant dense<0xFF800000> : vector<2xf32>
    %1012 = vector.multi_reduction <maximumf>, %1011, %cst_669 [1] : vector<2x8xf32> to vector<2xf32>
    %1013 = vector.shape_cast %1012 : vector<2xf32> to vector<2x1xf32>
    %1014 = vector.broadcast %1013 : vector<2x1xf32> to vector<2x8xf32>
    %1015 = arith.subf %1011, %1014 : vector<2x8xf32>
    %1016 = math.exp %1015 : vector<2x8xf32>
    %cst_670 = arith.constant dense<0.000000e+00> : vector<2xf32>
    %1017 = vector.multi_reduction <add>, %1016, %cst_670 [1] : vector<2x8xf32> to vector<2xf32>
    %1018 = vector.shape_cast %1017 : vector<2xf32> to vector<2x1xf32>
    %1019 = tpu.reciprocal %1018 {approx = true} : vector<2x1xf32> -> vector<2x1xf32>
    %1020 = arith.mulf %1018, %1019 : vector<2x1xf32>
    %cst_671 = arith.constant 2.000000e+00 : f32
    %1021 = vector.broadcast %cst_671 : f32 to vector<2x1xf32>
    %1022 = arith.subf %1021, %1020 : vector<2x1xf32>
    %1023 = arith.mulf %1019, %1022 : vector<2x1xf32>
    %1024 = vector.broadcast %1023 : vector<2x1xf32> to vector<2x8xf32>
    %1025 = arith.mulf %1016, %1024 : vector<2x8xf32>
    %1026 = arith.addf %1004, %1025 : vector<2x8xf32>
    %1027 = vector.extract_strided_slice %849 {offsets = [0, 1024], sizes = [2, 128], strides = [1, 1]} : vector<2x6400xf32> to vector<2x128xf32>
    %1028 = vector.extract_strided_slice %834 {offsets = [8, 0, 0], sizes = [1, 8, 128], strides = [1, 1, 1]} : vector<50x8x128xf32> to vector<1x8x128xf32>
    %1029 = vector.shape_cast %1028 : vector<1x8x128xf32> to vector<8x128xf32>
    %cst_672 = arith.constant dense<0.000000e+00> : vector<2x8xf32>
    %1030 = tpu.matmul %1027, %1029, %cst_672 {dimension_numbers = #tpu.dot_dimension_numbers<[1], [1], [0], [0], [0, 0, 1, 0], [], []>} : vector<2x128xf32>, vector<8x128xf32>, vector<2x8xf32> -> vector<2x8xf32>
    %1031 = vector.extract_strided_slice %842 {offsets = [8, 0], sizes = [1, 8], strides = [1, 1]} : vector<50x8xf32> to vector<1x8xf32>
    %1032 = vector.broadcast %1031 : vector<1x8xf32> to vector<2x8xf32>
    %1033 = arith.addf %1030, %1032 : vector<2x8xf32>
    %cst_673 = arith.constant dense<0xFF800000> : vector<2xf32>
    %1034 = vector.multi_reduction <maximumf>, %1033, %cst_673 [1] : vector<2x8xf32> to vector<2xf32>
    %1035 = vector.shape_cast %1034 : vector<2xf32> to vector<2x1xf32>
    %1036 = vector.broadcast %1035 : vector<2x1xf32> to vector<2x8xf32>
    %1037 = arith.subf %1033, %1036 : vector<2x8xf32>
    %1038 = math.exp %1037 : vector<2x8xf32>
    %cst_674 = arith.constant dense<0.000000e+00> : vector<2xf32>
    %1039 = vector.multi_reduction <add>, %1038, %cst_674 [1] : vector<2x8xf32> to vector<2xf32>
    %1040 = vector.shape_cast %1039 : vector<2xf32> to vector<2x1xf32>
    %1041 = tpu.reciprocal %1040 {approx = true} : vector<2x1xf32> -> vector<2x1xf32>
    %1042 = arith.mulf %1040, %1041 : vector<2x1xf32>
    %cst_675 = arith.constant 2.000000e+00 : f32
    %1043 = vector.broadcast %cst_675 : f32 to vector<2x1xf32>
    %1044 = arith.subf %1043, %1042 : vector<2x1xf32>
    %1045 = arith.mulf %1041, %1044 : vector<2x1xf32>
    %1046 = vector.broadcast %1045 : vector<2x1xf32> to vector<2x8xf32>
    %1047 = arith.mulf %1038, %1046 : vector<2x8xf32>
    %1048 = arith.addf %1026, %1047 : vector<2x8xf32>
    %1049 = vector.extract_strided_slice %849 {offsets = [0, 1152], sizes = [2, 128], strides = [1, 1]} : vector<2x6400xf32> to vector<2x128xf32>
    %1050 = vector.extract_strided_slice %834 {offsets = [9, 0, 0], sizes = [1, 8, 128], strides = [1, 1, 1]} : vector<50x8x128xf32> to vector<1x8x128xf32>
    %1051 = vector.shape_cast %1050 : vector<1x8x128xf32> to vector<8x128xf32>
    %cst_676 = arith.constant dense<0.000000e+00> : vector<2x8xf32>
    %1052 = tpu.matmul %1049, %1051, %cst_676 {dimension_numbers = #tpu.dot_dimension_numbers<[1], [1], [0], [0], [0, 0, 1, 0], [], []>} : vector<2x128xf32>, vector<8x128xf32>, vector<2x8xf32> -> vector<2x8xf32>
    %1053 = vector.extract_strided_slice %842 {offsets = [9, 0], sizes = [1, 8], strides = [1, 1]} : vector<50x8xf32> to vector<1x8xf32>
    %1054 = vector.broadcast %1053 : vector<1x8xf32> to vector<2x8xf32>
    %1055 = arith.addf %1052, %1054 : vector<2x8xf32>
    %cst_677 = arith.constant dense<0xFF800000> : vector<2xf32>
    %1056 = vector.multi_reduction <maximumf>, %1055, %cst_677 [1] : vector<2x8xf32> to vector<2xf32>
    %1057 = vector.shape_cast %1056 : vector<2xf32> to vector<2x1xf32>
    %1058 = vector.broadcast %1057 : vector<2x1xf32> to vector<2x8xf32>
    %1059 = arith.subf %1055, %1058 : vector<2x8xf32>
    %1060 = math.exp %1059 : vector<2x8xf32>
    %cst_678 = arith.constant dense<0.000000e+00> : vector<2xf32>
    %1061 = vector.multi_reduction <add>, %1060, %cst_678 [1] : vector<2x8xf32> to vector<2xf32>
    %1062 = vector.shape_cast %1061 : vector<2xf32> to vector<2x1xf32>
    %1063 = tpu.reciprocal %1062 {approx = true} : vector<2x1xf32> -> vector<2x1xf32>
    %1064 = arith.mulf %1062, %1063 : vector<2x1xf32>
    %cst_679 = arith.constant 2.000000e+00 : f32
    %1065 = vector.broadcast %cst_679 : f32 to vector<2x1xf32>
    %1066 = arith.subf %1065, %1064 : vector<2x1xf32>
    %1067 = arith.mulf %1063, %1066 : vector<2x1xf32>
    %1068 = vector.broadcast %1067 : vector<2x1xf32> to vector<2x8xf32>
    %1069 = arith.mulf %1060, %1068 : vector<2x8xf32>
    %1070 = arith.addf %1048, %1069 : vector<2x8xf32>
    %1071 = vector.extract_strided_slice %849 {offsets = [0, 1280], sizes = [2, 128], strides = [1, 1]} : vector<2x6400xf32> to vector<2x128xf32>
    %1072 = vector.extract_strided_slice %834 {offsets = [10, 0, 0], sizes = [1, 8, 128], strides = [1, 1, 1]} : vector<50x8x128xf32> to vector<1x8x128xf32>
    %1073 = vector.shape_cast %1072 : vector<1x8x128xf32> to vector<8x128xf32>
    %cst_680 = arith.constant dense<0.000000e+00> : vector<2x8xf32>
    %1074 = tpu.matmul %1071, %1073, %cst_680 {dimension_numbers = #tpu.dot_dimension_numbers<[1], [1], [0], [0], [0, 0, 1, 0], [], []>} : vector<2x128xf32>, vector<8x128xf32>, vector<2x8xf32> -> vector<2x8xf32>
    %1075 = vector.extract_strided_slice %842 {offsets = [10, 0], sizes = [1, 8], strides = [1, 1]} : vector<50x8xf32> to vector<1x8xf32>
    %1076 = vector.broadcast %1075 : vector<1x8xf32> to vector<2x8xf32>
    %1077 = arith.addf %1074, %1076 : vector<2x8xf32>
    %cst_681 = arith.constant dense<0xFF800000> : vector<2xf32>
    %1078 = vector.multi_reduction <maximumf>, %1077, %cst_681 [1] : vector<2x8xf32> to vector<2xf32>
    %1079 = vector.shape_cast %1078 : vector<2xf32> to vector<2x1xf32>
    %1080 = vector.broadcast %1079 : vector<2x1xf32> to vector<2x8xf32>
    %1081 = arith.subf %1077, %1080 : vector<2x8xf32>
    %1082 = math.exp %1081 : vector<2x8xf32>
    %cst_682 = arith.constant dense<0.000000e+00> : vector<2xf32>
    %1083 = vector.multi_reduction <add>, %1082, %cst_682 [1] : vector<2x8xf32> to vector<2xf32>
    %1084 = vector.shape_cast %1083 : vector<2xf32> to vector<2x1xf32>
    %1085 = tpu.reciprocal %1084 {approx = true} : vector<2x1xf32> -> vector<2x1xf32>
    %1086 = arith.mulf %1084, %1085 : vector<2x1xf32>
    %cst_683 = arith.constant 2.000000e+00 : f32
    %1087 = vector.broadcast %cst_683 : f32 to vector<2x1xf32>
    %1088 = arith.subf %1087, %1086 : vector<2x1xf32>
    %1089 = arith.mulf %1085, %1088 : vector<2x1xf32>
    %1090 = vector.broadcast %1089 : vector<2x1xf32> to vector<2x8xf32>
    %1091 = arith.mulf %1082, %1090 : vector<2x8xf32>
    %1092 = arith.addf %1070, %1091 : vector<2x8xf32>
    %1093 = vector.extract_strided_slice %849 {offsets = [0, 1408], sizes = [2, 128], strides = [1, 1]} : vector<2x6400xf32> to vector<2x128xf32>
    %1094 = vector.extract_strided_slice %834 {offsets = [11, 0, 0], sizes = [1, 8, 128], strides = [1, 1, 1]} : vector<50x8x128xf32> to vector<1x8x128xf32>
    %1095 = vector.shape_cast %1094 : vector<1x8x128xf32> to vector<8x128xf32>
    %cst_684 = arith.constant dense<0.000000e+00> : vector<2x8xf32>
    %1096 = tpu.matmul %1093, %1095, %cst_684 {dimension_numbers = #tpu.dot_dimension_numbers<[1], [1], [0], [0], [0, 0, 1, 0], [], []>} : vector<2x128xf32>, vector<8x128xf32>, vector<2x8xf32> -> vector<2x8xf32>
    %1097 = vector.extract_strided_slice %842 {offsets = [11, 0], sizes = [1, 8], strides = [1, 1]} : vector<50x8xf32> to vector<1x8xf32>
    %1098 = vector.broadcast %1097 : vector<1x8xf32> to vector<2x8xf32>
    %1099 = arith.addf %1096, %1098 : vector<2x8xf32>
    %cst_685 = arith.constant dense<0xFF800000> : vector<2xf32>
    %1100 = vector.multi_reduction <maximumf>, %1099, %cst_685 [1] : vector<2x8xf32> to vector<2xf32>
    %1101 = vector.shape_cast %1100 : vector<2xf32> to vector<2x1xf32>
    %1102 = vector.broadcast %1101 : vector<2x1xf32> to vector<2x8xf32>
    %1103 = arith.subf %1099, %1102 : vector<2x8xf32>
    %1104 = math.exp %1103 : vector<2x8xf32>
    %cst_686 = arith.constant dense<0.000000e+00> : vector<2xf32>
    %1105 = vector.multi_reduction <add>, %1104, %cst_686 [1] : vector<2x8xf32> to vector<2xf32>
    %1106 = vector.shape_cast %1105 : vector<2xf32> to vector<2x1xf32>
    %1107 = tpu.reciprocal %1106 {approx = true} : vector<2x1xf32> -> vector<2x1xf32>
    %1108 = arith.mulf %1106, %1107 : vector<2x1xf32>
    %cst_687 = arith.constant 2.000000e+00 : f32
    %1109 = vector.broadcast %cst_687 : f32 to vector<2x1xf32>
    %1110 = arith.subf %1109, %1108 : vector<2x1xf32>
    %1111 = arith.mulf %1107, %1110 : vector<2x1xf32>
    %1112 = vector.broadcast %1111 : vector<2x1xf32> to vector<2x8xf32>
    %1113 = arith.mulf %1104, %1112 : vector<2x8xf32>
    %1114 = arith.addf %1092, %1113 : vector<2x8xf32>
    %1115 = vector.extract_strided_slice %849 {offsets = [0, 1536], sizes = [2, 128], strides = [1, 1]} : vector<2x6400xf32> to vector<2x128xf32>
    %1116 = vector.extract_strided_slice %834 {offsets = [12, 0, 0], sizes = [1, 8, 128], strides = [1, 1, 1]} : vector<50x8x128xf32> to vector<1x8x128xf32>
    %1117 = vector.shape_cast %1116 : vector<1x8x128xf32> to vector<8x128xf32>
    %cst_688 = arith.constant dense<0.000000e+00> : vector<2x8xf32>
    %1118 = tpu.matmul %1115, %1117, %cst_688 {dimension_numbers = #tpu.dot_dimension_numbers<[1], [1], [0], [0], [0, 0, 1, 0], [], []>} : vector<2x128xf32>, vector<8x128xf32>, vector<2x8xf32> -> vector<2x8xf32>
    %1119 = vector.extract_strided_slice %842 {offsets = [12, 0], sizes = [1, 8], strides = [1, 1]} : vector<50x8xf32> to vector<1x8xf32>
    %1120 = vector.broadcast %1119 : vector<1x8xf32> to vector<2x8xf32>
    %1121 = arith.addf %1118, %1120 : vector<2x8xf32>
    %cst_689 = arith.constant dense<0xFF800000> : vector<2xf32>
    %1122 = vector.multi_reduction <maximumf>, %1121, %cst_689 [1] : vector<2x8xf32> to vector<2xf32>
    %1123 = vector.shape_cast %1122 : vector<2xf32> to vector<2x1xf32>
    %1124 = vector.broadcast %1123 : vector<2x1xf32> to vector<2x8xf32>
    %1125 = arith.subf %1121, %1124 : vector<2x8xf32>
    %1126 = math.exp %1125 : vector<2x8xf32>
    %cst_690 = arith.constant dense<0.000000e+00> : vector<2xf32>
    %1127 = vector.multi_reduction <add>, %1126, %cst_690 [1] : vector<2x8xf32> to vector<2xf32>
    %1128 = vector.shape_cast %1127 : vector<2xf32> to vector<2x1xf32>
    %1129 = tpu.reciprocal %1128 {approx = true} : vector<2x1xf32> -> vector<2x1xf32>
    %1130 = arith.mulf %1128, %1129 : vector<2x1xf32>
    %cst_691 = arith.constant 2.000000e+00 : f32
    %1131 = vector.broadcast %cst_691 : f32 to vector<2x1xf32>
    %1132 = arith.subf %1131, %1130 : vector<2x1xf32>
    %1133 = arith.mulf %1129, %1132 : vector<2x1xf32>
    %1134 = vector.broadcast %1133 : vector<2x1xf32> to vector<2x8xf32>
    %1135 = arith.mulf %1126, %1134 : vector<2x8xf32>
    %1136 = arith.addf %1114, %1135 : vector<2x8xf32>
    %1137 = vector.extract_strided_slice %849 {offsets = [0, 1664], sizes = [2, 128], strides = [1, 1]} : vector<2x6400xf32> to vector<2x128xf32>
    %1138 = vector.extract_strided_slice %834 {offsets = [13, 0, 0], sizes = [1, 8, 128], strides = [1, 1, 1]} : vector<50x8x128xf32> to vector<1x8x128xf32>
    %1139 = vector.shape_cast %1138 : vector<1x8x128xf32> to vector<8x128xf32>
    %cst_692 = arith.constant dense<0.000000e+00> : vector<2x8xf32>
    %1140 = tpu.matmul %1137, %1139, %cst_692 {dimension_numbers = #tpu.dot_dimension_numbers<[1], [1], [0], [0], [0, 0, 1, 0], [], []>} : vector<2x128xf32>, vector<8x128xf32>, vector<2x8xf32> -> vector<2x8xf32>
    %1141 = vector.extract_strided_slice %842 {offsets = [13, 0], sizes = [1, 8], strides = [1, 1]} : vector<50x8xf32> to vector<1x8xf32>
    %1142 = vector.broadcast %1141 : vector<1x8xf32> to vector<2x8xf32>
    %1143 = arith.addf %1140, %1142 : vector<2x8xf32>
    %cst_693 = arith.constant dense<0xFF800000> : vector<2xf32>
    %1144 = vector.multi_reduction <maximumf>, %1143, %cst_693 [1] : vector<2x8xf32> to vector<2xf32>
    %1145 = vector.shape_cast %1144 : vector<2xf32> to vector<2x1xf32>
    %1146 = vector.broadcast %1145 : vector<2x1xf32> to vector<2x8xf32>
    %1147 = arith.subf %1143, %1146 : vector<2x8xf32>
    %1148 = math.exp %1147 : vector<2x8xf32>
    %cst_694 = arith.constant dense<0.000000e+00> : vector<2xf32>
    %1149 = vector.multi_reduction <add>, %1148, %cst_694 [1] : vector<2x8xf32> to vector<2xf32>
    %1150 = vector.shape_cast %1149 : vector<2xf32> to vector<2x1xf32>
    %1151 = tpu.reciprocal %1150 {approx = true} : vector<2x1xf32> -> vector<2x1xf32>
    %1152 = arith.mulf %1150, %1151 : vector<2x1xf32>
    %cst_695 = arith.constant 2.000000e+00 : f32
    %1153 = vector.broadcast %cst_695 : f32 to vector<2x1xf32>
    %1154 = arith.subf %1153, %1152 : vector<2x1xf32>
    %1155 = arith.mulf %1151, %1154 : vector<2x1xf32>
    %1156 = vector.broadcast %1155 : vector<2x1xf32> to vector<2x8xf32>
    %1157 = arith.mulf %1148, %1156 : vector<2x8xf32>
    %1158 = arith.addf %1136, %1157 : vector<2x8xf32>
    %1159 = vector.extract_strided_slice %849 {offsets = [0, 1792], sizes = [2, 128], strides = [1, 1]} : vector<2x6400xf32> to vector<2x128xf32>
    %1160 = vector.extract_strided_slice %834 {offsets = [14, 0, 0], sizes = [1, 8, 128], strides = [1, 1, 1]} : vector<50x8x128xf32> to vector<1x8x128xf32>
    %1161 = vector.shape_cast %1160 : vector<1x8x128xf32> to vector<8x128xf32>
    %cst_696 = arith.constant dense<0.000000e+00> : vector<2x8xf32>
    %1162 = tpu.matmul %1159, %1161, %cst_696 {dimension_numbers = #tpu.dot_dimension_numbers<[1], [1], [0], [0], [0, 0, 1, 0], [], []>} : vector<2x128xf32>, vector<8x128xf32>, vector<2x8xf32> -> vector<2x8xf32>
    %1163 = vector.extract_strided_slice %842 {offsets = [14, 0], sizes = [1, 8], strides = [1, 1]} : vector<50x8xf32> to vector<1x8xf32>
    %1164 = vector.broadcast %1163 : vector<1x8xf32> to vector<2x8xf32>
    %1165 = arith.addf %1162, %1164 : vector<2x8xf32>
    %cst_697 = arith.constant dense<0xFF800000> : vector<2xf32>
    %1166 = vector.multi_reduction <maximumf>, %1165, %cst_697 [1] : vector<2x8xf32> to vector<2xf32>
    %1167 = vector.shape_cast %1166 : vector<2xf32> to vector<2x1xf32>
    %1168 = vector.broadcast %1167 : vector<2x1xf32> to vector<2x8xf32>
    %1169 = arith.subf %1165, %1168 : vector<2x8xf32>
    %1170 = math.exp %1169 : vector<2x8xf32>
    %cst_698 = arith.constant dense<0.000000e+00> : vector<2xf32>
    %1171 = vector.multi_reduction <add>, %1170, %cst_698 [1] : vector<2x8xf32> to vector<2xf32>
    %1172 = vector.shape_cast %1171 : vector<2xf32> to vector<2x1xf32>
    %1173 = tpu.reciprocal %1172 {approx = true} : vector<2x1xf32> -> vector<2x1xf32>
    %1174 = arith.mulf %1172, %1173 : vector<2x1xf32>
    %cst_699 = arith.constant 2.000000e+00 : f32
    %1175 = vector.broadcast %cst_699 : f32 to vector<2x1xf32>
    %1176 = arith.subf %1175, %1174 : vector<2x1xf32>
    %1177 = arith.mulf %1173, %1176 : vector<2x1xf32>
    %1178 = vector.broadcast %1177 : vector<2x1xf32> to vector<2x8xf32>
    %1179 = arith.mulf %1170, %1178 : vector<2x8xf32>
    %1180 = arith.addf %1158, %1179 : vector<2x8xf32>
    %1181 = vector.extract_strided_slice %849 {offsets = [0, 1920], sizes = [2, 128], strides = [1, 1]} : vector<2x6400xf32> to vector<2x128xf32>
    %1182 = vector.extract_strided_slice %834 {offsets = [15, 0, 0], sizes = [1, 8, 128], strides = [1, 1, 1]} : vector<50x8x128xf32> to vector<1x8x128xf32>
    %1183 = vector.shape_cast %1182 : vector<1x8x128xf32> to vector<8x128xf32>
    %cst_700 = arith.constant dense<0.000000e+00> : vector<2x8xf32>
    %1184 = tpu.matmul %1181, %1183, %cst_700 {dimension_numbers = #tpu.dot_dimension_numbers<[1], [1], [0], [0], [0, 0, 1, 0], [], []>} : vector<2x128xf32>, vector<8x128xf32>, vector<2x8xf32> -> vector<2x8xf32>
    %1185 = vector.extract_strided_slice %842 {offsets = [15, 0], sizes = [1, 8], strides = [1, 1]} : vector<50x8xf32> to vector<1x8xf32>
    %1186 = vector.broadcast %1185 : vector<1x8xf32> to vector<2x8xf32>
    %1187 = arith.addf %1184, %1186 : vector<2x8xf32>
    %cst_701 = arith.constant dense<0xFF800000> : vector<2xf32>
    %1188 = vector.multi_reduction <maximumf>, %1187, %cst_701 [1] : vector<2x8xf32> to vector<2xf32>
    %1189 = vector.shape_cast %1188 : vector<2xf32> to vector<2x1xf32>
    %1190 = vector.broadcast %1189 : vector<2x1xf32> to vector<2x8xf32>
    %1191 = arith.subf %1187, %1190 : vector<2x8xf32>
    %1192 = math.exp %1191 : vector<2x8xf32>
    %cst_702 = arith.constant dense<0.000000e+00> : vector<2xf32>
    %1193 = vector.multi_reduction <add>, %1192, %cst_702 [1] : vector<2x8xf32> to vector<2xf32>
    %1194 = vector.shape_cast %1193 : vector<2xf32> to vector<2x1xf32>
    %1195 = tpu.reciprocal %1194 {approx = true} : vector<2x1xf32> -> vector<2x1xf32>
    %1196 = arith.mulf %1194, %1195 : vector<2x1xf32>
    %cst_703 = arith.constant 2.000000e+00 : f32
    %1197 = vector.broadcast %cst_703 : f32 to vector<2x1xf32>
    %1198 = arith.subf %1197, %1196 : vector<2x1xf32>
    %1199 = arith.mulf %1195, %1198 : vector<2x1xf32>
    %1200 = vector.broadcast %1199 : vector<2x1xf32> to vector<2x8xf32>
    %1201 = arith.mulf %1192, %1200 : vector<2x8xf32>
    %1202 = arith.addf %1180, %1201 : vector<2x8xf32>
    %1203 = vector.extract_strided_slice %849 {offsets = [0, 2048], sizes = [2, 128], strides = [1, 1]} : vector<2x6400xf32> to vector<2x128xf32>
    %1204 = vector.extract_strided_slice %834 {offsets = [16, 0, 0], sizes = [1, 8, 128], strides = [1, 1, 1]} : vector<50x8x128xf32> to vector<1x8x128xf32>
    %1205 = vector.shape_cast %1204 : vector<1x8x128xf32> to vector<8x128xf32>
    %cst_704 = arith.constant dense<0.000000e+00> : vector<2x8xf32>
    %1206 = tpu.matmul %1203, %1205, %cst_704 {dimension_numbers = #tpu.dot_dimension_numbers<[1], [1], [0], [0], [0, 0, 1, 0], [], []>} : vector<2x128xf32>, vector<8x128xf32>, vector<2x8xf32> -> vector<2x8xf32>
    %1207 = vector.extract_strided_slice %842 {offsets = [16, 0], sizes = [1, 8], strides = [1, 1]} : vector<50x8xf32> to vector<1x8xf32>
    %1208 = vector.broadcast %1207 : vector<1x8xf32> to vector<2x8xf32>
    %1209 = arith.addf %1206, %1208 : vector<2x8xf32>
    %cst_705 = arith.constant dense<0xFF800000> : vector<2xf32>
    %1210 = vector.multi_reduction <maximumf>, %1209, %cst_705 [1] : vector<2x8xf32> to vector<2xf32>
    %1211 = vector.shape_cast %1210 : vector<2xf32> to vector<2x1xf32>
    %1212 = vector.broadcast %1211 : vector<2x1xf32> to vector<2x8xf32>
    %1213 = arith.subf %1209, %1212 : vector<2x8xf32>
    %1214 = math.exp %1213 : vector<2x8xf32>
    %cst_706 = arith.constant dense<0.000000e+00> : vector<2xf32>
    %1215 = vector.multi_reduction <add>, %1214, %cst_706 [1] : vector<2x8xf32> to vector<2xf32>
    %1216 = vector.shape_cast %1215 : vector<2xf32> to vector<2x1xf32>
    %1217 = tpu.reciprocal %1216 {approx = true} : vector<2x1xf32> -> vector<2x1xf32>
    %1218 = arith.mulf %1216, %1217 : vector<2x1xf32>
    %cst_707 = arith.constant 2.000000e+00 : f32
    %1219 = vector.broadcast %cst_707 : f32 to vector<2x1xf32>
    %1220 = arith.subf %1219, %1218 : vector<2x1xf32>
    %1221 = arith.mulf %1217, %1220 : vector<2x1xf32>
    %1222 = vector.broadcast %1221 : vector<2x1xf32> to vector<2x8xf32>
    %1223 = arith.mulf %1214, %1222 : vector<2x8xf32>
    %1224 = arith.addf %1202, %1223 : vector<2x8xf32>
    %1225 = vector.extract_strided_slice %849 {offsets = [0, 2176], sizes = [2, 128], strides = [1, 1]} : vector<2x6400xf32> to vector<2x128xf32>
    %1226 = vector.extract_strided_slice %834 {offsets = [17, 0, 0], sizes = [1, 8, 128], strides = [1, 1, 1]} : vector<50x8x128xf32> to vector<1x8x128xf32>
    %1227 = vector.shape_cast %1226 : vector<1x8x128xf32> to vector<8x128xf32>
    %cst_708 = arith.constant dense<0.000000e+00> : vector<2x8xf32>
    %1228 = tpu.matmul %1225, %1227, %cst_708 {dimension_numbers = #tpu.dot_dimension_numbers<[1], [1], [0], [0], [0, 0, 1, 0], [], []>} : vector<2x128xf32>, vector<8x128xf32>, vector<2x8xf32> -> vector<2x8xf32>
    %1229 = vector.extract_strided_slice %842 {offsets = [17, 0], sizes = [1, 8], strides = [1, 1]} : vector<50x8xf32> to vector<1x8xf32>
    %1230 = vector.broadcast %1229 : vector<1x8xf32> to vector<2x8xf32>
    %1231 = arith.addf %1228, %1230 : vector<2x8xf32>
    %cst_709 = arith.constant dense<0xFF800000> : vector<2xf32>
    %1232 = vector.multi_reduction <maximumf>, %1231, %cst_709 [1] : vector<2x8xf32> to vector<2xf32>
    %1233 = vector.shape_cast %1232 : vector<2xf32> to vector<2x1xf32>
    %1234 = vector.broadcast %1233 : vector<2x1xf32> to vector<2x8xf32>
    %1235 = arith.subf %1231, %1234 : vector<2x8xf32>
    %1236 = math.exp %1235 : vector<2x8xf32>
    %cst_710 = arith.constant dense<0.000000e+00> : vector<2xf32>
    %1237 = vector.multi_reduction <add>, %1236, %cst_710 [1] : vector<2x8xf32> to vector<2xf32>
    %1238 = vector.shape_cast %1237 : vector<2xf32> to vector<2x1xf32>
    %1239 = tpu.reciprocal %1238 {approx = true} : vector<2x1xf32> -> vector<2x1xf32>
    %1240 = arith.mulf %1238, %1239 : vector<2x1xf32>
    %cst_711 = arith.constant 2.000000e+00 : f32
    %1241 = vector.broadcast %cst_711 : f32 to vector<2x1xf32>
    %1242 = arith.subf %1241, %1240 : vector<2x1xf32>
    %1243 = arith.mulf %1239, %1242 : vector<2x1xf32>
    %1244 = vector.broadcast %1243 : vector<2x1xf32> to vector<2x8xf32>
    %1245 = arith.mulf %1236, %1244 : vector<2x8xf32>
    %1246 = arith.addf %1224, %1245 : vector<2x8xf32>
    %1247 = vector.extract_strided_slice %849 {offsets = [0, 2304], sizes = [2, 128], strides = [1, 1]} : vector<2x6400xf32> to vector<2x128xf32>
    %1248 = vector.extract_strided_slice %834 {offsets = [18, 0, 0], sizes = [1, 8, 128], strides = [1, 1, 1]} : vector<50x8x128xf32> to vector<1x8x128xf32>
    %1249 = vector.shape_cast %1248 : vector<1x8x128xf32> to vector<8x128xf32>
    %cst_712 = arith.constant dense<0.000000e+00> : vector<2x8xf32>
    %1250 = tpu.matmul %1247, %1249, %cst_712 {dimension_numbers = #tpu.dot_dimension_numbers<[1], [1], [0], [0], [0, 0, 1, 0], [], []>} : vector<2x128xf32>, vector<8x128xf32>, vector<2x8xf32> -> vector<2x8xf32>
    %1251 = vector.extract_strided_slice %842 {offsets = [18, 0], sizes = [1, 8], strides = [1, 1]} : vector<50x8xf32> to vector<1x8xf32>
    %1252 = vector.broadcast %1251 : vector<1x8xf32> to vector<2x8xf32>
    %1253 = arith.addf %1250, %1252 : vector<2x8xf32>
    %cst_713 = arith.constant dense<0xFF800000> : vector<2xf32>
    %1254 = vector.multi_reduction <maximumf>, %1253, %cst_713 [1] : vector<2x8xf32> to vector<2xf32>
    %1255 = vector.shape_cast %1254 : vector<2xf32> to vector<2x1xf32>
    %1256 = vector.broadcast %1255 : vector<2x1xf32> to vector<2x8xf32>
    %1257 = arith.subf %1253, %1256 : vector<2x8xf32>
    %1258 = math.exp %1257 : vector<2x8xf32>
    %cst_714 = arith.constant dense<0.000000e+00> : vector<2xf32>
    %1259 = vector.multi_reduction <add>, %1258, %cst_714 [1] : vector<2x8xf32> to vector<2xf32>
    %1260 = vector.shape_cast %1259 : vector<2xf32> to vector<2x1xf32>
    %1261 = tpu.reciprocal %1260 {approx = true} : vector<2x1xf32> -> vector<2x1xf32>
    %1262 = arith.mulf %1260, %1261 : vector<2x1xf32>
    %cst_715 = arith.constant 2.000000e+00 : f32
    %1263 = vector.broadcast %cst_715 : f32 to vector<2x1xf32>
    %1264 = arith.subf %1263, %1262 : vector<2x1xf32>
    %1265 = arith.mulf %1261, %1264 : vector<2x1xf32>
    %1266 = vector.broadcast %1265 : vector<2x1xf32> to vector<2x8xf32>
    %1267 = arith.mulf %1258, %1266 : vector<2x8xf32>
    %1268 = arith.addf %1246, %1267 : vector<2x8xf32>
    %1269 = vector.extract_strided_slice %849 {offsets = [0, 2432], sizes = [2, 128], strides = [1, 1]} : vector<2x6400xf32> to vector<2x128xf32>
    %1270 = vector.extract_strided_slice %834 {offsets = [19, 0, 0], sizes = [1, 8, 128], strides = [1, 1, 1]} : vector<50x8x128xf32> to vector<1x8x128xf32>
    %1271 = vector.shape_cast %1270 : vector<1x8x128xf32> to vector<8x128xf32>
    %cst_716 = arith.constant dense<0.000000e+00> : vector<2x8xf32>
    %1272 = tpu.matmul %1269, %1271, %cst_716 {dimension_numbers = #tpu.dot_dimension_numbers<[1], [1], [0], [0], [0, 0, 1, 0], [], []>} : vector<2x128xf32>, vector<8x128xf32>, vector<2x8xf32> -> vector<2x8xf32>
    %1273 = vector.extract_strided_slice %842 {offsets = [19, 0], sizes = [1, 8], strides = [1, 1]} : vector<50x8xf32> to vector<1x8xf32>
    %1274 = vector.broadcast %1273 : vector<1x8xf32> to vector<2x8xf32>
    %1275 = arith.addf %1272, %1274 : vector<2x8xf32>
    %cst_717 = arith.constant dense<0xFF800000> : vector<2xf32>
    %1276 = vector.multi_reduction <maximumf>, %1275, %cst_717 [1] : vector<2x8xf32> to vector<2xf32>
    %1277 = vector.shape_cast %1276 : vector<2xf32> to vector<2x1xf32>
    %1278 = vector.broadcast %1277 : vector<2x1xf32> to vector<2x8xf32>
    %1279 = arith.subf %1275, %1278 : vector<2x8xf32>
    %1280 = math.exp %1279 : vector<2x8xf32>
    %cst_718 = arith.constant dense<0.000000e+00> : vector<2xf32>
    %1281 = vector.multi_reduction <add>, %1280, %cst_718 [1] : vector<2x8xf32> to vector<2xf32>
    %1282 = vector.shape_cast %1281 : vector<2xf32> to vector<2x1xf32>
    %1283 = tpu.reciprocal %1282 {approx = true} : vector<2x1xf32> -> vector<2x1xf32>
    %1284 = arith.mulf %1282, %1283 : vector<2x1xf32>
    %cst_719 = arith.constant 2.000000e+00 : f32
    %1285 = vector.broadcast %cst_719 : f32 to vector<2x1xf32>
    %1286 = arith.subf %1285, %1284 : vector<2x1xf32>
    %1287 = arith.mulf %1283, %1286 : vector<2x1xf32>
    %1288 = vector.broadcast %1287 : vector<2x1xf32> to vector<2x8xf32>
    %1289 = arith.mulf %1280, %1288 : vector<2x8xf32>
    %1290 = arith.addf %1268, %1289 : vector<2x8xf32>
    %1291 = vector.extract_strided_slice %849 {offsets = [0, 2560], sizes = [2, 128], strides = [1, 1]} : vector<2x6400xf32> to vector<2x128xf32>
    %1292 = vector.extract_strided_slice %834 {offsets = [20, 0, 0], sizes = [1, 8, 128], strides = [1, 1, 1]} : vector<50x8x128xf32> to vector<1x8x128xf32>
    %1293 = vector.shape_cast %1292 : vector<1x8x128xf32> to vector<8x128xf32>
    %cst_720 = arith.constant dense<0.000000e+00> : vector<2x8xf32>
    %1294 = tpu.matmul %1291, %1293, %cst_720 {dimension_numbers = #tpu.dot_dimension_numbers<[1], [1], [0], [0], [0, 0, 1, 0], [], []>} : vector<2x128xf32>, vector<8x128xf32>, vector<2x8xf32> -> vector<2x8xf32>
    %1295 = vector.extract_strided_slice %842 {offsets = [20, 0], sizes = [1, 8], strides = [1, 1]} : vector<50x8xf32> to vector<1x8xf32>
    %1296 = vector.broadcast %1295 : vector<1x8xf32> to vector<2x8xf32>
    %1297 = arith.addf %1294, %1296 : vector<2x8xf32>
    %cst_721 = arith.constant dense<0xFF800000> : vector<2xf32>
    %1298 = vector.multi_reduction <maximumf>, %1297, %cst_721 [1] : vector<2x8xf32> to vector<2xf32>
    %1299 = vector.shape_cast %1298 : vector<2xf32> to vector<2x1xf32>
    %1300 = vector.broadcast %1299 : vector<2x1xf32> to vector<2x8xf32>
    %1301 = arith.subf %1297, %1300 : vector<2x8xf32>
    %1302 = math.exp %1301 : vector<2x8xf32>
    %cst_722 = arith.constant dense<0.000000e+00> : vector<2xf32>
    %1303 = vector.multi_reduction <add>, %1302, %cst_722 [1] : vector<2x8xf32> to vector<2xf32>
    %1304 = vector.shape_cast %1303 : vector<2xf32> to vector<2x1xf32>
    %1305 = tpu.reciprocal %1304 {approx = true} : vector<2x1xf32> -> vector<2x1xf32>
    %1306 = arith.mulf %1304, %1305 : vector<2x1xf32>
    %cst_723 = arith.constant 2.000000e+00 : f32
    %1307 = vector.broadcast %cst_723 : f32 to vector<2x1xf32>
    %1308 = arith.subf %1307, %1306 : vector<2x1xf32>
    %1309 = arith.mulf %1305, %1308 : vector<2x1xf32>
    %1310 = vector.broadcast %1309 : vector<2x1xf32> to vector<2x8xf32>
    %1311 = arith.mulf %1302, %1310 : vector<2x8xf32>
    %1312 = arith.addf %1290, %1311 : vector<2x8xf32>
    %1313 = vector.extract_strided_slice %849 {offsets = [0, 2688], sizes = [2, 128], strides = [1, 1]} : vector<2x6400xf32> to vector<2x128xf32>
    %1314 = vector.extract_strided_slice %834 {offsets = [21, 0, 0], sizes = [1, 8, 128], strides = [1, 1, 1]} : vector<50x8x128xf32> to vector<1x8x128xf32>
    %1315 = vector.shape_cast %1314 : vector<1x8x128xf32> to vector<8x128xf32>
    %cst_724 = arith.constant dense<0.000000e+00> : vector<2x8xf32>
    %1316 = tpu.matmul %1313, %1315, %cst_724 {dimension_numbers = #tpu.dot_dimension_numbers<[1], [1], [0], [0], [0, 0, 1, 0], [], []>} : vector<2x128xf32>, vector<8x128xf32>, vector<2x8xf32> -> vector<2x8xf32>
    %1317 = vector.extract_strided_slice %842 {offsets = [21, 0], sizes = [1, 8], strides = [1, 1]} : vector<50x8xf32> to vector<1x8xf32>
    %1318 = vector.broadcast %1317 : vector<1x8xf32> to vector<2x8xf32>
    %1319 = arith.addf %1316, %1318 : vector<2x8xf32>
    %cst_725 = arith.constant dense<0xFF800000> : vector<2xf32>
    %1320 = vector.multi_reduction <maximumf>, %1319, %cst_725 [1] : vector<2x8xf32> to vector<2xf32>
    %1321 = vector.shape_cast %1320 : vector<2xf32> to vector<2x1xf32>
    %1322 = vector.broadcast %1321 : vector<2x1xf32> to vector<2x8xf32>
    %1323 = arith.subf %1319, %1322 : vector<2x8xf32>
    %1324 = math.exp %1323 : vector<2x8xf32>
    %cst_726 = arith.constant dense<0.000000e+00> : vector<2xf32>
    %1325 = vector.multi_reduction <add>, %1324, %cst_726 [1] : vector<2x8xf32> to vector<2xf32>
    %1326 = vector.shape_cast %1325 : vector<2xf32> to vector<2x1xf32>
    %1327 = tpu.reciprocal %1326 {approx = true} : vector<2x1xf32> -> vector<2x1xf32>
    %1328 = arith.mulf %1326, %1327 : vector<2x1xf32>
    %cst_727 = arith.constant 2.000000e+00 : f32
    %1329 = vector.broadcast %cst_727 : f32 to vector<2x1xf32>
    %1330 = arith.subf %1329, %1328 : vector<2x1xf32>
    %1331 = arith.mulf %1327, %1330 : vector<2x1xf32>
    %1332 = vector.broadcast %1331 : vector<2x1xf32> to vector<2x8xf32>
    %1333 = arith.mulf %1324, %1332 : vector<2x8xf32>
    %1334 = arith.addf %1312, %1333 : vector<2x8xf32>
    %1335 = vector.extract_strided_slice %849 {offsets = [0, 2816], sizes = [2, 128], strides = [1, 1]} : vector<2x6400xf32> to vector<2x128xf32>
    %1336 = vector.extract_strided_slice %834 {offsets = [22, 0, 0], sizes = [1, 8, 128], strides = [1, 1, 1]} : vector<50x8x128xf32> to vector<1x8x128xf32>
    %1337 = vector.shape_cast %1336 : vector<1x8x128xf32> to vector<8x128xf32>
    %cst_728 = arith.constant dense<0.000000e+00> : vector<2x8xf32>
    %1338 = tpu.matmul %1335, %1337, %cst_728 {dimension_numbers = #tpu.dot_dimension_numbers<[1], [1], [0], [0], [0, 0, 1, 0], [], []>} : vector<2x128xf32>, vector<8x128xf32>, vector<2x8xf32> -> vector<2x8xf32>
    %1339 = vector.extract_strided_slice %842 {offsets = [22, 0], sizes = [1, 8], strides = [1, 1]} : vector<50x8xf32> to vector<1x8xf32>
    %1340 = vector.broadcast %1339 : vector<1x8xf32> to vector<2x8xf32>
    %1341 = arith.addf %1338, %1340 : vector<2x8xf32>
    %cst_729 = arith.constant dense<0xFF800000> : vector<2xf32>
    %1342 = vector.multi_reduction <maximumf>, %1341, %cst_729 [1] : vector<2x8xf32> to vector<2xf32>
    %1343 = vector.shape_cast %1342 : vector<2xf32> to vector<2x1xf32>
    %1344 = vector.broadcast %1343 : vector<2x1xf32> to vector<2x8xf32>
    %1345 = arith.subf %1341, %1344 : vector<2x8xf32>
    %1346 = math.exp %1345 : vector<2x8xf32>
    %cst_730 = arith.constant dense<0.000000e+00> : vector<2xf32>
    %1347 = vector.multi_reduction <add>, %1346, %cst_730 [1] : vector<2x8xf32> to vector<2xf32>
    %1348 = vector.shape_cast %1347 : vector<2xf32> to vector<2x1xf32>
    %1349 = tpu.reciprocal %1348 {approx = true} : vector<2x1xf32> -> vector<2x1xf32>
    %1350 = arith.mulf %1348, %1349 : vector<2x1xf32>
    %cst_731 = arith.constant 2.000000e+00 : f32
    %1351 = vector.broadcast %cst_731 : f32 to vector<2x1xf32>
    %1352 = arith.subf %1351, %1350 : vector<2x1xf32>
    %1353 = arith.mulf %1349, %1352 : vector<2x1xf32>
    %1354 = vector.broadcast %1353 : vector<2x1xf32> to vector<2x8xf32>
    %1355 = arith.mulf %1346, %1354 : vector<2x8xf32>
    %1356 = arith.addf %1334, %1355 : vector<2x8xf32>
    %1357 = vector.extract_strided_slice %849 {offsets = [0, 2944], sizes = [2, 128], strides = [1, 1]} : vector<2x6400xf32> to vector<2x128xf32>
    %1358 = vector.extract_strided_slice %834 {offsets = [23, 0, 0], sizes = [1, 8, 128], strides = [1, 1, 1]} : vector<50x8x128xf32> to vector<1x8x128xf32>
    %1359 = vector.shape_cast %1358 : vector<1x8x128xf32> to vector<8x128xf32>
    %cst_732 = arith.constant dense<0.000000e+00> : vector<2x8xf32>
    %1360 = tpu.matmul %1357, %1359, %cst_732 {dimension_numbers = #tpu.dot_dimension_numbers<[1], [1], [0], [0], [0, 0, 1, 0], [], []>} : vector<2x128xf32>, vector<8x128xf32>, vector<2x8xf32> -> vector<2x8xf32>
    %1361 = vector.extract_strided_slice %842 {offsets = [23, 0], sizes = [1, 8], strides = [1, 1]} : vector<50x8xf32> to vector<1x8xf32>
    %1362 = vector.broadcast %1361 : vector<1x8xf32> to vector<2x8xf32>
    %1363 = arith.addf %1360, %1362 : vector<2x8xf32>
    %cst_733 = arith.constant dense<0xFF800000> : vector<2xf32>
    %1364 = vector.multi_reduction <maximumf>, %1363, %cst_733 [1] : vector<2x8xf32> to vector<2xf32>
    %1365 = vector.shape_cast %1364 : vector<2xf32> to vector<2x1xf32>
    %1366 = vector.broadcast %1365 : vector<2x1xf32> to vector<2x8xf32>
    %1367 = arith.subf %1363, %1366 : vector<2x8xf32>
    %1368 = math.exp %1367 : vector<2x8xf32>
    %cst_734 = arith.constant dense<0.000000e+00> : vector<2xf32>
    %1369 = vector.multi_reduction <add>, %1368, %cst_734 [1] : vector<2x8xf32> to vector<2xf32>
    %1370 = vector.shape_cast %1369 : vector<2xf32> to vector<2x1xf32>
    %1371 = tpu.reciprocal %1370 {approx = true} : vector<2x1xf32> -> vector<2x1xf32>
    %1372 = arith.mulf %1370, %1371 : vector<2x1xf32>
    %cst_735 = arith.constant 2.000000e+00 : f32
    %1373 = vector.broadcast %cst_735 : f32 to vector<2x1xf32>
    %1374 = arith.subf %1373, %1372 : vector<2x1xf32>
    %1375 = arith.mulf %1371, %1374 : vector<2x1xf32>
    %1376 = vector.broadcast %1375 : vector<2x1xf32> to vector<2x8xf32>
    %1377 = arith.mulf %1368, %1376 : vector<2x8xf32>
    %1378 = arith.addf %1356, %1377 : vector<2x8xf32>
    %1379 = vector.extract_strided_slice %849 {offsets = [0, 3072], sizes = [2, 128], strides = [1, 1]} : vector<2x6400xf32> to vector<2x128xf32>
    %1380 = vector.extract_strided_slice %834 {offsets = [24, 0, 0], sizes = [1, 8, 128], strides = [1, 1, 1]} : vector<50x8x128xf32> to vector<1x8x128xf32>
    %1381 = vector.shape_cast %1380 : vector<1x8x128xf32> to vector<8x128xf32>
    %cst_736 = arith.constant dense<0.000000e+00> : vector<2x8xf32>
    %1382 = tpu.matmul %1379, %1381, %cst_736 {dimension_numbers = #tpu.dot_dimension_numbers<[1], [1], [0], [0], [0, 0, 1, 0], [], []>} : vector<2x128xf32>, vector<8x128xf32>, vector<2x8xf32> -> vector<2x8xf32>
    %1383 = vector.extract_strided_slice %842 {offsets = [24, 0], sizes = [1, 8], strides = [1, 1]} : vector<50x8xf32> to vector<1x8xf32>
    %1384 = vector.broadcast %1383 : vector<1x8xf32> to vector<2x8xf32>
    %1385 = arith.addf %1382, %1384 : vector<2x8xf32>
    %cst_737 = arith.constant dense<0xFF800000> : vector<2xf32>
    %1386 = vector.multi_reduction <maximumf>, %1385, %cst_737 [1] : vector<2x8xf32> to vector<2xf32>
    %1387 = vector.shape_cast %1386 : vector<2xf32> to vector<2x1xf32>
    %1388 = vector.broadcast %1387 : vector<2x1xf32> to vector<2x8xf32>
    %1389 = arith.subf %1385, %1388 : vector<2x8xf32>
    %1390 = math.exp %1389 : vector<2x8xf32>
    %cst_738 = arith.constant dense<0.000000e+00> : vector<2xf32>
    %1391 = vector.multi_reduction <add>, %1390, %cst_738 [1] : vector<2x8xf32> to vector<2xf32>
    %1392 = vector.shape_cast %1391 : vector<2xf32> to vector<2x1xf32>
    %1393 = tpu.reciprocal %1392 {approx = true} : vector<2x1xf32> -> vector<2x1xf32>
    %1394 = arith.mulf %1392, %1393 : vector<2x1xf32>
    %cst_739 = arith.constant 2.000000e+00 : f32
    %1395 = vector.broadcast %cst_739 : f32 to vector<2x1xf32>
    %1396 = arith.subf %1395, %1394 : vector<2x1xf32>
    %1397 = arith.mulf %1393, %1396 : vector<2x1xf32>
    %1398 = vector.broadcast %1397 : vector<2x1xf32> to vector<2x8xf32>
    %1399 = arith.mulf %1390, %1398 : vector<2x8xf32>
    %1400 = arith.addf %1378, %1399 : vector<2x8xf32>
    %1401 = vector.extract_strided_slice %849 {offsets = [0, 3200], sizes = [2, 128], strides = [1, 1]} : vector<2x6400xf32> to vector<2x128xf32>
    %1402 = vector.extract_strided_slice %834 {offsets = [25, 0, 0], sizes = [1, 8, 128], strides = [1, 1, 1]} : vector<50x8x128xf32> to vector<1x8x128xf32>
    %1403 = vector.shape_cast %1402 : vector<1x8x128xf32> to vector<8x128xf32>
    %cst_740 = arith.constant dense<0.000000e+00> : vector<2x8xf32>
    %1404 = tpu.matmul %1401, %1403, %cst_740 {dimension_numbers = #tpu.dot_dimension_numbers<[1], [1], [0], [0], [0, 0, 1, 0], [], []>} : vector<2x128xf32>, vector<8x128xf32>, vector<2x8xf32> -> vector<2x8xf32>
    %1405 = vector.extract_strided_slice %842 {offsets = [25, 0], sizes = [1, 8], strides = [1, 1]} : vector<50x8xf32> to vector<1x8xf32>
    %1406 = vector.broadcast %1405 : vector<1x8xf32> to vector<2x8xf32>
    %1407 = arith.addf %1404, %1406 : vector<2x8xf32>
    %cst_741 = arith.constant dense<0xFF800000> : vector<2xf32>
    %1408 = vector.multi_reduction <maximumf>, %1407, %cst_741 [1] : vector<2x8xf32> to vector<2xf32>
    %1409 = vector.shape_cast %1408 : vector<2xf32> to vector<2x1xf32>
    %1410 = vector.broadcast %1409 : vector<2x1xf32> to vector<2x8xf32>
    %1411 = arith.subf %1407, %1410 : vector<2x8xf32>
    %1412 = math.exp %1411 : vector<2x8xf32>
    %cst_742 = arith.constant dense<0.000000e+00> : vector<2xf32>
    %1413 = vector.multi_reduction <add>, %1412, %cst_742 [1] : vector<2x8xf32> to vector<2xf32>
    %1414 = vector.shape_cast %1413 : vector<2xf32> to vector<2x1xf32>
    %1415 = tpu.reciprocal %1414 {approx = true} : vector<2x1xf32> -> vector<2x1xf32>
    %1416 = arith.mulf %1414, %1415 : vector<2x1xf32>
    %cst_743 = arith.constant 2.000000e+00 : f32
    %1417 = vector.broadcast %cst_743 : f32 to vector<2x1xf32>
    %1418 = arith.subf %1417, %1416 : vector<2x1xf32>
    %1419 = arith.mulf %1415, %1418 : vector<2x1xf32>
    %1420 = vector.broadcast %1419 : vector<2x1xf32> to vector<2x8xf32>
    %1421 = arith.mulf %1412, %1420 : vector<2x8xf32>
    %1422 = arith.addf %1400, %1421 : vector<2x8xf32>
    %1423 = vector.extract_strided_slice %849 {offsets = [0, 3328], sizes = [2, 128], strides = [1, 1]} : vector<2x6400xf32> to vector<2x128xf32>
    %1424 = vector.extract_strided_slice %834 {offsets = [26, 0, 0], sizes = [1, 8, 128], strides = [1, 1, 1]} : vector<50x8x128xf32> to vector<1x8x128xf32>
    %1425 = vector.shape_cast %1424 : vector<1x8x128xf32> to vector<8x128xf32>
    %cst_744 = arith.constant dense<0.000000e+00> : vector<2x8xf32>
    %1426 = tpu.matmul %1423, %1425, %cst_744 {dimension_numbers = #tpu.dot_dimension_numbers<[1], [1], [0], [0], [0, 0, 1, 0], [], []>} : vector<2x128xf32>, vector<8x128xf32>, vector<2x8xf32> -> vector<2x8xf32>
    %1427 = vector.extract_strided_slice %842 {offsets = [26, 0], sizes = [1, 8], strides = [1, 1]} : vector<50x8xf32> to vector<1x8xf32>
    %1428 = vector.broadcast %1427 : vector<1x8xf32> to vector<2x8xf32>
    %1429 = arith.addf %1426, %1428 : vector<2x8xf32>
    %cst_745 = arith.constant dense<0xFF800000> : vector<2xf32>
    %1430 = vector.multi_reduction <maximumf>, %1429, %cst_745 [1] : vector<2x8xf32> to vector<2xf32>
    %1431 = vector.shape_cast %1430 : vector<2xf32> to vector<2x1xf32>
    %1432 = vector.broadcast %1431 : vector<2x1xf32> to vector<2x8xf32>
    %1433 = arith.subf %1429, %1432 : vector<2x8xf32>
    %1434 = math.exp %1433 : vector<2x8xf32>
    %cst_746 = arith.constant dense<0.000000e+00> : vector<2xf32>
    %1435 = vector.multi_reduction <add>, %1434, %cst_746 [1] : vector<2x8xf32> to vector<2xf32>
    %1436 = vector.shape_cast %1435 : vector<2xf32> to vector<2x1xf32>
    %1437 = tpu.reciprocal %1436 {approx = true} : vector<2x1xf32> -> vector<2x1xf32>
    %1438 = arith.mulf %1436, %1437 : vector<2x1xf32>
    %cst_747 = arith.constant 2.000000e+00 : f32
    %1439 = vector.broadcast %cst_747 : f32 to vector<2x1xf32>
    %1440 = arith.subf %1439, %1438 : vector<2x1xf32>
    %1441 = arith.mulf %1437, %1440 : vector<2x1xf32>
    %1442 = vector.broadcast %1441 : vector<2x1xf32> to vector<2x8xf32>
    %1443 = arith.mulf %1434, %1442 : vector<2x8xf32>
    %1444 = arith.addf %1422, %1443 : vector<2x8xf32>
    %1445 = vector.extract_strided_slice %849 {offsets = [0, 3456], sizes = [2, 128], strides = [1, 1]} : vector<2x6400xf32> to vector<2x128xf32>
    %1446 = vector.extract_strided_slice %834 {offsets = [27, 0, 0], sizes = [1, 8, 128], strides = [1, 1, 1]} : vector<50x8x128xf32> to vector<1x8x128xf32>
    %1447 = vector.shape_cast %1446 : vector<1x8x128xf32> to vector<8x128xf32>
    %cst_748 = arith.constant dense<0.000000e+00> : vector<2x8xf32>
    %1448 = tpu.matmul %1445, %1447, %cst_748 {dimension_numbers = #tpu.dot_dimension_numbers<[1], [1], [0], [0], [0, 0, 1, 0], [], []>} : vector<2x128xf32>, vector<8x128xf32>, vector<2x8xf32> -> vector<2x8xf32>
    %1449 = vector.extract_strided_slice %842 {offsets = [27, 0], sizes = [1, 8], strides = [1, 1]} : vector<50x8xf32> to vector<1x8xf32>
    %1450 = vector.broadcast %1449 : vector<1x8xf32> to vector<2x8xf32>
    %1451 = arith.addf %1448, %1450 : vector<2x8xf32>
    %cst_749 = arith.constant dense<0xFF800000> : vector<2xf32>
    %1452 = vector.multi_reduction <maximumf>, %1451, %cst_749 [1] : vector<2x8xf32> to vector<2xf32>
    %1453 = vector.shape_cast %1452 : vector<2xf32> to vector<2x1xf32>
    %1454 = vector.broadcast %1453 : vector<2x1xf32> to vector<2x8xf32>
    %1455 = arith.subf %1451, %1454 : vector<2x8xf32>
    %1456 = math.exp %1455 : vector<2x8xf32>
    %cst_750 = arith.constant dense<0.000000e+00> : vector<2xf32>
    %1457 = vector.multi_reduction <add>, %1456, %cst_750 [1] : vector<2x8xf32> to vector<2xf32>
    %1458 = vector.shape_cast %1457 : vector<2xf32> to vector<2x1xf32>
    %1459 = tpu.reciprocal %1458 {approx = true} : vector<2x1xf32> -> vector<2x1xf32>
    %1460 = arith.mulf %1458, %1459 : vector<2x1xf32>
    %cst_751 = arith.constant 2.000000e+00 : f32
    %1461 = vector.broadcast %cst_751 : f32 to vector<2x1xf32>
    %1462 = arith.subf %1461, %1460 : vector<2x1xf32>
    %1463 = arith.mulf %1459, %1462 : vector<2x1xf32>
    %1464 = vector.broadcast %1463 : vector<2x1xf32> to vector<2x8xf32>
    %1465 = arith.mulf %1456, %1464 : vector<2x8xf32>
    %1466 = arith.addf %1444, %1465 : vector<2x8xf32>
    %1467 = vector.extract_strided_slice %849 {offsets = [0, 3584], sizes = [2, 128], strides = [1, 1]} : vector<2x6400xf32> to vector<2x128xf32>
    %1468 = vector.extract_strided_slice %834 {offsets = [28, 0, 0], sizes = [1, 8, 128], strides = [1, 1, 1]} : vector<50x8x128xf32> to vector<1x8x128xf32>
    %1469 = vector.shape_cast %1468 : vector<1x8x128xf32> to vector<8x128xf32>
    %cst_752 = arith.constant dense<0.000000e+00> : vector<2x8xf32>
    %1470 = tpu.matmul %1467, %1469, %cst_752 {dimension_numbers = #tpu.dot_dimension_numbers<[1], [1], [0], [0], [0, 0, 1, 0], [], []>} : vector<2x128xf32>, vector<8x128xf32>, vector<2x8xf32> -> vector<2x8xf32>
    %1471 = vector.extract_strided_slice %842 {offsets = [28, 0], sizes = [1, 8], strides = [1, 1]} : vector<50x8xf32> to vector<1x8xf32>
    %1472 = vector.broadcast %1471 : vector<1x8xf32> to vector<2x8xf32>
    %1473 = arith.addf %1470, %1472 : vector<2x8xf32>
    %cst_753 = arith.constant dense<0xFF800000> : vector<2xf32>
    %1474 = vector.multi_reduction <maximumf>, %1473, %cst_753 [1] : vector<2x8xf32> to vector<2xf32>
    %1475 = vector.shape_cast %1474 : vector<2xf32> to vector<2x1xf32>
    %1476 = vector.broadcast %1475 : vector<2x1xf32> to vector<2x8xf32>
    %1477 = arith.subf %1473, %1476 : vector<2x8xf32>
    %1478 = math.exp %1477 : vector<2x8xf32>
    %cst_754 = arith.constant dense<0.000000e+00> : vector<2xf32>
    %1479 = vector.multi_reduction <add>, %1478, %cst_754 [1] : vector<2x8xf32> to vector<2xf32>
    %1480 = vector.shape_cast %1479 : vector<2xf32> to vector<2x1xf32>
    %1481 = tpu.reciprocal %1480 {approx = true} : vector<2x1xf32> -> vector<2x1xf32>
    %1482 = arith.mulf %1480, %1481 : vector<2x1xf32>
    %cst_755 = arith.constant 2.000000e+00 : f32
    %1483 = vector.broadcast %cst_755 : f32 to vector<2x1xf32>
    %1484 = arith.subf %1483, %1482 : vector<2x1xf32>
    %1485 = arith.mulf %1481, %1484 : vector<2x1xf32>
    %1486 = vector.broadcast %1485 : vector<2x1xf32> to vector<2x8xf32>
    %1487 = arith.mulf %1478, %1486 : vector<2x8xf32>
    %1488 = arith.addf %1466, %1487 : vector<2x8xf32>
    %1489 = vector.extract_strided_slice %849 {offsets = [0, 3712], sizes = [2, 128], strides = [1, 1]} : vector<2x6400xf32> to vector<2x128xf32>
    %1490 = vector.extract_strided_slice %834 {offsets = [29, 0, 0], sizes = [1, 8, 128], strides = [1, 1, 1]} : vector<50x8x128xf32> to vector<1x8x128xf32>
    %1491 = vector.shape_cast %1490 : vector<1x8x128xf32> to vector<8x128xf32>
    %cst_756 = arith.constant dense<0.000000e+00> : vector<2x8xf32>
    %1492 = tpu.matmul %1489, %1491, %cst_756 {dimension_numbers = #tpu.dot_dimension_numbers<[1], [1], [0], [0], [0, 0, 1, 0], [], []>} : vector<2x128xf32>, vector<8x128xf32>, vector<2x8xf32> -> vector<2x8xf32>
    %1493 = vector.extract_strided_slice %842 {offsets = [29, 0], sizes = [1, 8], strides = [1, 1]} : vector<50x8xf32> to vector<1x8xf32>
    %1494 = vector.broadcast %1493 : vector<1x8xf32> to vector<2x8xf32>
    %1495 = arith.addf %1492, %1494 : vector<2x8xf32>
    %cst_757 = arith.constant dense<0xFF800000> : vector<2xf32>
    %1496 = vector.multi_reduction <maximumf>, %1495, %cst_757 [1] : vector<2x8xf32> to vector<2xf32>
    %1497 = vector.shape_cast %1496 : vector<2xf32> to vector<2x1xf32>
    %1498 = vector.broadcast %1497 : vector<2x1xf32> to vector<2x8xf32>
    %1499 = arith.subf %1495, %1498 : vector<2x8xf32>
    %1500 = math.exp %1499 : vector<2x8xf32>
    %cst_758 = arith.constant dense<0.000000e+00> : vector<2xf32>
    %1501 = vector.multi_reduction <add>, %1500, %cst_758 [1] : vector<2x8xf32> to vector<2xf32>
    %1502 = vector.shape_cast %1501 : vector<2xf32> to vector<2x1xf32>
    %1503 = tpu.reciprocal %1502 {approx = true} : vector<2x1xf32> -> vector<2x1xf32>
    %1504 = arith.mulf %1502, %1503 : vector<2x1xf32>
    %cst_759 = arith.constant 2.000000e+00 : f32
    %1505 = vector.broadcast %cst_759 : f32 to vector<2x1xf32>
    %1506 = arith.subf %1505, %1504 : vector<2x1xf32>
    %1507 = arith.mulf %1503, %1506 : vector<2x1xf32>
    %1508 = vector.broadcast %1507 : vector<2x1xf32> to vector<2x8xf32>
    %1509 = arith.mulf %1500, %1508 : vector<2x8xf32>
    %1510 = arith.addf %1488, %1509 : vector<2x8xf32>
    %1511 = vector.extract_strided_slice %849 {offsets = [0, 3840], sizes = [2, 128], strides = [1, 1]} : vector<2x6400xf32> to vector<2x128xf32>
    %1512 = vector.extract_strided_slice %834 {offsets = [30, 0, 0], sizes = [1, 8, 128], strides = [1, 1, 1]} : vector<50x8x128xf32> to vector<1x8x128xf32>
    %1513 = vector.shape_cast %1512 : vector<1x8x128xf32> to vector<8x128xf32>
    %cst_760 = arith.constant dense<0.000000e+00> : vector<2x8xf32>
    %1514 = tpu.matmul %1511, %1513, %cst_760 {dimension_numbers = #tpu.dot_dimension_numbers<[1], [1], [0], [0], [0, 0, 1, 0], [], []>} : vector<2x128xf32>, vector<8x128xf32>, vector<2x8xf32> -> vector<2x8xf32>
    %1515 = vector.extract_strided_slice %842 {offsets = [30, 0], sizes = [1, 8], strides = [1, 1]} : vector<50x8xf32> to vector<1x8xf32>
    %1516 = vector.broadcast %1515 : vector<1x8xf32> to vector<2x8xf32>
    %1517 = arith.addf %1514, %1516 : vector<2x8xf32>
    %cst_761 = arith.constant dense<0xFF800000> : vector<2xf32>
    %1518 = vector.multi_reduction <maximumf>, %1517, %cst_761 [1] : vector<2x8xf32> to vector<2xf32>
    %1519 = vector.shape_cast %1518 : vector<2xf32> to vector<2x1xf32>
    %1520 = vector.broadcast %1519 : vector<2x1xf32> to vector<2x8xf32>
    %1521 = arith.subf %1517, %1520 : vector<2x8xf32>
    %1522 = math.exp %1521 : vector<2x8xf32>
    %cst_762 = arith.constant dense<0.000000e+00> : vector<2xf32>
    %1523 = vector.multi_reduction <add>, %1522, %cst_762 [1] : vector<2x8xf32> to vector<2xf32>
    %1524 = vector.shape_cast %1523 : vector<2xf32> to vector<2x1xf32>
    %1525 = tpu.reciprocal %1524 {approx = true} : vector<2x1xf32> -> vector<2x1xf32>
    %1526 = arith.mulf %1524, %1525 : vector<2x1xf32>
    %cst_763 = arith.constant 2.000000e+00 : f32
    %1527 = vector.broadcast %cst_763 : f32 to vector<2x1xf32>
    %1528 = arith.subf %1527, %1526 : vector<2x1xf32>
    %1529 = arith.mulf %1525, %1528 : vector<2x1xf32>
    %1530 = vector.broadcast %1529 : vector<2x1xf32> to vector<2x8xf32>
    %1531 = arith.mulf %1522, %1530 : vector<2x8xf32>
    %1532 = arith.addf %1510, %1531 : vector<2x8xf32>
    %1533 = vector.extract_strided_slice %849 {offsets = [0, 3968], sizes = [2, 128], strides = [1, 1]} : vector<2x6400xf32> to vector<2x128xf32>
    %1534 = vector.extract_strided_slice %834 {offsets = [31, 0, 0], sizes = [1, 8, 128], strides = [1, 1, 1]} : vector<50x8x128xf32> to vector<1x8x128xf32>
    %1535 = vector.shape_cast %1534 : vector<1x8x128xf32> to vector<8x128xf32>
    %cst_764 = arith.constant dense<0.000000e+00> : vector<2x8xf32>
    %1536 = tpu.matmul %1533, %1535, %cst_764 {dimension_numbers = #tpu.dot_dimension_numbers<[1], [1], [0], [0], [0, 0, 1, 0], [], []>} : vector<2x128xf32>, vector<8x128xf32>, vector<2x8xf32> -> vector<2x8xf32>
    %1537 = vector.extract_strided_slice %842 {offsets = [31, 0], sizes = [1, 8], strides = [1, 1]} : vector<50x8xf32> to vector<1x8xf32>
    %1538 = vector.broadcast %1537 : vector<1x8xf32> to vector<2x8xf32>
    %1539 = arith.addf %1536, %1538 : vector<2x8xf32>
    %cst_765 = arith.constant dense<0xFF800000> : vector<2xf32>
    %1540 = vector.multi_reduction <maximumf>, %1539, %cst_765 [1] : vector<2x8xf32> to vector<2xf32>
    %1541 = vector.shape_cast %1540 : vector<2xf32> to vector<2x1xf32>
    %1542 = vector.broadcast %1541 : vector<2x1xf32> to vector<2x8xf32>
    %1543 = arith.subf %1539, %1542 : vector<2x8xf32>
    %1544 = math.exp %1543 : vector<2x8xf32>
    %cst_766 = arith.constant dense<0.000000e+00> : vector<2xf32>
    %1545 = vector.multi_reduction <add>, %1544, %cst_766 [1] : vector<2x8xf32> to vector<2xf32>
    %1546 = vector.shape_cast %1545 : vector<2xf32> to vector<2x1xf32>
    %1547 = tpu.reciprocal %1546 {approx = true} : vector<2x1xf32> -> vector<2x1xf32>
    %1548 = arith.mulf %1546, %1547 : vector<2x1xf32>
    %cst_767 = arith.constant 2.000000e+00 : f32
    %1549 = vector.broadcast %cst_767 : f32 to vector<2x1xf32>
    %1550 = arith.subf %1549, %1548 : vector<2x1xf32>
    %1551 = arith.mulf %1547, %1550 : vector<2x1xf32>
    %1552 = vector.broadcast %1551 : vector<2x1xf32> to vector<2x8xf32>
    %1553 = arith.mulf %1544, %1552 : vector<2x8xf32>
    %1554 = arith.addf %1532, %1553 : vector<2x8xf32>
    %1555 = vector.extract_strided_slice %849 {offsets = [0, 4096], sizes = [2, 128], strides = [1, 1]} : vector<2x6400xf32> to vector<2x128xf32>
    %1556 = vector.extract_strided_slice %834 {offsets = [32, 0, 0], sizes = [1, 8, 128], strides = [1, 1, 1]} : vector<50x8x128xf32> to vector<1x8x128xf32>
    %1557 = vector.shape_cast %1556 : vector<1x8x128xf32> to vector<8x128xf32>
    %cst_768 = arith.constant dense<0.000000e+00> : vector<2x8xf32>
    %1558 = tpu.matmul %1555, %1557, %cst_768 {dimension_numbers = #tpu.dot_dimension_numbers<[1], [1], [0], [0], [0, 0, 1, 0], [], []>} : vector<2x128xf32>, vector<8x128xf32>, vector<2x8xf32> -> vector<2x8xf32>
    %1559 = vector.extract_strided_slice %842 {offsets = [32, 0], sizes = [1, 8], strides = [1, 1]} : vector<50x8xf32> to vector<1x8xf32>
    %1560 = vector.broadcast %1559 : vector<1x8xf32> to vector<2x8xf32>
    %1561 = arith.addf %1558, %1560 : vector<2x8xf32>
    %cst_769 = arith.constant dense<0xFF800000> : vector<2xf32>
    %1562 = vector.multi_reduction <maximumf>, %1561, %cst_769 [1] : vector<2x8xf32> to vector<2xf32>
    %1563 = vector.shape_cast %1562 : vector<2xf32> to vector<2x1xf32>
    %1564 = vector.broadcast %1563 : vector<2x1xf32> to vector<2x8xf32>
    %1565 = arith.subf %1561, %1564 : vector<2x8xf32>
    %1566 = math.exp %1565 : vector<2x8xf32>
    %cst_770 = arith.constant dense<0.000000e+00> : vector<2xf32>
    %1567 = vector.multi_reduction <add>, %1566, %cst_770 [1] : vector<2x8xf32> to vector<2xf32>
    %1568 = vector.shape_cast %1567 : vector<2xf32> to vector<2x1xf32>
    %1569 = tpu.reciprocal %1568 {approx = true} : vector<2x1xf32> -> vector<2x1xf32>
    %1570 = arith.mulf %1568, %1569 : vector<2x1xf32>
    %cst_771 = arith.constant 2.000000e+00 : f32
    %1571 = vector.broadcast %cst_771 : f32 to vector<2x1xf32>
    %1572 = arith.subf %1571, %1570 : vector<2x1xf32>
    %1573 = arith.mulf %1569, %1572 : vector<2x1xf32>
    %1574 = vector.broadcast %1573 : vector<2x1xf32> to vector<2x8xf32>
    %1575 = arith.mulf %1566, %1574 : vector<2x8xf32>
    %1576 = arith.addf %1554, %1575 : vector<2x8xf32>
    %1577 = vector.extract_strided_slice %849 {offsets = [0, 4224], sizes = [2, 128], strides = [1, 1]} : vector<2x6400xf32> to vector<2x128xf32>
    %1578 = vector.extract_strided_slice %834 {offsets = [33, 0, 0], sizes = [1, 8, 128], strides = [1, 1, 1]} : vector<50x8x128xf32> to vector<1x8x128xf32>
    %1579 = vector.shape_cast %1578 : vector<1x8x128xf32> to vector<8x128xf32>
    %cst_772 = arith.constant dense<0.000000e+00> : vector<2x8xf32>
    %1580 = tpu.matmul %1577, %1579, %cst_772 {dimension_numbers = #tpu.dot_dimension_numbers<[1], [1], [0], [0], [0, 0, 1, 0], [], []>} : vector<2x128xf32>, vector<8x128xf32>, vector<2x8xf32> -> vector<2x8xf32>
    %1581 = vector.extract_strided_slice %842 {offsets = [33, 0], sizes = [1, 8], strides = [1, 1]} : vector<50x8xf32> to vector<1x8xf32>
    %1582 = vector.broadcast %1581 : vector<1x8xf32> to vector<2x8xf32>
    %1583 = arith.addf %1580, %1582 : vector<2x8xf32>
    %cst_773 = arith.constant dense<0xFF800000> : vector<2xf32>
    %1584 = vector.multi_reduction <maximumf>, %1583, %cst_773 [1] : vector<2x8xf32> to vector<2xf32>
    %1585 = vector.shape_cast %1584 : vector<2xf32> to vector<2x1xf32>
    %1586 = vector.broadcast %1585 : vector<2x1xf32> to vector<2x8xf32>
    %1587 = arith.subf %1583, %1586 : vector<2x8xf32>
    %1588 = math.exp %1587 : vector<2x8xf32>
    %cst_774 = arith.constant dense<0.000000e+00> : vector<2xf32>
    %1589 = vector.multi_reduction <add>, %1588, %cst_774 [1] : vector<2x8xf32> to vector<2xf32>
    %1590 = vector.shape_cast %1589 : vector<2xf32> to vector<2x1xf32>
    %1591 = tpu.reciprocal %1590 {approx = true} : vector<2x1xf32> -> vector<2x1xf32>
    %1592 = arith.mulf %1590, %1591 : vector<2x1xf32>
    %cst_775 = arith.constant 2.000000e+00 : f32
    %1593 = vector.broadcast %cst_775 : f32 to vector<2x1xf32>
    %1594 = arith.subf %1593, %1592 : vector<2x1xf32>
    %1595 = arith.mulf %1591, %1594 : vector<2x1xf32>
    %1596 = vector.broadcast %1595 : vector<2x1xf32> to vector<2x8xf32>
    %1597 = arith.mulf %1588, %1596 : vector<2x8xf32>
    %1598 = arith.addf %1576, %1597 : vector<2x8xf32>
    %1599 = vector.extract_strided_slice %849 {offsets = [0, 4352], sizes = [2, 128], strides = [1, 1]} : vector<2x6400xf32> to vector<2x128xf32>
    %1600 = vector.extract_strided_slice %834 {offsets = [34, 0, 0], sizes = [1, 8, 128], strides = [1, 1, 1]} : vector<50x8x128xf32> to vector<1x8x128xf32>
    %1601 = vector.shape_cast %1600 : vector<1x8x128xf32> to vector<8x128xf32>
    %cst_776 = arith.constant dense<0.000000e+00> : vector<2x8xf32>
    %1602 = tpu.matmul %1599, %1601, %cst_776 {dimension_numbers = #tpu.dot_dimension_numbers<[1], [1], [0], [0], [0, 0, 1, 0], [], []>} : vector<2x128xf32>, vector<8x128xf32>, vector<2x8xf32> -> vector<2x8xf32>
    %1603 = vector.extract_strided_slice %842 {offsets = [34, 0], sizes = [1, 8], strides = [1, 1]} : vector<50x8xf32> to vector<1x8xf32>
    %1604 = vector.broadcast %1603 : vector<1x8xf32> to vector<2x8xf32>
    %1605 = arith.addf %1602, %1604 : vector<2x8xf32>
    %cst_777 = arith.constant dense<0xFF800000> : vector<2xf32>
    %1606 = vector.multi_reduction <maximumf>, %1605, %cst_777 [1] : vector<2x8xf32> to vector<2xf32>
    %1607 = vector.shape_cast %1606 : vector<2xf32> to vector<2x1xf32>
    %1608 = vector.broadcast %1607 : vector<2x1xf32> to vector<2x8xf32>
    %1609 = arith.subf %1605, %1608 : vector<2x8xf32>
    %1610 = math.exp %1609 : vector<2x8xf32>
    %cst_778 = arith.constant dense<0.000000e+00> : vector<2xf32>
    %1611 = vector.multi_reduction <add>, %1610, %cst_778 [1] : vector<2x8xf32> to vector<2xf32>
    %1612 = vector.shape_cast %1611 : vector<2xf32> to vector<2x1xf32>
    %1613 = tpu.reciprocal %1612 {approx = true} : vector<2x1xf32> -> vector<2x1xf32>
    %1614 = arith.mulf %1612, %1613 : vector<2x1xf32>
    %cst_779 = arith.constant 2.000000e+00 : f32
    %1615 = vector.broadcast %cst_779 : f32 to vector<2x1xf32>
    %1616 = arith.subf %1615, %1614 : vector<2x1xf32>
    %1617 = arith.mulf %1613, %1616 : vector<2x1xf32>
    %1618 = vector.broadcast %1617 : vector<2x1xf32> to vector<2x8xf32>
    %1619 = arith.mulf %1610, %1618 : vector<2x8xf32>
    %1620 = arith.addf %1598, %1619 : vector<2x8xf32>
    %1621 = vector.extract_strided_slice %849 {offsets = [0, 4480], sizes = [2, 128], strides = [1, 1]} : vector<2x6400xf32> to vector<2x128xf32>
    %1622 = vector.extract_strided_slice %834 {offsets = [35, 0, 0], sizes = [1, 8, 128], strides = [1, 1, 1]} : vector<50x8x128xf32> to vector<1x8x128xf32>
    %1623 = vector.shape_cast %1622 : vector<1x8x128xf32> to vector<8x128xf32>
    %cst_780 = arith.constant dense<0.000000e+00> : vector<2x8xf32>
    %1624 = tpu.matmul %1621, %1623, %cst_780 {dimension_numbers = #tpu.dot_dimension_numbers<[1], [1], [0], [0], [0, 0, 1, 0], [], []>} : vector<2x128xf32>, vector<8x128xf32>, vector<2x8xf32> -> vector<2x8xf32>
    %1625 = vector.extract_strided_slice %842 {offsets = [35, 0], sizes = [1, 8], strides = [1, 1]} : vector<50x8xf32> to vector<1x8xf32>
    %1626 = vector.broadcast %1625 : vector<1x8xf32> to vector<2x8xf32>
    %1627 = arith.addf %1624, %1626 : vector<2x8xf32>
    %cst_781 = arith.constant dense<0xFF800000> : vector<2xf32>
    %1628 = vector.multi_reduction <maximumf>, %1627, %cst_781 [1] : vector<2x8xf32> to vector<2xf32>
    %1629 = vector.shape_cast %1628 : vector<2xf32> to vector<2x1xf32>
    %1630 = vector.broadcast %1629 : vector<2x1xf32> to vector<2x8xf32>
    %1631 = arith.subf %1627, %1630 : vector<2x8xf32>
    %1632 = math.exp %1631 : vector<2x8xf32>
    %cst_782 = arith.constant dense<0.000000e+00> : vector<2xf32>
    %1633 = vector.multi_reduction <add>, %1632, %cst_782 [1] : vector<2x8xf32> to vector<2xf32>
    %1634 = vector.shape_cast %1633 : vector<2xf32> to vector<2x1xf32>
    %1635 = tpu.reciprocal %1634 {approx = true} : vector<2x1xf32> -> vector<2x1xf32>
    %1636 = arith.mulf %1634, %1635 : vector<2x1xf32>
    %cst_783 = arith.constant 2.000000e+00 : f32
    %1637 = vector.broadcast %cst_783 : f32 to vector<2x1xf32>
    %1638 = arith.subf %1637, %1636 : vector<2x1xf32>
    %1639 = arith.mulf %1635, %1638 : vector<2x1xf32>
    %1640 = vector.broadcast %1639 : vector<2x1xf32> to vector<2x8xf32>
    %1641 = arith.mulf %1632, %1640 : vector<2x8xf32>
    %1642 = arith.addf %1620, %1641 : vector<2x8xf32>
    %1643 = vector.extract_strided_slice %849 {offsets = [0, 4608], sizes = [2, 128], strides = [1, 1]} : vector<2x6400xf32> to vector<2x128xf32>
    %1644 = vector.extract_strided_slice %834 {offsets = [36, 0, 0], sizes = [1, 8, 128], strides = [1, 1, 1]} : vector<50x8x128xf32> to vector<1x8x128xf32>
    %1645 = vector.shape_cast %1644 : vector<1x8x128xf32> to vector<8x128xf32>
    %cst_784 = arith.constant dense<0.000000e+00> : vector<2x8xf32>
    %1646 = tpu.matmul %1643, %1645, %cst_784 {dimension_numbers = #tpu.dot_dimension_numbers<[1], [1], [0], [0], [0, 0, 1, 0], [], []>} : vector<2x128xf32>, vector<8x128xf32>, vector<2x8xf32> -> vector<2x8xf32>
    %1647 = vector.extract_strided_slice %842 {offsets = [36, 0], sizes = [1, 8], strides = [1, 1]} : vector<50x8xf32> to vector<1x8xf32>
    %1648 = vector.broadcast %1647 : vector<1x8xf32> to vector<2x8xf32>
    %1649 = arith.addf %1646, %1648 : vector<2x8xf32>
    %cst_785 = arith.constant dense<0xFF800000> : vector<2xf32>
    %1650 = vector.multi_reduction <maximumf>, %1649, %cst_785 [1] : vector<2x8xf32> to vector<2xf32>
    %1651 = vector.shape_cast %1650 : vector<2xf32> to vector<2x1xf32>
    %1652 = vector.broadcast %1651 : vector<2x1xf32> to vector<2x8xf32>
    %1653 = arith.subf %1649, %1652 : vector<2x8xf32>
    %1654 = math.exp %1653 : vector<2x8xf32>
    %cst_786 = arith.constant dense<0.000000e+00> : vector<2xf32>
    %1655 = vector.multi_reduction <add>, %1654, %cst_786 [1] : vector<2x8xf32> to vector<2xf32>
    %1656 = vector.shape_cast %1655 : vector<2xf32> to vector<2x1xf32>
    %1657 = tpu.reciprocal %1656 {approx = true} : vector<2x1xf32> -> vector<2x1xf32>
    %1658 = arith.mulf %1656, %1657 : vector<2x1xf32>
    %cst_787 = arith.constant 2.000000e+00 : f32
    %1659 = vector.broadcast %cst_787 : f32 to vector<2x1xf32>
    %1660 = arith.subf %1659, %1658 : vector<2x1xf32>
    %1661 = arith.mulf %1657, %1660 : vector<2x1xf32>
    %1662 = vector.broadcast %1661 : vector<2x1xf32> to vector<2x8xf32>
    %1663 = arith.mulf %1654, %1662 : vector<2x8xf32>
    %1664 = arith.addf %1642, %1663 : vector<2x8xf32>
    %1665 = vector.extract_strided_slice %849 {offsets = [0, 4736], sizes = [2, 128], strides = [1, 1]} : vector<2x6400xf32> to vector<2x128xf32>
    %1666 = vector.extract_strided_slice %834 {offsets = [37, 0, 0], sizes = [1, 8, 128], strides = [1, 1, 1]} : vector<50x8x128xf32> to vector<1x8x128xf32>
    %1667 = vector.shape_cast %1666 : vector<1x8x128xf32> to vector<8x128xf32>
    %cst_788 = arith.constant dense<0.000000e+00> : vector<2x8xf32>
    %1668 = tpu.matmul %1665, %1667, %cst_788 {dimension_numbers = #tpu.dot_dimension_numbers<[1], [1], [0], [0], [0, 0, 1, 0], [], []>} : vector<2x128xf32>, vector<8x128xf32>, vector<2x8xf32> -> vector<2x8xf32>
    %1669 = vector.extract_strided_slice %842 {offsets = [37, 0], sizes = [1, 8], strides = [1, 1]} : vector<50x8xf32> to vector<1x8xf32>
    %1670 = vector.broadcast %1669 : vector<1x8xf32> to vector<2x8xf32>
    %1671 = arith.addf %1668, %1670 : vector<2x8xf32>
    %cst_789 = arith.constant dense<0xFF800000> : vector<2xf32>
    %1672 = vector.multi_reduction <maximumf>, %1671, %cst_789 [1] : vector<2x8xf32> to vector<2xf32>
    %1673 = vector.shape_cast %1672 : vector<2xf32> to vector<2x1xf32>
    %1674 = vector.broadcast %1673 : vector<2x1xf32> to vector<2x8xf32>
    %1675 = arith.subf %1671, %1674 : vector<2x8xf32>
    %1676 = math.exp %1675 : vector<2x8xf32>
    %cst_790 = arith.constant dense<0.000000e+00> : vector<2xf32>
    %1677 = vector.multi_reduction <add>, %1676, %cst_790 [1] : vector<2x8xf32> to vector<2xf32>
    %1678 = vector.shape_cast %1677 : vector<2xf32> to vector<2x1xf32>
    %1679 = tpu.reciprocal %1678 {approx = true} : vector<2x1xf32> -> vector<2x1xf32>
    %1680 = arith.mulf %1678, %1679 : vector<2x1xf32>
    %cst_791 = arith.constant 2.000000e+00 : f32
    %1681 = vector.broadcast %cst_791 : f32 to vector<2x1xf32>
    %1682 = arith.subf %1681, %1680 : vector<2x1xf32>
    %1683 = arith.mulf %1679, %1682 : vector<2x1xf32>
    %1684 = vector.broadcast %1683 : vector<2x1xf32> to vector<2x8xf32>
    %1685 = arith.mulf %1676, %1684 : vector<2x8xf32>
    %1686 = arith.addf %1664, %1685 : vector<2x8xf32>
    %1687 = vector.extract_strided_slice %849 {offsets = [0, 4864], sizes = [2, 128], strides = [1, 1]} : vector<2x6400xf32> to vector<2x128xf32>
    %1688 = vector.extract_strided_slice %834 {offsets = [38, 0, 0], sizes = [1, 8, 128], strides = [1, 1, 1]} : vector<50x8x128xf32> to vector<1x8x128xf32>
    %1689 = vector.shape_cast %1688 : vector<1x8x128xf32> to vector<8x128xf32>
    %cst_792 = arith.constant dense<0.000000e+00> : vector<2x8xf32>
    %1690 = tpu.matmul %1687, %1689, %cst_792 {dimension_numbers = #tpu.dot_dimension_numbers<[1], [1], [0], [0], [0, 0, 1, 0], [], []>} : vector<2x128xf32>, vector<8x128xf32>, vector<2x8xf32> -> vector<2x8xf32>
    %1691 = vector.extract_strided_slice %842 {offsets = [38, 0], sizes = [1, 8], strides = [1, 1]} : vector<50x8xf32> to vector<1x8xf32>
    %1692 = vector.broadcast %1691 : vector<1x8xf32> to vector<2x8xf32>
    %1693 = arith.addf %1690, %1692 : vector<2x8xf32>
    %cst_793 = arith.constant dense<0xFF800000> : vector<2xf32>
    %1694 = vector.multi_reduction <maximumf>, %1693, %cst_793 [1] : vector<2x8xf32> to vector<2xf32>
    %1695 = vector.shape_cast %1694 : vector<2xf32> to vector<2x1xf32>
    %1696 = vector.broadcast %1695 : vector<2x1xf32> to vector<2x8xf32>
    %1697 = arith.subf %1693, %1696 : vector<2x8xf32>
    %1698 = math.exp %1697 : vector<2x8xf32>
    %cst_794 = arith.constant dense<0.000000e+00> : vector<2xf32>
    %1699 = vector.multi_reduction <add>, %1698, %cst_794 [1] : vector<2x8xf32> to vector<2xf32>
    %1700 = vector.shape_cast %1699 : vector<2xf32> to vector<2x1xf32>
    %1701 = tpu.reciprocal %1700 {approx = true} : vector<2x1xf32> -> vector<2x1xf32>
    %1702 = arith.mulf %1700, %1701 : vector<2x1xf32>
    %cst_795 = arith.constant 2.000000e+00 : f32
    %1703 = vector.broadcast %cst_795 : f32 to vector<2x1xf32>
    %1704 = arith.subf %1703, %1702 : vector<2x1xf32>
    %1705 = arith.mulf %1701, %1704 : vector<2x1xf32>
    %1706 = vector.broadcast %1705 : vector<2x1xf32> to vector<2x8xf32>
    %1707 = arith.mulf %1698, %1706 : vector<2x8xf32>
    %1708 = arith.addf %1686, %1707 : vector<2x8xf32>
    %1709 = vector.extract_strided_slice %849 {offsets = [0, 4992], sizes = [2, 128], strides = [1, 1]} : vector<2x6400xf32> to vector<2x128xf32>
    %1710 = vector.extract_strided_slice %834 {offsets = [39, 0, 0], sizes = [1, 8, 128], strides = [1, 1, 1]} : vector<50x8x128xf32> to vector<1x8x128xf32>
    %1711 = vector.shape_cast %1710 : vector<1x8x128xf32> to vector<8x128xf32>
    %cst_796 = arith.constant dense<0.000000e+00> : vector<2x8xf32>
    %1712 = tpu.matmul %1709, %1711, %cst_796 {dimension_numbers = #tpu.dot_dimension_numbers<[1], [1], [0], [0], [0, 0, 1, 0], [], []>} : vector<2x128xf32>, vector<8x128xf32>, vector<2x8xf32> -> vector<2x8xf32>
    %1713 = vector.extract_strided_slice %842 {offsets = [39, 0], sizes = [1, 8], strides = [1, 1]} : vector<50x8xf32> to vector<1x8xf32>
    %1714 = vector.broadcast %1713 : vector<1x8xf32> to vector<2x8xf32>
    %1715 = arith.addf %1712, %1714 : vector<2x8xf32>
    %cst_797 = arith.constant dense<0xFF800000> : vector<2xf32>
    %1716 = vector.multi_reduction <maximumf>, %1715, %cst_797 [1] : vector<2x8xf32> to vector<2xf32>
    %1717 = vector.shape_cast %1716 : vector<2xf32> to vector<2x1xf32>
    %1718 = vector.broadcast %1717 : vector<2x1xf32> to vector<2x8xf32>
    %1719 = arith.subf %1715, %1718 : vector<2x8xf32>
    %1720 = math.exp %1719 : vector<2x8xf32>
    %cst_798 = arith.constant dense<0.000000e+00> : vector<2xf32>
    %1721 = vector.multi_reduction <add>, %1720, %cst_798 [1] : vector<2x8xf32> to vector<2xf32>
    %1722 = vector.shape_cast %1721 : vector<2xf32> to vector<2x1xf32>
    %1723 = tpu.reciprocal %1722 {approx = true} : vector<2x1xf32> -> vector<2x1xf32>
    %1724 = arith.mulf %1722, %1723 : vector<2x1xf32>
    %cst_799 = arith.constant 2.000000e+00 : f32
    %1725 = vector.broadcast %cst_799 : f32 to vector<2x1xf32>
    %1726 = arith.subf %1725, %1724 : vector<2x1xf32>
    %1727 = arith.mulf %1723, %1726 : vector<2x1xf32>
    %1728 = vector.broadcast %1727 : vector<2x1xf32> to vector<2x8xf32>
    %1729 = arith.mulf %1720, %1728 : vector<2x8xf32>
    %1730 = arith.addf %1708, %1729 : vector<2x8xf32>
    %1731 = vector.extract_strided_slice %849 {offsets = [0, 5120], sizes = [2, 128], strides = [1, 1]} : vector<2x6400xf32> to vector<2x128xf32>
    %1732 = vector.extract_strided_slice %834 {offsets = [40, 0, 0], sizes = [1, 8, 128], strides = [1, 1, 1]} : vector<50x8x128xf32> to vector<1x8x128xf32>
    %1733 = vector.shape_cast %1732 : vector<1x8x128xf32> to vector<8x128xf32>
    %cst_800 = arith.constant dense<0.000000e+00> : vector<2x8xf32>
    %1734 = tpu.matmul %1731, %1733, %cst_800 {dimension_numbers = #tpu.dot_dimension_numbers<[1], [1], [0], [0], [0, 0, 1, 0], [], []>} : vector<2x128xf32>, vector<8x128xf32>, vector<2x8xf32> -> vector<2x8xf32>
    %1735 = vector.extract_strided_slice %842 {offsets = [40, 0], sizes = [1, 8], strides = [1, 1]} : vector<50x8xf32> to vector<1x8xf32>
    %1736 = vector.broadcast %1735 : vector<1x8xf32> to vector<2x8xf32>
    %1737 = arith.addf %1734, %1736 : vector<2x8xf32>
    %cst_801 = arith.constant dense<0xFF800000> : vector<2xf32>
    %1738 = vector.multi_reduction <maximumf>, %1737, %cst_801 [1] : vector<2x8xf32> to vector<2xf32>
    %1739 = vector.shape_cast %1738 : vector<2xf32> to vector<2x1xf32>
    %1740 = vector.broadcast %1739 : vector<2x1xf32> to vector<2x8xf32>
    %1741 = arith.subf %1737, %1740 : vector<2x8xf32>
    %1742 = math.exp %1741 : vector<2x8xf32>
    %cst_802 = arith.constant dense<0.000000e+00> : vector<2xf32>
    %1743 = vector.multi_reduction <add>, %1742, %cst_802 [1] : vector<2x8xf32> to vector<2xf32>
    %1744 = vector.shape_cast %1743 : vector<2xf32> to vector<2x1xf32>
    %1745 = tpu.reciprocal %1744 {approx = true} : vector<2x1xf32> -> vector<2x1xf32>
    %1746 = arith.mulf %1744, %1745 : vector<2x1xf32>
    %cst_803 = arith.constant 2.000000e+00 : f32
    %1747 = vector.broadcast %cst_803 : f32 to vector<2x1xf32>
    %1748 = arith.subf %1747, %1746 : vector<2x1xf32>
    %1749 = arith.mulf %1745, %1748 : vector<2x1xf32>
    %1750 = vector.broadcast %1749 : vector<2x1xf32> to vector<2x8xf32>
    %1751 = arith.mulf %1742, %1750 : vector<2x8xf32>
    %1752 = arith.addf %1730, %1751 : vector<2x8xf32>
    %1753 = vector.extract_strided_slice %849 {offsets = [0, 5248], sizes = [2, 128], strides = [1, 1]} : vector<2x6400xf32> to vector<2x128xf32>
    %1754 = vector.extract_strided_slice %834 {offsets = [41, 0, 0], sizes = [1, 8, 128], strides = [1, 1, 1]} : vector<50x8x128xf32> to vector<1x8x128xf32>
    %1755 = vector.shape_cast %1754 : vector<1x8x128xf32> to vector<8x128xf32>
    %cst_804 = arith.constant dense<0.000000e+00> : vector<2x8xf32>
    %1756 = tpu.matmul %1753, %1755, %cst_804 {dimension_numbers = #tpu.dot_dimension_numbers<[1], [1], [0], [0], [0, 0, 1, 0], [], []>} : vector<2x128xf32>, vector<8x128xf32>, vector<2x8xf32> -> vector<2x8xf32>
    %1757 = vector.extract_strided_slice %842 {offsets = [41, 0], sizes = [1, 8], strides = [1, 1]} : vector<50x8xf32> to vector<1x8xf32>
    %1758 = vector.broadcast %1757 : vector<1x8xf32> to vector<2x8xf32>
    %1759 = arith.addf %1756, %1758 : vector<2x8xf32>
    %cst_805 = arith.constant dense<0xFF800000> : vector<2xf32>
    %1760 = vector.multi_reduction <maximumf>, %1759, %cst_805 [1] : vector<2x8xf32> to vector<2xf32>
    %1761 = vector.shape_cast %1760 : vector<2xf32> to vector<2x1xf32>
    %1762 = vector.broadcast %1761 : vector<2x1xf32> to vector<2x8xf32>
    %1763 = arith.subf %1759, %1762 : vector<2x8xf32>
    %1764 = math.exp %1763 : vector<2x8xf32>
    %cst_806 = arith.constant dense<0.000000e+00> : vector<2xf32>
    %1765 = vector.multi_reduction <add>, %1764, %cst_806 [1] : vector<2x8xf32> to vector<2xf32>
    %1766 = vector.shape_cast %1765 : vector<2xf32> to vector<2x1xf32>
    %1767 = tpu.reciprocal %1766 {approx = true} : vector<2x1xf32> -> vector<2x1xf32>
    %1768 = arith.mulf %1766, %1767 : vector<2x1xf32>
    %cst_807 = arith.constant 2.000000e+00 : f32
    %1769 = vector.broadcast %cst_807 : f32 to vector<2x1xf32>
    %1770 = arith.subf %1769, %1768 : vector<2x1xf32>
    %1771 = arith.mulf %1767, %1770 : vector<2x1xf32>
    %1772 = vector.broadcast %1771 : vector<2x1xf32> to vector<2x8xf32>
    %1773 = arith.mulf %1764, %1772 : vector<2x8xf32>
    %1774 = arith.addf %1752, %1773 : vector<2x8xf32>
    %1775 = vector.extract_strided_slice %849 {offsets = [0, 5376], sizes = [2, 128], strides = [1, 1]} : vector<2x6400xf32> to vector<2x128xf32>
    %1776 = vector.extract_strided_slice %834 {offsets = [42, 0, 0], sizes = [1, 8, 128], strides = [1, 1, 1]} : vector<50x8x128xf32> to vector<1x8x128xf32>
    %1777 = vector.shape_cast %1776 : vector<1x8x128xf32> to vector<8x128xf32>
    %cst_808 = arith.constant dense<0.000000e+00> : vector<2x8xf32>
    %1778 = tpu.matmul %1775, %1777, %cst_808 {dimension_numbers = #tpu.dot_dimension_numbers<[1], [1], [0], [0], [0, 0, 1, 0], [], []>} : vector<2x128xf32>, vector<8x128xf32>, vector<2x8xf32> -> vector<2x8xf32>
    %1779 = vector.extract_strided_slice %842 {offsets = [42, 0], sizes = [1, 8], strides = [1, 1]} : vector<50x8xf32> to vector<1x8xf32>
    %1780 = vector.broadcast %1779 : vector<1x8xf32> to vector<2x8xf32>
    %1781 = arith.addf %1778, %1780 : vector<2x8xf32>
    %cst_809 = arith.constant dense<0xFF800000> : vector<2xf32>
    %1782 = vector.multi_reduction <maximumf>, %1781, %cst_809 [1] : vector<2x8xf32> to vector<2xf32>
    %1783 = vector.shape_cast %1782 : vector<2xf32> to vector<2x1xf32>
    %1784 = vector.broadcast %1783 : vector<2x1xf32> to vector<2x8xf32>
    %1785 = arith.subf %1781, %1784 : vector<2x8xf32>
    %1786 = math.exp %1785 : vector<2x8xf32>
    %cst_810 = arith.constant dense<0.000000e+00> : vector<2xf32>
    %1787 = vector.multi_reduction <add>, %1786, %cst_810 [1] : vector<2x8xf32> to vector<2xf32>
    %1788 = vector.shape_cast %1787 : vector<2xf32> to vector<2x1xf32>
    %1789 = tpu.reciprocal %1788 {approx = true} : vector<2x1xf32> -> vector<2x1xf32>
    %1790 = arith.mulf %1788, %1789 : vector<2x1xf32>
    %cst_811 = arith.constant 2.000000e+00 : f32
    %1791 = vector.broadcast %cst_811 : f32 to vector<2x1xf32>
    %1792 = arith.subf %1791, %1790 : vector<2x1xf32>
    %1793 = arith.mulf %1789, %1792 : vector<2x1xf32>
    %1794 = vector.broadcast %1793 : vector<2x1xf32> to vector<2x8xf32>
    %1795 = arith.mulf %1786, %1794 : vector<2x8xf32>
    %1796 = arith.addf %1774, %1795 : vector<2x8xf32>
    %1797 = vector.extract_strided_slice %849 {offsets = [0, 5504], sizes = [2, 128], strides = [1, 1]} : vector<2x6400xf32> to vector<2x128xf32>
    %1798 = vector.extract_strided_slice %834 {offsets = [43, 0, 0], sizes = [1, 8, 128], strides = [1, 1, 1]} : vector<50x8x128xf32> to vector<1x8x128xf32>
    %1799 = vector.shape_cast %1798 : vector<1x8x128xf32> to vector<8x128xf32>
    %cst_812 = arith.constant dense<0.000000e+00> : vector<2x8xf32>
    %1800 = tpu.matmul %1797, %1799, %cst_812 {dimension_numbers = #tpu.dot_dimension_numbers<[1], [1], [0], [0], [0, 0, 1, 0], [], []>} : vector<2x128xf32>, vector<8x128xf32>, vector<2x8xf32> -> vector<2x8xf32>
    %1801 = vector.extract_strided_slice %842 {offsets = [43, 0], sizes = [1, 8], strides = [1, 1]} : vector<50x8xf32> to vector<1x8xf32>
    %1802 = vector.broadcast %1801 : vector<1x8xf32> to vector<2x8xf32>
    %1803 = arith.addf %1800, %1802 : vector<2x8xf32>
    %cst_813 = arith.constant dense<0xFF800000> : vector<2xf32>
    %1804 = vector.multi_reduction <maximumf>, %1803, %cst_813 [1] : vector<2x8xf32> to vector<2xf32>
    %1805 = vector.shape_cast %1804 : vector<2xf32> to vector<2x1xf32>
    %1806 = vector.broadcast %1805 : vector<2x1xf32> to vector<2x8xf32>
    %1807 = arith.subf %1803, %1806 : vector<2x8xf32>
    %1808 = math.exp %1807 : vector<2x8xf32>
    %cst_814 = arith.constant dense<0.000000e+00> : vector<2xf32>
    %1809 = vector.multi_reduction <add>, %1808, %cst_814 [1] : vector<2x8xf32> to vector<2xf32>
    %1810 = vector.shape_cast %1809 : vector<2xf32> to vector<2x1xf32>
    %1811 = tpu.reciprocal %1810 {approx = true} : vector<2x1xf32> -> vector<2x1xf32>
    %1812 = arith.mulf %1810, %1811 : vector<2x1xf32>
    %cst_815 = arith.constant 2.000000e+00 : f32
    %1813 = vector.broadcast %cst_815 : f32 to vector<2x1xf32>
    %1814 = arith.subf %1813, %1812 : vector<2x1xf32>
    %1815 = arith.mulf %1811, %1814 : vector<2x1xf32>
    %1816 = vector.broadcast %1815 : vector<2x1xf32> to vector<2x8xf32>
    %1817 = arith.mulf %1808, %1816 : vector<2x8xf32>
    %1818 = arith.addf %1796, %1817 : vector<2x8xf32>
    %1819 = vector.extract_strided_slice %849 {offsets = [0, 5632], sizes = [2, 128], strides = [1, 1]} : vector<2x6400xf32> to vector<2x128xf32>
    %1820 = vector.extract_strided_slice %834 {offsets = [44, 0, 0], sizes = [1, 8, 128], strides = [1, 1, 1]} : vector<50x8x128xf32> to vector<1x8x128xf32>
    %1821 = vector.shape_cast %1820 : vector<1x8x128xf32> to vector<8x128xf32>
    %cst_816 = arith.constant dense<0.000000e+00> : vector<2x8xf32>
    %1822 = tpu.matmul %1819, %1821, %cst_816 {dimension_numbers = #tpu.dot_dimension_numbers<[1], [1], [0], [0], [0, 0, 1, 0], [], []>} : vector<2x128xf32>, vector<8x128xf32>, vector<2x8xf32> -> vector<2x8xf32>
    %1823 = vector.extract_strided_slice %842 {offsets = [44, 0], sizes = [1, 8], strides = [1, 1]} : vector<50x8xf32> to vector<1x8xf32>
    %1824 = vector.broadcast %1823 : vector<1x8xf32> to vector<2x8xf32>
    %1825 = arith.addf %1822, %1824 : vector<2x8xf32>
    %cst_817 = arith.constant dense<0xFF800000> : vector<2xf32>
    %1826 = vector.multi_reduction <maximumf>, %1825, %cst_817 [1] : vector<2x8xf32> to vector<2xf32>
    %1827 = vector.shape_cast %1826 : vector<2xf32> to vector<2x1xf32>
    %1828 = vector.broadcast %1827 : vector<2x1xf32> to vector<2x8xf32>
    %1829 = arith.subf %1825, %1828 : vector<2x8xf32>
    %1830 = math.exp %1829 : vector<2x8xf32>
    %cst_818 = arith.constant dense<0.000000e+00> : vector<2xf32>
    %1831 = vector.multi_reduction <add>, %1830, %cst_818 [1] : vector<2x8xf32> to vector<2xf32>
    %1832 = vector.shape_cast %1831 : vector<2xf32> to vector<2x1xf32>
    %1833 = tpu.reciprocal %1832 {approx = true} : vector<2x1xf32> -> vector<2x1xf32>
    %1834 = arith.mulf %1832, %1833 : vector<2x1xf32>
    %cst_819 = arith.constant 2.000000e+00 : f32
    %1835 = vector.broadcast %cst_819 : f32 to vector<2x1xf32>
    %1836 = arith.subf %1835, %1834 : vector<2x1xf32>
    %1837 = arith.mulf %1833, %1836 : vector<2x1xf32>
    %1838 = vector.broadcast %1837 : vector<2x1xf32> to vector<2x8xf32>
    %1839 = arith.mulf %1830, %1838 : vector<2x8xf32>
    %1840 = arith.addf %1818, %1839 : vector<2x8xf32>
    %1841 = vector.extract_strided_slice %849 {offsets = [0, 5760], sizes = [2, 128], strides = [1, 1]} : vector<2x6400xf32> to vector<2x128xf32>
    %1842 = vector.extract_strided_slice %834 {offsets = [45, 0, 0], sizes = [1, 8, 128], strides = [1, 1, 1]} : vector<50x8x128xf32> to vector<1x8x128xf32>
    %1843 = vector.shape_cast %1842 : vector<1x8x128xf32> to vector<8x128xf32>
    %cst_820 = arith.constant dense<0.000000e+00> : vector<2x8xf32>
    %1844 = tpu.matmul %1841, %1843, %cst_820 {dimension_numbers = #tpu.dot_dimension_numbers<[1], [1], [0], [0], [0, 0, 1, 0], [], []>} : vector<2x128xf32>, vector<8x128xf32>, vector<2x8xf32> -> vector<2x8xf32>
    %1845 = vector.extract_strided_slice %842 {offsets = [45, 0], sizes = [1, 8], strides = [1, 1]} : vector<50x8xf32> to vector<1x8xf32>
    %1846 = vector.broadcast %1845 : vector<1x8xf32> to vector<2x8xf32>
    %1847 = arith.addf %1844, %1846 : vector<2x8xf32>
    %cst_821 = arith.constant dense<0xFF800000> : vector<2xf32>
    %1848 = vector.multi_reduction <maximumf>, %1847, %cst_821 [1] : vector<2x8xf32> to vector<2xf32>
    %1849 = vector.shape_cast %1848 : vector<2xf32> to vector<2x1xf32>
    %1850 = vector.broadcast %1849 : vector<2x1xf32> to vector<2x8xf32>
    %1851 = arith.subf %1847, %1850 : vector<2x8xf32>
    %1852 = math.exp %1851 : vector<2x8xf32>
    %cst_822 = arith.constant dense<0.000000e+00> : vector<2xf32>
    %1853 = vector.multi_reduction <add>, %1852, %cst_822 [1] : vector<2x8xf32> to vector<2xf32>
    %1854 = vector.shape_cast %1853 : vector<2xf32> to vector<2x1xf32>
    %1855 = tpu.reciprocal %1854 {approx = true} : vector<2x1xf32> -> vector<2x1xf32>
    %1856 = arith.mulf %1854, %1855 : vector<2x1xf32>
    %cst_823 = arith.constant 2.000000e+00 : f32
    %1857 = vector.broadcast %cst_823 : f32 to vector<2x1xf32>
    %1858 = arith.subf %1857, %1856 : vector<2x1xf32>
    %1859 = arith.mulf %1855, %1858 : vector<2x1xf32>
    %1860 = vector.broadcast %1859 : vector<2x1xf32> to vector<2x8xf32>
    %1861 = arith.mulf %1852, %1860 : vector<2x8xf32>
    %1862 = arith.addf %1840, %1861 : vector<2x8xf32>
    %1863 = vector.extract_strided_slice %849 {offsets = [0, 5888], sizes = [2, 128], strides = [1, 1]} : vector<2x6400xf32> to vector<2x128xf32>
    %1864 = vector.extract_strided_slice %834 {offsets = [46, 0, 0], sizes = [1, 8, 128], strides = [1, 1, 1]} : vector<50x8x128xf32> to vector<1x8x128xf32>
    %1865 = vector.shape_cast %1864 : vector<1x8x128xf32> to vector<8x128xf32>
    %cst_824 = arith.constant dense<0.000000e+00> : vector<2x8xf32>
    %1866 = tpu.matmul %1863, %1865, %cst_824 {dimension_numbers = #tpu.dot_dimension_numbers<[1], [1], [0], [0], [0, 0, 1, 0], [], []>} : vector<2x128xf32>, vector<8x128xf32>, vector<2x8xf32> -> vector<2x8xf32>
    %1867 = vector.extract_strided_slice %842 {offsets = [46, 0], sizes = [1, 8], strides = [1, 1]} : vector<50x8xf32> to vector<1x8xf32>
    %1868 = vector.broadcast %1867 : vector<1x8xf32> to vector<2x8xf32>
    %1869 = arith.addf %1866, %1868 : vector<2x8xf32>
    %cst_825 = arith.constant dense<0xFF800000> : vector<2xf32>
    %1870 = vector.multi_reduction <maximumf>, %1869, %cst_825 [1] : vector<2x8xf32> to vector<2xf32>
    %1871 = vector.shape_cast %1870 : vector<2xf32> to vector<2x1xf32>
    %1872 = vector.broadcast %1871 : vector<2x1xf32> to vector<2x8xf32>
    %1873 = arith.subf %1869, %1872 : vector<2x8xf32>
    %1874 = math.exp %1873 : vector<2x8xf32>
    %cst_826 = arith.constant dense<0.000000e+00> : vector<2xf32>
    %1875 = vector.multi_reduction <add>, %1874, %cst_826 [1] : vector<2x8xf32> to vector<2xf32>
    %1876 = vector.shape_cast %1875 : vector<2xf32> to vector<2x1xf32>
    %1877 = tpu.reciprocal %1876 {approx = true} : vector<2x1xf32> -> vector<2x1xf32>
    %1878 = arith.mulf %1876, %1877 : vector<2x1xf32>
    %cst_827 = arith.constant 2.000000e+00 : f32
    %1879 = vector.broadcast %cst_827 : f32 to vector<2x1xf32>
    %1880 = arith.subf %1879, %1878 : vector<2x1xf32>
    %1881 = arith.mulf %1877, %1880 : vector<2x1xf32>
    %1882 = vector.broadcast %1881 : vector<2x1xf32> to vector<2x8xf32>
    %1883 = arith.mulf %1874, %1882 : vector<2x8xf32>
    %1884 = arith.addf %1862, %1883 : vector<2x8xf32>
    %1885 = vector.extract_strided_slice %849 {offsets = [0, 6016], sizes = [2, 128], strides = [1, 1]} : vector<2x6400xf32> to vector<2x128xf32>
    %1886 = vector.extract_strided_slice %834 {offsets = [47, 0, 0], sizes = [1, 8, 128], strides = [1, 1, 1]} : vector<50x8x128xf32> to vector<1x8x128xf32>
    %1887 = vector.shape_cast %1886 : vector<1x8x128xf32> to vector<8x128xf32>
    %cst_828 = arith.constant dense<0.000000e+00> : vector<2x8xf32>
    %1888 = tpu.matmul %1885, %1887, %cst_828 {dimension_numbers = #tpu.dot_dimension_numbers<[1], [1], [0], [0], [0, 0, 1, 0], [], []>} : vector<2x128xf32>, vector<8x128xf32>, vector<2x8xf32> -> vector<2x8xf32>
    %1889 = vector.extract_strided_slice %842 {offsets = [47, 0], sizes = [1, 8], strides = [1, 1]} : vector<50x8xf32> to vector<1x8xf32>
    %1890 = vector.broadcast %1889 : vector<1x8xf32> to vector<2x8xf32>
    %1891 = arith.addf %1888, %1890 : vector<2x8xf32>
    %cst_829 = arith.constant dense<0xFF800000> : vector<2xf32>
    %1892 = vector.multi_reduction <maximumf>, %1891, %cst_829 [1] : vector<2x8xf32> to vector<2xf32>
    %1893 = vector.shape_cast %1892 : vector<2xf32> to vector<2x1xf32>
    %1894 = vector.broadcast %1893 : vector<2x1xf32> to vector<2x8xf32>
    %1895 = arith.subf %1891, %1894 : vector<2x8xf32>
    %1896 = math.exp %1895 : vector<2x8xf32>
    %cst_830 = arith.constant dense<0.000000e+00> : vector<2xf32>
    %1897 = vector.multi_reduction <add>, %1896, %cst_830 [1] : vector<2x8xf32> to vector<2xf32>
    %1898 = vector.shape_cast %1897 : vector<2xf32> to vector<2x1xf32>
    %1899 = tpu.reciprocal %1898 {approx = true} : vector<2x1xf32> -> vector<2x1xf32>
    %1900 = arith.mulf %1898, %1899 : vector<2x1xf32>
    %cst_831 = arith.constant 2.000000e+00 : f32
    %1901 = vector.broadcast %cst_831 : f32 to vector<2x1xf32>
    %1902 = arith.subf %1901, %1900 : vector<2x1xf32>
    %1903 = arith.mulf %1899, %1902 : vector<2x1xf32>
    %1904 = vector.broadcast %1903 : vector<2x1xf32> to vector<2x8xf32>
    %1905 = arith.mulf %1896, %1904 : vector<2x8xf32>
    %1906 = arith.addf %1884, %1905 : vector<2x8xf32>
    %1907 = vector.extract_strided_slice %849 {offsets = [0, 6144], sizes = [2, 128], strides = [1, 1]} : vector<2x6400xf32> to vector<2x128xf32>
    %1908 = vector.extract_strided_slice %834 {offsets = [48, 0, 0], sizes = [1, 8, 128], strides = [1, 1, 1]} : vector<50x8x128xf32> to vector<1x8x128xf32>
    %1909 = vector.shape_cast %1908 : vector<1x8x128xf32> to vector<8x128xf32>
    %cst_832 = arith.constant dense<0.000000e+00> : vector<2x8xf32>
    %1910 = tpu.matmul %1907, %1909, %cst_832 {dimension_numbers = #tpu.dot_dimension_numbers<[1], [1], [0], [0], [0, 0, 1, 0], [], []>} : vector<2x128xf32>, vector<8x128xf32>, vector<2x8xf32> -> vector<2x8xf32>
    %1911 = vector.extract_strided_slice %842 {offsets = [48, 0], sizes = [1, 8], strides = [1, 1]} : vector<50x8xf32> to vector<1x8xf32>
    %1912 = vector.broadcast %1911 : vector<1x8xf32> to vector<2x8xf32>
    %1913 = arith.addf %1910, %1912 : vector<2x8xf32>
    %cst_833 = arith.constant dense<0xFF800000> : vector<2xf32>
    %1914 = vector.multi_reduction <maximumf>, %1913, %cst_833 [1] : vector<2x8xf32> to vector<2xf32>
    %1915 = vector.shape_cast %1914 : vector<2xf32> to vector<2x1xf32>
    %1916 = vector.broadcast %1915 : vector<2x1xf32> to vector<2x8xf32>
    %1917 = arith.subf %1913, %1916 : vector<2x8xf32>
    %1918 = math.exp %1917 : vector<2x8xf32>
    %cst_834 = arith.constant dense<0.000000e+00> : vector<2xf32>
    %1919 = vector.multi_reduction <add>, %1918, %cst_834 [1] : vector<2x8xf32> to vector<2xf32>
    %1920 = vector.shape_cast %1919 : vector<2xf32> to vector<2x1xf32>
    %1921 = tpu.reciprocal %1920 {approx = true} : vector<2x1xf32> -> vector<2x1xf32>
    %1922 = arith.mulf %1920, %1921 : vector<2x1xf32>
    %cst_835 = arith.constant 2.000000e+00 : f32
    %1923 = vector.broadcast %cst_835 : f32 to vector<2x1xf32>
    %1924 = arith.subf %1923, %1922 : vector<2x1xf32>
    %1925 = arith.mulf %1921, %1924 : vector<2x1xf32>
    %1926 = vector.broadcast %1925 : vector<2x1xf32> to vector<2x8xf32>
    %1927 = arith.mulf %1918, %1926 : vector<2x8xf32>
    %1928 = arith.addf %1906, %1927 : vector<2x8xf32>
    %1929 = vector.extract_strided_slice %849 {offsets = [0, 6272], sizes = [2, 128], strides = [1, 1]} : vector<2x6400xf32> to vector<2x128xf32>
    %1930 = vector.extract_strided_slice %834 {offsets = [49, 0, 0], sizes = [1, 8, 128], strides = [1, 1, 1]} : vector<50x8x128xf32> to vector<1x8x128xf32>
    %1931 = vector.shape_cast %1930 : vector<1x8x128xf32> to vector<8x128xf32>
    %cst_836 = arith.constant dense<0.000000e+00> : vector<2x8xf32>
    %1932 = tpu.matmul %1929, %1931, %cst_836 {dimension_numbers = #tpu.dot_dimension_numbers<[1], [1], [0], [0], [0, 0, 1, 0], [], []>} : vector<2x128xf32>, vector<8x128xf32>, vector<2x8xf32> -> vector<2x8xf32>
    %1933 = vector.extract_strided_slice %842 {offsets = [49, 0], sizes = [1, 8], strides = [1, 1]} : vector<50x8xf32> to vector<1x8xf32>
    %1934 = vector.broadcast %1933 : vector<1x8xf32> to vector<2x8xf32>
    %1935 = arith.addf %1932, %1934 : vector<2x8xf32>
    %cst_837 = arith.constant dense<0xFF800000> : vector<2xf32>
    %1936 = vector.multi_reduction <maximumf>, %1935, %cst_837 [1] : vector<2x8xf32> to vector<2xf32>
    %1937 = vector.shape_cast %1936 : vector<2xf32> to vector<2x1xf32>
    %1938 = vector.broadcast %1937 : vector<2x1xf32> to vector<2x8xf32>
    %1939 = arith.subf %1935, %1938 : vector<2x8xf32>
    %1940 = math.exp %1939 : vector<2x8xf32>
    %cst_838 = arith.constant dense<0.000000e+00> : vector<2xf32>
    %1941 = vector.multi_reduction <add>, %1940, %cst_838 [1] : vector<2x8xf32> to vector<2xf32>
    %1942 = vector.shape_cast %1941 : vector<2xf32> to vector<2x1xf32>
    %1943 = tpu.reciprocal %1942 {approx = true} : vector<2x1xf32> -> vector<2x1xf32>
    %1944 = arith.mulf %1942, %1943 : vector<2x1xf32>
    %cst_839 = arith.constant 2.000000e+00 : f32
    %1945 = vector.broadcast %cst_839 : f32 to vector<2x1xf32>
    %1946 = arith.subf %1945, %1944 : vector<2x1xf32>
    %1947 = arith.mulf %1943, %1946 : vector<2x1xf32>
    %1948 = vector.broadcast %1947 : vector<2x1xf32> to vector<2x8xf32>
    %1949 = arith.mulf %1940, %1948 : vector<2x8xf32>
    %1950 = arith.addf %1928, %1949 : vector<2x8xf32>
    %cst_840 = arith.constant 2.000000e-02 : f32
    %1951 = vector.broadcast %cst_840 : f32 to vector<2x8xf32>
    %1952 = arith.mulf %1950, %1951 : vector<2x8xf32>
    %c0_841 = arith.constant 0 : index
    %c0_842 = arith.constant 0 : index
    %c0_843 = arith.constant 0 : index
    %1953 = vector.load %arg14[%c0_841, %c0_842, %c0_843] : memref<1x2x8xf32, #tpu.memory_space<vmem>>, vector<1x2x8xf32>
    %1954 = vector.shape_cast %1953 : vector<1x2x8xf32> to vector<2x8xf32>
    %1955 = vector.shape_cast %1952 : vector<2x8xf32> to vector<1x2x8xf32>
    tpu.vector_store %arg14[%c0_841, %c0_842, %c0_843], %1955 {strides = array<i32>} : memref<1x2x8xf32, #tpu.memory_space<vmem>>, vector<1x2x8xf32>,
    return
  }
  func.func @transform_0(%arg0: i32) -> (i32, i32) {
    %c0_i32 = arith.constant 0 : i32
    %c0_i32_0 = arith.constant 0 : i32
    %c0_i32_1 = arith.constant 0 : i32
    return %c0_i32, %c0_i32_0 : i32, i32
  }
  func.func @transform_1(%arg0: i32) -> (i32, i32) {
    %c0_i32 = arith.constant 0 : i32
    %c0_i32_0 = arith.constant 0 : i32
    %c0_i32_1 = arith.constant 0 : i32
    return %c0_i32, %c0_i32_0 : i32, i32
  }
  func.func @transform_2(%arg0: i32) -> (i32, i32) {
    %c0_i32 = arith.constant 0 : i32
    %c0_i32_0 = arith.constant 0 : i32
    %c0_i32_1 = arith.constant 0 : i32
    return %c0_i32, %c0_i32_0 : i32, i32
  }
  func.func @transform_3(%arg0: i32) -> (i32, i32) {
    %c0_i32 = arith.constant 0 : i32
    %c0_i32_0 = arith.constant 0 : i32
    %c0_i32_1 = arith.constant 0 : i32
    return %c0_i32, %c0_i32_0 : i32, i32
  }
  func.func @transform_4(%arg0: i32) -> (i32, i32) {
    %c0_i32 = arith.constant 0 : i32
    %c0_i32_0 = arith.constant 0 : i32
    %c0_i32_1 = arith.constant 0 : i32
    return %c0_i32, %c0_i32_0 : i32, i32
  }
  func.func @transform_5(%arg0: i32) -> (i32, i32) {
    %c0_i32 = arith.constant 0 : i32
    %c0_i32_0 = arith.constant 0 : i32
    %c0_i32_1 = arith.constant 0 : i32
    return %c0_i32, %c0_i32_0 : i32, i32
  }
  func.func @transform_6(%arg0: i32) -> (i32, i32) {
    %c0_i32 = arith.constant 0 : i32
    %c0_i32_0 = arith.constant 0 : i32
    %c0_i32_1 = arith.constant 0 : i32
    return %c0_i32, %c0_i32_0 : i32, i32
  }
  func.func @transform_7(%arg0: i32) -> (i32, i32) {
    %c0_i32 = arith.constant 0 : i32
    %c0_i32_0 = arith.constant 0 : i32
    %c0_i32_1 = arith.constant 0 : i32
    return %c0_i32, %c0_i32_0 : i32, i32
  }
  func.func @transform_8(%arg0: i32) -> (i32, i32) {
    %c0_i32 = arith.constant 0 : i32
    %c0_i32_0 = arith.constant 0 : i32
    %c0_i32_1 = arith.constant 0 : i32
    return %c0_i32, %c0_i32_0 : i32, i32
  }
  func.func @transform_9(%arg0: i32) -> (i32, i32, i32) {
    %c0_i32 = arith.constant 0 : i32
    %c0_i32_0 = arith.constant 0 : i32
    %c0_i32_1 = arith.constant 0 : i32
    return %arg0, %c0_i32, %c0_i32_0 : i32, i32, i32
  }
  func.func @transform_10(%arg0: i32) -> (i32, i32, i32) {
    %c0_i32 = arith.constant 0 : i32
    %c0_i32_0 = arith.constant 0 : i32
    %c0_i32_1 = arith.constant 0 : i32
    return %arg0, %c0_i32, %c0_i32_0 : i32, i32, i32
  }
  func.func @transform_11(%arg0: i32) -> (i32, i32, i32, i32) {
    %c0_i32 = arith.constant 0 : i32
    %c0_i32_0 = arith.constant 0 : i32
    %c0_i32_1 = arith.constant 0 : i32
    %c0_i32_2 = arith.constant 0 : i32
    return %arg0, %c0_i32, %c0_i32_0, %c0_i32_1 : i32, i32, i32, i32
  }
  func.func @transform_12(%arg0: i32) -> (i32, i32, i32) {
    %c0_i32 = arith.constant 0 : i32
    %c0_i32_0 = arith.constant 0 : i32
    %c0_i32_1 = arith.constant 0 : i32
    return %arg0, %c0_i32, %c0_i32_0 : i32, i32, i32
  }
  func.func @transform_13(%arg0: i32) -> (i32, i32, i32) {
    %c0_i32 = arith.constant 0 : i32
    %c0_i32_0 = arith.constant 0 : i32
    %c0_i32_1 = arith.constant 0 : i32
    return %arg0, %c0_i32, %c0_i32_0 : i32, i32, i32
  }
}

</mosaic_0001>

<bundles_post_ra>
// kernel: tpu_custom_call.1
= control target key start
LH: loop header
LB: loop body
LE: loop exit
PB: predicated region body
PF: predicated region fallthrough
CT: control target
= control target key end

     0   :  { %18 = vsyncpa [#allocation5], 0  ;;  %s12950_s0 = inlined_call_operand.vmem [shape: f32[2,32], index: 0, kind: input, shape index: {}]   ;;  %s12951_s1 = inlined_call_operand.vmem [shape: f32[32,128], index: 1, kind: input, shape index: {}]   ;;  %s12952_s2 = inlined_call_operand.vmem [shape: f32[1,128], index: 2, kind: input, shape index: {}]   ;;  %s12953_s3 = inlined_call_operand.vmem [shape: f32[8,128], index: 3, kind: input, shape index: {}]   ;;  %s12954_s4 = inlined_call_operand.vmem [shape: f32[1,8], index: 4, kind: input, shape index: {}]   ;;  %s12955_s5 = inlined_call_operand.vmem [shape: f32[1,128], index: 5, kind: input, shape index: {}]   ;;  %s12956_s6 = inlined_call_operand.vmem [shape: f32[1,128], index: 6, kind: input, shape index: {}]   ;;  %s12957_s7 = inlined_call_operand.vmem [shape: f32[1,128], index: 7, kind: input, shape index: {}]   ;;  %s12958_s8 = inlined_call_operand.vmem [shape: f32[1,128], index: 8, kind: input, shape index: {}]   ;;  %s12959_s9 = inlined_call_operand.hbm [shape: s8[1,32,6400], index: 9, kind: input, shape index: {}]   ;;  %s12960_s10 = inlined_call_operand.vmem [shape: s32[1,50,128], index: 10, kind: input, shape index: {}]   ;;  %s12961_s11 = inlined_call_operand.hbm [shape: s32[1,50,8,128], index: 11, kind: input, shape index: {}]   ;;  %s12962_s12 = inlined_call_operand.vmem [shape: s32[1,50,8], index: 12, kind: input, shape index: {}]   ;;  %s12963_s13 = inlined_call_operand.hbm [shape: f32[1,2,8], index: 13, kind: output, shape index: {}]  }
   0x1   :  { %19 = vsyncpa [#allocation8], 0 }
   0x2   :  { %20 = vsyncpa [#allocation6], 0  ;;  %s9351_s25 = smov [#allocation4]   ;;  %s9352_s27 = smov [#allocation7]  }
   0x3   :  { %s45_s26 = sshll.u32 %s9351_s25, 4  ;;  %s56_s28 = sshll.u32 %s9352_s27, 4  ;;  %s46_s26 = int_to_ptr.vmem [resolvable:$true] %s45_s26  ;;  %s9428_s28 = int_to_ptr.vmem [resolvable:$true] %s56_s28 }
   0x4   :  { %s9279_s14 = scalar_lea.hbm %s12959_s9, 6400 }
   0x5   :  { %p9280_p0 = scmp.ne.s32.totalorder %s12959_s9, %s9279_s14  ;;  %p9283_p1 = scmp.lt.u32.totalorder %s9279_s14, %s12959_s9 }
   0x7   :  { %p9285_p2 = pnand %p9283_p1, %p9280_p0 }
   0x9   :  { %9288 = shalt.err (!%p9285_p2)
}
   0xa   :  { %s9289_s19 = scalar_lea.vmem %s46_s26, 6400  ;;  %p9294_p4 = scmp.lt.s32.totalorder %s46_s26, %s46_s26 }
   0xb   :  { %p9290_p3 = scmp.ne.s32.totalorder %s46_s26, %s9289_s19  ;;  %p9295_p5 = scmp.lt.s32.totalorder %s9289_s19, %s9289_s19 }
   0xd   :  { %p9296_p6 = por %p9295_p5, %p9294_p4 }
   0xf   :  { %p9297_p7 = pnand %p9296_p6, %p9290_p3 }
  0x11   :  { %9300 = shalt.err (!%p9297_p7)
}
  0x12   :  { %48 = dma.hbm_to_vmem [thread:$0]  %s12959_s9, 6400, %s46_s26, [#allocation5]  }
  0x13   :  { %s9301_s24 = scalar_lea.hbm %s12961_s11, 6400 }
  0x14   :  { %p9302_p8 = scmp.ne.s32.totalorder %s12961_s11, %s9301_s24  ;;  %p9305_p9 = scmp.lt.u32.totalorder %s9301_s24, %s12961_s11 }
  0x16   :  { %p9307_p10 = pnand %p9305_p9, %p9302_p8 }
  0x18   :  { %9310 = shalt.err (!%p9307_p10)
}
  0x19   :  { %s9311_s14 = scalar_lea.vmem %s9428_s28, 6400  ;;  %p9316_p12 = scmp.lt.s32.totalorder %s9428_s28, %s9428_s28 }
  0x1a   :  { %p9312_p11 = scmp.ne.s32.totalorder %s9428_s28, %s9311_s14  ;;  %p9317_p13 = scmp.lt.s32.totalorder %s9311_s14, %s9311_s14 }
  0x1c   :  { %p9318_p0 = por %p9317_p13, %p9316_p12 }
  0x1e   :  { %p9319_p1 = pnand %p9318_p0, %p9312_p11 }
  0x20   :  { %9322 = shalt.err (!%p9319_p1)
}
  0x21   :  { %s9353_s9 = smov 128   ;;  %s9354_s26 = smov 8  }
  0x22   :  { %62 = dma.hbm_to_vmem [thread:$0]  %s12961_s11, 6400, %s9428_s28, [#allocation8], %s9353_s9, %s9353_s9, %s9354_s26  }
  0x23   :  { %9345 = dma.done.wait [#allocation5], 6400  }
  0x24   :  { %9346 = vsyncadd [#allocation5], 4294960896 }
  0x25   :  { %9347 = dma.done.wait [#allocation8], 6400  }
  0x26   :  { %9348 = vsyncadd [#allocation8], 4294960896  ;;  %v9355_v0 = vmov 0.0   ;;  %v86_v1 = vlaneseq  ;;  %v73_v2 = vld [vmem:[%s12958_s8] sm:$0x1]  ;;  %v169_v6 = vld [vmem:[#allocation4 + $0x18] sm:$0xff] }
  0x27   :  { %1912 = vmatprep.mubr.f32.mxu0 %v9355_v0  ;;  %1983 = vmatprep.mubr.f32.mxu1 %v9355_v0  ;;  %v74_v3 = vadd.f32 1e-05, %v73_v2  ;;  %v125_v5 = vld [vmem:[#allocation4 + $0x8] sm:$0xff]  ;;  %v170_v9 = vunpack.c.0.s8 %v169_v6  ;;  %v99_v10 = vld [vmem:[#allocation4] sm:$0xff]  ;;  %v147_v11 = vld [vmem:[#allocation4 + $0x10] sm:$0xff]  ;;  %v171_v12 = vunpack.c.1.s8 %v169_v6  ;;  %v13135_v18 = vmov 0 }
  0x28   :  { %v9465_v4 = vshrl.u32 %v86_v1, 7  ;;  %v126_v7 = vunpack.c.0.s8 %v125_v5  ;;  %v127_v8 = vunpack.c.1.s8 %v125_v5  ;;  %v100_v13 = vunpack.c.0.s8 %v99_v10  ;;  %v213_v26 = vld [vmem:[#allocation4 + $0x28] sm:$0xff]  ;;  %v9494_v27 = vld [vmem:[#allocation4 + $0x20] sm:$0xff]  ;;  %v9504_v36 = vld [vmem:[#allocation4 + $0x38] sm:$0xff] }
  0x29   :  { %9075 = vrsqrt.f32 %v74_v3  ;;  %v101_v14 = vunpack.c.1.s8 %v99_v10  ;;  %v148_v15 = vunpack.c.0.s8 %v147_v11  ;;  %v149_v17 = vunpack.c.1.s8 %v147_v11  ;;  %v72_v37 = vld [vmem:[%s12955_s5] sm:$0x1]  ;;  %v82_v57 = vld [vmem:[%s12951_s1 + $0x8] sm:$0xff]  ;;  %v83_v58 = vld [vmem:[%s12951_s1 + $0x10] sm:$0xff] }
  0x2a   :  { %v9468_v16 = vsub.s32 0, %v9465_v4  ;;  %vm9470_vm0 = vcmp.ge.s32.totalorder %v126_v7, 0  ;;  %vm9474_vm1 = vcmp.ge.s32.totalorder %v127_v8, 0  ;;  %vm9478_vm2 = vcmp.ge.s32.totalorder %v170_v9, 0  ;;  %v78_v52 = vld [vmem:[%s12957_s7] sm:$0x1] }
  0x2b   :  { %v13136_v18 = vsel %vm9470_vm0, 4294967295, %v13135_v18  ;;  %v128_v21 = vunpack.c.2.s8 %v125_v5  ;;  %vm9482_vm3 = vcmp.ge.s32.totalorder %v171_v12, 0  ;;  %vm9486_vm4 = vcmp.ge.s32.totalorder %v100_v13, 0  ;;  %v81_v53 = vld [vmem:[%s12951_s1] sm:$0xff]  ;;  %v84_v3 = vld [vmem:[%s12951_s1 + $0x18] sm:$0xff]  ;;  %v345_v20 = vld [vmem:[#allocation4 + $0x58] sm:$0xff] }
  0x2c   :  { %vm9490_vm5 = vcmp.ge.s32.totalorder %v101_v14, 0  ;;  %v129_v25 = vunpack.c.3.s8 %v125_v5  ;;  %vm9496_vm6 = vcmp.ge.s32.totalorder %v148_v15, 0  ;;  %v172_v29 = vunpack.c.2.s8 %v169_v6  ;;  %v235_v63 = vld [vmem:[#allocation4 + $0x30] sm:$0xff]  ;;  %v9599_v12 = vld [vmem:[#allocation4 + $0x48] sm:$0xff] }
  0x2d   :  { %v173_v30 = vunpack.c.3.s8 %v169_v6  ;;  %v102_v31 = vunpack.c.2.s8 %v99_v10  ;;  %vm9500_vm7 = vcmp.ge.s32.totalorder %v149_v17, 0  ;;  %v103_v33 = vunpack.c.3.s8 %v99_v10  ;;  %v95_v15 = vld [vmem:[%s12952_s2] sm:$0x1]  ;;  %v9698_v32 = vld [vmem:[#allocation4 + $0x50] sm:$0xff] }
  0x2e   :  { %v150_v34 = vunpack.c.2.s8 %v147_v11  ;;  %v151_v35 = vunpack.c.3.s8 %v147_v11  ;;  %vm9509_vm8 = vcmp.ge.s32.totalorder %v128_v21, 0  ;;  %v13151_v38 = vmov 0 }
  0x2f   :  { %v13152_v38 = vsel %vm9509_vm8, 4294967295, %v13151_v38  ;;  %v214_v39 = vunpack.c.0.s8 %v213_v26  ;;  %v215_v40 = vunpack.c.1.s8 %v213_v26  ;;  %v192_v41 = vunpack.c.0.s8 %v9494_v27 }
  0x30   :  { %vm9514_vm9 = vcmp.ge.s32.totalorder %v129_v25, 0  ;;  %v193_v43 = vunpack.c.1.s8 %v9494_v27  ;;  %v216_v44 = vunpack.c.2.s8 %v213_v26  ;;  %v217_v45 = vunpack.c.3.s8 %v213_v26  ;;  %v77_v25 = vld [vmem:[%s12956_s6] sm:$0x1] }
  0x31   :  { %vm9519_vm10 = vcmp.ge.s32.totalorder %v172_v29, 0  ;;  %v13155_v47 = vmov 0  ;;  %vm9523_vm11 = vcmp.ge.s32.totalorder %v173_v30, 0  ;;  %v13157_v48 = vmov 0 }
  0x32   :  { %v13156_v47 = vsel %vm9519_vm10, 4294967295, %v13155_v47  ;;  %v13158_v48 = vsel %vm9523_vm11, 4294967295, %v13157_v48  ;;  %vm9527_vm12 = vcmp.ge.s32.totalorder %v102_v31, 0  ;;  %v13159_v49 = vmov 0 }
  0x33   :  { %v9076_v46 = vpop.eup %9075  ;;  %v13160_v49 = vsel %vm9527_vm12, 4294967295, %v13159_v49  ;;  %v258_v50 = vunpack.c.0.s8 %v9504_v36  ;;  %vm9538_vm13 = vcmp.ge.s32.totalorder %v103_v33, 0  ;;  %v13161_v54 = vmov 0 }
  0x34   :  { %v76_v51 = vmul.f32 %v9076_v46, %v72_v37  ;;  %v13162_v54 = vsel %vm9538_vm13, 4294967295, %v13161_v54  ;;  %vm9542_vm14 = vcmp.ge.s32.totalorder %v150_v34, 0  ;;  %v13163_v55 = vmov 0  ;;  %v9629_v37 = vld [vmem:[#allocation4 + $0x40] sm:$0xff] }
  0x35   :  { %v13164_v55 = vsel %vm9542_vm14, 4294967295, %v13163_v55  ;;  %vm9546_vm15 = vcmp.ge.s32.totalorder %v151_v35, 0  ;;  %v13165_v56 = vmov 0  ;;  %vm9556_vm12 = vcmp.ge.s32.totalorder %v214_v39, 0 }
  0x36   :  { %v13166_v56 = vsel %vm9546_vm15, 4294967295, %v13165_v56  ;;  %v13167_v59 = vmov 0  ;;  %vm9560_vm13 = vcmp.ge.s32.totalorder %v215_v40, 0  ;;  %v13169_v60 = vmov 0 }
  0x37   :  { %v13168_v59 = vsel %vm9556_vm12, 4294967295, %v13167_v59  ;;  %v13170_v60 = vsel %vm9560_vm13, 4294967295, %v13169_v60  ;;  %vm9564_vm14 = vcmp.ge.s32.totalorder %v192_v41, 0  ;;  %v13171_v61 = vmov 0 }
  0x38   :  { %v13172_v61 = vsel %vm9564_vm14, 4294967295, %v13171_v61  ;;  %v259_v62 = vunpack.c.1.s8 %v9504_v36  ;;  %v89_v2 = vrot.slane %v76_v51, %v9468_v16  ;;  %vm9577_vm12 = vcmp.ge.s32.totalorder %v193_v43, 0 }
  0x39   :  { %v13173_v5 = vmov 0  ;;  %vm9581_vm13 = vcmp.ge.s32.totalorder %v216_v44, 0  ;;  %v13175_v6 = vmov 0  ;;  %vm9585_vm14 = vcmp.ge.s32.totalorder %v217_v45, 0 }
  0x3a   :  { %v13174_v5 = vsel %vm9577_vm12, 4294967295, %v13173_v5  ;;  %v13176_v6 = vsel %vm9581_vm13, 4294967295, %v13175_v6  ;;  %v13177_v7 = vmov 0  ;;  %v79_v8 = vmul.f32 %v78_v52, %v76_v51  ;;  %v9739_v52 = vld [vmem:[#allocation4 + $0x68] sm:$0xff] }
  0x3b   :  { %v13178_v7 = vsel %vm9585_vm14, 4294967295, %v13177_v7  ;;  %vm9593_vm0 = vcmp.ge.s32.totalorder %v258_v50, 0  ;;  %v13179_v9 = vmov 0  ;;  %v194_v10 = vunpack.c.2.s8 %v9494_v27 }
  0x3c   :  { %v13180_v9 = vsel %vm9593_vm0, 4294967295, %v13179_v9  ;;  %v195_v11 = vunpack.c.3.s8 %v9494_v27  ;;  %v91_v13 = vmul.f32 %v89_v2, %v81_v53  ;;  %v92_v14 = vmul.f32 %v89_v2, %v82_v57 }
  0x3d   :  { %v93_v17 = vmul.f32 %v89_v2, %v83_v58  ;;  %v236_v21 = vunpack.c.0.s8 %v235_v63  ;;  %v94_v26 = vmul.f32 %v89_v2, %v84_v3  ;;  %v237_v27 = vunpack.c.1.s8 %v235_v63 }
  0x3e   :  { %v260_v29 = vunpack.c.2.s8 %v9504_v36  ;;  %v261_v30 = vunpack.c.3.s8 %v9504_v36  ;;  %v9617_v31 = vpack.c.bf16 %v92_v14, %v91_v13  ;;  %vm9623_vm12 = vcmp.ge.s32.totalorder %v259_v62, 0 }
  0x3f   :  { %v13181_v33 = vmov 0  ;;  %v302_v34 = vunpack.c.0.s8 %v9599_v12  ;;  %v303_v35 = vunpack.c.1.s8 %v9599_v12  ;;  %v9631_v39 = vmul.f32 %v95_v15, %v76_v51 }
  0x40   :  { %v13182_v33 = vsel %vm9623_vm12, 4294967295, %v13181_v33  ;;  %v9633_v36 = vpack.c.bf16 %v94_v26, %v93_v17  ;;  %v238_v40 = vunpack.c.2.s8 %v235_v63  ;;  %v239_v41 = vunpack.c.3.s8 %v235_v63  ;;  %vm13185_vm12 = vmpackc.low %vm9482_vm3, %vm9478_vm2  ;;  %v9763_v63 = vld [vmem:[%s12950_s0] sm:$0x3] }
  0x41   :  { %v9639_v43 = vsub.f32 %v77_v25, %v79_v8  ;;  %vm13183_vm15 = vnez %v13136_v18  ;;  %8782 = vmatprep.subr.msk.bf16.mxu1 %vm13185_vm12, %v9617_v31  ;;  %vm13186_vm13 = vnez %v13160_v49  ;;  %vm13187_vm0 = vnez %v13162_v54  ;;  %vm13194_vm2 = vmpackc.low %vm9490_vm5, %vm9486_vm4  ;;  %v9800_v8 = vld [vmem:[#allocation4 + $0x60] sm:$0xff] }
  0x42   :  { %vm13184_vm14 = vmpackc.low %vm9474_vm1, %vm13183_vm15  ;;  %vm9657_vm11 = vcmp.ge.s32.totalorder %v194_v10, 0  ;;  %v13188_v44 = vmov 0  ;;  %vm9661_vm8 = vcmp.ge.s32.totalorder %v195_v11, 0  ;;  %v13190_v18 = vmov 0 }
  0x43   :  { %8770 = vmatprep.subr.msk.bf16.mxu0 %vm13184_vm14, %v9617_v31  ;;  %v13189_v44 = vsel %vm9657_vm11, 4294967295, %v13188_v44  ;;  %v13191_v18 = vsel %vm9661_vm8, 4294967295, %v13190_v18  ;;  %vm9665_vm1 = vcmp.ge.s32.totalorder %v236_v21, 0  ;;  %vm13195_vm3 = vmpackc.low %vm9500_vm7, %vm9496_vm6  ;;  %vm13196_vm12 = vnez %v13164_v55  ;;  %v433_v21 = vld [vmem:[#allocation4 + $0x78] sm:$0xff] }
  0x44   :  { %8773 = vmatpush1.bf16.msk.msra.mxu0 %vm13194_vm2, %v9617_v31  ;;  %8785 = vmatpush1.bf16.msk.msra.mxu1 %vm13195_vm3, %v9617_v31  ;;  %vm13197_vm14 = vnez %v13166_v56  ;;  %vm9685_vm10 = vcmp.ge.s32.totalorder %v237_v27, 0  ;;  %v13198_v22 = vmov 0  ;;  %vm9689_vm8 = vcmp.ge.s32.totalorder %v260_v29, 0  ;;  %v9869_v27 = vld [vmem:[#allocation4 + $0x70] sm:$0xff] }
  0x45   :  { %v13199_v22 = vsel %vm9685_vm10, 4294967295, %v13198_v22  ;;  %v13200_v23 = vmov 0  ;;  %vm9693_vm4 = vcmp.ge.s32.totalorder %v261_v30, 0  ;;  %v13202_v24 = vmov 0 }
  0x46   :  { %v13201_v23 = vsel %vm9689_vm8, 4294967295, %v13200_v23  ;;  %v13203_v24 = vsel %vm9693_vm4, 4294967295, %v13202_v24  ;;  %v280_v28 = vunpack.c.0.s8 %v9629_v37  ;;  %vm13204_vm5 = vnez %v13152_v38 }
  0x47   :  { %vm13205_vm6 = vmpackc.low %vm9514_vm9, %vm13204_vm5  ;;  %vm13206_vm7 = vnez %v13158_v48  ;;  %vm13207_vm2 = vnez %v13156_v47  ;;  %vm13209_vm15 = vnez %v13168_v59  ;;  %vm13210_vm4 = vnez %v13170_v60 }
  0x48   :  { %8776 = vmatprep.subr.msk.bf16.mxu0 %vm13205_vm6, %v9633_v36  ;;  %vm13208_vm3 = vmpackc.low %vm13206_vm7, %vm13207_vm2  ;;  %vm9716_vm11 = vcmp.ge.s32.totalorder %v302_v34, 0  ;;  %v13211_v45 = vmov 0  ;;  %vm9720_vm10 = vcmp.ge.s32.totalorder %v303_v35, 0  ;;  %v13213_v38 = vmov 0 }
  0x49   :  { %8788 = vmatprep.subr.msk.bf16.mxu1 %vm13208_vm3, %v9633_v36  ;;  %v13212_v45 = vsel %vm9716_vm11, 4294967295, %v13211_v45  ;;  %v13214_v38 = vsel %vm9720_vm10, 4294967295, %v13213_v38  ;;  %v281_v42 = vunpack.c.1.s8 %v9629_v37  ;;  %v304_v46 = vunpack.c.2.s8 %v9599_v12  ;;  %vm13223_vm6 = vmpackc.low %vm13187_vm0, %vm13186_vm13 }
  0x4a   :  { %vm13215_vm9 = vnez %v13180_v9  ;;  %vm13216_vm5 = vnez %v13182_v33  ;;  %vm9730_vm7 = vcmp.ge.s32.totalorder %v238_v40, 0  ;;  %v13217_v47 = vmov 0  ;;  %8779 = vmatpush1.bf16.msk.msra.mxu0 %vm13223_vm6, %v9633_v36  ;;  %vm13224_vm10 = vmpackc.low %vm13197_vm14, %vm13196_vm12  ;;  %v9912_v40 = vld [vmem:[#allocation4 + $0x88] sm:$0xff] }
  0x4b   :  { %v13218_v47 = vsel %vm9730_vm7, 4294967295, %v13217_v47  ;;  %vm9734_vm2 = vcmp.ge.s32.totalorder %v239_v41, 0  ;;  %v13219_v48 = vmov 0  ;;  %v305_v50 = vunpack.c.3.s8 %v9599_v12  ;;  %8791 = vmatpush1.bf16.msk.msra.mxu1 %vm13224_vm10, %v9633_v36  ;;  %vm13229_vm0 = vmpackc.low %vm13210_vm4, %vm13209_vm15 }
  0x4c   :  { %v13220_v48 = vsel %vm9734_vm2, 4294967295, %v13219_v48  ;;  %v346_v51 = vunpack.c.0.s8 %v345_v20  ;;  %vm13222_vm8 = vnez %v13174_v5  ;;  %v347_v53 = vunpack.c.1.s8 %v345_v20  ;;  %8794 = vmatprep.subr.msk.bf16.mxu0 %vm13229_vm0, %v9617_v31  ;;  %vm13230_vm10 = vmpackc.low %vm13216_vm5, %vm13215_vm9 }
  0x4d   :  { %v282_v57 = vunpack.c.2.s8 %v9629_v37  ;;  %v283_v58 = vunpack.c.3.s8 %v9629_v37  ;;  %v324_v62 = vunpack.c.0.s8 %v9698_v32  ;;  %vm13225_vm2 = vnez %v13176_v6  ;;  %8806 = vmatprep.subr.msk.bf16.mxu1 %vm13230_vm10, %v9617_v31 }
  0x4e   :  { %vm13226_vm7 = vnez %v13178_v7  ;;  %vm9769_vm3 = vcmp.ge.s32.totalorder %v280_v28, 0  ;;  %v13227_v49 = vmov 0  ;;  %v325_v54 = vunpack.c.1.s8 %v9698_v32 }
  0x4f   :  { %v13228_v49 = vsel %vm9769_vm3, 4294967295, %v13227_v49  ;;  %v348_v56 = vunpack.c.2.s8 %v345_v20  ;;  %v349_v55 = vunpack.c.3.s8 %v345_v20  ;;  %vm13231_vm13 = vnez %v13199_v22 }
  0x50   :  { %vm9790_vm14 = vcmp.ge.s32.totalorder %v281_v42, 0  ;;  %v13232_v2 = vmov 0  ;;  %vm9794_vm6 = vcmp.ge.s32.totalorder %v304_v46, 0  ;;  %v13234_v59 = vmov 0  ;;  %v9968_v42 = vld [vmem:[#allocation4 + $0x80] sm:$0xff] }
  0x51   :  { %v13233_v2 = vsel %vm9790_vm14, 4294967295, %v13232_v2  ;;  %v13235_v59 = vsel %vm9794_vm6, 4294967295, %v13234_v59  ;;  %v390_v60 = vunpack.c.0.s8 %v9739_v52  ;;  %v391_v3 = vunpack.c.1.s8 %v9739_v52 }
  0x52   :  { %vm9806_vm5 = vcmp.ge.s32.totalorder %v305_v50, 0  ;;  %v13238_v9 = vmov 0  ;;  %vm9810_vm0 = vcmp.ge.s32.totalorder %v346_v51, 0  ;;  %v326_v11 = vunpack.c.2.s8 %v9698_v32 }
  0x53   :  { %v13239_v9 = vsel %vm9806_vm5, 4294967295, %v13238_v9  ;;  %v327_v12 = vunpack.c.3.s8 %v9698_v32  ;;  %vm13242_vm10 = vcmask 261120   ;;  %vm13244_vm9 = vnez %v13201_v23 }
  0x54   :  { %8143 = vmatmul.mubr.msk.f32.vlgmr.msra.gmra.mrb[0].mxu0 %vm13242_vm10, %v9763_v63  ;;  %vm13243_vm11 = vmmov %vm13242_vm10  ;;  %vm13245_vm12 = vnez %v13203_v24  ;;  %vm9824_vm5 = vcmp.ge.s32.totalorder %v347_v53, 0  ;;  %v13246_v13 = vmov 0  ;;  %vm9828_vm15 = vcmp.ge.s32.totalorder %v282_v57, 0 }
  0x55   :  { %8144 = vmatmul.mubr.msk.f32.vlgmr.msra.gmra.mrb[0].mxu1 %vm13243_vm11, %v9763_v63  ;;  %v13247_v13 = vsel %vm9824_vm5, 4294967295, %v13246_v13  ;;  %v13248_v14 = vmov 0  ;;  %vm9832_vm4 = vcmp.ge.s32.totalorder %v283_v58, 0  ;;  %v13250_v15 = vmov 0  ;;  %2054 = vmatprep.mubr.f32.mxu0 %v9355_v0  ;;  %v521_v58 = vld [vmem:[#allocation4 + $0x98] sm:$0xff] }
  0x56   :  { %v13249_v14 = vsel %vm9828_vm15, 4294967295, %v13248_v14  ;;  %v13251_v15 = vsel %vm9832_vm4, 4294967295, %v13250_v15  ;;  %vm9836_vm10 = vcmp.ge.s32.totalorder %v324_v62, 0  ;;  %v13252_v17 = vmov 0  ;;  %vm13256_vm15 = vmpackc.low %vm13231_vm13, %vm9665_vm1  ;;  %2125 = vmatprep.mubr.f32.mxu1 %v9355_v0 }
  0x57   :  { %v13253_v17 = vsel %vm9836_vm10, 4294967295, %v13252_v17  ;;  %vm13254_vm11 = vnez %v13172_v61  ;;  %8809 = vmatpush1.bf16.msk.msra.mxu1 %vm13256_vm15, %v9617_v31  ;;  %vm13257_vm4 = vnez %v13212_v45  ;;  %vm13258_vm14 = vnez %v13214_v38  ;;  %vm13265_vm1 = vmpackc.low %vm13226_vm7, %vm13225_vm2 }
  0x58   :  { %vm13255_vm6 = vmpackc.low %vm13222_vm8, %vm13254_vm11  ;;  %vm9856_vm3 = vcmp.ge.s32.totalorder %v325_v54, 0  ;;  %vm9860_vm5 = vcmp.ge.s32.totalorder %v348_v56, 0  ;;  %vm9864_vm8 = vcmp.ge.s32.totalorder %v349_v55, 0  ;;  %v13263_v5 = vmov 0  ;;  %v10037_v55 = vld [vmem:[#allocation4 + $0x90] sm:$0xff] }
  0x59   :  { %8797 = vmatpush1.bf16.msk.msra.mxu0 %vm13255_vm6, %v9617_v31  ;;  %v13264_v5 = vsel %vm9864_vm8, 4294967295, %v13263_v5  ;;  %v368_v26 = vunpack.c.0.s8 %v9800_v8  ;;  %vm13266_vm13 = vnez %v13218_v47  ;;  %vm13267_vm6 = vnez %v13220_v48  ;;  %vm13272_vm7 = vmpackc.low %vm13245_vm12, %vm13244_vm9 }
  0x5a   :  { %8800 = vmatprep.subr.msk.bf16.mxu0 %vm13265_vm1, %v9633_v36  ;;  %vm9882_vm11 = vcmp.ge.s32.totalorder %v390_v60, 0  ;;  %v13268_v29 = vmov 0  ;;  %vm9886_vm10 = vcmp.ge.s32.totalorder %v391_v3, 0  ;;  %v13270_v30 = vmov 0  ;;  %8812 = vmatprep.subr.msk.bf16.mxu1 %vm13272_vm7, %v9633_v36  ;;  %vm13283_vm7 = vmpackc.low %vm13267_vm6, %vm13266_vm13 }
  0x5b   :  { %v13269_v29 = vsel %vm9882_vm11, 4294967295, %v13268_v29  ;;  %v13271_v30 = vsel %vm9886_vm10, 4294967295, %v13270_v30  ;;  %v369_v7 = vunpack.c.1.s8 %v9800_v8  ;;  %v392_v6 = vunpack.c.2.s8 %v9739_v52  ;;  %8815 = vmatpush1.bf16.msk.msra.mxu1 %vm13283_vm7, %v9633_v36 }
  0x5c   :  { %vm13273_vm2 = vnez %v13247_v13  ;;  %vm9903_vm15 = vcmp.ge.s32.totalorder %v326_v11, 0  ;;  %v13274_v33 = vmov 0  ;;  %vm9907_vm10 = vcmp.ge.s32.totalorder %v327_v12, 0  ;;  %v10080_v12 = vld [vmem:[#allocation4 + $0xa8] sm:$0xff] }
  0x5d   :  { %v13275_v33 = vsel %vm9903_vm15, 4294967295, %v13274_v33  ;;  %v13276_v34 = vmov 0  ;;  %v393_v35 = vunpack.c.3.s8 %v9739_v52  ;;  %v434_v37 = vunpack.c.0.s8 %v433_v21  ;;  %vm13289_vm13 = vmpackc.low %vm13273_vm2, %vm9810_vm0 }
  0x5e   :  { %v13277_v34 = vsel %vm9907_vm10, 4294967295, %v13276_v34  ;;  %v435_v41 = vunpack.c.1.s8 %v433_v21  ;;  %v370_v19 = vunpack.c.2.s8 %v9800_v8  ;;  %v371_v20 = vunpack.c.3.s8 %v9800_v8  ;;  %8830 = vmatprep.subr.msk.bf16.mxu1 %vm13289_vm13, %v9617_v31 }
  0x5f   :  { %v412_v22 = vunpack.c.0.s8 %v9869_v27  ;;  %vm13280_vm1 = vnez %v13191_v18  ;;  %vm13281_vm10 = vnez %v13189_v44  ;;  %vm13284_vm11 = vnez %v13235_v59 }
  0x60   :  { %vm13282_vm15 = vmpackc.low %vm13280_vm1, %vm13281_vm10  ;;  %vm13285_vm12 = vnez %v13239_v9  ;;  %vm9937_vm8 = vcmp.ge.s32.totalorder %v368_v26, 0  ;;  %v13286_v23 = vmov 0  ;;  %v413_v44 = vunpack.c.1.s8 %v9869_v27 }
  0x61   :  { %8803 = vmatpush1.bf16.msk.msra.mxu0 %vm13282_vm15, %v9633_v36  ;;  %v13287_v23 = vsel %vm9937_vm8, 4294967295, %v13286_v23  ;;  %v436_v18 = vunpack.c.2.s8 %v433_v21  ;;  %v437_v24 = vunpack.c.3.s8 %v433_v21  ;;  %vm13288_vm10 = vmpackc.low %vm13258_vm14, %vm13257_vm4  ;;  %vm13290_vm6 = vnez %v13253_v17 }
  0x62   :  { %8818 = vmatprep.subr.msk.bf16.mxu0 %vm13288_vm10, %v9617_v31  ;;  %vm9958_vm1 = vcmp.ge.s32.totalorder %v369_v7, 0  ;;  %v13291_v28 = vmov 0  ;;  %vm9962_vm7 = vcmp.ge.s32.totalorder %v392_v6, 0  ;;  %v13293_v32 = vmov 0  ;;  %v10136_v7 = vld [vmem:[#allocation4 + $0xa0] sm:$0xff] }
  0x63   :  { %v13292_v28 = vsel %vm9958_vm1, 4294967295, %v13291_v28  ;;  %v13294_v32 = vsel %vm9962_vm7, 4294967295, %v13293_v32  ;;  %v478_v45 = vunpack.c.0.s8 %v9912_v40  ;;  %v479_v38 = vunpack.c.1.s8 %v9912_v40 }
  0x64   :  { %vm9974_vm2 = vcmp.ge.s32.totalorder %v393_v35, 0  ;;  %v13297_v46 = vmov 0  ;;  %vm9978_vm10 = vcmp.ge.s32.totalorder %v434_v37, 0  ;;  %v414_v48 = vunpack.c.2.s8 %v9869_v27 }
  0x65   :  { %v13298_v46 = vsel %vm9974_vm2, 4294967295, %v13297_v46  ;;  %v415_v50 = vunpack.c.3.s8 %v9869_v27  ;;  %vm13301_vm13 = vcmask 261120   ;;  %vm13303_vm0 = vnez %v13264_v5 }
  0x66   :  { %8145 = vmatmul.mubr.msk.f32.vlgmr.msra.gmra.mrb[2].mxu0 %vm13301_vm13, %v9763_v63  ;;  %vm13302_vm9 = vmmov %vm13301_vm13  ;;  %vm9992_vm2 = vcmp.ge.s32.totalorder %v435_v41, 0  ;;  %v13304_v51 = vmov 0  ;;  %vm9996_vm7 = vcmp.ge.s32.totalorder %v370_v19, 0  ;;  %v13306_v52 = vmov 0 }
  0x67   :  { %8146 = vmatmul.mubr.msk.f32.vlgmr.msra.gmra.mrb[2].mxu1 %vm13302_vm9, %v9763_v63  ;;  %v13305_v51 = vsel %vm9992_vm2, 4294967295, %v13304_v51  ;;  %v13307_v52 = vsel %vm9996_vm7, 4294967295, %v13306_v52  ;;  %vm10000_vm14 = vcmp.ge.s32.totalorder %v371_v20, 0  ;;  %v13308_v53 = vmov 0  ;;  %vm13315_vm7 = vmpackc.low %vm9856_vm3, %vm13290_vm6  ;;  %2196 = vmatprep.mubr.f32.mxu0 %v9355_v0  ;;  %v609_v20 = vld [vmem:[#allocation4 + $0xb8] sm:$0xff] }
  0x68   :  { %v13309_v53 = vsel %vm10000_vm14, 4294967295, %v13308_v53  ;;  %vm10004_vm13 = vcmp.ge.s32.totalorder %v412_v22, 0  ;;  %v13310_v57 = vmov 0  ;;  %vm13312_vm9 = vnez %v13233_v2  ;;  %8833 = vmatpush1.bf16.msk.msra.mxu1 %vm13315_vm7, %v9617_v31  ;;  %vm13324_vm3 = vmpackc.low %vm13285_vm12, %vm13284_vm11  ;;  %2267 = vmatprep.mubr.f32.mxu1 %v9355_v0 }
  0x69   :  { %v13311_v57 = vsel %vm10004_vm13, 4294967295, %v13310_v57  ;;  %vm13313_vm15 = vnez %v13228_v49  ;;  %vm13316_vm14 = vnez %v13269_v29  ;;  %vm13317_vm1 = vnez %v13271_v30  ;;  %vm13331_vm11 = vmpackc.low %vm13303_vm0, %vm9860_vm5 }
  0x6a   :  { %vm13314_vm4 = vmpackc.low %vm13312_vm9, %vm13313_vm15  ;;  %vm10024_vm8 = vcmp.ge.s32.totalorder %v413_v44, 0  ;;  %vm10028_vm2 = vcmp.ge.s32.totalorder %v436_v18, 0  ;;  %vm10032_vm15 = vcmp.ge.s32.totalorder %v437_v24, 0  ;;  %v13322_v54 = vmov 0  ;;  %8836 = vmatprep.subr.msk.bf16.mxu1 %vm13331_vm11, %v9633_v36  ;;  %v10205_v24 = vld [vmem:[#allocation4 + $0xb0] sm:$0xff] }
  0x6b   :  { %8821 = vmatpush1.bf16.msk.msra.mxu0 %vm13314_vm4, %v9617_v31  ;;  %v13323_v54 = vsel %vm10032_vm15, 4294967295, %v13322_v54  ;;  %v456_v56 = vunpack.c.0.s8 %v9968_v42  ;;  %vm13325_vm6 = vnez %v13275_v33  ;;  %vm13326_vm7 = vnez %v13277_v34 }
  0x6c   :  { %8824 = vmatprep.subr.msk.bf16.mxu0 %vm13324_vm3, %v9633_v36  ;;  %vm10050_vm9 = vcmp.ge.s32.totalorder %v478_v45, 0  ;;  %v13327_v2 = vmov 0  ;;  %vm10054_vm13 = vcmp.ge.s32.totalorder %v479_v38, 0  ;;  %v13329_v60 = vmov 0  ;;  %vm13342_vm11 = vmpackc.low %vm13326_vm7, %vm13325_vm6 }
  0x6d   :  { %v13328_v2 = vsel %vm10050_vm9, 4294967295, %v13327_v2  ;;  %v13330_v60 = vsel %vm10054_vm13, 4294967295, %v13329_v60  ;;  %v457_v3 = vunpack.c.1.s8 %v9968_v42  ;;  %v480_v59 = vunpack.c.2.s8 %v9912_v40  ;;  %8839 = vmatpush1.bf16.msk.msra.mxu1 %vm13342_vm11, %v9633_v36 }
  0x6e   :  { %vm13332_vm12 = vnez %v13305_v51  ;;  %vm10071_vm4 = vcmp.ge.s32.totalorder %v414_v48, 0  ;;  %v13333_v8 = vmov 0  ;;  %vm10075_vm13 = vcmp.ge.s32.totalorder %v415_v50, 0  ;;  %v10248_v50 = vld [vmem:[#allocation4 + $0xc8] sm:$0xff] }
  0x6f   :  { %v13334_v8 = vsel %vm10071_vm4, 4294967295, %v13333_v8  ;;  %v13335_v9 = vmov 0  ;;  %v481_v10 = vunpack.c.3.s8 %v9912_v40  ;;  %v522_v11 = vunpack.c.0.s8 %v521_v58  ;;  %vm13348_vm6 = vmpackc.low %vm13332_vm12, %vm9978_vm10 }
  0x70   :  { %v13336_v9 = vsel %vm10075_vm13, 4294967295, %v13335_v9  ;;  %v523_v13 = vunpack.c.1.s8 %v521_v58  ;;  %v458_v17 = vunpack.c.2.s8 %v9968_v42  ;;  %v459_v21 = vunpack.c.3.s8 %v9968_v42  ;;  %8854 = vmatprep.subr.msk.bf16.mxu1 %vm13348_vm6, %v9617_v31 }
  0x71   :  { %v500_v25 = vunpack.c.0.s8 %v10037_v55  ;;  %vm13339_vm3 = vnez %v13251_v15  ;;  %vm13340_vm13 = vnez %v13249_v14  ;;  %vm13343_vm9 = vnez %v13294_v32 }
  0x72   :  { %vm13341_vm4 = vmpackc.low %vm13339_vm3, %vm13340_vm13  ;;  %vm13344_vm5 = vnez %v13298_v46  ;;  %vm10105_vm15 = vcmp.ge.s32.totalorder %v456_v56, 0  ;;  %v13345_v61 = vmov 0  ;;  %v501_v14 = vunpack.c.1.s8 %v10037_v55 }
  0x73   :  { %8827 = vmatpush1.bf16.msk.msra.mxu0 %vm13341_vm4, %v9633_v36  ;;  %v13346_v61 = vsel %vm10105_vm15, 4294967295, %v13345_v61  ;;  %v524_v15 = vunpack.c.2.s8 %v521_v58  ;;  %v525_v5 = vunpack.c.3.s8 %v521_v58  ;;  %vm13347_vm13 = vmpackc.low %vm13317_vm1, %vm13316_vm14  ;;  %vm13349_vm7 = vnez %v13311_v57 }
  0x74   :  { %8842 = vmatprep.subr.msk.bf16.mxu0 %vm13347_vm13, %v9617_v31  ;;  %vm10126_vm3 = vcmp.ge.s32.totalorder %v457_v3, 0  ;;  %v13350_v26 = vmov 0  ;;  %vm10130_vm11 = vcmp.ge.s32.totalorder %v480_v59, 0  ;;  %v13352_v27 = vmov 0  ;;  %v10304_v3 = vld [vmem:[#allocation4 + $0xc0] sm:$0xff] }
  0x75   :  { %v13351_v26 = vsel %vm10126_vm3, 4294967295, %v13350_v26  ;;  %v13353_v27 = vsel %vm10130_vm11, 4294967295, %v13352_v27  ;;  %v566_v29 = vunpack.c.0.s8 %v10080_v12  ;;  %v567_v30 = vunpack.c.1.s8 %v10080_v12 }
  0x76   :  { %vm10142_vm12 = vcmp.ge.s32.totalorder %v481_v10, 0  ;;  %v13356_v6 = vmov 0  ;;  %vm10146_vm13 = vcmp.ge.s32.totalorder %v522_v11, 0  ;;  %v502_v34 = vunpack.c.2.s8 %v10037_v55 }
  0x77   :  { %v13357_v6 = vsel %vm10142_vm12, 4294967295, %v13356_v6  ;;  %v503_v35 = vunpack.c.3.s8 %v10037_v55  ;;  %vm13360_vm6 = vcmask 261120   ;;  %vm13362_vm10 = vnez %v13323_v54 }
  0x78   :  { %8147 = vmatmul.mubr.msk.f32.vlgmr.msra.gmra.mrb[4].mxu0 %vm13360_vm6, %v9763_v63  ;;  %vm13361_vm0 = vmmov %vm13360_vm6  ;;  %vm10160_vm12 = vcmp.ge.s32.totalorder %v523_v13, 0  ;;  %v13363_v37 = vmov 0  ;;  %vm10164_vm11 = vcmp.ge.s32.totalorder %v458_v17, 0  ;;  %v13365_v40 = vmov 0 }
  0x79   :  { %8148 = vmatmul.mubr.msk.f32.vlgmr.msra.gmra.mrb[4].mxu1 %vm13361_vm0, %v9763_v63  ;;  %v13364_v37 = vsel %vm10160_vm12, 4294967295, %v13363_v37  ;;  %v13366_v40 = vsel %vm10164_vm11, 4294967295, %v13365_v40  ;;  %vm10168_vm1 = vcmp.ge.s32.totalorder %v459_v21, 0  ;;  %v13367_v41 = vmov 0  ;;  %vm13374_vm11 = vmpackc.low %vm10024_vm8, %vm13349_vm7  ;;  %2338 = vmatprep.mubr.f32.mxu0 %v9355_v0  ;;  %v697_v21 = vld [vmem:[#allocation4 + $0xd8] sm:$0xff] }
  0x7a   :  { %v13368_v41 = vsel %vm10168_vm1, 4294967295, %v13367_v41  ;;  %vm10172_vm6 = vcmp.ge.s32.totalorder %v500_v25, 0  ;;  %v13369_v19 = vmov 0  ;;  %vm13371_vm0 = vnez %v13292_v28  ;;  %8857 = vmatpush1.bf16.msk.msra.mxu1 %vm13374_vm11, %v9617_v31  ;;  %vm13383_vm8 = vmpackc.low %vm13344_vm5, %vm13343_vm9  ;;  %2409 = vmatprep.mubr.f32.mxu1 %v9355_v0 }
  0x7b   :  { %v13370_v19 = vsel %vm10172_vm6, 4294967295, %v13369_v19  ;;  %vm13372_vm4 = vnez %v13287_v23  ;;  %vm13375_vm1 = vnez %v13328_v2  ;;  %vm13376_vm3 = vnez %v13330_v60  ;;  %vm13390_vm9 = vmpackc.low %vm13362_vm10, %vm10028_vm2 }
  0x7c   :  { %vm13373_vm14 = vmpackc.low %vm13371_vm0, %vm13372_vm4  ;;  %vm10192_vm15 = vcmp.ge.s32.totalorder %v501_v14, 0  ;;  %vm10196_vm12 = vcmp.ge.s32.totalorder %v524_v15, 0  ;;  %vm10200_vm4 = vcmp.ge.s32.totalorder %v525_v5, 0  ;;  %v13381_v44 = vmov 0  ;;  %8860 = vmatprep.subr.msk.bf16.mxu1 %vm13390_vm9, %v9633_v36  ;;  %v10373_v5 = vld [vmem:[#allocation4 + $0xd0] sm:$0xff] }
  0x7d   :  { %8845 = vmatpush1.bf16.msk.msra.mxu0 %vm13373_vm14, %v9617_v31  ;;  %v13382_v44 = vsel %vm10200_vm4, 4294967295, %v13381_v44  ;;  %v544_v18 = vunpack.c.0.s8 %v10136_v7  ;;  %vm13384_vm7 = vnez %v13334_v8  ;;  %vm13385_vm11 = vnez %v13336_v9 }
  0x7e   :  { %8848 = vmatprep.subr.msk.bf16.mxu0 %vm13383_vm8, %v9633_v36  ;;  %vm10218_vm0 = vcmp.ge.s32.totalorder %v566_v29, 0  ;;  %v13386_v28 = vmov 0  ;;  %vm10222_vm6 = vcmp.ge.s32.totalorder %v567_v30, 0  ;;  %v13388_v45 = vmov 0  ;;  %vm13401_vm9 = vmpackc.low %vm13385_vm11, %vm13384_vm7 }
  0x7f   :  { %v13387_v28 = vsel %vm10218_vm0, 4294967295, %v13386_v28  ;;  %v13389_v45 = vsel %vm10222_vm6, 4294967295, %v13388_v45  ;;  %v545_v38 = vunpack.c.1.s8 %v10136_v7  ;;  %v568_v32 = vunpack.c.2.s8 %v10080_v12  ;;  %8863 = vmatpush1.bf16.msk.msra.mxu1 %vm13401_vm9, %v9633_v36 }
  0x80   :  { %vm13391_vm5 = vnez %v13364_v37  ;;  %vm10239_vm14 = vcmp.ge.s32.totalorder %v502_v34, 0  ;;  %v13392_v42 = vmov 0  ;;  %vm10243_vm6 = vcmp.ge.s32.totalorder %v503_v35, 0  ;;  %v10416_v35 = vld [vmem:[#allocation4 + $0xe8] sm:$0xff] }
  0x81   :  { %v13393_v42 = vsel %vm10239_vm14, 4294967295, %v13392_v42  ;;  %v13394_v46 = vmov 0  ;;  %v569_v47 = vunpack.c.3.s8 %v10080_v12  ;;  %v610_v48 = vunpack.c.0.s8 %v609_v20  ;;  %vm13407_vm7 = vmpackc.low %vm13391_vm5, %vm10146_vm13 }
  0x82   :  { %v13395_v46 = vsel %vm10243_vm6, 4294967295, %v13394_v46  ;;  %v611_v51 = vunpack.c.1.s8 %v609_v20  ;;  %v546_v57 = vunpack.c.2.s8 %v10136_v7  ;;  %v547_v58 = vunpack.c.3.s8 %v10136_v7  ;;  %8878 = vmatprep.subr.msk.bf16.mxu1 %vm13407_vm7, %v9617_v31 }
  0x83   :  { %v588_v62 = vunpack.c.0.s8 %v10205_v24  ;;  %vm13398_vm8 = vnez %v13309_v53  ;;  %vm13399_vm6 = vnez %v13307_v52  ;;  %vm13402_vm0 = vnez %v13353_v27 }
  0x84   :  { %vm13400_vm14 = vmpackc.low %vm13398_vm8, %vm13399_vm6  ;;  %vm13403_vm2 = vnez %v13357_v6  ;;  %vm10273_vm4 = vcmp.ge.s32.totalorder %v544_v18, 0  ;;  %v13404_v49 = vmov 0  ;;  %v589_v52 = vunpack.c.1.s8 %v10205_v24 }
  0x85   :  { %8851 = vmatpush1.bf16.msk.msra.mxu0 %vm13400_vm14, %v9633_v36  ;;  %v13405_v49 = vsel %vm10273_vm4, 4294967295, %v13404_v49  ;;  %v612_v53 = vunpack.c.2.s8 %v609_v20  ;;  %v613_v54 = vunpack.c.3.s8 %v609_v20  ;;  %vm13406_vm6 = vmpackc.low %vm13376_vm3, %vm13375_vm1  ;;  %vm13408_vm11 = vnez %v13370_v19 }
  0x86   :  { %8866 = vmatprep.subr.msk.bf16.mxu0 %vm13406_vm6, %v9617_v31  ;;  %vm10294_vm8 = vcmp.ge.s32.totalorder %v545_v38, 0  ;;  %v13409_v56 = vmov 0  ;;  %vm10298_vm9 = vcmp.ge.s32.totalorder %v568_v32, 0  ;;  %v13411_v55 = vmov 0  ;;  %v10472_v38 = vld [vmem:[#allocation4 + $0xe0] sm:$0xff] }
  0x87   :  { %v13410_v56 = vsel %vm10294_vm8, 4294967295, %v13409_v56  ;;  %v13412_v55 = vsel %vm10298_vm9, 4294967295, %v13411_v55  ;;  %v654_v2 = vunpack.c.0.s8 %v10248_v50  ;;  %v655_v60 = vunpack.c.1.s8 %v10248_v50 }
  0x88   :  { %vm10310_vm5 = vcmp.ge.s32.totalorder %v569_v47, 0  ;;  %v13415_v59 = vmov 0  ;;  %vm10314_vm6 = vcmp.ge.s32.totalorder %v610_v48, 0  ;;  %v590_v9 = vunpack.c.2.s8 %v10205_v24 }
  0x89   :  { %v13416_v59 = vsel %vm10310_vm5, 4294967295, %v13415_v59  ;;  %v591_v10 = vunpack.c.3.s8 %v10205_v24  ;;  %vm13419_vm7 = vcmask 261120   ;;  %vm13421_vm13 = vnez %v13382_v44 }
  0x8a   :  { %8149 = vmatmul.mubr.msk.f32.vlgmr.msra.gmra.mrb[6].mxu0 %vm13419_vm7, %v9763_v63  ;;  %vm13420_vm10 = vmmov %vm13419_vm7  ;;  %vm10328_vm5 = vcmp.ge.s32.totalorder %v611_v51, 0  ;;  %v13422_v11 = vmov 0  ;;  %vm10332_vm9 = vcmp.ge.s32.totalorder %v546_v57, 0  ;;  %v13424_v12 = vmov 0 }
  0x8b   :  { %8150 = vmatmul.mubr.msk.f32.vlgmr.msra.gmra.mrb[6].mxu1 %vm13420_vm10, %v9763_v63  ;;  %v13423_v11 = vsel %vm10328_vm5, 4294967295, %v13422_v11  ;;  %v13425_v12 = vsel %vm10332_vm9, 4294967295, %v13424_v12  ;;  %vm10336_vm3 = vcmp.ge.s32.totalorder %v547_v58, 0  ;;  %v13426_v13 = vmov 0  ;;  %vm13433_vm9 = vmpackc.low %vm10192_vm15, %vm13408_vm11  ;;  %2480 = vmatprep.mubr.f32.mxu0 %v9355_v0  ;;  %v785_v58 = vld [vmem:[#allocation4 + $0xf8] sm:$0xff] }
  0x8c   :  { %v13427_v13 = vsel %vm10336_vm3, 4294967295, %v13426_v13  ;;  %vm10340_vm7 = vcmp.ge.s32.totalorder %v588_v62, 0  ;;  %v13428_v17 = vmov 0  ;;  %vm13430_vm10 = vnez %v13351_v26  ;;  %8881 = vmatpush1.bf16.msk.msra.mxu1 %vm13433_vm9, %v9617_v31  ;;  %vm13442_vm15 = vmpackc.low %vm13403_vm2, %vm13402_vm0  ;;  %2551 = vmatprep.mubr.f32.mxu1 %v9355_v0 }
  0x8d   :  { %v13429_v17 = vsel %vm10340_vm7, 4294967295, %v13428_v17  ;;  %vm13431_vm14 = vnez %v13346_v61  ;;  %vm13434_vm3 = vnez %v13387_v28  ;;  %vm13435_vm8 = vnez %v13389_v45  ;;  %vm13449_vm0 = vmpackc.low %vm13421_vm13, %vm10196_vm12 }
  0x8e   :  { %vm13432_vm1 = vmpackc.low %vm13430_vm10, %vm13431_vm14  ;;  %vm10360_vm4 = vcmp.ge.s32.totalorder %v589_v52, 0  ;;  %vm10364_vm5 = vcmp.ge.s32.totalorder %v612_v53, 0  ;;  %vm10368_vm14 = vcmp.ge.s32.totalorder %v613_v54, 0  ;;  %v13440_v14 = vmov 0  ;;  %8884 = vmatprep.subr.msk.bf16.mxu1 %vm13449_vm0, %v9633_v36  ;;  %v10541_v54 = vld [vmem:[#allocation4 + $0xf0] sm:$0xff] }
  0x8f   :  { %8869 = vmatpush1.bf16.msk.msra.mxu0 %vm13432_vm1, %v9617_v31  ;;  %v13441_v14 = vsel %vm10368_vm14, 4294967295, %v13440_v14  ;;  %v632_v15 = vunpack.c.0.s8 %v10304_v3  ;;  %vm13443_vm11 = vnez %v13393_v42  ;;  %vm13444_vm9 = vnez %v13395_v46 }
  0x90   :  { %8872 = vmatprep.subr.msk.bf16.mxu0 %vm13442_vm15, %v9633_v36  ;;  %vm10386_vm10 = vcmp.ge.s32.totalorder %v654_v2, 0  ;;  %v13445_v26 = vmov 0  ;;  %vm10390_vm7 = vcmp.ge.s32.totalorder %v655_v60, 0  ;;  %v13447_v29 = vmov 0  ;;  %vm13460_vm0 = vmpackc.low %vm13444_vm9, %vm13443_vm11 }
  0x91   :  { %v13446_v26 = vsel %vm10386_vm10, 4294967295, %v13445_v26  ;;  %v13448_v29 = vsel %vm10390_vm7, 4294967295, %v13447_v29  ;;  %v633_v30 = vunpack.c.1.s8 %v10304_v3  ;;  %v656_v27 = vunpack.c.2.s8 %v10248_v50  ;;  %8887 = vmatpush1.bf16.msk.msra.mxu1 %vm13460_vm0, %v9633_v36 }
  0x92   :  { %vm13450_vm2 = vnez %v13423_v11  ;;  %vm10407_vm1 = vcmp.ge.s32.totalorder %v590_v9, 0  ;;  %v13451_v7 = vmov 0  ;;  %vm10411_vm7 = vcmp.ge.s32.totalorder %v591_v10, 0  ;;  %v10584_v10 = vld [vmem:[#allocation4 + $0x108] sm:$0xff] }
  0x93   :  { %v13452_v7 = vsel %vm10407_vm1, 4294967295, %v13451_v7  ;;  %v13453_v6 = vmov 0  ;;  %v657_v33 = vunpack.c.3.s8 %v10248_v50  ;;  %v698_v34 = vunpack.c.0.s8 %v697_v21  ;;  %vm13466_vm11 = vmpackc.low %vm13450_vm2, %vm10314_vm6 }
  0x94   :  { %v13454_v6 = vsel %vm10411_vm7, 4294967295, %v13453_v6  ;;  %v699_v37 = vunpack.c.1.s8 %v697_v21  ;;  %v634_v19 = vunpack.c.2.s8 %v10304_v3  ;;  %v635_v20 = vunpack.c.3.s8 %v10304_v3  ;;  %8902 = vmatprep.subr.msk.bf16.mxu1 %vm13466_vm11, %v9617_v31 }
  0x95   :  { %v676_v22 = vunpack.c.0.s8 %v10373_v5  ;;  %vm13457_vm15 = vnez %v13368_v41  ;;  %vm13458_vm7 = vnez %v13366_v40  ;;  %vm13461_vm10 = vnez %v13412_v55 }
  0x96   :  { %vm13459_vm1 = vmpackc.low %vm13457_vm15, %vm13458_vm7  ;;  %vm13462_vm12 = vnez %v13416_v59  ;;  %vm10441_vm14 = vcmp.ge.s32.totalorder %v632_v15, 0  ;;  %v13463_v23 = vmov 0  ;;  %v677_v40 = vunpack.c.1.s8 %v10373_v5 }
  0x97   :  { %8875 = vmatpush1.bf16.msk.msra.mxu0 %vm13459_vm1, %v9633_v36  ;;  %v13464_v23 = vsel %vm10441_vm14, 4294967295, %v13463_v23  ;;  %v700_v41 = vunpack.c.2.s8 %v697_v21  ;;  %v701_v44 = vunpack.c.3.s8 %v697_v21  ;;  %vm13465_vm7 = vmpackc.low %vm13435_vm8, %vm13434_vm3  ;;  %vm13467_vm9 = vnez %v13429_v17 }
  0x98   :  { %8890 = vmatprep.subr.msk.bf16.mxu0 %vm13465_vm7, %v9617_v31  ;;  %vm10462_vm15 = vcmp.ge.s32.totalorder %v633_v30, 0  ;;  %v13468_v18 = vmov 0  ;;  %vm10466_vm0 = vcmp.ge.s32.totalorder %v656_v27, 0  ;;  %v13470_v24 = vmov 0  ;;  %v10640_v30 = vld [vmem:[#allocation4 + $0x100] sm:$0xff] }
  0x99   :  { %v13469_v18 = vsel %vm10462_vm15, 4294967295, %v13468_v18  ;;  %v13471_v24 = vsel %vm10466_vm0, 4294967295, %v13470_v24  ;;  %v742_v28 = vunpack.c.0.s8 %v10416_v35  ;;  %v743_v45 = vunpack.c.1.s8 %v10416_v35 }
  0x9a   :  { %vm10478_vm2 = vcmp.ge.s32.totalorder %v657_v33, 0  ;;  %v13474_v32 = vmov 0  ;;  %vm10482_vm7 = vcmp.ge.s32.totalorder %v698_v34, 0  ;;  %v678_v46 = vunpack.c.2.s8 %v10373_v5 }
  0x9b   :  { %v13475_v32 = vsel %vm10478_vm2, 4294967295, %v13474_v32  ;;  %v679_v47 = vunpack.c.3.s8 %v10373_v5  ;;  %vm13478_vm11 = vcmask 261120   ;;  %vm13480_vm6 = vnez %v13441_v14 }
  0x9c   :  { %8151 = vmatmul.mubr.msk.f32.vlgmr.msra.gmra.mrb[8].mxu0 %vm13478_vm11, %v9763_v63  ;;  %vm13479_vm13 = vmmov %vm13478_vm11  ;;  %vm10496_vm2 = vcmp.ge.s32.totalorder %v699_v37, 0  ;;  %v13481_v48 = vmov 0  ;;  %vm10500_vm0 = vcmp.ge.s32.totalorder %v634_v19, 0  ;;  %v13483_v50 = vmov 0 }
  0x9d   :  { %8152 = vmatmul.mubr.msk.f32.vlgmr.msra.gmra.mrb[8].mxu1 %vm13479_vm13, %v9763_v63  ;;  %v13482_v48 = vsel %vm10496_vm2, 4294967295, %v13481_v48  ;;  %v13484_v50 = vsel %vm10500_vm0, 4294967295, %v13483_v50  ;;  %vm10504_vm8 = vcmp.ge.s32.totalorder %v635_v20, 0  ;;  %v13485_v51 = vmov 0  ;;  %vm13492_vm0 = vmpackc.low %vm10360_vm4, %vm13467_vm9  ;;  %2622 = vmatprep.mubr.f32.mxu0 %v9355_v0  ;;  %v873_v20 = vld [vmem:[#allocation4 + $0x118] sm:$0xff] }
  0x9e   :  { %v13486_v51 = vsel %vm10504_vm8, 4294967295, %v13485_v51  ;;  %vm10508_vm11 = vcmp.ge.s32.totalorder %v676_v22, 0  ;;  %v13487_v57 = vmov 0  ;;  %vm13489_vm13 = vnez %v13410_v56  ;;  %8905 = vmatpush1.bf16.msk.msra.mxu1 %vm13492_vm0, %v9617_v31  ;;  %vm13501_vm4 = vmpackc.low %vm13462_vm12, %vm13461_vm10  ;;  %2693 = vmatprep.mubr.f32.mxu1 %v9355_v0 }
  0x9f   :  { %v13488_v57 = vsel %vm10508_vm11, 4294967295, %v13487_v57  ;;  %vm13490_vm1 = vnez %v13405_v49  ;;  %vm13493_vm8 = vnez %v13446_v26  ;;  %vm13494_vm15 = vnez %v13448_v29  ;;  %vm13508_vm10 = vmpackc.low %vm13480_vm6, %vm10364_vm5 }
  0xa0   :  { %vm13491_vm3 = vmpackc.low %vm13489_vm13, %vm13490_vm1  ;;  %vm10528_vm14 = vcmp.ge.s32.totalorder %v677_v40, 0  ;;  %vm10532_vm2 = vcmp.ge.s32.totalorder %v700_v41, 0  ;;  %vm10536_vm1 = vcmp.ge.s32.totalorder %v701_v44, 0  ;;  %v13499_v52 = vmov 0  ;;  %8908 = vmatprep.subr.msk.bf16.mxu1 %vm13508_vm10, %v9633_v36  ;;  %v10709_v44 = vld [vmem:[#allocation4 + $0x110] sm:$0xff] }
  0xa1   :  { %8893 = vmatpush1.bf16.msk.msra.mxu0 %vm13491_vm3, %v9617_v31  ;;  %v13500_v52 = vsel %vm10536_vm1, 4294967295, %v13499_v52  ;;  %v720_v53 = vunpack.c.0.s8 %v10472_v38  ;;  %vm13502_vm9 = vnez %v13452_v7  ;;  %vm13503_vm0 = vnez %v13454_v6 }
  0xa2   :  { %8896 = vmatprep.subr.msk.bf16.mxu0 %vm13501_vm4, %v9633_v36  ;;  %vm10554_vm13 = vcmp.ge.s32.totalorder %v742_v28, 0  ;;  %v13504_v56 = vmov 0  ;;  %vm10558_vm11 = vcmp.ge.s32.totalorder %v743_v45, 0  ;;  %v13506_v2 = vmov 0  ;;  %vm13519_vm10 = vmpackc.low %vm13503_vm0, %vm13502_vm9 }
  0xa3   :  { %v13505_v56 = vsel %vm10554_vm13, 4294967295, %v13504_v56  ;;  %v13507_v2 = vsel %vm10558_vm11, 4294967295, %v13506_v2  ;;  %v721_v60 = vunpack.c.1.s8 %v10472_v38  ;;  %v744_v55 = vunpack.c.2.s8 %v10416_v35  ;;  %8911 = vmatpush1.bf16.msk.msra.mxu1 %vm13519_vm10, %v9633_v36 }
  0xa4   :  { %vm13509_vm12 = vnez %v13482_v48  ;;  %vm10575_vm3 = vcmp.ge.s32.totalorder %v678_v46, 0  ;;  %v13510_v3 = vmov 0  ;;  %vm10579_vm11 = vcmp.ge.s32.totalorder %v679_v47, 0  ;;  %v10752_v47 = vld [vmem:[#allocation4 + $0x128] sm:$0xff] }
  0xa5   :  { %v13511_v3 = vsel %vm10575_vm3, 4294967295, %v13510_v3  ;;  %v13512_v59 = vmov 0  ;;  %v745_v8 = vunpack.c.3.s8 %v10416_v35  ;;  %v786_v9 = vunpack.c.0.s8 %v785_v58  ;;  %vm13525_vm9 = vmpackc.low %vm13509_vm12, %vm10482_vm7 }
  0xa6   :  { %v13513_v59 = vsel %vm10579_vm11, 4294967295, %v13512_v59  ;;  %v787_v11 = vunpack.c.1.s8 %v785_v58  ;;  %v722_v17 = vunpack.c.2.s8 %v10472_v38  ;;  %v723_v21 = vunpack.c.3.s8 %v10472_v38  ;;  %8926 = vmatprep.subr.msk.bf16.mxu1 %vm13525_vm9, %v9617_v31 }
  0xa7   :  { %v764_v25 = vunpack.c.0.s8 %v10541_v54  ;;  %vm13516_vm4 = vnez %v13427_v13  ;;  %vm13517_vm11 = vnez %v13425_v12  ;;  %vm13520_vm13 = vnez %v13471_v24 }
  0xa8   :  { %vm13518_vm3 = vmpackc.low %vm13516_vm4, %vm13517_vm11  ;;  %vm13521_vm5 = vnez %v13475_v32  ;;  %vm10609_vm1 = vcmp.ge.s32.totalorder %v720_v53, 0  ;;  %v13522_v61 = vmov 0  ;;  %v765_v12 = vunpack.c.1.s8 %v10541_v54 }
  0xa9   :  { %8899 = vmatpush1.bf16.msk.msra.mxu0 %vm13518_vm3, %v9633_v36  ;;  %v13523_v61 = vsel %vm10609_vm1, 4294967295, %v13522_v61  ;;  %v788_v13 = vunpack.c.2.s8 %v785_v58  ;;  %v789_v14 = vunpack.c.3.s8 %v785_v58  ;;  %vm13524_vm11 = vmpackc.low %vm13494_vm15, %vm13493_vm8  ;;  %vm13526_vm0 = vnez %v13488_v57 }
  0xaa   :  { %8914 = vmatprep.subr.msk.bf16.mxu0 %vm13524_vm11, %v9617_v31  ;;  %vm10630_vm4 = vcmp.ge.s32.totalorder %v721_v60, 0  ;;  %v13527_v15 = vmov 0  ;;  %vm10634_vm10 = vcmp.ge.s32.totalorder %v744_v55, 0  ;;  %v13529_v5 = vmov 0  ;;  %v10808_v60 = vld [vmem:[#allocation4 + $0x120] sm:$0xff] }
  0xab   :  { %v13528_v15 = vsel %vm10630_vm4, 4294967295, %v13527_v15  ;;  %v13530_v5 = vsel %vm10634_vm10, 4294967295, %v13529_v5  ;;  %v830_v26 = vunpack.c.0.s8 %v10584_v10  ;;  %v831_v29 = vunpack.c.1.s8 %v10584_v10 }
  0xac   :  { %vm10646_vm12 = vcmp.ge.s32.totalorder %v745_v8, 0  ;;  %v13533_v27 = vmov 0  ;;  %vm10650_vm11 = vcmp.ge.s32.totalorder %v786_v9, 0  ;;  %v766_v6 = vunpack.c.2.s8 %v10541_v54 }
  0xad   :  { %v13534_v27 = vsel %vm10646_vm12, 4294967295, %v13533_v27  ;;  %v767_v33 = vunpack.c.3.s8 %v10541_v54  ;;  %vm13537_vm9 = vcmask 261120   ;;  %vm13539_vm7 = vnez %v13500_v52 }
  0xae   :  { %8153 = vmatmul.mubr.msk.f32.vlgmr.msra.gmra.mrb[10].mxu0 %vm13537_vm9, %v9763_v63  ;;  %vm13538_vm6 = vmmov %vm13537_vm9  ;;  %vm10664_vm12 = vcmp.ge.s32.totalorder %v787_v11, 0  ;;  %v13540_v34 = vmov 0  ;;  %vm10668_vm10 = vcmp.ge.s32.totalorder %v722_v17, 0  ;;  %v13542_v35 = vmov 0 }
  0xaf   :  { %8154 = vmatmul.mubr.msk.f32.vlgmr.msra.gmra.mrb[10].mxu1 %vm13538_vm6, %v9763_v63  ;;  %v13541_v34 = vsel %vm10664_vm12, 4294967295, %v13540_v34  ;;  %v13543_v35 = vsel %vm10668_vm10, 4294967295, %v13542_v35  ;;  %vm10672_vm15 = vcmp.ge.s32.totalorder %v723_v21, 0  ;;  %v13544_v37 = vmov 0  ;;  %vm13551_vm10 = vmpackc.low %vm10528_vm14, %vm13526_vm0  ;;  %2764 = vmatprep.mubr.f32.mxu0 %v9355_v0  ;;  %v961_v21 = vld [vmem:[#allocation4 + $0x138] sm:$0xff] }
  0xb0   :  { %v13545_v37 = vsel %vm10672_vm15, 4294967295, %v13544_v37  ;;  %vm10676_vm9 = vcmp.ge.s32.totalorder %v764_v25, 0  ;;  %v13546_v19 = vmov 0  ;;  %vm13548_vm6 = vnez %v13469_v18  ;;  %8929 = vmatpush1.bf16.msk.msra.mxu1 %vm13551_vm10, %v9617_v31  ;;  %vm13560_vm14 = vmpackc.low %vm13521_vm5, %vm13520_vm13  ;;  %2835 = vmatprep.mubr.f32.mxu1 %v9355_v0 }
  0xb1   :  { %v13547_v19 = vsel %vm10676_vm9, 4294967295, %v13546_v19  ;;  %vm13549_vm3 = vnez %v13464_v23  ;;  %vm13552_vm15 = vnez %v13505_v56  ;;  %vm13553_vm4 = vnez %v13507_v2  ;;  %vm13567_vm13 = vmpackc.low %vm13539_vm7, %vm10532_vm2 }
  0xb2   :  { %vm13550_vm8 = vmpackc.low %vm13548_vm6, %vm13549_vm3  ;;  %vm10696_vm1 = vcmp.ge.s32.totalorder %v765_v12, 0  ;;  %vm10700_vm12 = vcmp.ge.s32.totalorder %v788_v13, 0  ;;  %vm10704_vm3 = vcmp.ge.s32.totalorder %v789_v14, 0  ;;  %v13558_v40 = vmov 0  ;;  %8932 = vmatprep.subr.msk.bf16.mxu1 %vm13567_vm13, %v9633_v36  ;;  %v10877_v14 = vld [vmem:[#allocation4 + $0x130] sm:$0xff] }
  0xb3   :  { %8917 = vmatpush1.bf16.msk.msra.mxu0 %vm13550_vm8, %v9617_v31  ;;  %v13559_v40 = vsel %vm10704_vm3, 4294967295, %v13558_v40  ;;  %v808_v41 = vunpack.c.0.s8 %v10640_v30  ;;  %vm13561_vm0 = vnez %v13511_v3  ;;  %vm13562_vm10 = vnez %v13513_v59 }
  0xb4   :  { %8920 = vmatprep.subr.msk.bf16.mxu0 %vm13560_vm14, %v9633_v36  ;;  %vm10722_vm6 = vcmp.ge.s32.totalorder %v830_v26, 0  ;;  %v13563_v18 = vmov 0  ;;  %vm10726_vm9 = vcmp.ge.s32.totalorder %v831_v29, 0  ;;  %v13565_v28 = vmov 0  ;;  %vm13578_vm13 = vmpackc.low %vm13562_vm10, %vm13561_vm0 }
  0xb5   :  { %v13564_v18 = vsel %vm10722_vm6, 4294967295, %v13563_v18  ;;  %v13566_v28 = vsel %vm10726_vm9, 4294967295, %v13565_v28  ;;  %v809_v45 = vunpack.c.1.s8 %v10640_v30  ;;  %v832_v24 = vunpack.c.2.s8 %v10584_v10  ;;  %8935 = vmatpush1.bf16.msk.msra.mxu1 %vm13578_vm13, %v9633_v36 }
  0xb6   :  { %vm13568_vm5 = vnez %v13541_v34  ;;  %vm10743_vm8 = vcmp.ge.s32.totalorder %v766_v6, 0  ;;  %v13569_v38 = vmov 0  ;;  %vm10747_vm9 = vcmp.ge.s32.totalorder %v767_v33, 0  ;;  %v10920_v33 = vld [vmem:[#allocation4 + $0x148] sm:$0xff] }
  0xb7   :  { %v13570_v38 = vsel %vm10743_vm8, 4294967295, %v13569_v38  ;;  %v13571_v32 = vmov 0  ;;  %v833_v42 = vunpack.c.3.s8 %v10584_v10  ;;  %v874_v46 = vunpack.c.0.s8 %v873_v20  ;;  %vm13584_vm0 = vmpackc.low %vm13568_vm5, %vm10650_vm11 }
  0xb8   :  { %v13572_v32 = vsel %vm10747_vm9, 4294967295, %v13571_v32  ;;  %v875_v48 = vunpack.c.1.s8 %v873_v20  ;;  %v810_v57 = vunpack.c.2.s8 %v10640_v30  ;;  %v811_v58 = vunpack.c.3.s8 %v10640_v30  ;;  %8950 = vmatprep.subr.msk.bf16.mxu1 %vm13584_vm0, %v9617_v31 }
  0xb9   :  { %v852_v62 = vunpack.c.0.s8 %v10709_v44  ;;  %vm13575_vm14 = vnez %v13486_v51  ;;  %vm13576_vm9 = vnez %v13484_v50  ;;  %vm13579_vm6 = vnez %v13530_v5 }
  0xba   :  { %vm13577_vm8 = vmpackc.low %vm13575_vm14, %vm13576_vm9  ;;  %vm13580_vm2 = vnez %v13534_v27  ;;  %vm10777_vm3 = vcmp.ge.s32.totalorder %v808_v41, 0  ;;  %v13581_v49 = vmov 0  ;;  %v853_v50 = vunpack.c.1.s8 %v10709_v44 }
  0xbb   :  { %8923 = vmatpush1.bf16.msk.msra.mxu0 %vm13577_vm8, %v9633_v36  ;;  %v13582_v49 = vsel %vm10777_vm3, 4294967295, %v13581_v49  ;;  %v876_v51 = vunpack.c.2.s8 %v873_v20  ;;  %v877_v52 = vunpack.c.3.s8 %v873_v20  ;;  %vm13583_vm9 = vmpackc.low %vm13553_vm4, %vm13552_vm15  ;;  %vm13585_vm10 = vnez %v13547_v19 }
  0xbc   :  { %8938 = vmatprep.subr.msk.bf16.mxu0 %vm13583_vm9, %v9617_v31  ;;  %vm10798_vm14 = vcmp.ge.s32.totalorder %v809_v45, 0  ;;  %v13586_v53 = vmov 0  ;;  %vm10802_vm13 = vcmp.ge.s32.totalorder %v832_v24, 0  ;;  %v13588_v54 = vmov 0  ;;  %v10976_v45 = vld [vmem:[#allocation4 + $0x140] sm:$0xff] }
  0xbd   :  { %v13587_v53 = vsel %vm10798_vm14, 4294967295, %v13586_v53  ;;  %v13589_v54 = vsel %vm10802_vm13, 4294967295, %v13588_v54  ;;  %v918_v56 = vunpack.c.0.s8 %v10752_v47  ;;  %v919_v2 = vunpack.c.1.s8 %v10752_v47 }
  0xbe   :  { %vm10814_vm5 = vcmp.ge.s32.totalorder %v833_v42, 0  ;;  %v13592_v55 = vmov 0  ;;  %vm10818_vm9 = vcmp.ge.s32.totalorder %v874_v46, 0  ;;  %v854_v59 = vunpack.c.2.s8 %v10709_v44 }
  0xbf   :  { %v13593_v55 = vsel %vm10814_vm5, 4294967295, %v13592_v55  ;;  %v855_v8 = vunpack.c.3.s8 %v10709_v44  ;;  %vm13596_vm0 = vcmask 261120   ;;  %vm13598_vm11 = vnez %v13559_v40 }
  0xc0   :  { %8155 = vmatmul.mubr.msk.f32.vlgmr.msra.gmra.mrb[12].mxu0 %vm13596_vm0, %v9763_v63  ;;  %vm13597_vm7 = vmmov %vm13596_vm0  ;;  %vm10832_vm5 = vcmp.ge.s32.totalorder %v875_v48, 0  ;;  %v13599_v9 = vmov 0  ;;  %vm10836_vm13 = vcmp.ge.s32.totalorder %v810_v57, 0  ;;  %v13601_v10 = vmov 0 }
  0xc1   :  { %8156 = vmatmul.mubr.msk.f32.vlgmr.msra.gmra.mrb[12].mxu1 %vm13597_vm7, %v9763_v63  ;;  %v13600_v9 = vsel %vm10832_vm5, 4294967295, %v13599_v9  ;;  %v13602_v10 = vsel %vm10836_vm13, 4294967295, %v13601_v10  ;;  %vm10840_vm4 = vcmp.ge.s32.totalorder %v811_v58, 0  ;;  %v13603_v11 = vmov 0  ;;  %vm13610_vm13 = vmpackc.low %vm10696_vm1, %vm13585_vm10  ;;  %2906 = vmatprep.mubr.f32.mxu0 %v9355_v0  ;;  %v1049_v58 = vld [vmem:[#allocation4 + $0x158] sm:$0xff] }
  0xc2   :  { %v13604_v11 = vsel %vm10840_vm4, 4294967295, %v13603_v11  ;;  %vm10844_vm0 = vcmp.ge.s32.totalorder %v852_v62, 0  ;;  %v13605_v17 = vmov 0  ;;  %vm13607_vm7 = vnez %v13528_v15  ;;  %8953 = vmatpush1.bf16.msk.msra.mxu1 %vm13610_vm13, %v9617_v31  ;;  %vm13619_vm1 = vmpackc.low %vm13580_vm2, %vm13579_vm6  ;;  %2977 = vmatprep.mubr.f32.mxu1 %v9355_v0 }
  0xc3   :  { %v13606_v17 = vsel %vm10844_vm0, 4294967295, %v13605_v17  ;;  %vm13608_vm8 = vnez %v13523_v61  ;;  %vm13611_vm4 = vnez %v13564_v18  ;;  %vm13612_vm14 = vnez %v13566_v28  ;;  %vm13626_vm6 = vmpackc.low %vm13598_vm11, %vm10700_vm12 }
  0xc4   :  { %vm13609_vm15 = vmpackc.low %vm13607_vm7, %vm13608_vm8  ;;  %vm10864_vm3 = vcmp.ge.s32.totalorder %v853_v50, 0  ;;  %vm10868_vm5 = vcmp.ge.s32.totalorder %v876_v51, 0  ;;  %vm10872_vm8 = vcmp.ge.s32.totalorder %v877_v52, 0  ;;  %v13617_v12 = vmov 0  ;;  %8956 = vmatprep.subr.msk.bf16.mxu1 %vm13626_vm6, %v9633_v36  ;;  %v11045_v52 = vld [vmem:[#allocation4 + $0x150] sm:$0xff] }
  0xc5   :  { %8941 = vmatpush1.bf16.msk.msra.mxu0 %vm13609_vm15, %v9617_v31  ;;  %v13618_v12 = vsel %vm10872_vm8, 4294967295, %v13617_v12  ;;  %v896_v13 = vunpack.c.0.s8 %v10808_v60  ;;  %vm13620_vm10 = vnez %v13570_v38  ;;  %vm13621_vm13 = vnez %v13572_v32 }
  0xc6   :  { %8944 = vmatprep.subr.msk.bf16.mxu0 %vm13619_vm1, %v9633_v36  ;;  %vm10890_vm7 = vcmp.ge.s32.totalorder %v918_v56, 0  ;;  %v13622_v15 = vmov 0  ;;  %vm10894_vm0 = vcmp.ge.s32.totalorder %v919_v2, 0  ;;  %v13624_v26 = vmov 0  ;;  %vm13637_vm6 = vmpackc.low %vm13621_vm13, %vm13620_vm10 }
  0xc7   :  { %v13623_v15 = vsel %vm10890_vm7, 4294967295, %v13622_v15  ;;  %v13625_v26 = vsel %vm10894_vm0, 4294967295, %v13624_v26  ;;  %v897_v29 = vunpack.c.1.s8 %v10808_v60  ;;  %v920_v5 = vunpack.c.2.s8 %v10752_v47  ;;  %8959 = vmatpush1.bf16.msk.msra.mxu1 %vm13637_vm6, %v9633_v36 }
  0xc8   :  { %vm13627_vm2 = vnez %v13600_v9  ;;  %vm10911_vm15 = vcmp.ge.s32.totalorder %v854_v59, 0  ;;  %v13628_v30 = vmov 0  ;;  %vm10915_vm0 = vcmp.ge.s32.totalorder %v855_v8, 0  ;;  %v11088_v8 = vld [vmem:[#allocation4 + $0x168] sm:$0xff] }
  0xc9   :  { %v13629_v30 = vsel %vm10911_vm15, 4294967295, %v13628_v30  ;;  %v13630_v27 = vmov 0  ;;  %v921_v7 = vunpack.c.3.s8 %v10752_v47  ;;  %v962_v6 = vunpack.c.0.s8 %v961_v21  ;;  %vm13643_vm10 = vmpackc.low %vm13627_vm2, %vm10818_vm9 }
  0xca   :  { %v13631_v27 = vsel %vm10915_vm0, 4294967295, %v13630_v27  ;;  %v963_v34 = vunpack.c.1.s8 %v961_v21  ;;  %v898_v19 = vunpack.c.2.s8 %v10808_v60  ;;  %v899_v20 = vunpack.c.3.s8 %v10808_v60  ;;  %8974 = vmatprep.subr.msk.bf16.mxu1 %vm13643_vm10, %v9617_v31 }
  0xcb   :  { %v940_v22 = vunpack.c.0.s8 %v10877_v14  ;;  %vm13634_vm1 = vnez %v13545_v37  ;;  %vm13635_vm0 = vnez %v13543_v35  ;;  %vm13638_vm7 = vnez %v13589_v54 }
  0xcc   :  { %vm13636_vm15 = vmpackc.low %vm13634_vm1, %vm13635_vm0  ;;  %vm13639_vm12 = vnez %v13593_v55  ;;  %vm10945_vm8 = vcmp.ge.s32.totalorder %v896_v13, 0  ;;  %v13640_v23 = vmov 0  ;;  %v941_v35 = vunpack.c.1.s8 %v10877_v14 }
  0xcd   :  { %8947 = vmatpush1.bf16.msk.msra.mxu0 %vm13636_vm15, %v9633_v36  ;;  %v13641_v23 = vsel %vm10945_vm8, 4294967295, %v13640_v23  ;;  %v964_v37 = vunpack.c.2.s8 %v961_v21  ;;  %v965_v40 = vunpack.c.3.s8 %v961_v21  ;;  %vm13642_vm0 = vmpackc.low %vm13612_vm14, %vm13611_vm4  ;;  %vm13644_vm13 = vnez %v13606_v17 }
  0xce   :  { %8962 = vmatprep.subr.msk.bf16.mxu0 %vm13642_vm0, %v9617_v31  ;;  %vm10966_vm1 = vcmp.ge.s32.totalorder %v897_v29, 0  ;;  %v13645_v41 = vmov 0  ;;  %vm10970_vm6 = vcmp.ge.s32.totalorder %v920_v5, 0  ;;  %v13647_v44 = vmov 0  ;;  %v11144_v29 = vld [vmem:[#allocation4 + $0x160] sm:$0xff] }
  0xcf   :  { %v13646_v41 = vsel %vm10966_vm1, 4294967295, %v13645_v41  ;;  %v13648_v44 = vsel %vm10970_vm6, 4294967295, %v13647_v44  ;;  %v1006_v18 = vunpack.c.0.s8 %v10920_v33  ;;  %v1007_v28 = vunpack.c.1.s8 %v10920_v33 }
  0xd0   :  { %vm10982_vm2 = vcmp.ge.s32.totalorder %v921_v7, 0  ;;  %v13651_v24 = vmov 0  ;;  %vm10986_vm0 = vcmp.ge.s32.totalorder %v962_v6, 0  ;;  %v942_v32 = vunpack.c.2.s8 %v10877_v14 }
  0xd1   :  { %v13652_v24 = vsel %vm10982_vm2, 4294967295, %v13651_v24  ;;  %v943_v42 = vunpack.c.3.s8 %v10877_v14  ;;  %vm13655_vm10 = vcmask 261120   ;;  %vm13657_vm9 = vnez %v13618_v12 }
  0xd2   :  { %8157 = vmatmul.mubr.msk.f32.vlgmr.msra.gmra.mrb[14].mxu0 %vm13655_vm10, %v9763_v63  ;;  %vm13656_vm11 = vmmov %vm13655_vm10  ;;  %vm11000_vm2 = vcmp.ge.s32.totalorder %v963_v34, 0  ;;  %v13658_v46 = vmov 0  ;;  %vm11004_vm6 = vcmp.ge.s32.totalorder %v898_v19, 0  ;;  %v13660_v47 = vmov 0 }
  0xd3   :  { %8158 = vmatmul.mubr.msk.f32.vlgmr.msra.gmra.mrb[14].mxu1 %vm13656_vm11, %v9763_v63  ;;  %v13659_v46 = vsel %vm11000_vm2, 4294967295, %v13658_v46  ;;  %v13661_v47 = vsel %vm11004_vm6, 4294967295, %v13660_v47  ;;  %vm11008_vm14 = vcmp.ge.s32.totalorder %v899_v20, 0  ;;  %v13662_v48 = vmov 0  ;;  %vm13669_vm6 = vmpackc.low %vm10864_vm3, %vm13644_vm13  ;;  %3048 = vmatprep.mubr.f32.mxu0 %v9355_v0 }
  0xd4   :  { %v13663_v48 = vsel %vm11008_vm14, 4294967295, %v13662_v48  ;;  %vm11012_vm10 = vcmp.ge.s32.totalorder %v940_v22, 0  ;;  %v13664_v57 = vmov 0  ;;  %vm13666_vm11 = vnez %v13587_v53  ;;  %8977 = vmatpush1.bf16.msk.msra.mxu1 %vm13669_vm6, %v9617_v31  ;;  %vm13678_vm3 = vmpackc.low %vm13639_vm12, %vm13638_vm7  ;;  %3119 = vmatprep.mubr.f32.mxu1 %v9355_v0 }
  0xd5   :  { %v13665_v57 = vsel %vm11012_vm10, 4294967295, %v13664_v57  ;;  %vm13667_vm15 = vnez %v13582_v49  ;;  %vm13670_vm14 = vnez %v13623_v15  ;;  %vm13671_vm1 = vnez %v13625_v26  ;;  %vm13685_vm7 = vmpackc.low %vm13657_vm9, %vm10868_vm5 }
  0xd6   :  { %vm13668_vm4 = vmpackc.low %vm13666_vm11, %vm13667_vm15  ;;  %vm11032_vm8 = vcmp.ge.s32.totalorder %v941_v35, 0  ;;  %vm11036_vm2 = vcmp.ge.s32.totalorder %v964_v37, 0  ;;  %vm11040_vm15 = vcmp.ge.s32.totalorder %v965_v40, 0  ;;  %v13676_v50 = vmov 0  ;;  %8980 = vmatprep.subr.msk.bf16.mxu1 %vm13685_vm7, %v9633_v36  ;;  %v1137_v35 = vld [vmem:[#allocation4 + $0x178] sm:$0xff]  ;;  %v11213_v37 = vld [vmem:[#allocation4 + $0x170] sm:$0xff] }
  0xd7   :  { %8965 = vmatpush1.bf16.msk.msra.mxu0 %vm13668_vm4, %v9617_v31  ;;  %v13677_v50 = vsel %vm11040_vm15, 4294967295, %v13676_v50  ;;  %v984_v51 = vunpack.c.0.s8 %v10976_v45  ;;  %vm13679_vm13 = vnez %v13629_v30  ;;  %vm13680_vm6 = vnez %v13631_v27  ;;  %v208_v30 = vld [vmem:[%s12960_s10 + $0x4] sm:$0x1] }
  0xd8   :  { %8968 = vmatprep.subr.msk.bf16.mxu0 %vm13678_vm3, %v9633_v36  ;;  %vm11058_vm11 = vcmp.ge.s32.totalorder %v1006_v18, 0  ;;  %v13681_v53 = vmov 0  ;;  %vm11062_vm10 = vcmp.ge.s32.totalorder %v1007_v28, 0  ;;  %v13683_v56 = vmov 0  ;;  %vm13696_vm7 = vmpackc.low %vm13680_vm6, %vm13679_vm13 }
  0xd9   :  { %v13682_v53 = vsel %vm11058_vm11, 4294967295, %v13681_v53  ;;  %v13684_v56 = vsel %vm11062_vm10, 4294967295, %v13683_v56  ;;  %v985_v2 = vunpack.c.1.s8 %v10976_v45  ;;  %v1008_v54 = vunpack.c.2.s8 %v10920_v33  ;;  %8983 = vmatpush1.bf16.msk.msra.mxu1 %vm13696_vm7, %v9633_v36 }
  0xda   :  { %vm13686_vm12 = vnez %v13659_v46  ;;  %vm11079_vm4 = vcmp.ge.s32.totalorder %v942_v32, 0  ;;  %v13687_v60 = vmov 0  ;;  %vm11083_vm10 = vcmp.ge.s32.totalorder %v943_v42, 0 }
  0xdb   :  { %v13688_v60 = vsel %vm11079_vm4, 4294967295, %v13687_v60  ;;  %v13689_v55 = vmov 0  ;;  %v1009_v3 = vunpack.c.3.s8 %v10920_v33  ;;  %v1050_v59 = vunpack.c.0.s8 %v1049_v58  ;;  %vm13702_vm13 = vmpackc.low %vm13686_vm12, %vm10986_vm0 }
  0xdc   :  { %v13690_v55 = vsel %vm11083_vm10, 4294967295, %v13689_v55  ;;  %v1051_v9 = vunpack.c.1.s8 %v1049_v58  ;;  %v986_v17 = vunpack.c.2.s8 %v10976_v45  ;;  %v987_v21 = vunpack.c.3.s8 %v10976_v45  ;;  %8998 = vmatprep.subr.msk.bf16.mxu1 %vm13702_vm13, %v9617_v31 }
  0xdd   :  { %v1028_v25 = vunpack.c.0.s8 %v11045_v52  ;;  %vm13693_vm3 = vnez %v13604_v11  ;;  %vm13694_vm10 = vnez %v13602_v10  ;;  %vm13697_vm11 = vnez %v13648_v44 }
  0xde   :  { %vm13695_vm4 = vmpackc.low %vm13693_vm3, %vm13694_vm10  ;;  %vm13698_vm5 = vnez %v13652_v24  ;;  %vm11113_vm15 = vcmp.ge.s32.totalorder %v984_v51, 0  ;;  %v13699_v61 = vmov 0  ;;  %v1029_v10 = vunpack.c.1.s8 %v11045_v52 }
  0xdf   :  { %8971 = vmatpush1.bf16.msk.msra.mxu0 %vm13695_vm4, %v9633_v36  ;;  %v13700_v61 = vsel %vm11113_vm15, 4294967295, %v13699_v61  ;;  %v1052_v11 = vunpack.c.2.s8 %v1049_v58  ;;  %v1053_v12 = vunpack.c.3.s8 %v1049_v58  ;;  %vm13701_vm10 = vmpackc.low %vm13671_vm1, %vm13670_vm14  ;;  %vm13703_vm6 = vnez %v13665_v57  ;;  %v11263_v58 = vld [vmem:[#allocation4 + $0x188] sm:$0xff] }
  0xe0   :  { %8986 = vmatprep.subr.msk.bf16.mxu0 %vm13701_vm10, %v9617_v31  ;;  %vm11134_vm3 = vcmp.ge.s32.totalorder %v985_v2, 0  ;;  %v13704_v13 = vmov 0  ;;  %vm11138_vm7 = vcmp.ge.s32.totalorder %v1008_v54, 0  ;;  %v13706_v14 = vmov 0 }
  0xe1   :  { %v13705_v13 = vsel %vm11134_vm3, 4294967295, %v13704_v13  ;;  %v13707_v14 = vsel %vm11138_vm7, 4294967295, %v13706_v14  ;;  %v1094_v15 = vunpack.c.0.s8 %v11088_v8  ;;  %v1095_v26 = vunpack.c.1.s8 %v11088_v8 }
  0xe2   :  { %vm11150_vm12 = vcmp.ge.s32.totalorder %v1009_v3, 0  ;;  %v13710_v5 = vmov 0  ;;  %vm11154_vm10 = vcmp.ge.s32.totalorder %v1050_v59, 0  ;;  %v1030_v27 = vunpack.c.2.s8 %v11045_v52  ;;  %v116_v3 = vld [vmem:[%s12960_s10] sm:$0x1] }
  0xe3   :  { %v13711_v5 = vsel %vm11150_vm12, 4294967295, %v13710_v5  ;;  %v1031_v7 = vunpack.c.3.s8 %v11045_v52  ;;  %vm13714_vm13 = vcmask 261120   ;;  %vm13716_vm0 = vnez %v13677_v50  ;;  %v11339_v59 = vld [vmem:[%s12950_s0] sm:$0x3] }
  0xe4   :  { %8159 = vmatmul.mubr.msk.f32.vlgmr.msra.gmra.mrb[16].mxu0 %vm13714_vm13, %v9763_v63  ;;  %vm13715_vm9 = vmmov %vm13714_vm13  ;;  %vm11168_vm12 = vcmp.ge.s32.totalorder %v1051_v9, 0  ;;  %v13717_v6 = vmov 0  ;;  %vm11172_vm7 = vcmp.ge.s32.totalorder %v986_v17, 0  ;;  %v13719_v33 = vmov 0 }
  0xe5   :  { %8160 = vmatmul.mubr.msk.f32.vlgmr.msra.gmra.mrb[16].mxu1 %vm13715_vm9, %v9763_v63  ;;  %v13718_v6 = vsel %vm11168_vm12, 4294967295, %v13717_v6  ;;  %v13720_v33 = vsel %vm11172_vm7, 4294967295, %v13719_v33  ;;  %vm11176_vm1 = vcmp.ge.s32.totalorder %v987_v21, 0  ;;  %v13721_v34 = vmov 0  ;;  %vm13728_vm7 = vmpackc.low %vm11032_vm8, %vm13703_vm6  ;;  %3190 = vmatprep.mubr.f32.mxu0 %v9355_v0 }
  0xe6   :  { %v13722_v34 = vsel %vm11176_vm1, 4294967295, %v13721_v34  ;;  %vm11180_vm13 = vcmp.ge.s32.totalorder %v1028_v25, 0  ;;  %v13723_v19 = vmov 0  ;;  %vm13725_vm9 = vnez %v13646_v41  ;;  %9001 = vmatpush1.bf16.msk.msra.mxu1 %vm13728_vm7, %v9617_v31  ;;  %vm13737_vm8 = vmpackc.low %vm13698_vm5, %vm13697_vm11  ;;  %3261 = vmatprep.mubr.f32.mxu1 %v9355_v0  ;;  %v142_v25 = vld [vmem:[%s12960_s10 + $0x1] sm:$0x1] }
  0xe7   :  { %v13724_v19 = vsel %vm11180_vm13, 4294967295, %v13723_v19  ;;  %vm13726_vm4 = vnez %v13641_v23  ;;  %vm13729_vm1 = vnez %v13682_v53  ;;  %vm13730_vm3 = vnez %v13684_v56  ;;  %vm13744_vm11 = vmpackc.low %vm13716_vm0, %vm11036_vm2 }
  0xe8   :  { %vm13727_vm14 = vmpackc.low %vm13725_vm9, %vm13726_vm4  ;;  %vm11200_vm13 = vcmp.ge.s32.totalorder %v1029_v10, 0  ;;  %vm11204_vm12 = vcmp.ge.s32.totalorder %v1052_v11, 0  ;;  %vm11208_vm4 = vcmp.ge.s32.totalorder %v1053_v12, 0  ;;  %v1072_v23 = vunpack.c.0.s8 %v11144_v29  ;;  %9004 = vmatprep.subr.msk.bf16.mxu1 %vm13744_vm11, %v9633_v36  ;;  %v428_v10 = vld [vmem:[%s12960_s10 + $0xe] sm:$0x1] }
  0xe9   :  { %8989 = vmatpush1.bf16.msk.msra.mxu0 %vm13727_vm14, %v9617_v31  ;;  %vm13738_vm6 = vnez %v13688_v60  ;;  %vm13739_vm7 = vnez %v13690_v55  ;;  %vm11226_vm9 = vcmp.ge.s32.totalorder %v1094_v15, 0  ;;  %v13740_v40 = vmov 0  ;;  %v11331_v55 = vld [vmem:[#allocation4 + $0x180] sm:$0xff] }
  0xea   :  { %8992 = vmatprep.subr.msk.bf16.mxu0 %vm13737_vm8, %v9633_v36  ;;  %v13741_v40 = vsel %vm11226_vm9, 4294967295, %v13740_v40  ;;  %vm11230_vm15 = vcmp.ge.s32.totalorder %v1095_v26, 0  ;;  %v13742_v41 = vmov 0  ;;  %v1073_v18 = vunpack.c.1.s8 %v11144_v29  ;;  %vm13757_vm11 = vmpackc.low %vm13739_vm7, %vm13738_vm6 }
  0xeb   :  { %v13743_v41 = vsel %vm11230_vm15, 4294967295, %v13742_v41  ;;  %v1096_v44 = vunpack.c.2.s8 %v11088_v8  ;;  %vm13745_vm5 = vnez %v13718_v6  ;;  %vm11247_vm14 = vcmp.ge.s32.totalorder %v1030_v27, 0  ;;  %9007 = vmatpush1.bf16.msk.msra.mxu1 %vm13757_vm11, %v9633_v36  ;;  %v230_v6 = vld [vmem:[%s12960_s10 + $0x5] sm:$0x1] }
  0xec   :  { %v13746_v28 = vmov 0  ;;  %vm11251_vm15 = vcmp.ge.s32.totalorder %v1031_v7, 0  ;;  %v13748_v45 = vmov 0  ;;  %v1097_v24 = vunpack.c.3.s8 %v11088_v8  ;;  %vm13763_vm6 = vmpackc.low %vm13745_vm5, %vm11154_vm10 }
  0xed   :  { %v13747_v28 = vsel %vm11247_vm14, 4294967295, %v13746_v28  ;;  %v13749_v45 = vsel %vm11251_vm15, 4294967295, %v13748_v45  ;;  %v1074_v38 = vunpack.c.2.s8 %v11144_v29  ;;  %v1075_v32 = vunpack.c.3.s8 %v11144_v29  ;;  %9022 = vmatprep.subr.msk.bf16.mxu1 %vm13763_vm6, %v9617_v31 }
  0xee   :  { %v1138_v42 = vunpack.c.0.s8 %v1137_v35  ;;  %v1139_v46 = vunpack.c.1.s8 %v1137_v35  ;;  %v1116_v57 = vunpack.c.0.s8 %v11213_v37  ;;  %vm11266_vm8 = vcmp.lt.s32.totalorder %v86_v1, 128 }
  0xef   :  { %v13752_v62 = vmov 0  ;;  %vm13754_vm15 = vnez %v13663_v48  ;;  %vm13755_vm14 = vnez %v13661_v47  ;;  %vm13758_vm2 = vnez %v13707_v14 }
  0xf0   :  { %v13753_v62 = vsel %vm11266_vm8, 4294967295, %v13752_v62  ;;  %vm13756_vm9 = vmpackc.low %vm13754_vm15, %vm13755_vm14  ;;  %vm13759_vm0 = vnez %v13711_v5  ;;  %vm11286_vm8 = vcmp.ge.s32.totalorder %v1072_v23, 0  ;;  %v13760_v1 = vmov 0  ;;  %v186_v5 = vld [vmem:[%s12960_s10 + $0x3] sm:$0x1] }
  0xf1   :  { %8995 = vmatpush1.bf16.msk.msra.mxu0 %vm13756_vm9, %v9633_v36  ;;  %v13761_v1 = vsel %vm11286_vm8, 4294967295, %v13760_v1  ;;  %v1117_v47 = vunpack.c.1.s8 %v11213_v37  ;;  %v1140_v48 = vunpack.c.2.s8 %v1137_v35  ;;  %v1141_v49 = vunpack.c.3.s8 %v1137_v35  ;;  %vm13762_vm15 = vmpackc.low %vm13730_vm3, %vm13729_vm1  ;;  %v274_v35 = vld [vmem:[%s12960_s10 + $0x7] sm:$0x1] }
  0xf2   :  { %9010 = vmatprep.subr.msk.bf16.mxu0 %vm13762_vm15, %v9617_v31  ;;  %vm13764_vm7 = vnez %v13724_v19  ;;  %vm11307_vm9 = vcmp.ge.s32.totalorder %v1073_v18, 0  ;;  %v13765_v50 = vmov 0  ;;  %vm11311_vm11 = vcmp.ge.s32.totalorder %v1096_v44, 0 }
  0xf3   :  { %v13766_v50 = vsel %vm11307_vm9, 4294967295, %v13765_v50  ;;  %v13767_v51 = vmov 0  ;;  %v1118_v52 = vunpack.c.2.s8 %v11213_v37  ;;  %v1119_v53 = vunpack.c.3.s8 %v11213_v37  ;;  %vm13788_vm9 = vmpackc.low %vm11200_vm13, %vm13764_vm7 }
  0xf4   :  { %v13768_v51 = vsel %vm11311_vm11, 4294967295, %v13767_v51  ;;  %vm11321_vm5 = vcmp.ge.s32.totalorder %v1097_v24, 0  ;;  %v13771_v56 = vmov 0  ;;  %vm11325_vm15 = vcmp.ge.s32.totalorder %v1074_v38, 0  ;;  %vm13799_vm13 = vmpackc.low %vm13759_vm0, %vm13758_vm2 }
  0xf5   :  { %v13772_v56 = vsel %vm11321_vm5, 4294967295, %v13771_v56  ;;  %v13773_v2 = vmov 0  ;;  %v1182_v54 = vunpack.c.0.s8 %v11263_v58  ;;  %v1183_v60 = vunpack.c.1.s8 %v11263_v58  ;;  %vm13806_vm2 = vmpackc.low %vm11208_vm4, %vm11204_vm12 }
  0xf6   :  { %v13774_v2 = vsel %vm11325_vm15, 4294967295, %v13773_v2  ;;  %vm13775_vm6 = vcmask 261120   ;;  %vm11349_vm15 = vcmp.ge.s32.totalorder %v1075_v32, 0  ;;  %v13777_v8 = vmov 0 }
  0xf7   :  { %8161 = vmatmul.mubr.msk.f32.vlgmr.msra.gmra.mrb[18].mxu0 %vm13775_vm6, %v11339_v59  ;;  %vm13776_vm10 = vmmov %vm13775_vm6  ;;  %v13778_v8 = vsel %vm11349_vm15, 4294967295, %v13777_v8  ;;  %vm11353_vm5 = vcmp.ge.s32.totalorder %v1138_v42, 0  ;;  %vm11357_vm11 = vcmp.ge.s32.totalorder %v1139_v46, 0  ;;  %v13781_v17 = vmov 0 }
  0xf8   :  { %8162 = vmatmul.mubr.msk.f32.vlgmr.msra.gmra.mrb[18].mxu1 %vm13776_vm10, %v11339_v59  ;;  %v13782_v17 = vsel %vm11357_vm11, 4294967295, %v13781_v17  ;;  %vm11361_vm6 = vcmp.ge.s32.totalorder %v1116_v57, 0  ;;  %v13783_v21 = vmov 0  ;;  %vm13785_vm10 = vnez %v13705_v13  ;;  %v164_v13 = vld [vmem:[%s12960_s10 + $0x2] sm:$0x1]  ;;  %3332 = vmatprep.mubr.f32.mxu0 %v9355_v0 }
  0xf9   :  { %v13784_v21 = vsel %vm11361_vm6, 4294967295, %v13783_v21  ;;  %vm13786_vm14 = vnez %v13700_v61  ;;  %9025 = vmatpush1.bf16.msk.msra.mxu1 %vm13788_vm9, %v9617_v31  ;;  %vm13789_vm6 = vnez %v13741_v40  ;;  %vm13790_vm8 = vnez %v13743_v41  ;;  %3403 = vmatprep.mubr.f32.mxu1 %v9355_v0 }
  0xfa   :  { %vm13787_vm15 = vmpackc.low %vm13785_vm10, %vm13786_vm14  ;;  %vm11384_vm1 = vcmp.ge.s32.totalorder %v1117_v47, 0  ;;  %vm11388_vm11 = vcmp.ge.s32.totalorder %v1140_v48, 0  ;;  %v13793_v61 = vmov 0  ;;  %vm11392_vm14 = vcmp.ge.s32.totalorder %v1141_v49, 0  ;;  %9028 = vmatprep.subr.msk.bf16.mxu1 %vm13806_vm2, %v9633_v36  ;;  %v714_v47 = vld [vmem:[%s12960_s10 + $0x1b] sm:$0x1] }
  0xfb   :  { %9013 = vmatpush1.bf16.msk.msra.mxu0 %vm13787_vm15, %v9617_v31  ;;  %v13794_v61 = vsel %vm11388_vm11, 4294967295, %v13793_v61  ;;  %v13795_v11 = vmov 0  ;;  %vm11396_vm15 = vcmp.ge.s32.totalorder %v1118_v52, 0  ;;  %v13797_v12 = vmov 0  ;;  %v340_v52 = vld [vmem:[%s12960_s10 + $0xa] sm:$0x1] }
  0xfc   :  { %v13796_v11 = vsel %vm11392_vm14, 4294967295, %v13795_v11  ;;  %v13798_v12 = vsel %vm11396_vm15, 4294967295, %v13797_v12  ;;  %9016 = vmatprep.subr.msk.bf16.mxu0 %vm13799_vm13, %v9633_v36  ;;  %vm13800_vm7 = vnez %v13747_v28  ;;  %vm13801_vm9 = vnez %v13749_v45 }
  0xfd   :  { %vm11414_vm3 = vcmp.ge.s32.totalorder %v1119_v53, 0  ;;  %v13802_v15 = vmov 0  ;;  %vm11418_vm15 = vcmp.ge.s32.totalorder %v1182_v54, 0  ;;  %v13804_v26 = vmov 0  ;;  %vm13813_vm13 = vmpackc.low %vm13801_vm9, %vm13800_vm7  ;;  %v736_v53 = vld [vmem:[%s12960_s10 + $0x1c] sm:$0x1] }
  0xfe   :  { %v13803_v15 = vsel %vm11414_vm3, 4294967295, %v13802_v15  ;;  %v13805_v26 = vsel %vm11418_vm15, 4294967295, %v13804_v26  ;;  %v1160_v29 = vunpack.c.0.s8 %v11331_v55  ;;  %v1161_v14 = vunpack.c.1.s8 %v11331_v55  ;;  %9031 = vmatpush1.bf16.msk.msra.mxu1 %vm13813_vm13, %v9633_v36  ;;  %vm13816_vm7 = vmpackc.low %vm13790_vm8, %vm13789_vm6 }
  0xff   :  { %vm13807_vm0 = vnez %v13782_v17  ;;  %vm11441_vm10 = vcmp.ge.s32.totalorder %v1183_v60, 0  ;;  %v13808_v27 = vmov 0  ;;  %v1184_v7 = vunpack.c.2.s8 %v11263_v58 }
 0x100   :  { %v13809_v27 = vsel %vm11441_vm10, 4294967295, %v13808_v27  ;;  %vm117_vm15 = vcmp.ge.s32.totalorder %v116_v3, 0  ;;  %vm143_vm3 = vcmp.ge.s32.totalorder %v142_v25, 0  ;;  %v1185_v19 = vunpack.c.3.s8 %v11263_v58  ;;  %v406_v25 = vld [vmem:[%s12960_s10 + $0xd] sm:$0x1] }
 0x101   :  { %v1162_v63 = vunpack.c.2.s8 %v11331_v55  ;;  %v118_v20 = vsel %vm117_vm15, %v9631_v39, 0.0  ;;  %v144_v22 = vsel %vm143_vm3, %v9631_v39, 0.0  ;;  %vm13810_vm12 = vnez %v13722_v34  ;;  %v670_v58 = vld [vmem:[%s12960_s10 + $0x19] sm:$0x1] }
 0x102   :  { %vm13811_vm4 = vnez %v13720_v33  ;;  %vm13814_vm10 = vnez %v13761_v1  ;;  %vm13815_vm15 = vnez %v13766_v50  ;;  %v119_v23 = vadd.f32 %v118_v20, %v9639_v43  ;;  %v252_v33 = vld [vmem:[%s12960_s10 + $0x6] sm:$0x1]  ;;  %v296_v50 = vld [vmem:[%s12960_s10 + $0x8] sm:$0x1]  ;;  %v692_v1 = vld [vmem:[%s12960_s10 + $0x1a] sm:$0x1] }
 0x103   :  { %vm13812_vm2 = vmpackc.low %vm13810_vm12, %vm13811_vm4  ;;  %v145_v34 = vadd.f32 %v144_v22, %v9639_v43  ;;  %vm165_vm3 = vcmp.ge.s32.totalorder %v164_v13, 0  ;;  %vm187_vm11 = vcmp.ge.s32.totalorder %v186_v5, 0  ;;  %vm13817_vm9 = vnez %v13768_v51  ;;  %v318_v51 = vld [vmem:[%s12960_s10 + $0x9] sm:$0x1] }
 0x104   :  { %9019 = vmatpush1.bf16.msk.msra.mxu0 %vm13812_vm2, %v9633_v36  ;;  %vm13818_vm13 = vnez %v13772_v56  ;;  %vm13819_vm4 = vmpackc.low %vm13807_vm0, %vm11353_vm5  ;;  %v166_v37 = vsel %vm165_vm3, %v9631_v39, 0.0  ;;  %v188_v41 = vsel %vm187_vm11, %v9631_v39, 0.0  ;;  %vm209_vm2 = vcmp.ge.s32.totalorder %v208_v30, 0  ;;  %v362_v56 = vld [vmem:[%s12960_s10 + $0xb] sm:$0x1] }
 0x105   :  { %9034 = vmatprep.subr.msk.bf16.mxu0 %vm13816_vm7, %v9617_v31  ;;  %9046 = vmatprep.subr.msk.bf16.mxu1 %vm13819_vm4, %v9617_v31  ;;  %vm231_vm14 = vcmp.ge.s32.totalorder %v230_v6, 0  ;;  %vm13820_vm8 = vnez %v13784_v21  ;;  %vm13821_vm7 = vnez %v13753_v62  ;;  %v167_v40 = vadd.f32 %v166_v37, %v9639_v43  ;;  %v538_v6 = vld [vmem:[%s12960_s10 + $0x13] sm:$0x1] }
 0x106   :  { %124 = vst.msk [vmem:[#allocation3] sm:$0x1] %vm13821_vm7, %v119_v23  ;;  %146 = vst.msk [vmem:[#allocation3 + $0x1] sm:$0x1] %vm13821_vm7, %v145_v34  ;;  %v189_v18 = vadd.f32 %v188_v41, %v9639_v43  ;;  %v210_v44 = vsel %vm209_vm2, %v9631_v39, 0.0  ;;  %v232_v28 = vsel %vm231_vm14, %v9631_v39, 0.0  ;;  %vm13824_vm0 = vnez %v13794_v61 }
 0x107   :  { %vm13822_vm11 = vcmask 261120   ;;  %vm13825_vm3 = vnez %v13796_v11  ;;  %v211_v45 = vadd.f32 %v210_v44, %v9639_v43  ;;  %v233_v24 = vadd.f32 %v232_v28, %v9639_v43  ;;  %vm13826_vm14 = vmpackc.low %vm13815_vm15, %vm13814_vm10  ;;  %168 = vst.msk [vmem:[#allocation3 + $0x2] sm:$0x1] %vm13821_vm7, %v167_v40  ;;  %v450_v11 = vld [vmem:[%s12960_s10 + $0xf] sm:$0x1] }
 0x108   :  { %8163 = vmatmul.mubr.msk.f32.vlgmr.msra.gmra.mrb[20].mxu0 %vm13822_vm11, %v11339_v59  ;;  %vm13823_vm5 = vmmov %vm13822_vm11  ;;  %vm253_vm6 = vcmp.ge.s32.totalorder %v252_v33, 0  ;;  %vm275_vm12 = vcmp.ge.s32.totalorder %v274_v35, 0  ;;  %vm13827_vm2 = vnez %v13774_v2  ;;  %vm13828_vm11 = vnez %v13778_v8  ;;  %190 = vst.msk [vmem:[#allocation3 + $0x3] sm:$0x1] %vm13821_vm7, %v189_v18  ;;  %v384_v8 = vld [vmem:[%s12960_s10 + $0xc] sm:$0x1] }
 0x109   :  { %8164 = vmatmul.mubr.msk.f32.vlgmr.msra.gmra.mrb[20].mxu1 %vm13823_vm5, %v11339_v59  ;;  %vm9051_vm4 = vmpackc.low %vm13825_vm3, %vm13824_vm0  ;;  %9037 = vmatpush1.bf16.msk.msra.mxu0 %vm13826_vm14, %v9617_v31  ;;  %v254_v38 = vsel %vm253_vm6, %v9631_v39, 0.0  ;;  %v276_v32 = vsel %vm275_vm12, %v9631_v39, 0.0  ;;  %vm13831_vm14 = vnez %v13798_v12  ;;  %vm13832_vm6 = vnez %v13803_v15  ;;  %212 = vst.msk [vmem:[#allocation3 + $0x4] sm:$0x1] %vm13821_vm7, %v211_v45  ;;  %v560_v34 = vld [vmem:[%s12960_s10 + $0x14] sm:$0x1] }
 0x10a   :  { %3474 = vmatprep.mubr.f32.mxu0 %v9355_v0  ;;  %vm13829_vm10 = vmpackc.low %vm13818_vm13, %vm13817_vm9  ;;  %v1163_v42 = vunpack.c.3.s8 %v11331_v55  ;;  %234 = vst.msk [vmem:[#allocation3 + $0x5] sm:$0x1] %vm13821_vm7, %v233_v24  ;;  %v255_v46 = vadd.f32 %v254_v38, %v9639_v43  ;;  %v277_v57 = vadd.f32 %v276_v32, %v9639_v43  ;;  %3545 = vmatprep.mubr.f32.mxu1 %v9355_v0  ;;  %vm13834_vm9 = vnez %v13809_v27  ;;  %v1203_v55 = vld [vmem:[#allocation7] sm:$0xff]  ;;  %v1205_v27 = vld [vmem:[#allocation7 + $0x10] sm:$0xff] }
 0x10b   :  { %9040 = vmatprep.subr.msk.bf16.mxu0 %vm13829_vm10, %v9633_v36  ;;  %vm13830_vm15 = vmpackc.low %vm11384_vm1, %vm13820_vm8  ;;  %vm13833_vm1 = vnez %v13805_v26  ;;  %vm11570_vm12 = vcmp.ge.s32.totalorder %v1160_v29, 0  ;;  %vm11576_vm8 = vcmp.ge.s32.totalorder %v1161_v14, 0  ;;  %vm11580_vm0 = vcmp.ge.s32.totalorder %v1184_v7, 0  ;;  %v11690_v26 = vld [vmem:[%s12953_s3] sm:$0xff]  ;;  %v516_v7 = vld [vmem:[%s12960_s10 + $0x12] sm:$0x1] }
 0x10c   :  { %9049 = vmatpush1.bf16.msk.msra.mxu1 %vm13830_vm15, %v9617_v31  ;;  %vm9054_vm5 = vmpackc.low %vm13832_vm6, %vm13831_vm14  ;;  %vm11584_vm3 = vcmp.ge.s32.totalorder %v1185_v19, 0  ;;  %256 = vst.msk [vmem:[#allocation3 + $0x6] sm:$0x1] %vm13821_vm7, %v255_v46  ;;  %vm297_vm15 = vcmp.ge.s32.totalorder %v296_v50, 0  ;;  %vm363_vm14 = vcmp.ge.s32.totalorder %v362_v56, 0  ;;  %vm13848_vm6 = vcmask 261120  }
 0x10d   :  { %9052 = vmatprep.subr.msk.bf16.mxu1 %vm9051_vm4, %v9633_v36  ;;  %vm9057_vm13 = vmpackc.low %vm13834_vm9, %vm13833_vm1  ;;  %vm11588_vm4 = vcmp.ge.s32.totalorder %v1162_v63, 0  ;;  %278 = vst.msk [vmem:[#allocation3 + $0x7] sm:$0x1] %vm13821_vm7, %v277_v57  ;;  %vm319_vm1 = vcmp.ge.s32.totalorder %v318_v51, 0  ;;  %vm341_vm9 = vcmp.ge.s32.totalorder %v340_v52, 0  ;;  %v298_v2 = vsel %vm297_vm15, %v9631_v39, 0.0 }
 0x10e   :  { %vm13845_vm10 = vmpackc.low %vm13828_vm11, %vm13827_vm2  ;;  %vm11622_vm11 = vcmp.ge.s32.totalorder %v1163_v42, 0  ;;  %v320_v54 = vsel %vm319_vm1, %v9631_v39, 0.0  ;;  %v342_v60 = vsel %vm341_vm9, %v9631_v39, 0.0  ;;  %v299_v3 = vadd.f32 %v298_v2, %v9639_v43  ;;  %v582_v33 = vld [vmem:[%s12960_s10 + $0x15] sm:$0x1] }
 0x10f   :  { %9043 = vmatpush1.bf16.msk.msra.mxu0 %vm13845_vm10, %v9633_v36  ;;  %vm9060_vm2 = vmpackc.low %vm11576_vm8, %vm11570_vm12  ;;  %v321_v9 = vadd.f32 %v320_v54, %v9639_v43  ;;  %v343_v17 = vadd.f32 %v342_v60, %v9639_v43  ;;  %v364_v21 = vsel %vm363_vm14, %v9631_v39, 0.0  ;;  %vm385_vm10 = vcmp.ge.s32.totalorder %v384_v8, 0  ;;  %v604_v35 = vld [vmem:[%s12960_s10 + $0x16] sm:$0x1]  ;;  %v626_v40 = vld [vmem:[%s12960_s10 + $0x17] sm:$0x1] }
 0x110   :  { %9055 = vmatpush1.bf16.msk.msra.mxu1 %vm9054_vm5, %v9633_v36  ;;  %9058 = vmatprep.subr.msk.bf16.mxu0 %vm9057_vm13, %v9617_v31  ;;  %vm9063_vm5 = vmpackc.low %vm11584_vm3, %vm11580_vm0  ;;  %300 = vst.msk [vmem:[#allocation3 + $0x8] sm:$0x1] %vm13821_vm7, %v299_v3  ;;  %v386_v61 = vsel %vm385_vm10, %v9631_v39, 0.0  ;;  %vm407_vm8 = vcmp.ge.s32.totalorder %v406_v25, 0  ;;  %vm9356_vm0 = vmmov 0   ;;  %vm451_vm3 = vcmp.ge.s32.totalorder %v450_v11, 0 }
 0x111   :  { %8518 = vmatprep.subr.mxu1 %v9355_v0  ;;  %vm13849_vm13 = vmmov %vm13848_vm6  ;;  %322 = vst.msk [vmem:[#allocation3 + $0x9] sm:$0x1] %vm13821_vm7, %v321_v9  ;;  %v387_v12 = vadd.f32 %v386_v61, %v9639_v43  ;;  %v408_v13 = vsel %vm407_vm8, %v9631_v39, 0.0  ;;  %vm1253_vm15 = vcmp.ge.s32.totalorder %v1203_v55, 0  ;;  %v452_v5 = vsel %vm451_vm3, %v9631_v39, 0.0 }
 0x112   :  { %8165 = vmatmul.mubr.msk.f32.vlgmr.msra.gmra.mrb[22].mxu0 %vm13848_vm6, %v11339_v59  ;;  %vm9066_vm12 = vmpackc.low %vm11622_vm11, %vm11588_vm4  ;;  %344 = vst.msk [vmem:[#allocation3 + $0xa] sm:$0x1] %vm13821_vm7, %v343_v17  ;;  %v409_v29 = vadd.f32 %v408_v13, %v9639_v43  ;;  %v453_v30 = vadd.f32 %v452_v5, %v9639_v43  ;;  %vm1255_vm4 = vcmp.ge.s32.totalorder %v1205_v27, 0  ;;  %vm539_vm14 = vcmp.ge.s32.totalorder %v538_v6, 0  ;;  %v648_v57 = vld [vmem:[%s12960_s10 + $0x18] sm:$0x1] }
 0x113   :  { %8166 = vmatmul.mubr.msk.f32.vlgmr.msra.gmra.mrb[22].mxu1 %vm13849_vm13, %v11339_v59  ;;  %9061 = vmatpush1.bf16.msk.msra.mxu0 %vm9060_vm2, %v9617_v31  ;;  %v365_v31 = vadd.f32 %v364_v21, %v9639_v43  ;;  %vm429_vm2 = vcmp.ge.s32.totalorder %v428_v10, 0  ;;  %388 = vst.msk [vmem:[#allocation3 + $0xc] sm:$0x1] %vm13821_vm7, %v387_v12  ;;  %vm13850_vm1 = vmmov %vm13848_vm6  ;;  %v540_v41 = vsel %vm539_vm14, %v9631_v39, 0.0  ;;  %vm561_vm6 = vcmp.ge.s32.totalorder %v560_v34, 0 }
 0x114   :  { %9064 = vmatprep.subr.msk.bf16.mxu0 %vm9063_vm5, %v9633_v36  ;;  %3616 = vmatprep.mubr.f32.mxu0 %v9355_v0  ;;  %v430_v15 = vsel %vm429_vm2, %v9631_v39, 0.0  ;;  %410 = vst.msk [vmem:[#allocation3 + $0xd] sm:$0x1] %vm13821_vm7, %v409_v29  ;;  %454 = vst.msk [vmem:[#allocation3 + $0xf] sm:$0x1] %vm13821_vm7, %v453_v30  ;;  %vm517_vm5 = vcmp.ge.s32.totalorder %v516_v7, 0  ;;  %v541_v18 = vadd.f32 %v540_v41, %v9639_v43 }
 0x115   :  { %8520 = vmatprep.mubr.msk.f32.mxu1 %vm9356_vm0, %v9355_v0  ;;  %366 = vst.msk [vmem:[#allocation3 + $0xb] sm:$0x1] %vm13821_vm7, %v365_v31  ;;  %v431_v14 = vadd.f32 %v430_v15, %v9639_v43  ;;  %v518_v20 = vsel %vm517_vm5, %v9631_v39, 0.0  ;;  %v562_v44 = vsel %vm561_vm6, %v9631_v39, 0.0  ;;  %vm583_vm13 = vcmp.ge.s32.totalorder %v582_v33, 0 }
 0x116   :  { %v519_v37 = vadd.f32 %v518_v20, %v9639_v43  ;;  %vm605_vm10 = vcmp.ge.s32.totalorder %v604_v35, 0  ;;  %v563_v28 = vadd.f32 %v562_v44, %v9639_v43  ;;  %v584_v45 = vsel %vm583_vm13, %v9631_v39, 0.0  ;;  %542 = vst.msk [vmem:[#allocation3 + $0x13] sm:$0x1] %vm13821_vm7, %v541_v18  ;;  %v758_v56 = vld [vmem:[%s12960_s10 + $0x1d] sm:$0x1] }
 0x117   :  { %9067 = vmatpush1.bf16.msk.msra.mxu0 %vm9066_vm12, %v9633_v36  ;;  %432 = vst.msk [vmem:[#allocation3 + $0xe] sm:$0x1] %vm13821_vm7, %v431_v14  ;;  %v472_v36 = vld [vmem:[%s12960_s10 + $0x10] sm:$0x1]  ;;  %v585_v24 = vadd.f32 %v584_v45, %v9639_v43  ;;  %v606_v38 = vsel %vm605_vm10, %v9631_v39, 0.0  ;;  %vm627_vm12 = vcmp.ge.s32.totalorder %v626_v40, 0 }
 0x118   :  { %8528 = vmatprep.subr.mxu0 %v9355_v0  ;;  %vm473_vm11 = vcmp.ge.s32.totalorder %v472_v36, 0  ;;  %520 = vst.msk [vmem:[#allocation3 + $0x12] sm:$0x1] %vm13821_vm7, %v519_v37  ;;  %564 = vst.msk [vmem:[#allocation3 + $0x14] sm:$0x1] %vm13821_vm7, %v563_v28  ;;  %v607_v32 = vadd.f32 %v606_v38, %v9639_v43  ;;  %v628_v42 = vsel %vm627_vm12, %v9631_v39, 0.0 }
 0x119   :  { %8519 = vmatpush3.xpose.msk.msra.mxu1 %vm1253_vm15, %v11690_v26  ;;  %v474_v19 = vsel %vm473_vm11, %v9631_v39, 0.0  ;;  %586 = vst.msk [vmem:[#allocation3 + $0x15] sm:$0x1] %vm13821_vm7, %v585_v24  ;;  %v629_v46 = vadd.f32 %v628_v42, %v9639_v43  ;;  %vm649_vm8 = vcmp.ge.s32.totalorder %v648_v57, 0  ;;  %vm671_vm2 = vcmp.ge.s32.totalorder %v670_v58, 0 }
 0x11a   :  { %8167 = vmatmul.mubr.msk.f32.vlgmr.msra.gmra.mrb[24].mxu0 %vm13850_vm1, %v11339_v59  ;;  %8523 = vmatprep.subr.mxu1 %v9355_v0  ;;  %v494_v59 = vld [vmem:[%s12960_s10 + $0x11] sm:$0x1]  ;;  %v475_v22 = vadd.f32 %v474_v19, %v9639_v43  ;;  %608 = vst.msk [vmem:[#allocation3 + $0x16] sm:$0x1] %vm13821_vm7, %v607_v32  ;;  %vm693_vm3 = vcmp.ge.s32.totalorder %v692_v1, 0  ;;  %v650_v48 = vsel %vm649_vm8, %v9631_v39, 0.0 }
 0x11b   :  { %8530 = vmatprep.mubr.msk.f32.mxu0 %vm9356_vm0, %v9355_v0  ;;  %vm495_vm9 = vcmp.ge.s32.totalorder %v494_v59, 0  ;;  %630 = vst.msk [vmem:[#allocation3 + $0x17] sm:$0x1] %vm13821_vm7, %v629_v46  ;;  %v672_v49 = vsel %vm671_vm2, %v9631_v39, 0.0  ;;  %v694_v50 = vsel %vm693_vm3, %v9631_v39, 0.0  ;;  %vm715_vm15 = vcmp.ge.s32.totalorder %v714_v47, 0 }
 0x11c   :  { %v496_v63 = vsel %vm495_vm9, %v9631_v39, 0.0  ;;  %476 = vst.msk [vmem:[#allocation3 + $0x10] sm:$0x1] %vm13821_vm7, %v475_v22  ;;  %v651_v51 = vadd.f32 %v650_v48, %v9639_v43  ;;  %v673_v52 = vadd.f32 %v672_v49, %v9639_v43  ;;  %v780_v2 = vld [vmem:[%s12960_s10 + $0x1e] sm:$0x1]  ;;  %v695_v54 = vadd.f32 %v694_v50, %v9639_v43 }
 0x11d   :  { %v497_v23 = vadd.f32 %v496_v63, %v9639_v43  ;;  %v716_v60 = vsel %vm715_vm15, %v9631_v39, 0.0  ;;  %vm737_vm1 = vcmp.ge.s32.totalorder %v736_v53, 0  ;;  %v802_v55 = vld [vmem:[%s12960_s10 + $0x1f] sm:$0x1]  ;;  %vm781_vm11 = vcmp.ge.s32.totalorder %v780_v2, 0 }
 0x11e   :  { %652 = vst.msk [vmem:[#allocation3 + $0x18] sm:$0x1] %vm13821_vm7, %v651_v51  ;;  %674 = vst.msk [vmem:[#allocation3 + $0x19] sm:$0x1] %vm13821_vm7, %v673_v52  ;;  %v717_v3 = vadd.f32 %v716_v60, %v9639_v43  ;;  %v738_v8 = vsel %vm737_vm1, %v9631_v39, 0.0  ;;  %v782_v25 = vsel %vm781_vm11, %v9631_v39, 0.0 }
 0x11f   :  { %498 = vst.msk [vmem:[#allocation3 + $0x11] sm:$0x1] %vm13821_vm7, %v497_v23  ;;  %696 = vst.msk [vmem:[#allocation3 + $0x1a] sm:$0x1] %vm13821_vm7, %v695_v54  ;;  %v739_v9 = vadd.f32 %v738_v8, %v9639_v43  ;;  %vm803_vm9 = vcmp.ge.s32.totalorder %v802_v55, 0  ;;  %v783_v10 = vadd.f32 %v782_v25, %v9639_v43 }
 0x120   :  { %8529 = vmatpush3.xpose.msk.msra.mxu0 %vm1255_vm4, %v11690_v26  ;;  %vm759_vm4 = vcmp.ge.s32.totalorder %v758_v56, 0  ;;  %718 = vst.msk [vmem:[#allocation3 + $0x1b] sm:$0x1] %vm13821_vm7, %v717_v3  ;;  %v804_v31 = vsel %vm803_vm9, %v9631_v39, 0.0  ;;  %v824_v11 = vld [vmem:[%s12960_s10 + $0x20] sm:$0x1] }
 0x121   :  { %8538 = vmatprep.subr.mxu0 %v9355_v0  ;;  %v760_v17 = vsel %vm759_vm4, %v9631_v39, 0.0  ;;  %740 = vst.msk [vmem:[#allocation3 + $0x1c] sm:$0x1] %vm13821_vm7, %v739_v9  ;;  %v805_v61 = vadd.f32 %v804_v31, %v9639_v43  ;;  %784 = vst.msk [vmem:[#allocation3 + $0x1e] sm:$0x1] %vm13821_vm7, %v783_v10  ;;  %vm825_vm5 = vcmp.ge.s32.totalorder %v824_v11, 0 }
 0x122   :  { %v761_v21 = vadd.f32 %v760_v17, %v9639_v43  ;;  %v846_v12 = vld [vmem:[%s12960_s10 + $0x21] sm:$0x1]  ;;  %v868_v13 = vld [vmem:[%s12960_s10 + $0x22] sm:$0x1]  ;;  %v890_v15 = vld [vmem:[%s12960_s10 + $0x23] sm:$0x1] }
 0x123   :  { %806 = vst.msk [vmem:[#allocation3 + $0x1f] sm:$0x1] %vm13821_vm7, %v805_v61  ;;  %vm847_vm14 = vcmp.ge.s32.totalorder %v846_v12, 0  ;;  %vm869_vm6 = vcmp.ge.s32.totalorder %v868_v13, 0  ;;  %v826_v29 = vsel %vm825_vm5, %v9631_v39, 0.0  ;;  %vm891_vm13 = vcmp.ge.s32.totalorder %v890_v15, 0 }
 0x124   :  { %762 = vst.msk [vmem:[#allocation3 + $0x1d] sm:$0x1] %vm13821_vm7, %v761_v21  ;;  %v848_v14 = vsel %vm847_vm14, %v9631_v39, 0.0  ;;  %v870_v5 = vsel %vm869_vm6, %v9631_v39, 0.0  ;;  %v827_v30 = vadd.f32 %v826_v29, %v9639_v43  ;;  %v912_v36 = vld [vmem:[%s12960_s10 + $0x24] sm:$0x1] }
 0x125   :  { %v849_v27 = vadd.f32 %v848_v14, %v9639_v43  ;;  %v934_v59 = vld [vmem:[%s12960_s10 + $0x25] sm:$0x1]  ;;  %v956_v7 = vld [vmem:[%s12960_s10 + $0x26] sm:$0x1]  ;;  %v871_v6 = vadd.f32 %v870_v5, %v9639_v43  ;;  %v892_v19 = vsel %vm891_vm13, %v9631_v39, 0.0  ;;  %vm913_vm10 = vcmp.ge.s32.totalorder %v912_v36, 0 }
 0x126   :  { %828 = vst.msk [vmem:[#allocation3 + $0x20] sm:$0x1] %vm13821_vm7, %v827_v30  ;;  %v978_v63 = vld [vmem:[%s12960_s10 + $0x27] sm:$0x1]  ;;  %v893_v20 = vadd.f32 %v892_v19, %v9639_v43  ;;  %v914_v22 = vsel %vm913_vm10, %v9631_v39, 0.0  ;;  %vm935_vm12 = vcmp.ge.s32.totalorder %v934_v59, 0 }
 0x127   :  { %850 = vst.msk [vmem:[#allocation3 + $0x21] sm:$0x1] %vm13821_vm7, %v849_v27  ;;  %vm957_vm8 = vcmp.ge.s32.totalorder %v956_v7, 0  ;;  %872 = vst.msk [vmem:[#allocation3 + $0x22] sm:$0x1] %vm13821_vm7, %v871_v6  ;;  %v915_v23 = vadd.f32 %v914_v22, %v9639_v43  ;;  %v936_v34 = vsel %vm935_vm12, %v9631_v39, 0.0 }
 0x128   :  { %894 = vst.msk [vmem:[#allocation3 + $0x23] sm:$0x1] %vm13821_vm7, %v893_v20  ;;  %v937_v33 = vadd.f32 %v936_v34, %v9639_v43  ;;  %v958_v35 = vsel %vm957_vm8, %v9631_v39, 0.0  ;;  %vm979_vm2 = vcmp.ge.s32.totalorder %v978_v63, 0  ;;  %v1000_v18 = vld [vmem:[%s12960_s10 + $0x28] sm:$0x1] }
 0x129   :  { %916 = vst.msk [vmem:[#allocation3 + $0x24] sm:$0x1] %vm13821_vm7, %v915_v23  ;;  %v959_v37 = vadd.f32 %v958_v35, %v9639_v43  ;;  %v980_v41 = vsel %vm979_vm2, %v9631_v39, 0.0  ;;  %v1022_v44 = vld [vmem:[%s12960_s10 + $0x29] sm:$0x1]  ;;  %vm1001_vm3 = vcmp.ge.s32.totalorder %v1000_v18, 0 }
 0x12a   :  { %938 = vst.msk [vmem:[#allocation3 + $0x25] sm:$0x1] %vm13821_vm7, %v937_v33  ;;  %v981_v40 = vadd.f32 %v980_v41, %v9639_v43  ;;  %v1044_v28 = vld [vmem:[%s12960_s10 + $0x2a] sm:$0x1]  ;;  %vm1023_vm15 = vcmp.ge.s32.totalorder %v1022_v44, 0  ;;  %v1002_v24 = vsel %vm1001_vm3, %v9631_v39, 0.0 }
 0x12b   :  { %960 = vst.msk [vmem:[#allocation3 + $0x26] sm:$0x1] %vm13821_vm7, %v959_v37  ;;  %vm1045_vm1 = vcmp.ge.s32.totalorder %v1044_v28, 0  ;;  %v1066_v45 = vld [vmem:[%s12960_s10 + $0x2b] sm:$0x1]  ;;  %v1024_v38 = vsel %vm1023_vm15, %v9631_v39, 0.0  ;;  %v1003_v42 = vadd.f32 %v1002_v24, %v9639_v43 }
 0x12c   :  { %982 = vst.msk [vmem:[#allocation3 + $0x27] sm:$0x1] %vm13821_vm7, %v981_v40  ;;  %v1046_v32 = vsel %vm1045_vm1, %v9631_v39, 0.0  ;;  %vm1067_vm4 = vcmp.ge.s32.totalorder %v1066_v45, 0  ;;  %v1025_v46 = vadd.f32 %v1024_v38, %v9639_v43  ;;  %v1088_v57 = vld [vmem:[%s12960_s10 + $0x2c] sm:$0x1] }
 0x12d   :  { %v1110_v58 = vld [vmem:[%s12960_s10 + $0x2d] sm:$0x1]  ;;  %v1132_v1 = vld [vmem:[%s12960_s10 + $0x2e] sm:$0x1]  ;;  %1004 = vst.msk [vmem:[#allocation3 + $0x28] sm:$0x1] %vm13821_vm7, %v1003_v42  ;;  %v1047_v47 = vadd.f32 %v1046_v32, %v9639_v43 }
 0x12e   :  { %1026 = vst.msk [vmem:[#allocation3 + $0x29] sm:$0x1] %vm13821_vm7, %v1025_v46  ;;  %v1068_v48 = vsel %vm1067_vm4, %v9631_v39, 0.0  ;;  %vm1089_vm11 = vcmp.ge.s32.totalorder %v1088_v57, 0  ;;  %v1154_v49 = vld [vmem:[%s12960_s10 + $0x2f] sm:$0x1] }
 0x12f   :  { %v1069_v50 = vadd.f32 %v1068_v48, %v9639_v43  ;;  %v1090_v51 = vsel %vm1089_vm11, %v9631_v39, 0.0  ;;  %vm1111_vm9 = vcmp.ge.s32.totalorder %v1110_v58, 0  ;;  %vm1133_vm5 = vcmp.ge.s32.totalorder %v1132_v1, 0  ;;  %1048 = vst.msk [vmem:[#allocation3 + $0x2a] sm:$0x1] %vm13821_vm7, %v1047_v47  ;;  %v11962_v31 = vld [vmem:[#allocation3] sm:$0xff] }
 0x130   :  { %v1091_v52 = vadd.f32 %v1090_v51, %v9639_v43  ;;  %v1112_v53 = vsel %vm1111_vm9, %v9631_v39, 0.0  ;;  %v1134_v2 = vsel %vm1133_vm5, %v9631_v39, 0.0  ;;  %vm1155_vm14 = vcmp.ge.s32.totalorder %v1154_v49, 0  ;;  %v1176_v3 = vld [vmem:[%s12960_s10 + $0x30] sm:$0x1]  ;;  %v1914_v12 = vpop.f32.mrb[0].mxu0 }
 0x131   :  { %1070 = vst.msk [vmem:[#allocation3 + $0x2b] sm:$0x1] %vm13821_vm7, %v1069_v50  ;;  %v1113_v56 = vadd.f32 %v1112_v53, %v9639_v43  ;;  %v1135_v54 = vadd.f32 %v1134_v2, %v9639_v43  ;;  %v1156_v60 = vsel %vm1155_vm14, %v9631_v39, 0.0  ;;  %v1198_v8 = vld [vmem:[%s12960_s10 + $0x31] sm:$0x1]  ;;  %vm1177_vm6 = vcmp.ge.s32.totalorder %v1176_v3, 0 }
 0x132   :  { %1092 = vst.msk [vmem:[#allocation3 + $0x2c] sm:$0x1] %vm13821_vm7, %v1091_v52  ;;  %v1157_v55 = vadd.f32 %v1156_v60, %v9639_v43  ;;  %vm1199_vm13 = vcmp.ge.s32.totalorder %v1198_v8, 0  ;;  %v1178_v9 = vsel %vm1177_vm6, %v9631_v39, 0.0  ;;  %v11960_v10 = vsub.s32 2, %v9465_v4  ;;  %v1985_v13 = vpop.f32.mrb[0].mxu1 }
 0x133   :  { %1114 = vst.msk [vmem:[#allocation3 + $0x2d] sm:$0x1] %vm13821_vm7, %v1113_v56  ;;  %1136 = vst.msk [vmem:[#allocation3 + $0x2e] sm:$0x1] %vm13821_vm7, %v1135_v54  ;;  %v1200_v17 = vsel %vm1199_vm13, %v9631_v39, 0.0  ;;  %v1179_v21 = vadd.f32 %v1178_v9, %v9639_v43  ;;  %v11965_v61 = vsub.s32 1, %v9465_v4  ;;  %v1597_v39 = vrot.slane %v11962_v31, %v9468_v16 }
 0x134   :  { %1158 = vst.msk [vmem:[#allocation3 + $0x2f] sm:$0x1] %vm13821_vm7, %v1157_v55  ;;  %v1201_v25 = vadd.f32 %v1200_v17, %v9639_v43  ;;  %v1605_v43 = vrot.slane %v11962_v31, %v11960_v10  ;;  %v11972_v11 = vsub.s32 3, %v9465_v4  ;;  %v1204_v15 = vld [vmem:[#allocation7 + $0x8] sm:$0xff]  ;;  %v11977_v29 = vsub.s32 4, %v9465_v4  ;;  %v1916_v30 = vpop.f32.mrb[1].mxu0 }
 0x135   :  { %1180 = vst.msk [vmem:[#allocation3 + $0x30] sm:$0x1] %vm13821_vm7, %v1179_v21  ;;  %v1601_v62 = vrot.slane %v11962_v31, %v11965_v61  ;;  %v1915_v14 = vadd.f32 %v1914_v12, %v1597_v39  ;;  %v1987_v36 = vpop.f32.mrb[1].mxu1  ;;  %v1207_v59 = vld [vmem:[#allocation7 + $0x20] sm:$0xff]  ;;  %v11982_v7 = vsub.s32 6, %v9465_v4  ;;  %v11985_v6 = vsub.s32 5, %v9465_v4 }
 0x136   :  { %1202 = vst.msk [vmem:[#allocation3 + $0x31] sm:$0x1] %vm13821_vm7, %v1201_v25  ;;  %v1986_v5 = vadd.f32 %v1985_v13, %v1605_v43  ;;  %v1609_v27 = vrot.slane %v11962_v31, %v11972_v11  ;;  %vm1254_vm7 = vcmp.ge.s32.totalorder %v1204_v15, 0  ;;  %v1206_v22 = vld [vmem:[#allocation7 + $0x18] sm:$0xff]  ;;  %vm1257_vm10 = vcmp.ge.s32.totalorder %v1207_v59, 0  ;;  %v1209_v44 = vld [vmem:[#allocation7 + $0x30] sm:$0xff] }
 0x137   :  { %v3623_v19 = vmax.f32 %v1915_v14, 0.0  ;;  %v1917_v20 = vadd.f32 %v1916_v30, %v1601_v62  ;;  %v1613_v34 = vrot.slane %v11962_v31, %v11977_v29  ;;  %v1621_v33 = vrot.slane %v11962_v31, %v11982_v7  ;;  %v12006_v46 = vld [vmem:[#allocation3 + $0x8] sm:$0xff]  ;;  %v1210_v47 = vld [vmem:[#allocation7 + $0x38] sm:$0xff]  ;;  %v1213_v60 = vld [vmem:[#allocation7 + $0x50] sm:$0xff] }
 0x138   :  { %v3625_v63 = vmax.f32 %v1986_v5, 0.0  ;;  %v1988_v23 = vadd.f32 %v1987_v36, %v1609_v27  ;;  %v11992_v35 = vsub.s32 7, %v9465_v4  ;;  %v1617_v37 = vrot.slane %v11962_v31, %v11985_v6  ;;  %v1208_v4 = vld [vmem:[#allocation7 + $0x28] sm:$0xff]  ;;  %v1211_v48 = vld [vmem:[#allocation7 + $0x40] sm:$0xff]  ;;  %v1214_v43 = vld [vmem:[#allocation7 + $0x58] sm:$0xff] }
 0x139   :  { %8521 = vmatmul.mubr.f32.vlgmr.msra.gmra.mrb[24].mxu1 %v3623_v19  ;;  %v3624_v41 = vmax.f32 %v1917_v20, 0.0  ;;  %vm1256_vm12 = vcmp.ge.s32.totalorder %v1206_v22, 0  ;;  %v2056_v40 = vpop.f32.mrb[2].mxu0  ;;  %vm1258_vm8 = vcmp.ge.s32.totalorder %v1208_v4, 0  ;;  %vm1259_vm2 = vcmp.ge.s32.totalorder %v1209_v44, 0  ;;  %v1212_v54 = vld [vmem:[#allocation7 + $0x48] sm:$0xff] }
 0x13a   :  { %8531 = vmatmul.mubr.f32.vlgmr.msra.gmra.mrb[26].mxu0 %v3625_v63  ;;  %8524 = vmatpush3.xpose.msk.msra.mxu1 %vm1254_vm7, %v11690_v26  ;;  %v2127_v18 = vpop.f32.mrb[2].mxu1  ;;  %v3626_v28 = vmax.f32 %v1988_v23, 0.0  ;;  %v2057_v45 = vadd.f32 %v2056_v40, %v1613_v34  ;;  %v2058_v24 = vpop.f32.mrb[3].mxu0  ;;  %v1625_v32 = vrot.slane %v11962_v31, %v11992_v35  ;;  %v1629_v1 = vrot.slane %v12006_v46, %v9468_v16  ;;  %v1215_v62 = vld [vmem:[#allocation7 + $0x60] sm:$0xff]  ;;  %v1216_v36 = vld [vmem:[#allocation7 + $0x68] sm:$0xff]  ;;  %v1217_v59 = vld [vmem:[#allocation7 + $0x70] sm:$0xff] }
 0x13b   :  { %8525 = vmatprep.mubr.msk.f32.mxu1 %vm9356_vm0, %v9355_v0  ;;  %8533 = vmatprep.subr.mxu1 %v9355_v0  ;;  %v2128_v38 = vadd.f32 %v2127_v18, %v1621_v33  ;;  %v2129_v42 = vpop.f32.mrb[3].mxu1  ;;  %v2059_v57 = vadd.f32 %v2058_v24, %v1617_v37  ;;  %v1637_v52 = vrot.slane %v12006_v46, %v11960_v10  ;;  %vm1260_vm3 = vcmp.ge.s32.totalorder %v1210_v47, 0  ;;  %v12055_v33 = vld [vmem:[#allocation3 + $0x10] sm:$0xff]  ;;  %v1218_v18 = vld [vmem:[#allocation7 + $0x78] sm:$0xff]  ;;  %v1219_v4 = vld [vmem:[#allocation7 + $0x80] sm:$0xff] }
 0x13c   :  { %8539 = vmatpush3.xpose.msk.msra.mxu0 %vm1257_vm10, %v11690_v26  ;;  %8540 = vmatprep.mubr.msk.f32.mxu0 %vm9356_vm0, %v9355_v0  ;;  %v3627_v58 = vmax.f32 %v2057_v45, 0.0  ;;  %v2130_v51 = vadd.f32 %v2129_v42, %v1625_v32  ;;  %v1633_v53 = vrot.slane %v12006_v46, %v11965_v61  ;;  %vm1261_vm15 = vcmp.ge.s32.totalorder %v1211_v48, 0 }
 0x13d   :  { %8548 = vmatprep.subr.mxu0 %v9355_v0  ;;  %8526 = vmatmul.mubr.f32.vlgmr.msra.gmra.mrb[26].mxu1 %v3624_v41  ;;  %v3628_v49 = vmax.f32 %v2059_v57, 0.0  ;;  %v3629_v50 = vmax.f32 %v2128_v38, 0.0  ;;  %v1641_v17 = vrot.slane %v12006_v46, %v11972_v11  ;;  %vm1262_vm1 = vcmp.ge.s32.totalorder %v1212_v54, 0  ;;  %v1221_v57 = vld [vmem:[#allocation7 + $0x90] sm:$0xff] }
 0x13e   :  { %8534 = vmatpush3.xpose.msk.msra.mxu1 %vm1256_vm12, %v11690_v26  ;;  %8535 = vmatprep.mubr.msk.f32.mxu1 %vm9356_vm0, %v9355_v0  ;;  %v3630_v55 = vmax.f32 %v2130_v51, 0.0  ;;  %vm1263_vm4 = vcmp.ge.s32.totalorder %v1213_v60, 0  ;;  %v1645_v39 = vrot.slane %v12006_v46, %v11977_v29  ;;  %v1653_v14 = vrot.slane %v12006_v46, %v11982_v7 }
 0x13f   :  { %8543 = vmatprep.subr.mxu1 %v9355_v0  ;;  %8541 = vmatmul.mubr.f32.vlgmr.msra.gmra.mrb[28].mxu0 %v3627_v58  ;;  %v1649_v5 = vrot.slane %v12006_v46, %v11985_v6  ;;  %vm1264_vm11 = vcmp.ge.s32.totalorder %v1214_v43, 0  ;;  %vm1265_vm9 = vcmp.ge.s32.totalorder %v1215_v62, 0  ;;  %v1657_v23 = vrot.slane %v12006_v46, %v11992_v35  ;;  %v1220_v46 = vld [vmem:[#allocation7 + $0x88] sm:$0xff] }
 0x140   :  { %8549 = vmatpush3.xpose.msk.msra.mxu0 %vm1259_vm2, %v11690_v26  ;;  %8550 = vmatprep.mubr.msk.f32.mxu0 %vm9356_vm0, %v9355_v0  ;;  %vm1266_vm5 = vcmp.ge.s32.totalorder %v1216_v36, 0  ;;  %vm1267_vm14 = vcmp.ge.s32.totalorder %v1217_v59, 0  ;;  %v1661_v40 = vrot.slane %v12055_v33, %v9468_v16  ;;  %v1669_v24 = vrot.slane %v12055_v33, %v11960_v10  ;;  %v1227_v36 = vld [vmem:[#allocation7 + $0xc0] sm:$0xff] }
 0x141   :  { %8536 = vmatmul.mubr.f32.vlgmr.msra.gmra.mrb[28].mxu1 %v3626_v28  ;;  %8558 = vmatprep.subr.mxu0 %v9355_v0  ;;  %v1665_v38 = vrot.slane %v12055_v33, %v11965_v61  ;;  %vm1268_vm6 = vcmp.ge.s32.totalorder %v1218_v18, 0  ;;  %vm1269_vm13 = vcmp.ge.s32.totalorder %v1219_v4, 0  ;;  %vm1270_vm7 = vcmp.ge.s32.totalorder %v1220_v46, 0 }
 0x142   :  { %8544 = vmatpush3.xpose.msk.msra.mxu1 %vm1258_vm8, %v11690_v26  ;;  %8545 = vmatprep.mubr.msk.f32.mxu1 %vm9356_vm0, %v9355_v0  ;;  %vm1271_vm10 = vcmp.ge.s32.totalorder %v1221_v57, 0 }
 0x143   :  { %8553 = vmatprep.subr.mxu1 %v9355_v0  ;;  %8551 = vmatmul.mubr.f32.vlgmr.msra.gmra.mrb[30].mxu0 %v3629_v50 }
 0x144   :  { %8559 = vmatpush3.xpose.msk.msra.mxu0 %vm1261_vm15, %v11690_v26  ;;  %8560 = vmatprep.mubr.msk.f32.mxu0 %vm9356_vm0, %v9355_v0 }
 0x145   :  { %8546 = vmatmul.mubr.f32.vlgmr.msra.gmra.mrb[30].mxu1 %v3628_v49  ;;  %8568 = vmatprep.subr.mxu0 %v9355_v0  ;;  %v1673_v49 = vrot.slane %v12055_v33, %v11972_v11 }
 0x146   :  { %8554 = vmatpush3.xpose.msk.msra.mxu1 %vm1260_vm3, %v11690_v26  ;;  %8555 = vmatprep.mubr.msk.f32.mxu1 %vm9356_vm0, %v9355_v0 }
 0x147   :  { %8563 = vmatprep.subr.mxu1 %v9355_v0 }
 0x149   :  { %8556 = vmatmul.mubr.f32.vlgmr.msra.gmra.mrb[32].mxu1 %v3630_v55 }
 0x14a   :  { %8564 = vmatpush3.xpose.msk.msra.mxu1 %vm1262_vm1, %v11690_v26  ;;  %8565 = vmatprep.mubr.msk.f32.mxu1 %vm9356_vm0, %v9355_v0  ;;  %vm1277_vm1 = vcmp.ge.s32.totalorder %v1227_v36, 0 }
 0x14b   :  { %v2198_v56 = vpop.f32.mrb[4].mxu0  ;;  %8573 = vmatprep.subr.mxu1 %v9355_v0 }
 0x14c   :  { %v2269_v2 = vpop.f32.mrb[4].mxu1  ;;  %v2199_v3 = vadd.f32 %v2198_v56, %v1629_v1  ;;  %v2200_v8 = vpop.f32.mrb[5].mxu0  ;;  %v1222_v56 = vld [vmem:[#allocation7 + $0x98] sm:$0xff] }
 0x14d   :  { %v2270_v9 = vadd.f32 %v2269_v2, %v1637_v52  ;;  %v2271_v21 = vpop.f32.mrb[5].mxu1  ;;  %v2201_v25 = vadd.f32 %v2200_v8, %v1633_v53  ;;  %v1677_v53 = vrot.slane %v12055_v33, %v11977_v29  ;;  %v1223_v2 = vld [vmem:[#allocation7 + $0xa0] sm:$0xff]  ;;  %v1681_v8 = vrot.slane %v12055_v33, %v11985_v6 }
 0x14e   :  { %v3631_v31 = vmax.f32 %v2199_v3, 0.0  ;;  %v2272_v15 = vadd.f32 %v2271_v21, %v1641_v17  ;;  %v1685_v3 = vrot.slane %v12055_v33, %v11982_v7  ;;  %vm1272_vm12 = vcmp.ge.s32.totalorder %v1222_v56, 0  ;;  %v1224_v21 = vld [vmem:[#allocation7 + $0xa8] sm:$0xff] }
 0x14f   :  { %v3632_v12 = vmax.f32 %v2201_v25, 0.0  ;;  %v3633_v13 = vmax.f32 %v2270_v9, 0.0  ;;  %vm1273_vm8 = vcmp.ge.s32.totalorder %v1223_v2, 0  ;;  %v1225_v25 = vld [vmem:[#allocation7 + $0xb0] sm:$0xff]  ;;  %vm1274_vm2 = vcmp.ge.s32.totalorder %v1224_v21, 0  ;;  %v1235_v21 = vld [vmem:[#allocation7 + $0x100] sm:$0xff] }
 0x150   :  { %8561 = vmatmul.mubr.f32.vlgmr.msra.gmra.mrb[32].mxu0 %v3631_v31  ;;  %v3634_v19 = vmax.f32 %v2272_v15, 0.0  ;;  %v12109_v15 = vld [vmem:[#allocation3 + $0x18] sm:$0xff]  ;;  %vm1275_vm3 = vcmp.ge.s32.totalorder %v1225_v25, 0 }
 0x151   :  { %8569 = vmatpush3.xpose.msk.msra.mxu0 %vm1263_vm4, %v11690_v26  ;;  %8570 = vmatprep.mubr.msk.f32.mxu0 %vm9356_vm0, %v9355_v0 }
 0x152   :  { %8578 = vmatprep.subr.mxu0 %v9355_v0  ;;  %8566 = vmatmul.mubr.f32.vlgmr.msra.gmra.mrb[34].mxu1 %v3632_v12  ;;  %v1689_v12 = vrot.slane %v12055_v33, %v11992_v35  ;;  %v1228_v33 = vld [vmem:[#allocation7 + $0xc8] sm:$0xff] }
 0x153   :  { %8574 = vmatpush3.xpose.msk.msra.mxu1 %vm1264_vm11, %v11690_v26  ;;  %8575 = vmatprep.mubr.msk.f32.mxu1 %vm9356_vm0, %v9355_v0  ;;  %vm1278_vm4 = vcmp.ge.s32.totalorder %v1228_v33, 0 }
 0x154   :  { %8571 = vmatmul.mubr.f32.vlgmr.msra.gmra.mrb[34].mxu0 %v3633_v13  ;;  %8583 = vmatprep.subr.mxu1 %v9355_v0 }
 0x155   :  { %8579 = vmatpush3.xpose.msk.msra.mxu0 %vm1265_vm9, %v11690_v26  ;;  %8580 = vmatprep.mubr.msk.f32.mxu0 %vm9356_vm0, %v9355_v0 }
 0x156   :  { %8588 = vmatprep.subr.mxu0 %v9355_v0  ;;  %8576 = vmatmul.mubr.f32.vlgmr.msra.gmra.mrb[36].mxu1 %v3634_v19 }
 0x157   :  { %8584 = vmatpush3.xpose.msk.msra.mxu1 %vm1266_vm5, %v11690_v26  ;;  %8585 = vmatprep.mubr.msk.f32.mxu1 %vm9356_vm0, %v9355_v0 }
 0x158   :  { %8593 = vmatprep.subr.mxu1 %v9355_v0 }
 0x15d   :  { %v2340_v30 = vpop.f32.mrb[6].mxu0 }
 0x15e   :  { %v2411_v27 = vpop.f32.mrb[6].mxu1  ;;  %v2341_v63 = vadd.f32 %v2340_v30, %v1645_v39  ;;  %v2342_v20 = vpop.f32.mrb[7].mxu0  ;;  %v1693_v30 = vrot.slane %v12109_v15, %v9468_v16 }
 0x15f   :  { %v2412_v22 = vadd.f32 %v2411_v27, %v1653_v14  ;;  %v2413_v34 = vpop.f32.mrb[7].mxu1  ;;  %v2343_v37 = vadd.f32 %v2342_v20, %v1649_v5  ;;  %v1226_v27 = vld [vmem:[#allocation7 + $0xb8] sm:$0xff]  ;;  %v1701_v20 = vrot.slane %v12109_v15, %v11960_v10 }
 0x160   :  { %v3635_v41 = vmax.f32 %v2341_v63, 0.0  ;;  %v2414_v45 = vadd.f32 %v2413_v34, %v1657_v23  ;;  %vm1276_vm15 = vcmp.ge.s32.totalorder %v1226_v27, 0 }
 0x161   :  { %v3636_v44 = vmax.f32 %v2343_v37, 0.0  ;;  %v3637_v28 = vmax.f32 %v2412_v22, 0.0  ;;  %v1697_v22 = vrot.slane %v12109_v15, %v11965_v61  ;;  %v1229_v37 = vld [vmem:[#allocation7 + $0xd0] sm:$0xff] }
 0x162   :  { %8581 = vmatmul.mubr.f32.vlgmr.msra.gmra.mrb[36].mxu0 %v3635_v41  ;;  %v3638_v58 = vmax.f32 %v2414_v45, 0.0  ;;  %vm1279_vm11 = vcmp.ge.s32.totalorder %v1229_v37, 0 }
 0x163   :  { %8589 = vmatpush3.xpose.msk.msra.mxu0 %vm1267_vm14, %v11690_v26  ;;  %8590 = vmatprep.mubr.msk.f32.mxu0 %vm9356_vm0, %v9355_v0 }
 0x164   :  { %8598 = vmatprep.subr.mxu0 %v9355_v0  ;;  %8586 = vmatmul.mubr.f32.vlgmr.msra.gmra.mrb[38].mxu1 %v3636_v44  ;;  %v1705_v44 = vrot.slane %v12109_v15, %v11972_v11 }
 0x165   :  { %8594 = vmatpush3.xpose.msk.msra.mxu1 %vm1268_vm6, %v11690_v26  ;;  %8595 = vmatprep.mubr.msk.f32.mxu1 %vm9356_vm0, %v9355_v0 }
 0x166   :  { %8591 = vmatmul.mubr.f32.vlgmr.msra.gmra.mrb[38].mxu0 %v3637_v28  ;;  %8603 = vmatprep.subr.mxu1 %v9355_v0 }
 0x167   :  { %8599 = vmatpush3.xpose.msk.msra.mxu0 %vm1269_vm13, %v11690_v26  ;;  %8600 = vmatprep.mubr.msk.f32.mxu0 %vm9356_vm0, %v9355_v0 }
 0x168   :  { %8608 = vmatprep.subr.mxu0 %v9355_v0  ;;  %8596 = vmatmul.mubr.f32.vlgmr.msra.gmra.mrb[40].mxu1 %v3638_v58 }
 0x169   :  { %8604 = vmatpush3.xpose.msk.msra.mxu1 %vm1270_vm7, %v11690_v26  ;;  %8605 = vmatprep.mubr.msk.f32.mxu1 %vm9356_vm0, %v9355_v0  ;;  %vm1285_vm7 = vcmp.ge.s32.totalorder %v1235_v21, 0 }
 0x16a   :  { %8613 = vmatprep.subr.mxu1 %v9355_v0 }
 0x16f   :  { %v2482_v32 = vpop.f32.mrb[8].mxu0 }
 0x170   :  { %v2553_v42 = vpop.f32.mrb[8].mxu1  ;;  %v2483_v1 = vadd.f32 %v2482_v32, %v1661_v40  ;;  %v2484_v47 = vpop.f32.mrb[9].mxu0  ;;  %v1230_v32 = vld [vmem:[#allocation7 + $0xd8] sm:$0xff] }
 0x171   :  { %v2554_v48 = vadd.f32 %v2553_v42, %v1669_v24  ;;  %v2555_v50 = vpop.f32.mrb[9].mxu1  ;;  %v2485_v51 = vadd.f32 %v2484_v47, %v1665_v38  ;;  %v1709_v38 = vrot.slane %v12109_v15, %v11977_v29  ;;  %v1231_v42 = vld [vmem:[#allocation7 + $0xe0] sm:$0xff]  ;;  %v1713_v47 = vrot.slane %v12109_v15, %v11985_v6 }
 0x172   :  { %v3639_v52 = vmax.f32 %v2483_v1, 0.0  ;;  %v2556_v55 = vadd.f32 %v2555_v50, %v1673_v49  ;;  %v1717_v1 = vrot.slane %v12109_v15, %v11982_v7  ;;  %vm1280_vm9 = vcmp.ge.s32.totalorder %v1230_v32, 0  ;;  %v1232_v50 = vld [vmem:[#allocation7 + $0xe8] sm:$0xff] }
 0x173   :  { %v3640_v54 = vmax.f32 %v2485_v51, 0.0  ;;  %v3641_v60 = vmax.f32 %v2554_v48, 0.0  ;;  %vm1281_vm5 = vcmp.ge.s32.totalorder %v1231_v42, 0  ;;  %v1233_v51 = vld [vmem:[#allocation7 + $0xf0] sm:$0xff]  ;;  %vm1282_vm14 = vcmp.ge.s32.totalorder %v1232_v50, 0  ;;  %v1243_v50 = vld [vmem:[#allocation7 + $0x140] sm:$0xff] }
 0x174   :  { %8601 = vmatmul.mubr.f32.vlgmr.msra.gmra.mrb[40].mxu0 %v3639_v52  ;;  %v3642_v31 = vmax.f32 %v2556_v55, 0.0  ;;  %v12163_v55 = vld [vmem:[#allocation3 + $0x20] sm:$0xff]  ;;  %vm1283_vm6 = vcmp.ge.s32.totalorder %v1233_v51, 0 }
 0x175   :  { %8609 = vmatpush3.xpose.msk.msra.mxu0 %vm1271_vm10, %v11690_v26  ;;  %8610 = vmatprep.mubr.msk.f32.mxu0 %vm9356_vm0, %v9355_v0  ;;  %v1737_v36 = vrot.slane %v12163_v55, %v11972_v11 }
 0x176   :  { %8618 = vmatprep.subr.mxu0 %v9355_v0  ;;  %8606 = vmatmul.mubr.f32.vlgmr.msra.gmra.mrb[42].mxu1 %v3640_v54  ;;  %v1721_v54 = vrot.slane %v12109_v15, %v11992_v35  ;;  %v1236_v15 = vld [vmem:[#allocation7 + $0x108] sm:$0xff] }
 0x177   :  { %8614 = vmatpush3.xpose.msk.msra.mxu1 %vm1272_vm12, %v11690_v26  ;;  %8615 = vmatprep.mubr.msk.f32.mxu1 %vm9356_vm0, %v9355_v0  ;;  %vm1286_vm10 = vcmp.ge.s32.totalorder %v1236_v15, 0 }
 0x178   :  { %8611 = vmatmul.mubr.f32.vlgmr.msra.gmra.mrb[42].mxu0 %v3641_v60  ;;  %8623 = vmatprep.subr.mxu1 %v9355_v0 }
 0x179   :  { %8619 = vmatpush3.xpose.msk.msra.mxu0 %vm1273_vm8, %v11690_v26  ;;  %8620 = vmatprep.mubr.msk.f32.mxu0 %vm9356_vm0, %v9355_v0 }
 0x17a   :  { %8628 = vmatprep.subr.mxu0 %v9355_v0  ;;  %8616 = vmatmul.mubr.f32.vlgmr.msra.gmra.mrb[44].mxu1 %v3642_v31 }
 0x17b   :  { %8624 = vmatpush3.xpose.msk.msra.mxu1 %vm1274_vm2, %v11690_v26  ;;  %8625 = vmatprep.mubr.msk.f32.mxu1 %vm9356_vm0, %v9355_v0 }
 0x17c   :  { %8633 = vmatprep.subr.mxu1 %v9355_v0 }
 0x181   :  { %v2624_v9 = vpop.f32.mrb[10].mxu0 }
 0x182   :  { %v2695_v17 = vpop.f32.mrb[10].mxu1  ;;  %v2625_v39 = vadd.f32 %v2624_v9, %v1677_v53  ;;  %v2626_v43 = vpop.f32.mrb[11].mxu0  ;;  %v1725_v9 = vrot.slane %v12163_v55, %v9468_v16 }
 0x183   :  { %v2696_v62 = vadd.f32 %v2695_v17, %v1685_v3  ;;  %v2697_v13 = vpop.f32.mrb[11].mxu1  ;;  %v2627_v14 = vadd.f32 %v2626_v43, %v1681_v8  ;;  %v1234_v17 = vld [vmem:[#allocation7 + $0xf8] sm:$0xff]  ;;  %v1733_v43 = vrot.slane %v12163_v55, %v11960_v10 }
 0x184   :  { %v3643_v5 = vmax.f32 %v2625_v39, 0.0  ;;  %v2698_v63 = vadd.f32 %v2697_v13, %v1689_v12  ;;  %vm1284_vm13 = vcmp.ge.s32.totalorder %v1234_v17, 0 }
 0x185   :  { %v3644_v59 = vmax.f32 %v2627_v14, 0.0  ;;  %v3645_v19 = vmax.f32 %v2696_v62, 0.0  ;;  %v1729_v62 = vrot.slane %v12163_v55, %v11965_v61  ;;  %v1237_v14 = vld [vmem:[#allocation7 + $0x110] sm:$0xff] }
 0x186   :  { %8621 = vmatmul.mubr.f32.vlgmr.msra.gmra.mrb[44].mxu0 %v3643_v5  ;;  %v3646_v41 = vmax.f32 %v2698_v63, 0.0  ;;  %vm1287_vm12 = vcmp.ge.s32.totalorder %v1237_v14, 0 }
 0x187   :  { %8629 = vmatpush3.xpose.msk.msra.mxu0 %vm1275_vm3, %v11690_v26  ;;  %8630 = vmatprep.mubr.msk.f32.mxu0 %vm9356_vm0, %v9355_v0 }
 0x188   :  { %8638 = vmatprep.subr.mxu0 %v9355_v0  ;;  %8626 = vmatmul.mubr.f32.vlgmr.msra.gmra.mrb[46].mxu1 %v3644_v59 }
 0x189   :  { %8634 = vmatpush3.xpose.msk.msra.mxu1 %vm1276_vm15, %v11690_v26  ;;  %8635 = vmatprep.mubr.msk.f32.mxu1 %vm9356_vm0, %v9355_v0 }
 0x18a   :  { %8631 = vmatmul.mubr.f32.vlgmr.msra.gmra.mrb[46].mxu0 %v3645_v19  ;;  %8643 = vmatprep.subr.mxu1 %v9355_v0  ;;  %v12194_v19 = vld [vmem:[%s12953_s3] sm:$0xff] }
 0x18b   :  { %8639 = vmatpush3.xpose.msk.msra.mxu0 %vm1277_vm1, %v11690_v26  ;;  %8640 = vmatprep.mubr.msk.f32.mxu0 %vm9356_vm0, %v9355_v0 }
 0x18c   :  { %8648 = vmatprep.subr.mxu0 %v9355_v0  ;;  %8636 = vmatmul.mubr.f32.vlgmr.msra.gmra.mrb[48].mxu1 %v3646_v41 }
 0x18d   :  { %8644 = vmatpush3.xpose.msk.msra.mxu1 %vm1278_vm4, %v11690_v26  ;;  %8645 = vmatprep.mubr.msk.f32.mxu1 %vm9356_vm0, %v9355_v0  ;;  %vm1293_vm4 = vcmp.ge.s32.totalorder %v1243_v50, 0  ;;  %v1353_v50 = vld [vmem:[%s12962_s12] sm:$0xff] }
 0x18e   :  { %8653 = vmatprep.subr.mxu1 %v9355_v0 }
 0x193   :  { %v2766_v23 = vpop.f32.mrb[12].mxu0 }
 0x194   :  { %v2837_v34 = vpop.f32.mrb[12].mxu1  ;;  %v2767_v40 = vadd.f32 %v2766_v23, %v1693_v30  ;;  %v2768_v18 = vpop.f32.mrb[13].mxu0  ;;  %v1238_v23 = vld [vmem:[#allocation7 + $0x118] sm:$0xff] }
 0x195   :  { %v2838_v4 = vadd.f32 %v2837_v34, %v1701_v20  ;;  %v2839_v28 = vpop.f32.mrb[13].mxu1  ;;  %v2769_v45 = vadd.f32 %v2768_v18, %v1697_v22  ;;  %v1741_v22 = vrot.slane %v12163_v55, %v11977_v29  ;;  %v1239_v34 = vld [vmem:[#allocation7 + $0x120] sm:$0xff]  ;;  %v1745_v18 = vrot.slane %v12163_v55, %v11985_v6 }
 0x196   :  { %v3647_v24 = vmax.f32 %v2767_v40, 0.0  ;;  %v2840_v58 = vadd.f32 %v2839_v28, %v1705_v44  ;;  %v1749_v40 = vrot.slane %v12163_v55, %v11982_v7  ;;  %vm1288_vm8 = vcmp.ge.s32.totalorder %v1238_v23, 0  ;;  %v1240_v28 = vld [vmem:[#allocation7 + $0x128] sm:$0xff]  ;;  %v1249_v23 = vld [vmem:[#allocation7 + $0x170] sm:$0xff] }
 0x197   :  { %v3648_v46 = vmax.f32 %v2769_v45, 0.0  ;;  %v3649_v57 = vmax.f32 %v2838_v4, 0.0  ;;  %vm1289_vm2 = vcmp.ge.s32.totalorder %v1239_v34, 0  ;;  %v1241_v45 = vld [vmem:[#allocation7 + $0x130] sm:$0xff]  ;;  %vm1290_vm3 = vcmp.ge.s32.totalorder %v1240_v28, 0 }
 0x198   :  { %8641 = vmatmul.mubr.f32.vlgmr.msra.gmra.mrb[48].mxu0 %v3647_v24  ;;  %v3650_v52 = vmax.f32 %v2840_v58, 0.0  ;;  %v12222_v58 = vld [vmem:[#allocation3 + $0x28] sm:$0xff]  ;;  %vm1291_vm15 = vcmp.ge.s32.totalorder %v1241_v45, 0 }
 0x199   :  { %8649 = vmatpush3.xpose.msk.msra.mxu0 %vm1279_vm11, %v11690_v26  ;;  %8650 = vmatprep.mubr.msk.f32.mxu0 %vm9356_vm0, %v9355_v0  ;;  %v1785_v34 = vrot.slane %v12222_v58, %v11992_v35 }
 0x19a   :  { %8658 = vmatprep.subr.mxu0 %v9355_v0  ;;  %8646 = vmatmul.mubr.f32.vlgmr.msra.gmra.mrb[50].mxu1 %v3648_v46  ;;  %v1753_v46 = vrot.slane %v12163_v55, %v11992_v35  ;;  %v1244_v55 = vld [vmem:[#allocation7 + $0x148] sm:$0xff] }
 0x19b   :  { %8654 = vmatpush3.xpose.msk.msra.mxu1 %vm1280_vm9, %v11690_v26  ;;  %8655 = vmatprep.mubr.msk.f32.mxu1 %vm9356_vm0, %v9355_v0  ;;  %vm1294_vm11 = vcmp.ge.s32.totalorder %v1244_v55, 0 }
 0x19c   :  { %8651 = vmatmul.mubr.f32.vlgmr.msra.gmra.mrb[50].mxu0 %v3649_v57  ;;  %8663 = vmatprep.subr.mxu1 %v9355_v0 }
 0x19d   :  { %8659 = vmatpush3.xpose.msk.msra.mxu0 %vm1281_vm5, %v11690_v26  ;;  %8660 = vmatprep.mubr.msk.f32.mxu0 %vm9356_vm0, %v9355_v0 }
 0x19e   :  { %8668 = vmatprep.subr.mxu0 %v9355_v0  ;;  %8656 = vmatmul.mubr.f32.vlgmr.msra.gmra.mrb[52].mxu1 %v3650_v52 }
 0x19f   :  { %8664 = vmatpush3.xpose.msk.msra.mxu1 %vm1282_vm14, %v11690_v26  ;;  %8665 = vmatprep.mubr.msk.f32.mxu1 %vm9356_vm0, %v9355_v0 }
 0x1a0   :  { %8673 = vmatprep.subr.mxu1 %v9355_v0 }
 0x1a5   :  { %v2908_v48 = vpop.f32.mrb[14].mxu0 }
 0x1a6   :  { %v2979_v49 = vpop.f32.mrb[14].mxu1  ;;  %v2909_v53 = vadd.f32 %v2908_v48, %v1709_v38  ;;  %v2910_v56 = vpop.f32.mrb[15].mxu0  ;;  %v1757_v48 = vrot.slane %v12222_v58, %v9468_v16 }
 0x1a7   :  { %v2980_v2 = vadd.f32 %v2979_v49, %v1717_v1  ;;  %v2981_v60 = vpop.f32.mrb[15].mxu1  ;;  %v2911_v3 = vadd.f32 %v2910_v56, %v1713_v47  ;;  %v1242_v49 = vld [vmem:[#allocation7 + $0x138] sm:$0xff]  ;;  %v1765_v56 = vrot.slane %v12222_v58, %v11960_v10 }
 0x1a8   :  { %v3651_v8 = vmax.f32 %v2909_v53, 0.0  ;;  %v2982_v39 = vadd.f32 %v2981_v60, %v1721_v54  ;;  %vm1292_vm1 = vcmp.ge.s32.totalorder %v1242_v49, 0 }
 0x1a9   :  { %v3652_v25 = vmax.f32 %v2911_v3, 0.0  ;;  %v3653_v31 = vmax.f32 %v2980_v2, 0.0  ;;  %v1761_v2 = vrot.slane %v12222_v58, %v11965_v61  ;;  %v1245_v3 = vld [vmem:[#allocation7 + $0x150] sm:$0xff] }
 0x1aa   :  { %8661 = vmatmul.mubr.f32.vlgmr.msra.gmra.mrb[52].mxu0 %v3651_v8  ;;  %vm1295_vm9 = vcmp.ge.s32.totalorder %v1245_v3, 0 }
 0x1ab   :  { %8669 = vmatpush3.xpose.msk.msra.mxu0 %vm1283_vm6, %v11690_v26  ;;  %8670 = vmatprep.mubr.msk.f32.mxu0 %vm9356_vm0, %v9355_v0  ;;  %v3654_v26 = vmax.f32 %v2982_v39, 0.0 }
 0x1ac   :  { %8678 = vmatprep.subr.mxu0 %v9355_v0  ;;  %8666 = vmatmul.mubr.f32.vlgmr.msra.gmra.mrb[54].mxu1 %v3652_v25  ;;  %v1769_v25 = vrot.slane %v12222_v58, %v11972_v11 }
 0x1ad   :  { %8674 = vmatpush3.xpose.msk.msra.mxu1 %vm1284_vm13, %v12194_v19  ;;  %8675 = vmatprep.mubr.msk.f32.mxu1 %vm9356_vm0, %v9355_v0  ;;  %vm1299_vm13 = vcmp.ge.s32.totalorder %v1249_v23, 0 }
 0x1ae   :  { %8671 = vmatmul.mubr.f32.vlgmr.msra.gmra.mrb[54].mxu0 %v3653_v31  ;;  %8683 = vmatprep.subr.mxu1 %v9355_v0 }
 0x1af   :  { %8679 = vmatpush3.xpose.msk.msra.mxu0 %vm1285_vm7, %v12194_v19  ;;  %8680 = vmatprep.mubr.msk.f32.mxu0 %vm9356_vm0, %v9355_v0 }
 0x1b0   :  { %8688 = vmatprep.subr.mxu0 %v9355_v0  ;;  %8676 = vmatmul.mubr.f32.vlgmr.msra.gmra.mrb[56].mxu1 %v3654_v26  ;;  %v1773_v26 = vrot.slane %v12222_v58, %v11977_v29 }
 0x1b1   :  { %8684 = vmatpush3.xpose.msk.msra.mxu1 %vm1286_vm10, %v12194_v19  ;;  %8685 = vmatprep.mubr.msk.f32.mxu1 %vm9356_vm0, %v9355_v0 }
 0x1b2   :  { %8693 = vmatprep.subr.mxu1 %v9355_v0 }
 0x1b7   :  { %v3050_v12 = vpop.f32.mrb[16].mxu0 }
 0x1b8   :  { %v3121_v13 = vpop.f32.mrb[16].mxu1  ;;  %v3051_v5 = vadd.f32 %v3050_v12, %v1725_v9  ;;  %v3052_v30 = vpop.f32.mrb[17].mxu0  ;;  %v1247_v12 = vld [vmem:[#allocation7 + $0x160] sm:$0xff] }
 0x1b9   :  { %v3122_v27 = vadd.f32 %v3121_v13, %v1733_v43  ;;  %v3123_v59 = vpop.f32.mrb[17].mxu1  ;;  %v3053_v63 = vadd.f32 %v3052_v30, %v1729_v62  ;;  %v1246_v62 = vld [vmem:[#allocation7 + $0x158] sm:$0xff]  ;;  %v1781_v30 = vrot.slane %v12222_v58, %v11982_v7  ;;  %vm1297_vm14 = vcmp.ge.s32.totalorder %v1247_v12, 0 }
 0x1ba   :  { %v3655_v20 = vmax.f32 %v3051_v5, 0.0  ;;  %v3124_v41 = vadd.f32 %v3123_v59, %v1737_v36  ;;  %v1777_v5 = vrot.slane %v12222_v58, %v11985_v6  ;;  %vm1296_vm5 = vcmp.ge.s32.totalorder %v1246_v62, 0  ;;  %v1248_v36 = vld [vmem:[#allocation7 + $0x168] sm:$0xff] }
 0x1bb   :  { %v3656_v33 = vmax.f32 %v3053_v63, 0.0  ;;  %v3657_v37 = vmax.f32 %v3122_v27, 0.0  ;;  %vm1298_vm6 = vcmp.ge.s32.totalorder %v1248_v36, 0 }
 0x1bc   :  { %8681 = vmatmul.mubr.f32.vlgmr.msra.gmra.mrb[56].mxu0 %v3655_v20  ;;  %v3658_v24 = vmax.f32 %v3124_v41, 0.0 }
 0x1bd   :  { %8689 = vmatpush3.xpose.msk.msra.mxu0 %vm1287_vm12, %v12194_v19  ;;  %8690 = vmatprep.mubr.msk.f32.mxu0 %vm9356_vm0, %v9355_v0 }
 0x1be   :  { %8698 = vmatprep.subr.mxu0 %v9355_v0  ;;  %8686 = vmatmul.mubr.f32.vlgmr.msra.gmra.mrb[58].mxu1 %v3656_v33 }
 0x1bf   :  { %8694 = vmatpush3.xpose.msk.msra.mxu1 %vm1288_vm8, %v12194_v19  ;;  %8695 = vmatprep.mubr.msk.f32.mxu1 %vm9356_vm0, %v9355_v0  ;;  %vm1360_vm8 = vcmp.ge.s32.totalorder %v1353_v50, 0 }
 0x1c0   :  { %8691 = vmatmul.mubr.f32.vlgmr.msra.gmra.mrb[58].mxu0 %v3657_v37  ;;  %8703 = vmatprep.subr.mxu1 %v9355_v0 }
 0x1c1   :  { %8699 = vmatpush3.xpose.msk.msra.mxu0 %vm1289_vm2, %v12194_v19  ;;  %8700 = vmatprep.mubr.msk.f32.mxu0 %vm9356_vm0, %v9355_v0 }
 0x1c2   :  { %8708 = vmatprep.subr.mxu0 %v9355_v0  ;;  %8696 = vmatmul.mubr.f32.vlgmr.msra.gmra.mrb[60].mxu1 %v3658_v24 }
 0x1c3   :  { %8704 = vmatpush3.xpose.msk.msra.mxu1 %vm1290_vm3, %v12194_v19  ;;  %8705 = vmatprep.mubr.msk.f32.mxu1 %vm9356_vm0, %v9355_v0 }
 0x1c4   :  { %8713 = vmatprep.subr.mxu1 %v9355_v0 }
 0x1ca   :  { %v3192_v4 = vpop.f32.mrb[18].mxu0 }
 0x1cb   :  { %v3263_v44 = vpop.f32.mrb[18].mxu1  ;;  %v3193_v38 = vadd.f32 %v3192_v4, %v1741_v22  ;;  %v3194_v32 = vpop.f32.mrb[19].mxu0  ;;  %v1250_v4 = vld [vmem:[#allocation7 + $0x178] sm:$0xff] }
 0x1cc   :  { %v3264_v42 = vadd.f32 %v3263_v44, %v1749_v40  ;;  %v3265_v57 = vpop.f32.mrb[19].mxu1  ;;  %v3195_v1 = vadd.f32 %v3194_v32, %v1745_v18  ;;  %v1586_v40 = vld [vmem:[#allocation3 + $0x30] sm:$0x3]  ;;  %v1251_v32 = vld [vmem:[#allocation7 + $0x180] sm:$0xff]  ;;  %vm1300_vm7 = vcmp.ge.s32.totalorder %v1250_v4, 0 }
 0x1cd   :  { %v3659_v47 = vmax.f32 %v3193_v38, 0.0  ;;  %v3266_v53 = vadd.f32 %v3265_v57, %v1753_v46  ;;  %v1789_v45 = vrot.slane %v1586_v40, %v9468_v16  ;;  %v1793_v38 = vrot.slane %v1586_v40, %v11965_v61  ;;  %v1252_v46 = vld [vmem:[#allocation7 + $0x188] sm:$0xff] }
 0x1ce   :  { %v3660_v51 = vmax.f32 %v3195_v1, 0.0  ;;  %v3661_v52 = vmax.f32 %v3264_v42, 0.0  ;;  %vm1301_vm10 = vcmp.ge.s32.totalorder %v1251_v32, 0  ;;  %vm1302_vm12 = vcmp.ge.s32.totalorder %v1252_v46, 0 }
 0x1cf   :  { %8701 = vmatmul.mubr.f32.vlgmr.msra.gmra.mrb[60].mxu0 %v3659_v47  ;;  %v3662_v8 = vmax.f32 %v3266_v53, 0.0 }
 0x1d0   :  { %8709 = vmatpush3.xpose.msk.msra.mxu0 %vm1291_vm15, %v12194_v19  ;;  %8710 = vmatprep.mubr.msk.f32.mxu0 %vm9356_vm0, %v9355_v0 }
 0x1d1   :  { %8718 = vmatprep.subr.mxu0 %v9355_v0  ;;  %8706 = vmatmul.mubr.f32.vlgmr.msra.gmra.mrb[62].mxu1 %v3660_v51  ;;  %v12310_v51 = vld [vmem:[%s12954_s4] ss:$0 sm:$0xff] }
 0x1d2   :  { %8714 = vmatpush3.xpose.msk.msra.mxu1 %vm1292_vm1, %v12194_v19  ;;  %8715 = vmatprep.mubr.msk.f32.mxu1 %vm9356_vm0, %v9355_v0 }
 0x1d3   :  { %8711 = vmatmul.mubr.f32.vlgmr.msra.gmra.mrb[62].mxu0 %v3661_v52  ;;  %8723 = vmatprep.subr.mxu1 %v9355_v0  ;;  %v1373_v52 = vsel %vm1360_vm8, %v12310_v51, 0.0 }
 0x1d4   :  { %8719 = vmatpush3.xpose.msk.msra.mxu0 %vm1293_vm4, %v12194_v19  ;;  %8720 = vmatprep.mubr.msk.f32.mxu0 %vm9356_vm0, %v9355_v0  ;;  %v3676_v53 = vrot.slane %v1373_v52, %v9468_v16  ;;  %v3766_v55 = vrot.slane %v1373_v52, %v11965_v61  ;;  %v4300_v40 = vrot.slane %v1373_v52, %v11992_v35 }
 0x1d5   :  { %8728 = vmatprep.subr.mxu0 %v9355_v0  ;;  %8716 = vmatmul.mubr.f32.vlgmr.msra.gmra.mrb[64].mxu1 %v3662_v8 }
 0x1d6   :  { %8724 = vmatpush3.xpose.msk.msra.mxu1 %vm1294_vm11, %v12194_v19  ;;  %8725 = vmatprep.mubr.msk.f32.mxu1 %vm9356_vm0, %v9355_v0 }
 0x1d7   :  { %8733 = vmatprep.subr.mxu1 %v9355_v0 }
 0x1db   :  { %v3334_v54 = vpop.f32.mrb[20].mxu0 }
 0x1dc   :  { %v3405_v60 = vpop.f32.mrb[20].mxu1  ;;  %v3335_v9 = vadd.f32 %v3334_v54, %v1757_v48  ;;  %v3336_v17 = vpop.f32.mrb[21].mxu0 }
 0x1dd   :  { %v3406_v21 = vadd.f32 %v3405_v60, %v1765_v56  ;;  %v3407_v31 = vpop.f32.mrb[21].mxu1  ;;  %v3337_v39 = vadd.f32 %v3336_v17, %v1761_v2 }
 0x1de   :  { %v3663_v43 = vmax.f32 %v3335_v9, 0.0  ;;  %v3408_v14 = vadd.f32 %v3407_v31, %v1769_v25 }
 0x1df   :  { %v3664_v13 = vmax.f32 %v3337_v39, 0.0  ;;  %v3665_v15 = vmax.f32 %v3406_v21, 0.0  ;;  %v1354_v21 = vld [vmem:[%s12962_s12 + $0x8] sm:$0xff]  ;;  %v4033_v39 = vrot.slane %v1373_v52, %v11977_v29 }
 0x1e0   :  { %8721 = vmatmul.mubr.f32.vlgmr.msra.gmra.mrb[64].mxu0 %v3663_v43  ;;  %v3666_v59 = vmax.f32 %v3408_v14, 0.0  ;;  %v3944_v43 = vrot.slane %v1373_v52, %v11972_v11  ;;  %vm1361_vm2 = vcmp.ge.s32.totalorder %v1354_v21, 0 }
 0x1e1   :  { %8729 = vmatpush3.xpose.msk.msra.mxu0 %vm1295_vm9, %v12194_v19  ;;  %8730 = vmatprep.mubr.msk.f32.mxu0 %vm9356_vm0, %v9355_v0  ;;  %v12340_v36 = vsel %vm1361_vm2, %v12310_v51, 0.0 }
 0x1e2   :  { %8738 = vmatprep.subr.mxu0 %v9355_v0  ;;  %8726 = vmatmul.mubr.f32.vlgmr.msra.gmra.mrb[66].mxu1 %v3664_v13  ;;  %v4478_v46 = vrot.slane %v12340_v36, %v11965_v61 }
 0x1e3   :  { %8734 = vmatpush3.xpose.msk.msra.mxu1 %vm1296_vm5, %v12194_v19  ;;  %8735 = vmatprep.mubr.msk.f32.mxu1 %vm9356_vm0, %v9355_v0 }
 0x1e4   :  { %8731 = vmatmul.mubr.f32.vlgmr.msra.gmra.mrb[66].mxu0 %v3665_v15  ;;  %8743 = vmatprep.subr.mxu1 %v9355_v0 }
 0x1e5   :  { %v3476_v27 = vpop.f32.mrb[22].mxu0  ;;  %8739 = vmatpush3.xpose.msk.msra.mxu0 %vm1297_vm14, %v12194_v19  ;;  %8740 = vmatprep.mubr.msk.f32.mxu0 %vm9356_vm0, %v9355_v0 }
 0x1e6   :  { %v3477_v63 = vadd.f32 %v3476_v27, %v1773_v26  ;;  %v3478_v20 = vpop.f32.mrb[23].mxu0  ;;  %v3547_v22 = vpop.f32.mrb[22].mxu1  ;;  %8748 = vmatprep.subr.mxu0 %v9355_v0  ;;  %8736 = vmatmul.mubr.f32.vlgmr.msra.gmra.mrb[68].mxu1 %v3666_v59  ;;  %v4122_v27 = vrot.slane %v1373_v52, %v11985_v6 }
 0x1e7   :  { %v3479_v33 = vadd.f32 %v3478_v20, %v1777_v5  ;;  %v3548_v37 = vadd.f32 %v3547_v22, %v1781_v30  ;;  %v3549_v41 = vpop.f32.mrb[23].mxu1  ;;  %8744 = vmatpush3.xpose.msk.msra.mxu1 %vm1298_vm6, %v12194_v19  ;;  %8745 = vmatprep.mubr.msk.f32.mxu1 %vm9356_vm0, %v9355_v0  ;;  %v4211_v30 = vrot.slane %v1373_v52, %v11982_v7 }
 0x1e8   :  { %v3667_v18 = vmax.f32 %v3477_v63, 0.0  ;;  %v3550_v28 = vadd.f32 %v3549_v41, %v1785_v34  ;;  %8753 = vmatprep.subr.mxu1 %v9355_v0  ;;  %v4389_v41 = vrot.slane %v12340_v36, %v9468_v16 }
 0x1e9   :  { %v3668_v44 = vmax.f32 %v3479_v33, 0.0  ;;  %v3669_v24 = vmax.f32 %v3548_v37, 0.0 }
 0x1ea   :  { %8741 = vmatmul.mubr.f32.vlgmr.msra.gmra.mrb[68].mxu0 %v3667_v18  ;;  %v3670_v57 = vmax.f32 %v3550_v28, 0.0 }
 0x1eb   :  { %8749 = vmatpush3.xpose.msk.msra.mxu0 %vm1299_vm13, %v12194_v19  ;;  %8750 = vmatprep.mubr.msk.f32.mxu0 %vm9356_vm0, %v9355_v0 }
 0x1ec   :  { %8758 = vmatprep.subr.mxu0 %v9355_v0  ;;  %8746 = vmatmul.mubr.f32.vlgmr.msra.gmra.mrb[70].mxu1 %v3668_v44 }
 0x1ed   :  { %v3618_v42 = vpop.f32.mrb[24].mxu0  ;;  %8754 = vmatpush3.xpose.msk.msra.mxu1 %vm1300_vm7, %v12194_v19  ;;  %8755 = vmatprep.mubr.msk.f32.mxu1 %vm9356_vm0, %v9355_v0 }
 0x1ee   :  { %v3619_v58 = vadd.f32 %v3618_v42, %v1789_v45  ;;  %v3620_v1 = vpop.f32.mrb[25].mxu0  ;;  %8751 = vmatmul.mubr.f32.vlgmr.msra.gmra.mrb[70].mxu0 %v3669_v24  ;;  %8763 = vmatprep.subr.mxu1 %v9355_v0  ;;  %v4567_v42 = vrot.slane %v12340_v36, %v11960_v10 }
 0x1ef   :  { %v3621_v47 = vadd.f32 %v3620_v1, %v1793_v38  ;;  %8759 = vmatpush3.xpose.msk.msra.mxu0 %vm1301_vm10, %v12194_v19  ;;  %8760 = vmatprep.mubr.msk.f32.mxu0 %vm9356_vm0, %v9355_v0 }
 0x1f0   :  { %v3671_v48 = vmax.f32 %v3619_v58, 0.0  ;;  %8756 = vmatmul.mubr.f32.vlgmr.msra.gmra.mrb[72].mxu1 %v3670_v57 }
 0x1f1   :  { %v3672_v49 = vmax.f32 %v3621_v47, 0.0  ;;  %8764 = vmatpush3.xpose.msk.msra.mxu1 %vm1302_vm12, %v12194_v19  ;;  %8765 = vmatprep.mubr.msk.f32.mxu1 %vm9356_vm0, %v9355_v0  ;;  %v3855_v19 = vrot.slane %v1373_v52, %v11960_v10  ;;  %vm3747_vm0 = vcmask 58368  }
 0x1f2   :  { %8761 = vmatmul.mubr.f32.vlgmr.msra.gmra.mrb[72].mxu0 %v3671_v48  ;;  %v1355_v48 = vld [vmem:[%s12962_s12 + $0x10] sm:$0xff] }
 0x1f3   :  { %vm1362_vm3 = vcmp.ge.s32.totalorder %v1355_v48, 0 }
 0x1f4   :  { %8766 = vmatmul.mubr.f32.vlgmr.msra.gmra.mrb[74].mxu1 %v3672_v49 }
 0x20c   :  { %v3743_v56 = vpop.f32.mrb[24].mxu1 }
 0x20d   :  { %v3922_v0 = vpop.f32.mrb[26].mxu0  ;;  %v12315_v2 = vadd.f32 %v3743_v56, %v3676_v53  ;;  %v8522_v60 = vpop.f32.mrb[25].mxu1  ;;  %v4656_v56 = vrot.slane %v12340_v36, %v11972_v11 }
 0x20e   :  { %v12317_v54 = vadd.f32 %v3922_v0, %v3855_v19  ;;  %v8532_v3 = vpop.f32.mrb[27].mxu0  ;;  %v4745_v19 = vrot.slane %v12340_v36, %v11977_v29 }
 0x20f   :  { %v3748_v9 = vsel %vm3747_vm0, %v12315_v2, -inf }
 0x210   :  { %v3926_v8 = vsel %vm3747_vm0, %v12317_v54, -inf  ;;  %3749 = vmax.xlane.f32.xlu0 %v3748_v9  ;;  %v3833_v17 = vpop.f32.mrb[26].mxu1 }
 0x211   :  { %3927 = vmax.xlane.f32.xlu1 %v3926_v8  ;;  %v12327_v25 = vadd.f32 %v3833_v17, %v3766_v55  ;;  %v8527_v31 = vpop.f32.mrb[27].mxu1 }
 0x212   :  { %v4100_v12 = vpop.f32.mrb[28].mxu0  ;;  %v4923_v31 = vrot.slane %v12340_v36, %v11982_v7 }
 0x213   :  { %v3837_v62 = vsel %vm3747_vm0, %v12327_v25, -inf  ;;  %v12333_v15 = vadd.f32 %v4100_v12, %v4033_v39  ;;  %v8542_v5 = vpop.f32.mrb[29].mxu0  ;;  %v4834_v39 = vrot.slane %v12340_v36, %v11985_v6 }
 0x214   :  { %3838 = vmax.xlane.f32.xlu0 %v3837_v62  ;;  %v4011_v13 = vpop.f32.mrb[28].mxu1 }
 0x215   :  { %v12335_v14 = vadd.f32 %v4011_v13, %v3944_v43  ;;  %v8537_v26 = vpop.f32.mrb[29].mxu1  ;;  %v4104_v59 = vsel %vm3747_vm0, %v12333_v15, -inf  ;;  %v12393_v43 = vsel %vm1362_vm3, %v12310_v51, 0.0 }
 0x216   :  { %v4278_v20 = vpop.f32.mrb[30].mxu0 }
 0x217   :  { %v4015_v63 = vsel %vm3747_vm0, %v12335_v14, -inf  ;;  %v12346_v23 = vadd.f32 %v4278_v20, %v4211_v30  ;;  %v8552_v37 = vpop.f32.mrb[31].mxu0  ;;  %v5012_v20 = vrot.slane %v12340_v36, %v11992_v35  ;;  %v5190_v36 = vrot.slane %v12393_v43, %v11965_v61 }
 0x218   :  { %4105 = vmax.xlane.f32.xlu0 %v4104_v59  ;;  %4016 = vmax.xlane.f32.xlu1 %v4015_v63  ;;  %v4189_v22 = vpop.f32.mrb[30].mxu1  ;;  %v5101_v63 = vrot.slane %v12393_v43, %v9468_v16 }
 0x219   :  { %v12348_v34 = vadd.f32 %v4189_v22, %v4122_v27  ;;  %v8547_v33 = vpop.f32.mrb[31].mxu1  ;;  %v4282_v18 = vsel %vm3747_vm0, %v12346_v23, -inf }
 0x21b   :  { %v4193_v4 = vsel %vm3747_vm0, %v12348_v34, -inf }
 0x21c   :  { %4283 = vmax.xlane.f32.xlu0 %v4282_v18  ;;  %4194 = vmax.xlane.f32.xlu1 %v4193_v4  ;;  %v4367_v28 = vpop.f32.mrb[32].mxu1 }
 0x21d   :  { %v12359_v24 = vadd.f32 %v4367_v28, %v4300_v40  ;;  %v8557_v38 = vpop.f32.mrb[33].mxu1  ;;  %v5279_v28 = vrot.slane %v12393_v43, %v11960_v10 }
 0x21f   :  { %v4371_v58 = vsel %vm3747_vm0, %v12359_v24, -inf }
 0x220   :  { %4372 = vmax.xlane.f32.xlu1 %v4371_v58 }
 0x223   :  { %v4456_v44 = vpop.f32.mrb[32].mxu0 }
 0x224   :  { %v12357_v45 = vadd.f32 %v4456_v44, %v4389_v41  ;;  %v8562_v32 = vpop.f32.mrb[33].mxu0 }
 0x225   :  { %v4545_v47 = vpop.f32.mrb[34].mxu1 }
 0x226   :  { %v4460_v57 = vsel %vm3747_vm0, %v12357_v45, -inf  ;;  %v12374_v50 = vadd.f32 %v4545_v47, %v4478_v46  ;;  %v8567_v52 = vpop.f32.mrb[35].mxu1 }
 0x227   :  { %v4634_v1 = vpop.f32.mrb[34].mxu0  ;;  %4461 = vmax.xlane.f32.xlu0 %v4460_v57  ;;  %v1356_v57 = vld [vmem:[%s12962_s12 + $0x18] sm:$0xff]  ;;  %v5457_v52 = vrot.slane %v12393_v43, %v11977_v29 }
 0x228   :  { %v12372_v49 = vadd.f32 %v4634_v1, %v4567_v42  ;;  %v8572_v53 = vpop.f32.mrb[35].mxu0  ;;  %v4549_v60 = vsel %vm3747_vm0, %v12374_v50, -inf  ;;  %vm1363_vm15 = vcmp.ge.s32.totalorder %v1356_v57, 0 }
 0x229   :  { %4550 = vmax.xlane.f32.xlu1 %v4549_v60  ;;  %v4723_v3 = vpop.f32.mrb[36].mxu1  ;;  %v5368_v53 = vrot.slane %v12393_v43, %v11972_v11 }
 0x22a   :  { %v4638_v0 = vsel %vm3747_vm0, %v12372_v49, -inf  ;;  %v12386_v9 = vadd.f32 %v4723_v3, %v4656_v56  ;;  %v8577_v17 = vpop.f32.mrb[37].mxu1 }
 0x22b   :  { %4639 = vmax.xlane.f32.xlu0 %v4638_v0 }
 0x22c   :  { %v4727_v12 = vsel %vm3747_vm0, %v12386_v9, -inf }
 0x22d   :  { %4728 = vmax.xlane.f32.xlu1 %v4727_v12 }
 0x235   :  { %v4812_v55 = vpop.f32.mrb[36].mxu0 }
 0x236   :  { %v12384_v8 = vadd.f32 %v4812_v55, %v4745_v19  ;;  %v8582_v21 = vpop.f32.mrb[37].mxu0 }
 0x237   :  { %v4901_v26 = vpop.f32.mrb[38].mxu1 }
 0x238   :  { %v4816_v62 = vsel %vm3747_vm0, %v12384_v8, -inf  ;;  %v12401_v30 = vadd.f32 %v4901_v26, %v4834_v39  ;;  %v8587_v27 = vpop.f32.mrb[39].mxu1  ;;  %v5546_v39 = vrot.slane %v12393_v43, %v11985_v6 }
 0x239   :  { %v4990_v13 = vpop.f32.mrb[38].mxu0  ;;  %4817 = vmax.xlane.f32.xlu0 %v4816_v62  ;;  %v12447_v62 = vsel %vm1363_vm15, %v12310_v51, 0.0 }
 0x23a   :  { %v12399_v5 = vadd.f32 %v4990_v13, %v4923_v31  ;;  %v8592_v59 = vpop.f32.mrb[39].mxu0  ;;  %v4905_v33 = vsel %vm3747_vm0, %v12401_v30, -inf  ;;  %v5635_v31 = vrot.slane %v12393_v43, %v11982_v7 }
 0x23b   :  { %4906 = vmax.xlane.f32.xlu1 %v4905_v33  ;;  %v5079_v41 = vpop.f32.mrb[40].mxu1  ;;  %v5813_v33 = vrot.slane %v12447_v62, %v9468_v16 }
 0x23c   :  { %v4994_v22 = vsel %vm3747_vm0, %v12399_v5, -inf  ;;  %v12413_v18 = vadd.f32 %v5079_v41, %v5012_v20  ;;  %v8597_v4 = vpop.f32.mrb[41].mxu1 }
 0x23d   :  { %4995 = vmax.xlane.f32.xlu0 %v4994_v22 }
 0x23e   :  { %v5083_v32 = vsel %vm3747_vm0, %v12413_v18, -inf }
 0x23f   :  { %5084 = vmax.xlane.f32.xlu1 %v5083_v32 }
 0x247   :  { %v5168_v37 = vpop.f32.mrb[40].mxu0 }
 0x248   :  { %v12411_v40 = vadd.f32 %v5168_v37, %v5101_v63  ;;  %v8602_v44 = vpop.f32.mrb[41].mxu0  ;;  %v5724_v37 = vrot.slane %v12393_v43, %v11992_v35  ;;  %v5902_v43 = vrot.slane %v12447_v62, %v11965_v61 }
 0x249   :  { %v5257_v46 = vpop.f32.mrb[42].mxu1 }
 0x24a   :  { %v5172_v38 = vsel %vm3747_vm0, %v12411_v40, -inf  ;;  %v12428_v1 = vadd.f32 %v5257_v46, %v5190_v36  ;;  %v8607_v47 = vpop.f32.mrb[43].mxu1  ;;  %v5991_v46 = vrot.slane %v12447_v62, %v11960_v10 }
 0x24b   :  { %v5346_v42 = vpop.f32.mrb[42].mxu0  ;;  %5173 = vmax.xlane.f32.xlu0 %v5172_v38 }
 0x24c   :  { %v12426_v58 = vadd.f32 %v5346_v42, %v5279_v28  ;;  %v8612_v48 = vpop.f32.mrb[43].mxu0  ;;  %v5261_v56 = vsel %vm3747_vm0, %v12428_v1, -inf }
 0x24d   :  { %5262 = vmax.xlane.f32.xlu1 %v5261_v56  ;;  %v5435_v60 = vpop.f32.mrb[44].mxu1 }
 0x24e   :  { %v5350_v19 = vsel %vm3747_vm0, %v12426_v58, -inf  ;;  %v12440_v3 = vadd.f32 %v5435_v60, %v5368_v53  ;;  %v8617_v17 = vpop.f32.mrb[45].mxu1  ;;  %v1357_v53 = vld [vmem:[%s12962_s12 + $0x20] sm:$0xff] }
 0x24f   :  { %5351 = vmax.xlane.f32.xlu0 %v5350_v19  ;;  %v6169_v17 = vrot.slane %v12447_v62, %v11977_v29  ;;  %vm1364_vm1 = vcmp.ge.s32.totalorder %v1357_v53, 0 }
 0x250   :  { %v5439_v13 = vsel %vm3747_vm0, %v12440_v3, -inf }
 0x251   :  { %5440 = vmax.xlane.f32.xlu1 %v5439_v13 }
 0x259   :  { %v5524_v0 = vpop.f32.mrb[44].mxu0 }
 0x25a   :  { %v12438_v55 = vadd.f32 %v5524_v0, %v5457_v52  ;;  %v8622_v21 = vpop.f32.mrb[45].mxu0 }
 0x25b   :  { %v5613_v27 = vpop.f32.mrb[46].mxu1  ;;  %v6080_v21 = vrot.slane %v12447_v62, %v11972_v11 }
 0x25c   :  { %v5528_v12 = vsel %vm3747_vm0, %v12438_v55, -inf  ;;  %v12455_v63 = vadd.f32 %v5613_v27, %v5546_v39  ;;  %v8627_v20 = vpop.f32.mrb[47].mxu1 }
 0x25d   :  { %v5702_v26 = vpop.f32.mrb[46].mxu0  ;;  %5529 = vmax.xlane.f32.xlu0 %v5528_v12 }
 0x25e   :  { %v12453_v59 = vadd.f32 %v5702_v26, %v5635_v31  ;;  %v8632_v22 = vpop.f32.mrb[47].mxu0  ;;  %v5617_v4 = vsel %vm3747_vm0, %v12455_v63, -inf }
 0x25f   :  { %5618 = vmax.xlane.f32.xlu1 %v5617_v4  ;;  %v5791_v28 = vpop.f32.mrb[48].mxu1 }
 0x260   :  { %v5706_v41 = vsel %vm3747_vm0, %v12453_v59, -inf  ;;  %v12467_v38 = vadd.f32 %v5791_v28, %v5724_v37  ;;  %v8637_v32 = vpop.f32.mrb[49].mxu1  ;;  %v6258_v37 = vrot.slane %v12447_v62, %v11985_v6 }
 0x261   :  { %5707 = vmax.xlane.f32.xlu0 %v5706_v41  ;;  %v12501_v41 = vsel %vm1364_vm1, %v12310_v51, 0.0 }
 0x262   :  { %v5795_v47 = vsel %vm3747_vm0, %v12467_v38, -inf }
 0x263   :  { %5796 = vmax.xlane.f32.xlu1 %v5795_v47  ;;  %v6525_v47 = vrot.slane %v12501_v41, %v9468_v16 }
 0x26b   :  { %v5880_v44 = vpop.f32.mrb[48].mxu0 }
 0x26c   :  { %v12465_v36 = vadd.f32 %v5880_v44, %v5813_v33  ;;  %v8642_v42 = vpop.f32.mrb[49].mxu0  ;;  %v6347_v33 = vrot.slane %v12447_v62, %v11982_v7 }
 0x26d   :  { %v5969_v52 = vpop.f32.mrb[50].mxu1 }
 0x26e   :  { %v5884_v57 = vsel %vm3747_vm0, %v12465_v36, -inf  ;;  %v12482_v56 = vadd.f32 %v5969_v52, %v5902_v43  ;;  %v8647_v0 = vpop.f32.mrb[51].mxu1 }
 0x26f   :  { %v6058_v48 = vpop.f32.mrb[50].mxu0  ;;  %5885 = vmax.xlane.f32.xlu0 %v5884_v57 }
 0x270   :  { %v12480_v19 = vadd.f32 %v6058_v48, %v5991_v46  ;;  %v8652_v60 = vpop.f32.mrb[51].mxu0  ;;  %v5973_v39 = vsel %vm3747_vm0, %v12482_v56, -inf  ;;  %v6436_v48 = vrot.slane %v12447_v62, %v11992_v35  ;;  %v6614_v62 = vrot.slane %v12501_v41, %v11965_v61 }
 0x271   :  { %5974 = vmax.xlane.f32.xlu1 %v5973_v39  ;;  %v6147_v13 = vpop.f32.mrb[52].mxu1 }
 0x272   :  { %v6062_v31 = vsel %vm3747_vm0, %v12480_v19, -inf  ;;  %v12494_v27 = vadd.f32 %v6147_v13, %v6080_v21  ;;  %v8657_v20 = vpop.f32.mrb[53].mxu1 }
 0x273   :  { %6063 = vmax.xlane.f32.xlu0 %v6062_v31 }
 0x274   :  { %v6151_v44 = vsel %vm3747_vm0, %v12494_v27, -inf }
 0x275   :  { %6152 = vmax.xlane.f32.xlu1 %v6151_v44 }
 0x27d   :  { %v6236_v12 = vpop.f32.mrb[52].mxu0 }
 0x27e   :  { %v12492_v26 = vadd.f32 %v6236_v12, %v6169_v17  ;;  %v8662_v22 = vpop.f32.mrb[53].mxu0  ;;  %v6703_v12 = vrot.slane %v12501_v41, %v11960_v10 }
 0x27f   :  { %v6325_v32 = vpop.f32.mrb[54].mxu1 }
 0x280   :  { %v6240_v4 = vsel %vm3747_vm0, %v12492_v26, -inf  ;;  %v12509_v46 = vadd.f32 %v6325_v32, %v6258_v37  ;;  %v8667_v43 = vpop.f32.mrb[55].mxu1  ;;  %v1358_v37 = vld [vmem:[%s12962_s12 + $0x28] sm:$0xff] }
 0x281   :  { %v6414_v28 = vpop.f32.mrb[54].mxu0  ;;  %6241 = vmax.xlane.f32.xlu0 %v6240_v4  ;;  %v6881_v43 = vrot.slane %v12501_v41, %v11977_v29  ;;  %vm1365_vm4 = vcmp.ge.s32.totalorder %v1358_v37, 0 }
 0x282   :  { %v12507_v42 = vadd.f32 %v6414_v28, %v6347_v33  ;;  %v8672_v57 = vpop.f32.mrb[55].mxu0  ;;  %v6329_v53 = vsel %vm3747_vm0, %v12509_v46, -inf }
 0x283   :  { %6330 = vmax.xlane.f32.xlu1 %v6329_v53  ;;  %v6503_v60 = vpop.f32.mrb[56].mxu1  ;;  %v6792_v57 = vrot.slane %v12501_v41, %v11972_v11 }
 0x284   :  { %v6418_v52 = vsel %vm3747_vm0, %v12507_v42, -inf  ;;  %v12521_v21 = vadd.f32 %v6503_v60, %v6436_v48  ;;  %v8677_v31 = vpop.f32.mrb[57].mxu1 }
 0x285   :  { %6419 = vmax.xlane.f32.xlu0 %v6418_v52 }
 0x286   :  { %v6507_v20 = vsel %vm3747_vm0, %v12521_v21, -inf }
 0x287   :  { %6508 = vmax.xlane.f32.xlu1 %v6507_v20 }
 0x28f   :  { %v6592_v0 = vpop.f32.mrb[56].mxu0 }
 0x290   :  { %v12519_v17 = vadd.f32 %v6592_v0, %v6525_v47  ;;  %v8682_v39 = vpop.f32.mrb[57].mxu0 }
 0x291   :  { %v6681_v33 = vpop.f32.mrb[58].mxu1 }
 0x292   :  { %v6596_v13 = vsel %vm3747_vm0, %v12519_v17, -inf  ;;  %v12536_v44 = vadd.f32 %v6681_v33, %v6614_v62  ;;  %v8687_v28 = vpop.f32.mrb[59].mxu1  ;;  %v6970_v62 = vrot.slane %v12501_v41, %v11985_v6 }
 0x293   :  { %v6770_v22 = vpop.f32.mrb[58].mxu0  ;;  %6597 = vmax.xlane.f32.xlu0 %v6596_v13  ;;  %v12555_v13 = vsel %vm1365_vm4, %v12310_v51, 0.0 }
 0x294   :  { %v12534_v4 = vadd.f32 %v6770_v22, %v6703_v12  ;;  %v8692_v32 = vpop.f32.mrb[59].mxu0  ;;  %v6685_v48 = vsel %vm3747_vm0, %v12536_v44, -inf  ;;  %v7059_v12 = vrot.slane %v12501_v41, %v11982_v7 }
 0x295   :  { %6686 = vmax.xlane.f32.xlu1 %v6685_v48  ;;  %v6859_v53 = vpop.f32.mrb[60].mxu1  ;;  %v7148_v48 = vrot.slane %v12501_v41, %v11992_v35  ;;  %v7326_v41 = vrot.slane %v12555_v13, %v11965_v61 }
 0x296   :  { %v6774_v47 = vsel %vm3747_vm0, %v12534_v4, -inf  ;;  %v12548_v60 = vadd.f32 %v6859_v53, %v6792_v57  ;;  %v8697_v31 = vpop.f32.mrb[61].mxu1 }
 0x297   :  { %6775 = vmax.xlane.f32.xlu0 %v6774_v47  ;;  %v7237_v47 = vrot.slane %v12555_v13, %v9468_v16 }
 0x298   :  { %v6863_v22 = vsel %vm3747_vm0, %v12548_v60, -inf }
 0x299   :  { %6864 = vmax.xlane.f32.xlu1 %v6863_v22 }
 0x2a2   :  { %v6948_v52 = vpop.f32.mrb[60].mxu0 }
 0x2a3   :  { %v12546_v0 = vadd.f32 %v6948_v52, %v6881_v43  ;;  %v8702_v39 = vpop.f32.mrb[61].mxu0 }
 0x2a4   :  { %v7037_v37 = vpop.f32.mrb[62].mxu1 }
 0x2a5   :  { %v6952_v20 = vsel %vm3747_vm0, %v12546_v0, -inf  ;;  %v12563_v32 = vadd.f32 %v7037_v37, %v6970_v62  ;;  %v8707_v43 = vpop.f32.mrb[63].mxu1 }
 0x2a6   :  { %v7126_v33 = vpop.f32.mrb[62].mxu0  ;;  %6953 = vmax.xlane.f32.xlu0 %v6952_v20 }
 0x2a7   :  { %v12561_v28 = vadd.f32 %v7126_v33, %v7059_v12  ;;  %v8712_v57 = vpop.f32.mrb[63].mxu0  ;;  %v7041_v53 = vsel %vm3747_vm0, %v12563_v32, -inf  ;;  %v7415_v33 = vrot.slane %v12555_v13, %v11960_v10  ;;  %v7593_v10 = vrot.slane %v12555_v13, %v11977_v29 }
 0x2a8   :  { %7042 = vmax.xlane.f32.xlu1 %v7041_v53  ;;  %v7215_v39 = vpop.f32.mrb[64].mxu1  ;;  %v7682_v29 = vrot.slane %v12555_v13, %v11985_v6  ;;  %v7860_v6 = vrot.slane %v12555_v13, %v11992_v35 }
 0x2a9   :  { %v7130_v52 = vsel %vm3747_vm0, %v12561_v28, -inf  ;;  %v12575_v62 = vadd.f32 %v7215_v39, %v7148_v48  ;;  %v8717_v20 = vpop.f32.mrb[65].mxu1  ;;  %v7504_v39 = vrot.slane %v12555_v13, %v11972_v11  ;;  %v7771_v11 = vrot.slane %v12555_v13, %v11982_v7 }
 0x2aa   :  { %7131 = vmax.xlane.f32.xlu0 %v7130_v52 }
 0x2ab   :  { %v7219_v43 = vsel %vm3747_vm0, %v12575_v62, -inf }
 0x2ac   :  { %7220 = vmax.xlane.f32.xlu1 %v7219_v43 }
 0x2b3   :  { %v7304_v31 = vpop.f32.mrb[64].mxu0 }
 0x2b4   :  { %v12573_v12 = vadd.f32 %v7304_v31, %v7237_v47  ;;  %v8722_v22 = vpop.f32.mrb[65].mxu0 }
 0x2b5   :  { %v7393_v47 = vpop.f32.mrb[66].mxu1 }
 0x2b6   :  { %v7308_v37 = vsel %vm3747_vm0, %v12573_v12, -inf  ;;  %v12587_v52 = vadd.f32 %v7393_v47, %v7326_v41  ;;  %v8727_v53 = vpop.f32.mrb[67].mxu1 }
 0x2b7   :  { %v7482_v57 = vpop.f32.mrb[66].mxu0  ;;  %7309 = vmax.xlane.f32.xlu0 %v7308_v37 }
 0x2b8   :  { %v12585_v48 = vadd.f32 %v7482_v57, %v7415_v33  ;;  %v8732_v31 = vpop.f32.mrb[67].mxu0  ;;  %v7397_v22 = vsel %vm3747_vm0, %v12587_v52, -inf }
 0x2b9   :  { %7398 = vmax.xlane.f32.xlu1 %v7397_v22  ;;  %v7571_v33 = vpop.f32.mrb[68].mxu1 }
 0x2ba   :  { %v7486_v20 = vsel %vm3747_vm0, %v12585_v48, -inf  ;;  %v12599_v43 = vadd.f32 %v7571_v33, %v7504_v39  ;;  %v8737_v57 = vpop.f32.mrb[69].mxu1 }
 0x2bb   :  { %7487 = vmax.xlane.f32.xlu0 %v7486_v20 }
 0x2bc   :  { %v7575_v31 = vsel %vm3747_vm0, %v12599_v43, -inf }
 0x2bd   :  { %v7660_v37 = vpop.f32.mrb[68].mxu0  ;;  %7576 = vmax.xlane.f32.xlu1 %v7575_v31 }
 0x2be   :  { %v12597_v41 = vadd.f32 %v7660_v37, %v7593_v10  ;;  %v8742_v47 = vpop.f32.mrb[69].mxu0 }
 0x2bf   :  { %v7749_v10 = vpop.f32.mrb[70].mxu1 }
 0x2c0   :  { %v7664_v53 = vsel %vm3747_vm0, %v12597_v41, -inf  ;;  %v12609_v20 = vadd.f32 %v7749_v10, %v7682_v29  ;;  %v8747_v22 = vpop.f32.mrb[71].mxu1 }
 0x2c1   :  { %7665 = vmax.xlane.f32.xlu0 %v7664_v53  ;;  %v7838_v39 = vpop.f32.mrb[70].mxu0 }
 0x2c2   :  { %v12613_v37 = vadd.f32 %v7838_v39, %v7771_v11  ;;  %v8752_v33 = vpop.f32.mrb[71].mxu0  ;;  %v7753_v7 = vsel %vm3747_vm0, %v12609_v20, -inf  ;;  %v3928_v11 = vpop.xlane.xlu1 %3927 }
 0x2c3   :  { %7754 = vmax.xlane.f32.xlu1 %v7753_v7  ;;  %v7927_v57 = vpop.f32.mrb[72].mxu1  ;;  %v3750_v39 = vpop.xlane.xlu0 %3749  ;;  %v3929_v33 = vsub.f32 %v12317_v54, %v3928_v11 }
 0x2c4   :  { %13851 = vst [vmem:[#allocation13_spill] sm:$0xff] %v12613_v37  ;;  %v7842_v47 = vsel %vm3747_vm0, %v12613_v37, -inf  ;;  %v12619_v53 = vadd.f32 %v7927_v57, %v7860_v6  ;;  %v8757_v29 = vpop.f32.mrb[73].mxu1  ;;  %v3751_v7 = vsub.f32 %v12315_v2, %v3750_v39  ;;  %v1359_v6 = vld [vmem:[%s12962_s12 + $0x30] sm:$0x3]  ;;  %s9357_s12 = smov [#allocation9]  }
 0x2c5   :  { %v8016_v31 = vpop.f32.mrb[72].mxu0  ;;  %v3930_v57 = vmul.f32 1.442695, %v3929_v33  ;;  %vm1366_vm11 = vcmp.ge.s32.totalorder %v1359_v6, 0  ;;  %s8132_s22 = sshll.u32 %s9357_s12, 4  ;;  %s8133_s22 = int_to_ptr.vmem [resolvable:$true] %s8132_s22 }
 0x2c6   :  { %13852 = vst [vmem:[#allocation14_spill] sm:$0xff] %v12619_v53  ;;  %v8762_v10 = vpop.f32.mrb[73].mxu0  ;;  %v7931_v35 = vsel %vm3747_vm0, %v12619_v53, -inf  ;;  %v3752_v29 = vmul.f32 1.442695, %v3751_v7  ;;  %v4017_v53 = vpop.xlane.xlu1 %4016  ;;  %v1379_v37 = vsel %vm1366_vm11, %v12310_v51, 0.0  ;;  %p9328_p3 = scmp.lt.s32.totalorder %s8133_s22, %s8133_s22 }
 0x2c7   :  { %7843 = vmax.xlane.f32.xlu1 %v7842_v47  ;;  %v8105_v22 = vpop.f32.mrb[74].mxu1  ;;  %v3839_v10 = vpop.xlane.xlu0 %3838  ;;  %9077 = vpow2.f32 %v3930_v57  ;;  %v4018_v54 = vsub.f32 %v12335_v14, %v4017_v53  ;;  %v7949_v39 = vrot.slane %v1379_v37, %v9468_v16  ;;  %s9323_s7 = scalar_lea.vmem %s8133_s22, 32 }
 0x2c8   :  { %v8767_v13 = vpop.f32.mrb[75].mxu1  ;;  %v3840_v47 = vsub.f32 %v12327_v25, %v3839_v10  ;;  %9079 = vpow2.f32 %v3752_v29  ;;  %p9324_p2 = scmp.ne.s32.totalorder %s8133_s22, %s9323_s7  ;;  %p9329_p4 = scmp.lt.s32.totalorder %s9323_s7, %s9323_s7 }
 0x2c9   :  { %v4019_v11 = vmul.f32 1.442695, %v4018_v54  ;;  %v12636_v29 = vadd.f32 %v8016_v31, %v7949_v39 }
 0x2ca   :  { %v3841_v13 = vmul.f32 1.442695, %v3840_v47  ;;  %v4195_v57 = vpop.xlane.xlu1 %4194  ;;  %p9330_p5 = por %p9329_p4, %p9328_p3 }
 0x2cb   :  { %7932 = vmax.xlane.f32.xlu1 %v7931_v35  ;;  %v4106_v35 = vpop.xlane.xlu0 %4105  ;;  %v4196_v25 = vsub.f32 %v12348_v34, %v4195_v57  ;;  %v8038_v34 = vrot.slane %v1379_v37, %v11965_v61 }
 0x2cc   :  { %9081 = vpow2.f32 %v3841_v13  ;;  %v4107_v2 = vsub.f32 %v12333_v15, %v4106_v35  ;;  %p9331_p6 = pnand %p9330_p5, %p9324_p2 }
 0x2cd   :  { %9083 = vpow2.f32 %v4019_v11  ;;  %v4197_v15 = vmul.f32 1.442695, %v4196_v25 }
 0x2ce   :  { %v4108_v33 = vmul.f32 1.442695, %v4107_v2  ;;  %v4373_v53 = vpop.xlane.xlu1 %4372 }
 0x2cf   :  { %v4284_v7 = vpop.xlane.xlu0 %4283  ;;  %v4374_v47 = vsub.f32 %v12359_v24, %v4373_v53  ;;  %v12654_v24 = vadd.f32 %v8105_v22, %v8038_v34 }
 0x2d0   :  { %9085 = vpow2.f32 %v4108_v33  ;;  %v4285_v51 = vsub.f32 %v12346_v23, %v4284_v7  ;;  %v8020_v23 = vsel %vm3747_vm0, %v12636_v29, -inf }
 0x2d1   :  { %v12634_v6 = vpop.eup %9077  ;;  %v4375_v35 = vmul.f32 1.442695, %v4374_v47  ;;  %9087 = vpow2.f32 %v4197_v15 }
 0x2d2   :  { %v12638_v10 = vpop.eup %9079  ;;  %v3932_v16 = vsel %vm3747_vm0, %v12634_v6, 0.0  ;;  %v4286_v2 = vmul.f32 1.442695, %v4285_v51  ;;  %v4551_v39 = vpop.xlane.xlu1 %4550 }
 0x2d3   :  { %v4462_v14 = vpop.xlane.xlu0 %4461  ;;  %3933 = vadd.xlane.f32.xlu0 %v3932_v16  ;;  %v3754_v31 = vsel %vm3747_vm0, %v12638_v10, 0.0  ;;  %v4552_v37 = vsub.f32 %v12374_v50, %v4551_v39  ;;  %9089 = vpow2.f32 %v4375_v35  ;;  %v8109_v50 = vsel %vm3747_vm0, %v12654_v24, -inf }
 0x2d4   :  { %3755 = vadd.xlane.f32.xlu1 %v3754_v31  ;;  %v4463_v54 = vsub.f32 %v12357_v45, %v4462_v14  ;;  %9091 = vpow2.f32 %v4286_v2 }
 0x2d5   :  { %v4553_v33 = vmul.f32 1.442695, %v4552_v37 }
 0x2d6   :  { %v12647_v13 = vpop.eup %9081  ;;  %v4464_v57 = vmul.f32 1.442695, %v4463_v54  ;;  %v4729_v51 = vpop.xlane.xlu1 %4728 }
 0x2d7   :  { %v4640_v11 = vpop.xlane.xlu0 %4639  ;;  %v3843_v61 = vsel %vm3747_vm0, %v12647_v13, 0.0  ;;  %v12657_v7 = vpop.eup %9083  ;;  %v4730_v15 = vsub.f32 %v12386_v9, %v4729_v51  ;;  %9093 = vpow2.f32 %v4553_v33 }
 0x2d8   :  { %3844 = vadd.xlane.f32.xlu0 %v3843_v61  ;;  %8021 = vmax.xlane.f32.xlu1 %v8020_v23  ;;  %v4641_v25 = vsub.f32 %v12372_v49, %v4640_v11  ;;  %v4021_v22 = vsel %vm3747_vm0, %v12657_v7, 0.0  ;;  %9095 = vpow2.f32 %v4464_v57 }
 0x2d9   :  { %v4731_v53 = vmul.f32 1.442695, %v4730_v15 }
 0x2da   :  { %v12665_v14 = vpop.eup %9085  ;;  %v4642_v16 = vmul.f32 1.442695, %v4641_v25  ;;  %v4907_v34 = vpop.xlane.xlu1 %4906 }
 0x2db   :  { %v4818_v45 = vpop.xlane.xlu0 %4817  ;;  %v4908_v9 = vsub.f32 %v12401_v30, %v4907_v34  ;;  %v4110_v31 = vsel %vm3747_vm0, %v12665_v14, 0.0  ;;  %v12671_v35 = vpop.eup %9087  ;;  %9097 = vpow2.f32 %v4731_v53 }
 0x2dc   :  { %4022 = vadd.xlane.f32.xlu0 %v4021_v22  ;;  %8110 = vmax.xlane.f32.xlu1 %v8109_v50  ;;  %v4819_v49 = vsub.f32 %v12384_v8, %v4818_v45  ;;  %9099 = vpow2.f32 %v4642_v16  ;;  %v4199_v30 = vsel %vm3747_vm0, %v12671_v35, 0.0 }
 0x2dd   :  { %v4909_v23 = vmul.f32 1.442695, %v4908_v9  ;;  %v12673_v2 = vpop.eup %9089 }
 0x2de   :  { %v4820_v54 = vmul.f32 1.442695, %v4819_v49  ;;  %v5085_v8 = vpop.xlane.xlu1 %5084  ;;  %v4377_v37 = vsel %vm3747_vm0, %v12673_v2, 0.0  ;;  %v12681_v33 = vpop.eup %9091 }
 0x2df   :  { %v4996_v47 = vpop.xlane.xlu0 %4995  ;;  %v5086_v61 = vsub.f32 %v12413_v18, %v5085_v8  ;;  %9101 = vpow2.f32 %v4909_v23  ;;  %v4288_v22 = vsel %vm3747_vm0, %v12681_v33, 0.0 }
 0x2e0   :  { %4111 = vadd.xlane.f32.xlu0 %v4110_v31  ;;  %v4997_v11 = vsub.f32 %v12399_v5, %v4996_v47  ;;  %4378 = vadd.xlane.f32.xlu1 %v4377_v37  ;;  %9103 = vpow2.f32 %v4820_v54 }
 0x2e1   :  { %v5087_v57 = vmul.f32 1.442695, %v5086_v61  ;;  %v12683_v25 = vpop.eup %9093 }
 0x2e2   :  { %v4998_v5 = vmul.f32 1.442695, %v4997_v11  ;;  %v5263_v18 = vpop.xlane.xlu1 %5262  ;;  %v4555_v50 = vsel %vm3747_vm0, %v12683_v25, 0.0  ;;  %v12691_v53 = vpop.eup %9095 }
 0x2e3   :  { %v5174_v39 = vpop.xlane.xlu0 %5173  ;;  %v5264_v15 = vsub.f32 %v12428_v1, %v5263_v18  ;;  %9105 = vpow2.f32 %v5087_v57  ;;  %v4466_v31 = vsel %vm3747_vm0, %v12691_v53, 0.0 }
 0x2e4   :  { %4200 = vadd.xlane.f32.xlu0 %v4199_v30  ;;  %v5175_v45 = vsub.f32 %v12411_v40, %v5174_v39  ;;  %4556 = vadd.xlane.f32.xlu1 %v4555_v50  ;;  %9107 = vpow2.f32 %v4998_v5 }
 0x2e5   :  { %v5265_v16 = vmul.f32 1.442695, %v5264_v15  ;;  %v12693_v49 = vpop.eup %9097 }
 0x2e6   :  { %v5176_v40 = vmul.f32 1.442695, %v5175_v45  ;;  %v5441_v1 = vpop.xlane.xlu1 %5440  ;;  %v4733_v23 = vsel %vm3747_vm0, %v12693_v49, 0.0  ;;  %v12701_v54 = vpop.eup %9099 }
 0x2e7   :  { %v5352_v51 = vpop.xlane.xlu0 %5351  ;;  %v5442_v9 = vsub.f32 %v12440_v3, %v5441_v1  ;;  %9109 = vpow2.f32 %v5265_v16  ;;  %v4644_v37 = vsel %vm3747_vm0, %v12701_v54, 0.0 }
 0x2e8   :  { %4289 = vadd.xlane.f32.xlu0 %v4288_v22  ;;  %v5353_v47 = vsub.f32 %v12426_v58, %v5352_v51  ;;  %4734 = vadd.xlane.f32.xlu1 %v4733_v23  ;;  %9111 = vpow2.f32 %v5176_v40 }
 0x2e9   :  { %v5443_v11 = vmul.f32 1.442695, %v5442_v9  ;;  %v12703_v39 = vpop.eup %9101 }
 0x2ea   :  { %v5354_v58 = vmul.f32 1.442695, %v5353_v47  ;;  %v4911_v57 = vsel %vm3747_vm0, %v12703_v39, 0.0  ;;  %v12711_v5 = vpop.eup %9103 }
 0x2eb   :  { %v5530_v34 = vpop.xlane.xlu0 %5529  ;;  %9113 = vpow2.f32 %v5443_v11  ;;  %v4822_v50 = vsel %vm3747_vm0, %v12711_v5, 0.0 }
 0x2ec   :  { %4467 = vadd.xlane.f32.xlu0 %v4466_v31  ;;  %v5531_v8 = vsub.f32 %v12438_v55, %v5530_v34  ;;  %v5619_v3 = vpop.xlane.xlu1 %5618  ;;  %4912 = vadd.xlane.f32.xlu1 %v4911_v57  ;;  %9115 = vpow2.f32 %v5354_v58 }
 0x2ed   :  { %v5620_v30 = vsub.f32 %v12455_v63, %v5619_v3  ;;  %v12713_v51 = vpop.eup %9105 }
 0x2ee   :  { %v5532_v55 = vmul.f32 1.442695, %v5531_v8  ;;  %v5089_v16 = vsel %vm3747_vm0, %v12713_v51, 0.0  ;;  %v12721_v40 = vpop.eup %9107 }
 0x2ef   :  { %v5708_v61 = vpop.xlane.xlu0 %5707  ;;  %v5621_v45 = vmul.f32 1.442695, %v5620_v30  ;;  %v5000_v23 = vsel %vm3747_vm0, %v12721_v40, 0.0 }
 0x2f0   :  { %4645 = vadd.xlane.f32.xlu0 %v4644_v37  ;;  %v5709_v18 = vsub.f32 %v12453_v59, %v5708_v61  ;;  %v5797_v63 = vpop.xlane.xlu1 %5796  ;;  %5090 = vadd.xlane.f32.xlu1 %v5089_v16 }
 0x2f1   :  { %v5798_v22 = vsub.f32 %v12467_v38, %v5797_v63  ;;  %9117 = vpow2.f32 %v5621_v45  ;;  %v12723_v34 = vpop.eup %9109 }
 0x2f2   :  { %9119 = vpow2.f32 %v5532_v55  ;;  %v5710_v59 = vmul.f32 1.442695, %v5709_v18  ;;  %v5267_v11 = vsel %vm3747_vm0, %v12723_v34, 0.0  ;;  %v12731_v58 = vpop.eup %9111 }
 0x2f3   :  { %v5799_v47 = vmul.f32 1.442695, %v5798_v22  ;;  %v5178_v57 = vsel %vm3747_vm0, %v12731_v58, 0.0 }
 0x2f4   :  { %4823 = vadd.xlane.f32.xlu0 %v4822_v50  ;;  %5268 = vadd.xlane.f32.xlu1 %v5267_v11 }
 0x2f5   :  { %9121 = vpow2.f32 %v5799_v47  ;;  %v12733_v61 = vpop.eup %9113 }
 0x2f6   :  { %9123 = vpow2.f32 %v5710_v59  ;;  %v5445_v45 = vsel %vm3747_vm0, %v12733_v61, 0.0  ;;  %v12741_v55 = vpop.eup %9115 }
 0x2f7   :  { %v5356_v16 = vsel %vm3747_vm0, %v12741_v55, 0.0 }
 0x2f8   :  { %5001 = vadd.xlane.f32.xlu0 %v5000_v23  ;;  %5446 = vadd.xlane.f32.xlu1 %v5445_v45 }
 0x2fc   :  { %v5886_v15 = vpop.xlane.xlu0 %5885  ;;  %5179 = vadd.xlane.f32.xlu0 %v5178_v57 }
 0x2fd   :  { %v5887_v1 = vsub.f32 %v12465_v36, %v5886_v15  ;;  %v12743_v15 = vpop.eup %9117 }
 0x2fe   :  { %v5975_v38 = vpop.xlane.xlu1 %5974  ;;  %v5623_v47 = vsel %vm3747_vm0, %v12743_v15, 0.0  ;;  %v12751_v59 = vpop.eup %9119 }
 0x2ff   :  { %v5976_v31 = vsub.f32 %v12482_v56, %v5975_v38  ;;  %v5888_v36 = vmul.f32 1.442695, %v5887_v1  ;;  %5624 = vadd.xlane.f32.xlu1 %v5623_v47  ;;  %v5534_v11 = vsel %vm3747_vm0, %v12751_v59, 0.0 }
 0x300   :  { %v6064_v9 = vpop.xlane.xlu0 %6063  ;;  %5357 = vadd.xlane.f32.xlu0 %v5356_v16 }
 0x301   :  { %v5977_v8 = vmul.f32 1.442695, %v5976_v31  ;;  %v6065_v3 = vsub.f32 %v12480_v19, %v6064_v9  ;;  %v12753_v9 = vpop.eup %9121 }
 0x302   :  { %v6153_v56 = vpop.xlane.xlu1 %6152 }
 0x303   :  { %v6154_v37 = vsub.f32 %v12494_v27, %v6153_v56  ;;  %9125 = vpow2.f32 %v5977_v8  ;;  %v6066_v19 = vmul.f32 1.442695, %v6065_v3  ;;  %v5801_v8 = vsel %vm3747_vm0, %v12753_v9, 0.0 }
 0x304   :  { %9127 = vpow2.f32 %v5888_v36  ;;  %v12761_v36 = vpop.eup %9123  ;;  %5535 = vadd.xlane.f32.xlu0 %v5534_v11  ;;  %5802 = vadd.xlane.f32.xlu1 %v5801_v8 }
 0x305   :  { %v6155_v18 = vmul.f32 1.442695, %v6154_v37  ;;  %v5712_v45 = vsel %vm3747_vm0, %v12761_v36, 0.0 }
 0x307   :  { %9129 = vpow2.f32 %v6155_v18 }
 0x308   :  { %9131 = vpow2.f32 %v6066_v19  ;;  %5713 = vadd.xlane.f32.xlu0 %v5712_v45 }
 0x30e   :  { %v6242_v30 = vpop.xlane.xlu0 %6241 }
 0x30f   :  { %v6243_v63 = vsub.f32 %v12492_v26, %v6242_v30  ;;  %v12763_v30 = vpop.eup %9125 }
 0x310   :  { %v6331_v27 = vpop.xlane.xlu1 %6330  ;;  %v5979_v18 = vsel %vm3747_vm0, %v12763_v30, 0.0  ;;  %v12771_v19 = vpop.eup %9127 }
 0x311   :  { %v6332_v50 = vsub.f32 %v12509_v46, %v6331_v27  ;;  %v6244_v26 = vmul.f32 1.442695, %v6243_v63  ;;  %5980 = vadd.xlane.f32.xlu1 %v5979_v18  ;;  %v5890_v47 = vsel %vm3747_vm0, %v12771_v19, 0.0 }
 0x312   :  { %v6420_v22 = vpop.xlane.xlu0 %6419  ;;  %5891 = vadd.xlane.f32.xlu0 %v5890_v47 }
 0x313   :  { %v6333_v1 = vmul.f32 1.442695, %v6332_v50  ;;  %v6421_v38 = vsub.f32 %v12507_v42, %v6420_v22  ;;  %v12773_v22 = vpop.eup %9129 }
 0x314   :  { %v6509_v46 = vpop.xlane.xlu1 %6508 }
 0x315   :  { %v6510_v23 = vsub.f32 %v12521_v21, %v6509_v46  ;;  %9133 = vpow2.f32 %v6333_v1  ;;  %v6422_v42 = vmul.f32 1.442695, %v6421_v38  ;;  %v6157_v1 = vsel %vm3747_vm0, %v12773_v22, 0.0 }
 0x316   :  { %9135 = vpow2.f32 %v6244_v26  ;;  %v12781_v26 = vpop.eup %9131  ;;  %6158 = vadd.xlane.f32.xlu1 %v6157_v1 }
 0x317   :  { %v6511_v3 = vmul.f32 1.442695, %v6510_v23  ;;  %v6068_v8 = vsel %vm3747_vm0, %v12781_v26, 0.0 }
 0x318   :  { %6069 = vadd.xlane.f32.xlu0 %v6068_v8 }
 0x319   :  { %9137 = vpow2.f32 %v6511_v3 }
 0x31a   :  { %9139 = vpow2.f32 %v6422_v42 }
 0x320   :  { %v6598_v31 = vpop.xlane.xlu0 %6597 }
 0x321   :  { %v6599_v56 = vsub.f32 %v12519_v17, %v6598_v31  ;;  %v12783_v31 = vpop.eup %9133 }
 0x322   :  { %v6687_v21 = vpop.xlane.xlu1 %6686  ;;  %v6335_v3 = vsel %vm3747_vm0, %v12783_v31, 0.0  ;;  %v12791_v42 = vpop.eup %9135 }
 0x323   :  { %v6688_v57 = vsub.f32 %v12536_v44, %v6687_v21  ;;  %v6600_v17 = vmul.f32 1.442695, %v6599_v56  ;;  %6336 = vadd.xlane.f32.xlu1 %v6335_v3  ;;  %v6246_v18 = vsel %vm3747_vm0, %v12791_v42, 0.0 }
 0x324   :  { %v6776_v37 = vpop.xlane.xlu0 %6775  ;;  %6247 = vadd.xlane.f32.xlu0 %v6246_v18 }
 0x325   :  { %v6689_v63 = vmul.f32 1.442695, %v6688_v57  ;;  %v6777_v27 = vsub.f32 %v12534_v4, %v6776_v37  ;;  %v12793_v37 = vpop.eup %9137 }
 0x326   :  { %v6865_v44 = vpop.xlane.xlu1 %6864 }
 0x327   :  { %v6866_v16 = vsub.f32 %v12548_v60, %v6865_v44  ;;  %9141 = vpow2.f32 %v6689_v63  ;;  %v6778_v4 = vmul.f32 1.442695, %v6777_v27  ;;  %v6513_v63 = vsel %vm3747_vm0, %v12793_v37, 0.0 }
 0x328   :  { %9143 = vpow2.f32 %v6600_v17  ;;  %v12801_v17 = vpop.eup %9139  ;;  %6514 = vadd.xlane.f32.xlu1 %v6513_v63 }
 0x329   :  { %v6867_v38 = vmul.f32 1.442695, %v6866_v16  ;;  %v6424_v1 = vsel %vm3747_vm0, %v12801_v17, 0.0 }
 0x32a   :  { %6425 = vadd.xlane.f32.xlu0 %v6424_v1 }
 0x32b   :  { %9145 = vpow2.f32 %v6867_v38 }
 0x32c   :  { %9147 = vpow2.f32 %v6778_v4 }
 0x333   :  { %v6954_v50 = vpop.xlane.xlu0 %6953 }
 0x334   :  { %v6955_v46 = vsub.f32 %v12546_v0, %v6954_v50  ;;  %v12803_v50 = vpop.eup %9141 }
 0x335   :  { %v7043_v60 = vpop.xlane.xlu1 %7042  ;;  %v6691_v38 = vsel %vm3747_vm0, %v12803_v50, 0.0  ;;  %v12811_v4 = vpop.eup %9143 }
 0x336   :  { %v7044_v11 = vsub.f32 %v12563_v32, %v7043_v60  ;;  %v6956_v0 = vmul.f32 1.442695, %v6955_v46  ;;  %6692 = vadd.xlane.f32.xlu1 %v6691_v38  ;;  %v6602_v3 = vsel %vm3747_vm0, %v12811_v4, 0.0 }
 0x337   :  { %v7132_v23 = vpop.xlane.xlu0 %7131  ;;  %6603 = vadd.xlane.f32.xlu0 %v6602_v3 }
 0x338   :  { %v7045_v56 = vmul.f32 1.442695, %v7044_v11  ;;  %v7133_v21 = vsub.f32 %v12561_v28, %v7132_v23  ;;  %v12813_v23 = vpop.eup %9145 }
 0x339   :  { %v7221_v32 = vpop.xlane.xlu1 %7220 }
 0x33a   :  { %v7222_v45 = vsub.f32 %v12575_v62, %v7221_v32  ;;  %9149 = vpow2.f32 %v7045_v56  ;;  %v7134_v28 = vmul.f32 1.442695, %v7133_v21  ;;  %v6869_v56 = vsel %vm3747_vm0, %v12813_v23, 0.0 }
 0x33b   :  { %9151 = vpow2.f32 %v6956_v0  ;;  %v12821_v0 = vpop.eup %9147  ;;  %6870 = vadd.xlane.f32.xlu1 %v6869_v56 }
 0x33c   :  { %v7223_v27 = vmul.f32 1.442695, %v7222_v45  ;;  %v6780_v18 = vsel %vm3747_vm0, %v12821_v0, 0.0 }
 0x33d   :  { %6781 = vadd.xlane.f32.xlu0 %v6780_v18 }
 0x33e   :  { %9153 = vpow2.f32 %v7223_v27 }
 0x33f   :  { %9155 = vpow2.f32 %v7134_v28 }
 0x344   :  { %v7310_v57 = vpop.xlane.xlu0 %7309 }
 0x345   :  { %v7311_v44 = vsub.f32 %v12573_v12, %v7310_v57  ;;  %v12823_v57 = vpop.eup %9149 }
 0x346   :  { %v7399_v62 = vpop.xlane.xlu1 %7398  ;;  %13853 = vst [vmem:[#allocation15_spill] sm:$0xff] %v12823_v57  ;;  %v7047_v63 = vsel %vm3747_vm0, %v12823_v57, 0.0  ;;  %v12831_v27 = vpop.eup %9151 }
 0x347   :  { %v7400_v47 = vsub.f32 %v12587_v52, %v7399_v62  ;;  %v7312_v12 = vmul.f32 1.442695, %v7311_v44  ;;  %13854 = vst [vmem:[#allocation16_spill] sm:$0xff] %v12831_v27  ;;  %7048 = vadd.xlane.f32.xlu1 %v7047_v63  ;;  %v13856_v62 = vld [vmem:[#allocation13_spill] sm:$0xff] }
 0x348   :  { %v7488_v16 = vpop.xlane.xlu0 %7487  ;;  %v12833_v44 = vpop.eup %9153 }
 0x349   :  { %v7401_v46 = vmul.f32 1.442695, %v7400_v47  ;;  %v7489_v60 = vsub.f32 %v12585_v48, %v7488_v16  ;;  %13855 = vst [vmem:[#allocation17_spill] sm:$0xff] %v12833_v44  ;;  %v6958_v47 = vsel %vm3747_vm0, %v12831_v27, 0.0  ;;  %v7225_v1 = vsel %vm3747_vm0, %v12833_v44, 0.0  ;;  %v12840_v38 = vpop.eup %9155 }
 0x34a   :  { %v7577_v11 = vpop.xlane.xlu1 %7576  ;;  %13857 = vst [vmem:[#allocation13_spill] sm:$0xff] %v12840_v38  ;;  %6959 = vadd.xlane.f32.xlu0 %v6958_v47 }
 0x34b   :  { %v7578_v8 = vsub.f32 %v12599_v43, %v7577_v11  ;;  %9157 = vpow2.f32 %v7401_v46  ;;  %v7490_v48 = vmul.f32 1.442695, %v7489_v60  ;;  %7226 = vadd.xlane.f32.xlu1 %v7225_v1  ;;  %v13859_v11 = vld [vmem:[#allocation14_spill] sm:$0xff] }
 0x34c   :  { %9159 = vpow2.f32 %v7312_v12 }
 0x34d   :  { %v7579_v21 = vmul.f32 1.442695, %v7578_v8  ;;  %v7136_v8 = vsel %vm3747_vm0, %v12840_v38, 0.0 }
 0x34e   :  { %v7666_v52 = vpop.xlane.xlu0 %7665  ;;  %7137 = vadd.xlane.f32.xlu0 %v7136_v8 }
 0x34f   :  { %v7667_v32 = vsub.f32 %v12597_v41, %v7666_v52  ;;  %9161 = vpow2.f32 %v7579_v21 }
 0x350   :  { %v7755_v45 = vpop.xlane.xlu1 %7754  ;;  %9163 = vpow2.f32 %v7490_v48 }
 0x351   :  { %v7756_v43 = vsub.f32 %v12609_v20, %v7755_v45  ;;  %v7668_v16 = vmul.f32 1.442695, %v7667_v32 }
 0x353   :  { %v7757_v28 = vmul.f32 1.442695, %v7756_v43 }
 0x354   :  { %v7844_v41 = vpop.xlane.xlu1 %7843 }
 0x355   :  { %9165 = vpow2.f32 %v7757_v28  ;;  %v7845_v20 = vsub.f32 %v13856_v62, %v7844_v41  ;;  %v12842_v46 = vpop.eup %9157 }
 0x356   :  { %13858 = vst [vmem:[#allocation18_spill] sm:$0xff] %v12842_v46  ;;  %9167 = vpow2.f32 %v7668_v16  ;;  %v7403_v3 = vsel %vm3747_vm0, %v12842_v46, 0.0  ;;  %v12849_v56 = vpop.eup %9159 }
 0x357   :  { %v7846_v12 = vmul.f32 1.442695, %v7845_v20  ;;  %13860 = vst [vmem:[#allocation14_spill] sm:$0xff] %v12849_v56  ;;  %7404 = vadd.xlane.f32.xlu1 %v7403_v3  ;;  %v7314_v32 = vsel %vm3747_vm0, %v12849_v56, 0.0 }
 0x358   :  { %v7933_v60 = vpop.xlane.xlu1 %7932  ;;  %7315 = vadd.xlane.f32.xlu0 %v7314_v32 }
 0x359   :  { %v7934_v52 = vsub.f32 %v13859_v11, %v7933_v60  ;;  %v12851_v48 = vpop.eup %9161  ;;  %9169 = vpow2.f32 %v7846_v12 }
 0x35a   :  { %13861 = vst [vmem:[#allocation19_spill] sm:$0xff] %v12851_v48  ;;  %v7581_v45 = vsel %vm3747_vm0, %v12851_v48, 0.0  ;;  %v12857_v43 = vpop.eup %9163 }
 0x35b   :  { %v7935_v21 = vmul.f32 1.442695, %v7934_v52  ;;  %13862 = vst [vmem:[#allocation20_spill] sm:$0xff] %v12857_v43  ;;  %7582 = vadd.xlane.f32.xlu1 %v7581_v45  ;;  %v7492_v28 = vsel %vm3747_vm0, %v12857_v43, 0.0 }
 0x35c   :  { %7493 = vadd.xlane.f32.xlu0 %v7492_v28 }
 0x35d   :  { %9171 = vpow2.f32 %v7935_v21 }
 0x35f   :  { %v12859_v18 = vpop.eup %9165 }
 0x360   :  { %13863 = vst [vmem:[#allocation21_spill] sm:$0xff] %v12859_v18  ;;  %v7759_v63 = vsel %vm3747_vm0, %v12859_v18, 0.0  ;;  %v12865_v16 = vpop.eup %9167  ;;  %v3934_v12 = vpop.xlane.xlu0 %3933 }
 0x361   :  { %13864 = vst [vmem:[#allocation22_spill] sm:$0xff] %v12865_v16  ;;  %7760 = vadd.xlane.f32.xlu1 %v7759_v63  ;;  %v7670_v41 = vsel %vm3747_vm0, %v12865_v16, 0.0  ;;  %v3756_v60 = vpop.xlane.xlu1 %3755 }
 0x362   :  { %7671 = vadd.xlane.f32.xlu0 %v7670_v41  ;;  %9173 = vrcp.f32 %v3756_v60 }
 0x363   :  { %v12869_v62 = vpop.eup %9169  ;;  %9175 = vrcp.f32 %v3934_v12 }
 0x364   :  { %13865 = vst [vmem:[#allocation23_spill] sm:$0xff] %v12869_v62  ;;  %v7848_v1 = vsel %vm3747_vm0, %v12869_v62, 0.0 }
 0x365   :  { %v3845_v11 = vpop.xlane.xlu0 %3844  ;;  %v8022_v52 = vpop.xlane.xlu1 %8021 }
 0x366   :  { %7849 = vadd.xlane.f32.xlu0 %v7848_v1  ;;  %9177 = vrcp.f32 %v3845_v11  ;;  %v8023_v8 = vsub.f32 %v12636_v29, %v8022_v52 }
 0x367   :  { %v12871_v20 = vpop.eup %9171 }
 0x368   :  { %13866 = vst [vmem:[#allocation24_spill] sm:$0xff] %v12871_v20  ;;  %v7937_v47 = vsel %vm3747_vm0, %v12871_v20, 0.0  ;;  %v8024_v3 = vmul.f32 1.442695, %v8023_v8 }
 0x369   :  { %7938 = vadd.xlane.f32.xlu1 %v7937_v47  ;;  %v4023_v21 = vpop.xlane.xlu0 %4022  ;;  %v8111_v32 = vpop.xlane.xlu1 %8110 }
 0x36a   :  { %9179 = vpow2.f32 %v8024_v3  ;;  %v8112_v45 = vsub.f32 %v12654_v24, %v8111_v32 }
 0x36b   :  { %9181 = vrcp.f32 %v4023_v21 }
 0x36c   :  { %v9174_v63 = vpop.eup %9173  ;;  %v8113_v28 = vmul.f32 1.442695, %v8112_v45 }
 0x36d   :  { %v3758_v41 = vmul.f32 %v9174_v63, %v3756_v60  ;;  %v4112_v47 = vpop.xlane.xlu0 %4111  ;;  %v9176_v1 = vpop.eup %9175 }
 0x36e   :  { %9183 = vpow2.f32 %v8113_v28  ;;  %v3936_v18 = vmul.f32 %v9176_v1, %v3934_v12  ;;  %v4379_v29 = vpop.xlane.xlu1 %4378 }
 0x36f   :  { %9185 = vrcp.f32 %v4112_v47  ;;  %v3759_v16 = vsub.f32 2.0, %v3758_v41 }
 0x370   :  { %v9178_v20 = vpop.eup %9177  ;;  %v3937_v32 = vsub.f32 2.0, %v3936_v18 }
 0x371   :  { %v3847_v62 = vmul.f32 %v9178_v20, %v3845_v11  ;;  %v4201_v48 = vpop.xlane.xlu0 %4200  ;;  %v3760_v45 = vmul.f32 %v9174_v63, %v3759_v16 }
 0x372   :  { %9187 = vrcp.f32 %v4201_v48  ;;  %v4557_v43 = vpop.xlane.xlu1 %4556  ;;  %v3938_v56 = vmul.f32 %v9176_v1, %v3937_v32 }
 0x373   :  { %v3848_v52 = vsub.f32 2.0, %v3847_v62  ;;  %9189 = vrcp.f32 %v4379_v29 }
 0x374   :  { %v12879_v8 = vpop.eup %9179 }
 0x375   :  { %13867 = vst [vmem:[#allocation25_spill] sm:$0xff] %v12879_v8  ;;  %v3849_v24 = vmul.f32 %v9178_v20, %v3848_v52  ;;  %v9182_v3 = vpop.eup %9181  ;;  %v4290_v60 = vpop.xlane.xlu0 %4289  ;;  %v8026_v28 = vsel %vm3747_vm0, %v12879_v8, 0.0  ;;  %v3761_v20 = vmul.f32 %v12638_v10, %v3760_v45 }
 0x376   :  { %v4025_v46 = vmul.f32 %v9182_v3, %v4023_v21  ;;  %9191 = vrcp.f32 %v4290_v60  ;;  %8027 = vadd.xlane.f32.xlu0 %v8026_v28  ;;  %v4735_v16 = vpop.xlane.xlu1 %4734 }
 0x377   :  { %v3850_v12 = vmul.f32 %v12647_v13, %v3849_v24  ;;  %9193 = vrcp.f32 %v4557_v43 }
 0x378   :  { %v12884_v62 = vpop.eup %9183  ;;  %v4026_v11 = vsub.f32 2.0, %v4025_v46  ;;  %v3939_v46 = vmul.f32 %v12634_v6, %v3938_v56 }
 0x379   :  { %13868 = vst [vmem:[#allocation26_spill] sm:$0xff] %v12884_v62  ;;  %v9186_v41 = vpop.eup %9185  ;;  %v4468_v18 = vpop.xlane.xlu0 %4467  ;;  %v8115_v63 = vsel %vm3747_vm0, %v12884_v62, 0.0  ;;  %v3851_v21 = vadd.f32 %v3850_v12, %v3761_v20 }
 0x37a   :  { %v4114_v52 = vmul.f32 %v9186_v41, %v4112_v47  ;;  %9195 = vrcp.f32 %v4468_v18  ;;  %8116 = vadd.xlane.f32.xlu1 %v8115_v63  ;;  %v4027_v28 = vmul.f32 %v9182_v3, %v4026_v11  ;;  %v4913_v32 = vpop.xlane.xlu1 %4912 }
 0x37b   :  { %9197 = vrcp.f32 %v4735_v16  ;;  %v3940_v38 = vadd.f32 %v3939_v46, %v3851_v21 }
 0x37c   :  { %v9188_v13 = vpop.eup %9187  ;;  %v4115_v24 = vsub.f32 2.0, %v4114_v52  ;;  %v4028_v62 = vmul.f32 %v12657_v7, %v4027_v28 }
 0x37d   :  { %v9190_v8 = vpop.eup %9189  ;;  %v4203_v44 = vmul.f32 %v9188_v13, %v4201_v48  ;;  %v4646_v1 = vpop.xlane.xlu0 %4645 }
 0x37e   :  { %v4116_v10 = vmul.f32 %v9186_v41, %v4115_v24  ;;  %v4381_v45 = vmul.f32 %v9190_v8, %v4379_v29  ;;  %9199 = vrcp.f32 %v4646_v1  ;;  %v5091_v6 = vpop.xlane.xlu1 %5090  ;;  %v4029_v48 = vadd.f32 %v4028_v62, %v3940_v38 }
 0x37f   :  { %v4204_v47 = vsub.f32 2.0, %v4203_v44  ;;  %9201 = vrcp.f32 %v4913_v32 }
 0x380   :  { %v9192_v63 = vpop.eup %9191  ;;  %v4117_v3 = vmul.f32 %v12665_v14, %v4116_v10  ;;  %v4382_v20 = vsub.f32 2.0, %v4381_v45 }
 0x381   :  { %v9194_v12 = vpop.eup %9193  ;;  %v4205_v11 = vmul.f32 %v9188_v13, %v4204_v47  ;;  %v4292_v52 = vmul.f32 %v9192_v63, %v4290_v60  ;;  %v4824_v57 = vpop.xlane.xlu0 %4823 }
 0x382   :  { %v4559_v56 = vmul.f32 %v9194_v12, %v4557_v43  ;;  %9203 = vrcp.f32 %v4824_v57  ;;  %v4118_v28 = vadd.f32 %v4117_v3, %v4029_v48  ;;  %v4383_v24 = vmul.f32 %v9190_v8, %v4382_v20  ;;  %v5269_v13 = vpop.xlane.xlu1 %5268 }
 0x383   :  { %v4206_v29 = vmul.f32 %v12671_v35, %v4205_v11  ;;  %v4293_v41 = vsub.f32 2.0, %v4292_v52  ;;  %9205 = vrcp.f32 %v5091_v6 }
 0x384   :  { %v9196_v21 = vpop.eup %9195  ;;  %v4560_v7 = vsub.f32 2.0, %v4559_v56  ;;  %v4384_v11 = vmul.f32 %v12673_v2, %v4383_v24 }
 0x385   :  { %v9198_v44 = vpop.eup %9197  ;;  %v4294_v46 = vmul.f32 %v9192_v63, %v4293_v41  ;;  %v4470_v27 = vmul.f32 %v9196_v21, %v4468_v18  ;;  %v5002_v14 = vpop.xlane.xlu0 %5001  ;;  %v4207_v60 = vadd.f32 %v4206_v29, %v4118_v28 }
 0x386   :  { %v4737_v10 = vmul.f32 %v9198_v44, %v4735_v16  ;;  %9207 = vrcp.f32 %v5002_v14  ;;  %v4561_v35 = vmul.f32 %v9194_v12, %v4560_v7  ;;  %v5447_v18 = vpop.xlane.xlu1 %5446 }
 0x387   :  { %v4295_v43 = vmul.f32 %v12681_v33, %v4294_v46  ;;  %v4471_v45 = vsub.f32 2.0, %v4470_v27  ;;  %9209 = vrcp.f32 %v5269_v13 }
 0x388   :  { %v9200_v38 = vpop.eup %9199  ;;  %v4738_v62 = vsub.f32 2.0, %v4737_v10  ;;  %v4562_v27 = vmul.f32 %v12683_v25, %v4561_v35 }
 0x389   :  { %v9202_v47 = vpop.eup %9201  ;;  %v4296_v52 = vadd.f32 %v4295_v43, %v4207_v60  ;;  %v4472_v3 = vmul.f32 %v9196_v21, %v4471_v45  ;;  %v4648_v8 = vmul.f32 %v9200_v38, %v4646_v1  ;;  %v5180_v63 = vpop.xlane.xlu0 %5179 }
 0x38a   :  { %v4915_v20 = vmul.f32 %v9202_v47, %v4913_v32  ;;  %9211 = vrcp.f32 %v5180_v63  ;;  %v4739_v29 = vmul.f32 %v9198_v44, %v4738_v62 }
 0x38b   :  { %v4385_v16 = vadd.f32 %v4384_v11, %v4296_v52  ;;  %v4473_v56 = vmul.f32 %v12691_v53, %v4472_v3  ;;  %v4649_v48 = vsub.f32 2.0, %v4648_v8  ;;  %9213 = vrcp.f32 %v5447_v18 }
 0x38c   :  { %v9204_v33 = vpop.eup %9203  ;;  %v4916_v2 = vsub.f32 2.0, %v4915_v20  ;;  %v4740_v53 = vmul.f32 %v12693_v49, %v4739_v29  ;;  %v5625_v62 = vpop.xlane.xlu1 %5624 }
 0x38d   :  { %v9206_v12 = vpop.eup %9205  ;;  %v4474_v41 = vadd.f32 %v4473_v56, %v4385_v16  ;;  %v4650_v7 = vmul.f32 %v9200_v38, %v4649_v48  ;;  %v4826_v28 = vmul.f32 %v9204_v33, %v4824_v57  ;;  %v5358_v21 = vpop.xlane.xlu0 %5357 }
 0x38e   :  { %v5093_v1 = vmul.f32 %v9206_v12, %v5091_v6  ;;  %9215 = vrcp.f32 %v5358_v21  ;;  %v4917_v44 = vmul.f32 %v9202_v47, %v4916_v2 }
 0x38f   :  { %v4563_v24 = vadd.f32 %v4562_v27, %v4474_v41  ;;  %v4651_v32 = vmul.f32 %v12701_v54, %v4650_v7  ;;  %v4827_v46 = vsub.f32 2.0, %v4826_v28 }
 0x390   :  { %v9208_v10 = vpop.eup %9207  ;;  %v5094_v60 = vsub.f32 2.0, %v5093_v1  ;;  %v4918_v49 = vmul.f32 %v12703_v39, %v4917_v44 }
 0x391   :  { %v9210_v43 = vpop.eup %9209  ;;  %v4652_v25 = vadd.f32 %v4651_v32, %v4563_v24  ;;  %v4828_v45 = vmul.f32 %v9204_v33, %v4827_v46  ;;  %v5004_v35 = vmul.f32 %v9208_v10, %v5002_v14  ;;  %v5536_v38 = vpop.xlane.xlu0 %5535 }
 0x392   :  { %v5271_v11 = vmul.f32 %v9210_v43, %v5269_v13  ;;  %9217 = vrcp.f32 %v5536_v38  ;;  %v5095_v54 = vmul.f32 %v9206_v12, %v5094_v60  ;;  %v5803_v28 = vpop.xlane.xlu1 %5802 }
 0x393   :  { %v4741_v57 = vadd.f32 %v4740_v53, %v4652_v25  ;;  %v4829_v6 = vmul.f32 %v12711_v5, %v4828_v45  ;;  %v5005_v52 = vsub.f32 2.0, %v5004_v35  ;;  %9219 = vrcp.f32 %v5625_v62 }
 0x394   :  { %v9212_v3 = vpop.eup %9211  ;;  %v5272_v8 = vsub.f32 2.0, %v5271_v11  ;;  %v5096_v5 = vmul.f32 %v12713_v51, %v5095_v54 }
 0x395   :  { %v4830_v20 = vadd.f32 %v4829_v6, %v4741_v57  ;;  %v5006_v16 = vmul.f32 %v9208_v10, %v5005_v52  ;;  %v5182_v56 = vmul.f32 %v9212_v3, %v5180_v63  ;;  %v5714_v47 = vpop.xlane.xlu0 %5713  ;;  %v9214_v48 = vpop.eup %9213 }
 0x396   :  { %9221 = vrcp.f32 %v5714_v47  ;;  %v5273_v29 = vmul.f32 %v9210_v43, %v5272_v8  ;;  %v5449_v7 = vmul.f32 %v9214_v48, %v5447_v18 }
 0x397   :  { %v4919_v14 = vadd.f32 %v4918_v49, %v4830_v20  ;;  %v5007_v13 = vmul.f32 %v12721_v40, %v5006_v16  ;;  %v5183_v33 = vsub.f32 2.0, %v5182_v56  ;;  %9223 = vrcp.f32 %v5803_v28 }
 0x398   :  { %v9216_v27 = vpop.eup %9215  ;;  %v5274_v46 = vmul.f32 %v12723_v34, %v5273_v29  ;;  %v5450_v10 = vsub.f32 2.0, %v5449_v7 }
 0x399   :  { %v5008_v41 = vadd.f32 %v5007_v13, %v4919_v14  ;;  %v5184_v12 = vmul.f32 %v9212_v3, %v5183_v33  ;;  %v5360_v2 = vmul.f32 %v9216_v27, %v5358_v21 }
 0x39a   :  { %v5451_v44 = vmul.f32 %v9214_v48, %v5450_v10 }
 0x39b   :  { %v5097_v39 = vadd.f32 %v5096_v5, %v5008_v41  ;;  %v5185_v1 = vmul.f32 %v12731_v58, %v5184_v12  ;;  %v5361_v63 = vsub.f32 2.0, %v5360_v2 }
 0x39c   :  { %v9218_v32 = vpop.eup %9217  ;;  %v5452_v34 = vmul.f32 %v12733_v61, %v5451_v44 }
 0x39d   :  { %v5186_v40 = vadd.f32 %v5185_v1, %v5097_v39  ;;  %v5362_v53 = vmul.f32 %v9216_v27, %v5361_v63  ;;  %v5538_v60 = vmul.f32 %v9218_v32, %v5536_v38  ;;  %v9220_v51 = vpop.eup %9219 }
 0x39e   :  { %v5627_v45 = vmul.f32 %v9220_v51, %v5625_v62  ;;  %v5981_v58 = vpop.xlane.xlu1 %5980 }
 0x39f   :  { %v5892_v24 = vpop.xlane.xlu0 %5891  ;;  %v5275_v43 = vadd.f32 %v5274_v46, %v5186_v40  ;;  %v5363_v18 = vmul.f32 %v12741_v55, %v5362_v53  ;;  %v5539_v21 = vsub.f32 2.0, %v5538_v60 }
 0x3a0   :  { %9225 = vrcp.f32 %v5892_v24  ;;  %v9222_v25 = vpop.eup %9221  ;;  %v5628_v52 = vsub.f32 2.0, %v5627_v45 }
 0x3a1   :  { %v5364_v35 = vadd.f32 %v5363_v18, %v5275_v43  ;;  %v5540_v11 = vmul.f32 %v9218_v32, %v5539_v21  ;;  %v5716_v57 = vmul.f32 %v9222_v25, %v5714_v47  ;;  %9227 = vrcp.f32 %v5981_v58  ;;  %v9224_v3 = vpop.eup %9223 }
 0x3a2   :  { %v5629_v49 = vmul.f32 %v9220_v51, %v5628_v52  ;;  %v5805_v20 = vmul.f32 %v9224_v3, %v5803_v28 }
 0x3a3   :  { %v5453_v38 = vadd.f32 %v5452_v34, %v5364_v35  ;;  %v5541_v54 = vmul.f32 %v12751_v59, %v5540_v11  ;;  %v5717_v8 = vsub.f32 2.0, %v5716_v57  ;;  %v6159_v16 = vpop.xlane.xlu1 %6158 }
 0x3a4   :  { %v5630_v47 = vmul.f32 %v12743_v15, %v5629_v49  ;;  %v5806_v13 = vsub.f32 2.0, %v5805_v20 }
 0x3a5   :  { %v6070_v6 = vpop.xlane.xlu0 %6069  ;;  %v5542_v62 = vadd.f32 %v5541_v54, %v5453_v38  ;;  %v5718_v56 = vmul.f32 %v9222_v25, %v5717_v8 }
 0x3a6   :  { %9229 = vrcp.f32 %v6070_v6  ;;  %v5807_v29 = vmul.f32 %v9224_v3, %v5806_v13 }
 0x3a7   :  { %9231 = vrcp.f32 %v6159_v16  ;;  %v5631_v33 = vadd.f32 %v5630_v47, %v5542_v62  ;;  %v5719_v27 = vmul.f32 %v12761_v36, %v5718_v56 }
 0x3a8   :  { %v5808_v1 = vmul.f32 %v12753_v9, %v5807_v29 }
 0x3a9   :  { %v5720_v7 = vadd.f32 %v5719_v27, %v5631_v33 }
 0x3aa   :  { %v9226_v55 = vpop.eup %9225 }
 0x3ab   :  { %v5894_v48 = vmul.f32 %v9226_v55, %v5892_v24  ;;  %v9228_v61 = vpop.eup %9227  ;;  %v5809_v24 = vadd.f32 %v5808_v1, %v5720_v7 }
 0x3ac   :  { %v5983_v41 = vmul.f32 %v9228_v61, %v5981_v58 }
 0x3ad   :  { %v5895_v5 = vsub.f32 2.0, %v5894_v48 }
 0x3ae   :  { %v5984_v63 = vsub.f32 2.0, %v5983_v41 }
 0x3af   :  { %v5896_v2 = vmul.f32 %v9226_v55, %v5895_v5 }
 0x3b0   :  { %v9230_v59 = vpop.eup %9229  ;;  %v6337_v12 = vpop.xlane.xlu1 %6336  ;;  %v5985_v40 = vmul.f32 %v9228_v61, %v5984_v63 }
 0x3b1   :  { %v6248_v14 = vpop.xlane.xlu0 %6247  ;;  %v6072_v28 = vmul.f32 %v9230_v59, %v6070_v6  ;;  %v9232_v15 = vpop.eup %9231  ;;  %v5897_v32 = vmul.f32 %v12771_v19, %v5896_v2 }
 0x3b2   :  { %9233 = vrcp.f32 %v6248_v14  ;;  %v6161_v10 = vmul.f32 %v9232_v15, %v6159_v16  ;;  %v5986_v21 = vmul.f32 %v12763_v30, %v5985_v40 }
 0x3b3   :  { %9235 = vrcp.f32 %v6337_v12  ;;  %v6073_v46 = vsub.f32 2.0, %v6072_v28  ;;  %v5898_v60 = vadd.f32 %v5897_v32, %v5809_v24 }
 0x3b4   :  { %v6162_v25 = vsub.f32 2.0, %v6161_v10 }
 0x3b5   :  { %v6515_v53 = vpop.xlane.xlu1 %6514  ;;  %v6074_v51 = vmul.f32 %v9230_v59, %v6073_v46  ;;  %v5987_v44 = vadd.f32 %v5986_v21, %v5898_v60 }
 0x3b6   :  { %v6163_v35 = vmul.f32 %v9232_v15, %v6162_v25 }
 0x3b7   :  { %v6426_v39 = vpop.xlane.xlu0 %6425  ;;  %v6075_v45 = vmul.f32 %v12781_v26, %v6074_v51 }
 0x3b8   :  { %9237 = vrcp.f32 %v6426_v39  ;;  %v6164_v38 = vmul.f32 %v12773_v22, %v6163_v35 }
 0x3b9   :  { %9239 = vrcp.f32 %v6515_v53  ;;  %v6076_v6 = vadd.f32 %v6075_v45, %v5987_v44 }
 0x3bb   :  { %v6165_v8 = vadd.f32 %v6164_v38, %v6076_v6 }
 0x3bc   :  { %v9234_v36 = vpop.eup %9233 }
 0x3bd   :  { %v6250_v43 = vmul.f32 %v9234_v36, %v6248_v14  ;;  %v9236_v9 = vpop.eup %9235 }
 0x3be   :  { %v6339_v11 = vmul.f32 %v9236_v9, %v6337_v12 }
 0x3bf   :  { %v6251_v58 = vsub.f32 2.0, %v6250_v43 }
 0x3c0   :  { %v6340_v54 = vsub.f32 2.0, %v6339_v11 }
 0x3c1   :  { %v6252_v34 = vmul.f32 %v9234_v36, %v6251_v58 }
 0x3c2   :  { %v9238_v19 = vpop.eup %9237  ;;  %v6341_v20 = vmul.f32 %v9236_v9, %v6340_v54 }
 0x3c3   :  { %v6693_v57 = vpop.xlane.xlu1 %6692  ;;  %v6428_v52 = vmul.f32 %v9238_v19, %v6426_v39  ;;  %v9240_v30 = vpop.eup %9239  ;;  %v6253_v55 = vmul.f32 %v12791_v42, %v6252_v34 }
 0x3c4   :  { %v6604_v18 = vpop.xlane.xlu0 %6603  ;;  %v6517_v16 = vmul.f32 %v9240_v30, %v6515_v53  ;;  %v6342_v13 = vmul.f32 %v12783_v31, %v6341_v20 }
 0x3c5   :  { %9241 = vrcp.f32 %v6604_v18  ;;  %v6429_v49 = vsub.f32 2.0, %v6428_v52  ;;  %v6254_v56 = vadd.f32 %v6253_v55, %v6165_v8  ;;  %v13869_v52 = vld [vmem:[#allocation16_spill] sm:$0xff] }
 0x3c6   :  { %9243 = vrcp.f32 %v6693_v57  ;;  %v6518_v61 = vsub.f32 2.0, %v6517_v16  ;;  %v13870_v16 = vld [vmem:[#allocation15_spill] sm:$0xff] }
 0x3c7   :  { %v6430_v48 = vmul.f32 %v9238_v19, %v6429_v49  ;;  %v6343_v33 = vadd.f32 %v6342_v13, %v6254_v56 }
 0x3c8   :  { %v6871_v62 = vpop.xlane.xlu1 %6870  ;;  %v6519_v59 = vmul.f32 %v9240_v30, %v6518_v61 }
 0x3c9   :  { %v6431_v27 = vmul.f32 %v12801_v17, %v6430_v48 }
 0x3ca   :  { %v6782_v3 = vpop.xlane.xlu0 %6781  ;;  %v6520_v39 = vmul.f32 %v12793_v37, %v6519_v59 }
 0x3cb   :  { %9245 = vrcp.f32 %v6782_v3  ;;  %v6432_v12 = vadd.f32 %v6431_v27, %v6343_v33 }
 0x3cc   :  { %9247 = vrcp.f32 %v6871_v62 }
 0x3cd   :  { %v6521_v63 = vadd.f32 %v6520_v39, %v6432_v12  ;;  %v13873_v39 = vld [vmem:[#allocation14_spill] sm:$0xff] }
 0x3cf   :  { %v9242_v26 = vpop.eup %9241 }
 0x3d0   :  { %v6606_v14 = vmul.f32 %v9242_v26, %v6604_v18  ;;  %v9244_v22 = vpop.eup %9243 }
 0x3d1   :  { %v6695_v29 = vmul.f32 %v9244_v22, %v6693_v57 }
 0x3d2   :  { %v6607_v5 = vsub.f32 2.0, %v6606_v14  ;;  %v13871_v14 = vld [vmem:[#allocation13_spill] sm:$0xff] }
 0x3d3   :  { %v6696_v1 = vsub.f32 2.0, %v6695_v29 }
 0x3d4   :  { %v7049_v41 = vpop.xlane.xlu1 %7048  ;;  %v6608_v7 = vmul.f32 %v9242_v26, %v6607_v5 }
 0x3d5   :  { %v9246_v42 = vpop.eup %9245  ;;  %v6697_v32 = vmul.f32 %v9244_v22, %v6696_v1 }
 0x3d6   :  { %v6784_v2 = vmul.f32 %v9246_v42, %v6782_v3  ;;  %v9248_v31 = vpop.eup %9247  ;;  %v6609_v15 = vmul.f32 %v12811_v4, %v6608_v7 }
 0x3d7   :  { %v6960_v47 = vpop.xlane.xlu0 %6959  ;;  %v6873_v46 = vmul.f32 %v9248_v31, %v6871_v62  ;;  %v6698_v51 = vmul.f32 %v12803_v50, %v6697_v32 }
 0x3d8   :  { %9249 = vrcp.f32 %v6960_v47  ;;  %v6785_v24 = vsub.f32 2.0, %v6784_v2  ;;  %v7227_v36 = vpop.xlane.xlu1 %7226  ;;  %v6610_v40 = vadd.f32 %v6609_v15, %v6521_v63 }
 0x3d9   :  { %9251 = vrcp.f32 %v7049_v41  ;;  %v6874_v43 = vsub.f32 2.0, %v6873_v46 }
 0x3da   :  { %v6786_v10 = vmul.f32 %v9246_v42, %v6785_v24  ;;  %v6699_v18 = vadd.f32 %v6698_v51, %v6610_v40  ;;  %v13874_v40 = vld [vmem:[#allocation18_spill] sm:$0xff] }
 0x3db   :  { %v7138_v28 = vpop.xlane.xlu0 %7137  ;;  %v6875_v9 = vmul.f32 %v9248_v31, %v6874_v43  ;;  %v13875_v43 = vld [vmem:[#allocation20_spill] sm:$0xff] }
 0x3dc   :  { %9253 = vrcp.f32 %v7138_v28  ;;  %v6787_v21 = vmul.f32 %v12821_v0, %v6786_v10 }
 0x3dd   :  { %9255 = vrcp.f32 %v7227_v36  ;;  %v6876_v57 = vmul.f32 %v12813_v23, %v6875_v9 }
 0x3de   :  { %v6788_v58 = vadd.f32 %v6787_v21, %v6699_v18 }
 0x3e0   :  { %v6877_v34 = vadd.f32 %v6876_v57, %v6788_v58 }
 0x3e2   :  { %v9250_v17 = vpop.eup %9249 }
 0x3e3   :  { %v6962_v53 = vmul.f32 %v9250_v17, %v6960_v47  ;;  %v9252_v37 = vpop.eup %9251 }
 0x3e4   :  { %v7051_v44 = vmul.f32 %v9252_v37, %v7049_v41  ;;  %v7405_v45 = vpop.xlane.xlu1 %7404  ;;  %v13872_v41 = vld [vmem:[#allocation17_spill] sm:$0xff] }
 0x3e5   :  { %v7316_v60 = vpop.xlane.xlu0 %7315  ;;  %v6963_v25 = vsub.f32 2.0, %v6962_v53 }
 0x3e6   :  { %9257 = vrcp.f32 %v7316_v60  ;;  %v9254_v4 = vpop.eup %9253  ;;  %v7052_v6 = vsub.f32 2.0, %v7051_v44 }
 0x3e7   :  { %v6964_v19 = vmul.f32 %v9250_v17, %v6963_v25  ;;  %v7140_v35 = vmul.f32 %v9254_v4, %v7138_v28  ;;  %9259 = vrcp.f32 %v7405_v45  ;;  %v9256_v50 = vpop.eup %9255 }
 0x3e8   :  { %v7053_v54 = vmul.f32 %v9252_v37, %v7052_v6  ;;  %v7229_v30 = vmul.f32 %v9256_v50, %v7227_v36  ;;  %v7583_v8 = vpop.xlane.xlu1 %7582 }
 0x3e9   :  { %v7494_v11 = vpop.xlane.xlu0 %7493  ;;  %v6965_v3 = vmul.f32 %v13869_v52, %v6964_v19  ;;  %v7141_v38 = vsub.f32 2.0, %v7140_v35  ;;  %v13876_v19 = vld [vmem:[#allocation19_spill] sm:$0xff] }
 0x3ea   :  { %9261 = vrcp.f32 %v7494_v11  ;;  %v7054_v62 = vmul.f32 %v13870_v16, %v7053_v54  ;;  %v7230_v56 = vsub.f32 2.0, %v7229_v30  ;;  %v13879_v16 = vld [vmem:[#allocation23_spill] sm:$0xff] }
 0x3eb   :  { %v6966_v55 = vadd.f32 %v6965_v3, %v6877_v34  ;;  %v7142_v49 = vmul.f32 %v9254_v4, %v7141_v38  ;;  %9263 = vrcp.f32 %v7583_v8 }
 0x3ec   :  { %v7231_v22 = vmul.f32 %v9256_v50, %v7230_v56  ;;  %v13877_v50 = vld [vmem:[#allocation22_spill] sm:$0xff] }
 0x3ed   :  { %v7055_v48 = vadd.f32 %v7054_v62, %v6966_v55  ;;  %v7143_v47 = vmul.f32 %v13871_v14, %v7142_v49 }
 0x3ee   :  { %v7761_v27 = vpop.xlane.xlu1 %7760  ;;  %v7232_v12 = vmul.f32 %v13872_v41, %v7231_v22  ;;  %v13880_v22 = vld [vmem:[#allocation24_spill] sm:$0xff] }
 0x3ef   :  { %v7672_v20 = vpop.xlane.xlu0 %7671  ;;  %v7144_v5 = vadd.f32 %v7143_v47, %v7055_v48 }
 0x3f0   :  { %v9258_v0 = vpop.eup %9257  ;;  %9265 = vrcp.f32 %v7672_v20 }
 0x3f1   :  { %v7318_v26 = vmul.f32 %v9258_v0, %v7316_v60  ;;  %v9260_v23 = vpop.eup %9259  ;;  %9267 = vrcp.f32 %v7761_v27  ;;  %v7233_v28 = vadd.f32 %v7232_v12, %v7144_v5  ;;  %v13882_v12 = vld [vmem:[#allocation26_spill] sm:$0xff] }
 0x3f2   :  { %v7407_v33 = vmul.f32 %v9260_v23, %v7405_v45 }
 0x3f3   :  { %v7319_v13 = vsub.f32 2.0, %v7318_v26  ;;  %v7850_v29 = vpop.xlane.xlu0 %7849 }
 0x3f4   :  { %v9262_v61 = vpop.eup %9261  ;;  %v7408_v7 = vsub.f32 2.0, %v7407_v33  ;;  %9269 = vrcp.f32 %v7850_v29 }
 0x3f5   :  { %v7320_v42 = vmul.f32 %v9258_v0, %v7319_v13  ;;  %v7496_v59 = vmul.f32 %v9262_v61, %v7494_v11  ;;  %v9264_v2 = vpop.eup %9263 }
 0x3f6   :  { %v7409_v15 = vmul.f32 %v9260_v23, %v7408_v7  ;;  %v7585_v24 = vmul.f32 %v9264_v2, %v7583_v8  ;;  %v7939_v17 = vpop.xlane.xlu1 %7938  ;;  %v13878_v8 = vld [vmem:[#allocation21_spill] sm:$0xff] }
 0x3f7   :  { %v7321_v1 = vmul.f32 %v13873_v39, %v7320_v42  ;;  %v7497_v31 = vsub.f32 2.0, %v7496_v59  ;;  %9271 = vrcp.f32 %v7939_v17 }
 0x3f8   :  { %v7410_v10 = vmul.f32 %v13874_v40, %v7409_v15  ;;  %v7586_v53 = vsub.f32 2.0, %v7585_v24 }
 0x3f9   :  { %v7322_v32 = vadd.f32 %v7321_v1, %v7233_v28  ;;  %v7498_v46 = vmul.f32 %v9262_v61, %v7497_v31 }
 0x3fa   :  { %v9266_v63 = vpop.eup %9265  ;;  %v7587_v25 = vmul.f32 %v9264_v2, %v7586_v53 }
 0x3fb   :  { %v7674_v36 = vmul.f32 %v9266_v63, %v7672_v20  ;;  %v9268_v60 = vpop.eup %9267  ;;  %v7411_v51 = vadd.f32 %v7410_v10, %v7322_v32  ;;  %v7499_v37 = vmul.f32 %v13875_v43, %v7498_v46 }
 0x3fc   :  { %v7763_v4 = vmul.f32 %v9268_v60, %v7761_v27  ;;  %v7588_v35 = vmul.f32 %v13876_v19, %v7587_v25  ;;  %v13881_v27 = vld [vmem:[#allocation25_spill] sm:$0xff] }
 0x3fd   :  { %v7675_v18 = vsub.f32 2.0, %v7674_v36  ;;  %v7500_v9 = vadd.f32 %v7499_v37, %v7411_v51 }
 0x3fe   :  { %v9270_v21 = vpop.eup %9269  ;;  %v7764_v11 = vsub.f32 2.0, %v7763_v4 }
 0x3ff   :  { %v7676_v44 = vmul.f32 %v9266_v63, %v7675_v18  ;;  %v7852_v45 = vmul.f32 %v9270_v21, %v7850_v29  ;;  %v7589_v6 = vadd.f32 %v7588_v35, %v7500_v9 }
 0x400   :  { %v7765_v38 = vmul.f32 %v9268_v60, %v7764_v11 }
 0x401   :  { %v9272_v57 = vpop.eup %9271  ;;  %v7677_v34 = vmul.f32 %v13877_v50, %v7676_v44  ;;  %v7853_v52 = vsub.f32 2.0, %v7852_v45 }
 0x402   :  { %v7941_v0 = vmul.f32 %v9272_v57, %v7939_v17  ;;  %v7766_v55 = vmul.f32 %v13878_v8, %v7765_v38 }
 0x403   :  { %v8028_v58 = vpop.xlane.xlu0 %8027  ;;  %v7678_v54 = vadd.f32 %v7677_v34, %v7589_v6  ;;  %v7854_v30 = vmul.f32 %v9270_v21, %v7853_v52 }
 0x404   :  { %9273 = vrcp.f32 %v8028_v58  ;;  %v7942_v49 = vsub.f32 2.0, %v7941_v0 }
 0x405   :  { %v7767_v20 = vadd.f32 %v7766_v55, %v7678_v54  ;;  %v7855_v62 = vmul.f32 %v13879_v16, %v7854_v30 }
 0x406   :  { %v7943_v23 = vmul.f32 %v9272_v57, %v7942_v49 }
 0x407   :  { %v8117_v3 = vpop.xlane.xlu1 %8116  ;;  %v7856_v47 = vadd.f32 %v7855_v62, %v7767_v20 }
 0x408   :  { %9275 = vrcp.f32 %v8117_v3  ;;  %v7944_v33 = vmul.f32 %v13880_v22, %v7943_v23 }
 0x40a   :  { %v7945_v59 = vadd.f32 %v7944_v33, %v7856_v47 }
 0x40e   :  { %v9274_v26 = vpop.eup %9273 }
 0x40f   :  { %v8030_v56 = vmul.f32 %v9274_v26, %v8028_v58 }
 0x411   :  { %v8031_v48 = vsub.f32 2.0, %v8030_v56 }
 0x412   :  { %v9276_v14 = vpop.eup %9275 }
 0x413   :  { %v8032_v13 = vmul.f32 %v9274_v26, %v8031_v48  ;;  %v8119_v61 = vmul.f32 %v9276_v14, %v8117_v3 }
 0x415   :  { %v8033_v5 = vmul.f32 %v13881_v27, %v8032_v13  ;;  %v8120_v42 = vsub.f32 2.0, %v8119_v61 }
 0x417   :  { %v8121_v29 = vmul.f32 %v9276_v14, %v8120_v42  ;;  %v8034_v41 = vadd.f32 %v8033_v5, %v7945_v59 }
 0x419   :  { %v8122_v7 = vmul.f32 %v13882_v12, %v8121_v29 }
 0x41b   :  { %v8123_v2 = vadd.f32 %v8122_v7, %v8034_v41 }
 0x41d   :  { %v8124_v28 = vmul.f32 0.02, %v8123_v2 }
 0x41f   :  { %8125 = vst.msk [vmem:[#allocation9] sm:$0x3] %vm3747_vm0, %v8124_v28 }
 0x420   :  { %9334 = shalt.err (!%p9331_p6)
}
 0x421   :  { %s9335_s25 = scalar_lea.hbm %s12963_s13, 32 }
 0x422   :  { %p9336_p7 = scmp.ne.s32.totalorder %s12963_s13, %s9335_s25  ;;  %p9339_p8 = scmp.lt.u32.totalorder %s9335_s25, %s12963_s13 }
 0x424   :  { %p9341_p9 = pnand %p9339_p8, %p9336_p7 }
 0x426   :  { %9344 = shalt.err (!%p9341_p9)
}
 0x427   :  { %8135 = dma.vmem_to_hbm [thread:$0]  %s8133_s22, 32, %s12963_s13, [#allocation6]  }
 0x428   :  { %9349 = dma.done.wait [#allocation6], 32  }
 0x429   :  { %9350 = vsyncadd [#allocation6], 4294967264 }
 0x42a   :  { %8139 = vsyncpa [#allocation5], 1 }
 0x42b   :  { %8140 = vsyncpa [#allocation8], 1 }
 0x42c   :  { %8141 = vsyncpa [#allocation6], 1 }

</bundles_post_ra>
